<compile_context>
chip_gen: v6e
topology: v6e:2x2x1
jax: 0.10.0
libtpu: 0.0.40
codegen_flags: <defaults>
</compile_context>

<pallas_src>
from functools import partial

import jax
import jax.numpy as jnp
import numpy as np
from jax.experimental import pallas as pl
from jax.experimental.pallas import tpu as pltpu

H = 14
W = 14
KH = KW = 3
C_IN = 384
C_OUT = 96
C_OUT_PAD = 128       # pad pointwise output channels to a full lane tile
LANE = 128
HP = H + 2            # padded height  = 16
WP = W + 2            # padded width   = 16 (multiple of 8 -> aligned rows)
NPIX = HP * WP        # 256 flattened padded pixels per image
HW_PAD = H * WP       # 224 staged output rows per image (w in [0,16), valid w<14)
EPS = 1e-5


def block_kernel(b_blk, xp_ref, dw_ref, b1_ref, pw_ref, b2_ref, out_ref, y_ref):
    """One grid step = `b_blk` batch elements.

    xp_ref : (b_blk*256, 384)   spatially padded input, flattened (ph*16+pw, c)
    dw_ref : (3, 3, 384)        depthwise taps, pre-scaled by BN1 scale
    b1_ref : (1, 384)           BN1 shift
    pw_ref : (384, 128) bf16    1x1 weights, pre-scaled by BN2 scale, 0-padded 96->128
    b2_ref : (1, 128)           BN2 shift, 0-padded
    out_ref: (b_blk*224, 128)   lane-dense output (row = h*16+w; cols 0..95 valid)
    y_ref  : (b_blk*224, 384)   bf16 VMEM scratch: depthwise + BN1 + ReLU6 result
    """
    # ---- depthwise 3x3 (stride 1, pad 1) + BN1 shift + ReLU6, staged to VMEM ----
    for b in range(b_blk):                       # static unroll over the batch block
        for c0 in range(0, C_IN, LANE):          # 3 channel chunks of 128 lanes
            cs = pl.ds(c0, LANE)
            acc = jnp.zeros((HW_PAD, LANE), jnp.float32)
            for kh in range(KH):
                # rows [kh*16, kh*16 + 224) of this image: sublane-aligned slice
                slab = xp_ref[pl.ds(b * NPIX + kh * WP, HW_PAD), cs]   # (224, 128)
                for kw in range(KW):
                    # The kw shift along W == roll of the flattened rows by -kw
                    # (XLU sublane rotate, no unaligned repack).  Wrapped rows
                    # only pollute w in {14,15}, which are discarded later.
                    tap = slab if kw == 0 else pltpu.roll(slab, HW_PAD - kw, axis=0)
                    acc = acc + tap * dw_ref[kh, kw, cs]               # per-channel weight
            y = jnp.clip(acc + b1_ref[0, cs], 0.0, 6.0)                # BN1 shift + ReLU6
            y_ref[pl.ds(b * HW_PAD, HW_PAD), cs] = y.astype(jnp.bfloat16)

    # ---- pointwise 1x1 conv + BN2: one fused lane-dense bf16 MXU matmul ----
    z = jnp.dot(y_ref[...], pw_ref[...], preferred_element_type=jnp.float32)
    out_ref[...] = z + b2_ref[...]


def mobilenet_block(x_nchw, dw_w, bn1, pw_w, bn2, eps=EPS, b_blk=None):
    """x_nchw: (N, 384, 14, 14) float32 -> (N, 96, 14, 14) float32."""
    n = x_nchw.shape[0]
    if b_blk is None:
        # amortize per-step overhead while keeping >=2 grid steps when possible
        b_blk = 8 if n >= 16 else 4 if n >= 8 else 2 if n >= 4 else 1
    n_blocks = pl.cdiv(n, b_blk)
    n_pad = n_blocks * b_blk

    # ---- fold BN into scale/shift; fold the scales into the conv weights ----
    g1, be1, m1, v1 = bn1
    s1 = g1 / jnp.sqrt(v1 + eps)
    b1 = be1 - m1 * s1
    g2, be2, m2, v2 = bn2
    s2 = g2 / jnp.sqrt(v2 + eps)
    b2 = be2 - m2 * s2

    dw = (dw_w * s1[None, None, :]).astype(jnp.float32)                   # (3,3,384)
    pw = (pw_w * s2[None, :]).astype(jnp.float32)                          # (384,96)
    pw = jnp.pad(pw, ((0, 0), (0, C_OUT_PAD - C_OUT))).astype(jnp.bfloat16)  # (384,128)
    b1 = b1.reshape(1, C_IN).astype(jnp.float32)
    b2 = jnp.pad(b2, (0, C_OUT_PAD - C_OUT)).reshape(1, C_OUT_PAD).astype(jnp.float32)

    # ---- NCHW -> NHWC, pad H/W by 1, pad batch, flatten spatial to sublanes ----
    x = jnp.transpose(x_nchw, (0, 2, 3, 1)).astype(jnp.float32)           # (n,14,14,384)
    xp = jnp.pad(x, ((0, n_pad - n), (1, 1), (1, 1), (0, 0)))             # (n_pad,16,16,384)
    xp = xp.reshape(n_pad * NPIX, C_IN)                                   # (n_pad*256,384)

    m_rows = b_blk * HW_PAD
    out = pl.pallas_call(
        partial(block_kernel, b_blk),
        out_shape=jax.ShapeDtypeStruct((n_pad * HW_PAD, C_OUT_PAD), jnp.float32),
        grid=(n_blocks,),
        in_specs=[
            pl.BlockSpec((b_blk * NPIX, C_IN), lambda i: (i, 0)),
            pl.BlockSpec((KH, KW, C_IN), lambda i: (0, 0, 0)),
            pl.BlockSpec((1, C_IN), lambda i: (0, 0)),
            pl.BlockSpec((C_IN, C_OUT_PAD), lambda i: (0, 0)),
            pl.BlockSpec((1, C_OUT_PAD), lambda i: (0, 0)),
        ],
        out_specs=pl.BlockSpec((m_rows, C_OUT_PAD), lambda i: (i, 0)),
        scratch_shapes=[pltpu.VMEM((m_rows, C_IN), jnp.bfloat16)],
        compiler_params=pltpu.CompilerParams(
            dimension_semantics=("parallel",)),
    )(xp, dw, b1, pw, b2)

    # (n_pad*224, 128) -> (n, 14, 14, 96) -> NCHW
    out = out.reshape(n_pad, H, WP, C_OUT_PAD)[:n, :, :W, :C_OUT]
    return jnp.transpose(out, (0, 3, 1, 2))


def reference(x_nchw, dw_w, pw_w, bn1, bn2, eps=EPS):
    """Pure-JAX reference (lax convs) for correctness checking."""
    dw = jnp.transpose(dw_w, (2, 0, 1))[:, None, :, :]         # (C_IN, 1, 3, 3) OIHW
    y = jax.lax.conv_general_dilated(
        x_nchw, dw, window_strides=(1, 1), padding=((1, 1), (1, 1)),
        feature_group_count=C_IN, dimension_numbers=("NCHW", "OIHW", "NCHW"),
        precision=jax.lax.Precision.HIGHEST)
    g1, be1, m1, v1 = bn1
    y = (y - m1[None, :, None, None]) / jnp.sqrt(v1 + eps)[None, :, None, None]
    y = y * g1[None, :, None, None] + be1[None, :, None, None]
    y = jnp.clip(y, 0.0, 6.0)
    pw = jnp.transpose(pw_w, (1, 0))[:, :, None, None]          # (C_OUT, C_IN, 1, 1)
    z = jax.lax.conv_general_dilated(
        y, pw, window_strides=(1, 1), padding=((0, 0), (0, 0)),
        dimension_numbers=("NCHW", "OIHW", "NCHW"),
        precision=jax.lax.Precision.HIGHEST)
    g2, be2, m2, v2 = bn2
    z = (z - m2[None, :, None, None]) / jnp.sqrt(v2 + eps)[None, :, None, None]
    z = z * g2[None, :, None, None] + be2[None, :, None, None]
    return z


if __name__ == "__main__":
    key = jax.random.PRNGKey(0)
    ks = jax.random.split(key, 11)

    N = 4  # small batch: exercises batch-blocking (B_BLK=2) and a 2-step grid
    # module input per element: (384, 14, 14), NCHW
    x = jax.random.normal(ks[0], (N, C_IN, H, W), jnp.float32)

    # deterministic parameter init (shapes from the module's __init__)
    dw_w = jax.random.normal(ks[1], (KH, KW, C_IN), jnp.float32) * 0.1   # conv2d31 (depthwise)
    pw_w = jax.random.normal(ks[2], (C_IN, C_OUT), jnp.float32) * 0.05   # conv2d32 (1x1)

    g1 = jax.random.uniform(ks[3], (C_IN,), minval=0.5, maxval=1.5)
    be1 = jax.random.normal(ks[4], (C_IN,)) * 0.1
    m1 = jax.random.normal(ks[5], (C_IN,)) * 0.1
    v1 = jax.random.uniform(ks[6], (C_IN,), minval=0.5, maxval=1.5)

    g2 = jax.random.uniform(ks[7], (C_OUT,), minval=0.5, maxval=1.5)
    be2 = jax.random.normal(ks[8], (C_OUT,)) * 0.1
    m2 = jax.random.normal(ks[9], (C_OUT,)) * 0.1
    v2 = jax.random.uniform(ks[10], (C_OUT,), minval=0.5, maxval=1.5)

    bn1 = (g1, be1, m1, v1)
    bn2 = (g2, be2, m2, v2)

    out = mobilenet_block(x, dw_w, bn1, pw_w, bn2)
    out = jax.block_until_ready(out)
    assert out.shape == (N, C_OUT, H, W)

    ref = jax.block_until_ready(reference(x, dw_w, pw_w, bn1, bn2))
    np.testing.assert_allclose(np.asarray(out), np.asarray(ref), rtol=2e-2, atol=2e-2)

    print("KERNEL_OK")
</pallas_src>

<mosaic_0001>
module attributes {stable_mosaic.version = 11 : i64} {
  func.func @block_kernel(%arg0: i32, %arg1: memref<512x384xf32, #tpu.memory_space<vmem>>, %arg2: memref<3x3x384xf32, #tpu.memory_space<vmem>>, %arg3: memref<1x384xf32, #tpu.memory_space<vmem>>, %arg4: memref<384x128xbf16, #tpu.memory_space<vmem>>, %arg5: memref<1x128xf32, #tpu.memory_space<vmem>>, %arg6: memref<448x128xf32, #tpu.memory_space<vmem>>, %arg7: memref<448x384xbf16, #tpu.memory_space<vmem>>) attributes {dimension_semantics = [#tpu.dimension_semantics<parallel>], iteration_bounds = array<i64: 2>, scalar_prefetch = 0 : i64, scratch_operands = 1 : i64, tpu.core_type = #tpu.core_type<tc>, window_params = [{transform_indices = @transform_0, window_bounds = array<i64: 512, 384>}, {pipeline_mode = #tpu.pipeline_mode<synchronous>, transform_indices = @transform_1, window_bounds = array<i64: 3, 3, 384>}, {pipeline_mode = #tpu.pipeline_mode<synchronous>, transform_indices = @transform_2, window_bounds = array<i64: 1, 384>}, {pipeline_mode = #tpu.pipeline_mode<synchronous>, transform_indices = @transform_3, window_bounds = array<i64: 384, 128>}, {pipeline_mode = #tpu.pipeline_mode<synchronous>, transform_indices = @transform_4, window_bounds = array<i64: 1, 128>}, {transform_indices = @transform_5, window_bounds = array<i64: 448, 128>}]} {
    %cst = arith.constant 0.000000e+00 : f32
    %0 = vector.broadcast %cst : f32 to vector<224x128xf32>
    %c0 = arith.constant 0 : index
    %c0_0 = arith.constant 0 : index
    %1 = vector.load %arg1[%c0, %c0_0] : memref<512x384xf32, #tpu.memory_space<vmem>>, vector<224x128xf32>
    %c0_1 = arith.constant 0 : index
    %c0_2 = arith.constant 0 : index
    %c0_3 = arith.constant 0 : index
    %2 = vector.load %arg2[%c0_1, %c0_2, %c0_3] : memref<3x3x384xf32, #tpu.memory_space<vmem>>, vector<1x1x128xf32>
    %3 = vector.shape_cast %2 : vector<1x1x128xf32> to vector<128xf32>
    %4 = vector.shape_cast %3 : vector<128xf32> to vector<1x128xf32>
    %5 = vector.broadcast %4 : vector<1x128xf32> to vector<224x128xf32>
    %6 = arith.mulf %1, %5 : vector<224x128xf32>
    %7 = arith.addf %0, %6 : vector<224x128xf32>
    %c223_i32 = arith.constant 223 : i32
    %8 = tpu.dynamic_rotate %1 by %c223_i32 dim 0 : vector<224x128xf32>, i32 -> vector<224x128xf32>
    %c0_4 = arith.constant 0 : index
    %c1 = arith.constant 1 : index
    %c0_5 = arith.constant 0 : index
    %9 = vector.load %arg2[%c0_4, %c1, %c0_5] : memref<3x3x384xf32, #tpu.memory_space<vmem>>, vector<1x1x128xf32>
    %10 = vector.shape_cast %9 : vector<1x1x128xf32> to vector<128xf32>
    %11 = vector.shape_cast %10 : vector<128xf32> to vector<1x128xf32>
    %12 = vector.broadcast %11 : vector<1x128xf32> to vector<224x128xf32>
    %13 = arith.mulf %8, %12 : vector<224x128xf32>
    %14 = arith.addf %7, %13 : vector<224x128xf32>
    %c222_i32 = arith.constant 222 : i32
    %15 = tpu.dynamic_rotate %1 by %c222_i32 dim 0 : vector<224x128xf32>, i32 -> vector<224x128xf32>
    %c0_6 = arith.constant 0 : index
    %c2 = arith.constant 2 : index
    %c0_7 = arith.constant 0 : index
    %16 = vector.load %arg2[%c0_6, %c2, %c0_7] : memref<3x3x384xf32, #tpu.memory_space<vmem>>, vector<1x1x128xf32>
    %17 = vector.shape_cast %16 : vector<1x1x128xf32> to vector<128xf32>
    %18 = vector.shape_cast %17 : vector<128xf32> to vector<1x128xf32>
    %19 = vector.broadcast %18 : vector<1x128xf32> to vector<224x128xf32>
    %20 = arith.mulf %15, %19 : vector<224x128xf32>
    %21 = arith.addf %14, %20 : vector<224x128xf32>
    %c16 = arith.constant 16 : index
    %c0_8 = arith.constant 0 : index
    %22 = vector.load %arg1[%c16, %c0_8] : memref<512x384xf32, #tpu.memory_space<vmem>>, vector<224x128xf32>
    %c1_9 = arith.constant 1 : index
    %c0_10 = arith.constant 0 : index
    %c0_11 = arith.constant 0 : index
    %23 = vector.load %arg2[%c1_9, %c0_10, %c0_11] : memref<3x3x384xf32, #tpu.memory_space<vmem>>, vector<1x1x128xf32>
    %24 = vector.shape_cast %23 : vector<1x1x128xf32> to vector<128xf32>
    %25 = vector.shape_cast %24 : vector<128xf32> to vector<1x128xf32>
    %26 = vector.broadcast %25 : vector<1x128xf32> to vector<224x128xf32>
    %27 = arith.mulf %22, %26 : vector<224x128xf32>
    %28 = arith.addf %21, %27 : vector<224x128xf32>
    %c223_i32_12 = arith.constant 223 : i32
    %29 = tpu.dynamic_rotate %22 by %c223_i32_12 dim 0 : vector<224x128xf32>, i32 -> vector<224x128xf32>
    %c1_13 = arith.constant 1 : index
    %c1_14 = arith.constant 1 : index
    %c0_15 = arith.constant 0 : index
    %30 = vector.load %arg2[%c1_13, %c1_14, %c0_15] : memref<3x3x384xf32, #tpu.memory_space<vmem>>, vector<1x1x128xf32>
    %31 = vector.shape_cast %30 : vector<1x1x128xf32> to vector<128xf32>
    %32 = vector.shape_cast %31 : vector<128xf32> to vector<1x128xf32>
    %33 = vector.broadcast %32 : vector<1x128xf32> to vector<224x128xf32>
    %34 = arith.mulf %29, %33 : vector<224x128xf32>
    %35 = arith.addf %28, %34 : vector<224x128xf32>
    %c222_i32_16 = arith.constant 222 : i32
    %36 = tpu.dynamic_rotate %22 by %c222_i32_16 dim 0 : vector<224x128xf32>, i32 -> vector<224x128xf32>
    %c1_17 = arith.constant 1 : index
    %c2_18 = arith.constant 2 : index
    %c0_19 = arith.constant 0 : index
    %37 = vector.load %arg2[%c1_17, %c2_18, %c0_19] : memref<3x3x384xf32, #tpu.memory_space<vmem>>, vector<1x1x128xf32>
    %38 = vector.shape_cast %37 : vector<1x1x128xf32> to vector<128xf32>
    %39 = vector.shape_cast %38 : vector<128xf32> to vector<1x128xf32>
    %40 = vector.broadcast %39 : vector<1x128xf32> to vector<224x128xf32>
    %41 = arith.mulf %36, %40 : vector<224x128xf32>
    %42 = arith.addf %35, %41 : vector<224x128xf32>
    %c32 = arith.constant 32 : index
    %c0_20 = arith.constant 0 : index
    %43 = vector.load %arg1[%c32, %c0_20] : memref<512x384xf32, #tpu.memory_space<vmem>>, vector<224x128xf32>
    %c2_21 = arith.constant 2 : index
    %c0_22 = arith.constant 0 : index
    %c0_23 = arith.constant 0 : index
    %44 = vector.load %arg2[%c2_21, %c0_22, %c0_23] : memref<3x3x384xf32, #tpu.memory_space<vmem>>, vector<1x1x128xf32>
    %45 = vector.shape_cast %44 : vector<1x1x128xf32> to vector<128xf32>
    %46 = vector.shape_cast %45 : vector<128xf32> to vector<1x128xf32>
    %47 = vector.broadcast %46 : vector<1x128xf32> to vector<224x128xf32>
    %48 = arith.mulf %43, %47 : vector<224x128xf32>
    %49 = arith.addf %42, %48 : vector<224x128xf32>
    %c223_i32_24 = arith.constant 223 : i32
    %50 = tpu.dynamic_rotate %43 by %c223_i32_24 dim 0 : vector<224x128xf32>, i32 -> vector<224x128xf32>
    %c2_25 = arith.constant 2 : index
    %c1_26 = arith.constant 1 : index
    %c0_27 = arith.constant 0 : index
    %51 = vector.load %arg2[%c2_25, %c1_26, %c0_27] : memref<3x3x384xf32, #tpu.memory_space<vmem>>, vector<1x1x128xf32>
    %52 = vector.shape_cast %51 : vector<1x1x128xf32> to vector<128xf32>
    %53 = vector.shape_cast %52 : vector<128xf32> to vector<1x128xf32>
    %54 = vector.broadcast %53 : vector<1x128xf32> to vector<224x128xf32>
    %55 = arith.mulf %50, %54 : vector<224x128xf32>
    %56 = arith.addf %49, %55 : vector<224x128xf32>
    %c222_i32_28 = arith.constant 222 : i32
    %57 = tpu.dynamic_rotate %43 by %c222_i32_28 dim 0 : vector<224x128xf32>, i32 -> vector<224x128xf32>
    %c2_29 = arith.constant 2 : index
    %c2_30 = arith.constant 2 : index
    %c0_31 = arith.constant 0 : index
    %58 = vector.load %arg2[%c2_29, %c2_30, %c0_31] : memref<3x3x384xf32, #tpu.memory_space<vmem>>, vector<1x1x128xf32>
    %59 = vector.shape_cast %58 : vector<1x1x128xf32> to vector<128xf32>
    %60 = vector.shape_cast %59 : vector<128xf32> to vector<1x128xf32>
    %61 = vector.broadcast %60 : vector<1x128xf32> to vector<224x128xf32>
    %62 = arith.mulf %57, %61 : vector<224x128xf32>
    %63 = arith.addf %56, %62 : vector<224x128xf32>
    %c0_32 = arith.constant 0 : index
    %c0_33 = arith.constant 0 : index
    %64 = vector.load %arg3[%c0_32, %c0_33] : memref<1x384xf32, #tpu.memory_space<vmem>>, vector<1x128xf32>
    %65 = vector.shape_cast %64 : vector<1x128xf32> to vector<128xf32>
    %66 = vector.shape_cast %65 : vector<128xf32> to vector<1x128xf32>
    %67 = vector.broadcast %66 : vector<1x128xf32> to vector<224x128xf32>
    %68 = arith.addf %63, %67 : vector<224x128xf32>
    %cst_34 = arith.constant 0.000000e+00 : f32
    %cst_35 = arith.constant 6.000000e+00 : f32
    %69 = vector.broadcast %cst_34 : f32 to vector<224x128xf32>
    %70 = arith.maximumf %69, %68 : vector<224x128xf32>
    %71 = vector.broadcast %cst_35 : f32 to vector<224x128xf32>
    %72 = arith.minimumf %71, %70 : vector<224x128xf32>
    %73 = arith.truncf %72 : vector<224x128xf32> to vector<224x128xbf16>
    %c0_36 = arith.constant 0 : index
    %c0_37 = arith.constant 0 : index
    %74 = vector.load %arg7[%c0_36, %c0_37] : memref<448x384xbf16, #tpu.memory_space<vmem>>, vector<224x128xbf16>
    tpu.vector_store %arg7[%c0_36, %c0_37], %73 {strides = array<i32>} : memref<448x384xbf16, #tpu.memory_space<vmem>>, vector<224x128xbf16>,
    %cst_38 = arith.constant 0.000000e+00 : f32
    %75 = vector.broadcast %cst_38 : f32 to vector<224x128xf32>
    %c0_39 = arith.constant 0 : index
    %c128 = arith.constant 128 : index
    %76 = vector.load %arg1[%c0_39, %c128] : memref<512x384xf32, #tpu.memory_space<vmem>>, vector<224x128xf32>
    %c0_40 = arith.constant 0 : index
    %c0_41 = arith.constant 0 : index
    %c128_42 = arith.constant 128 : index
    %77 = vector.load %arg2[%c0_40, %c0_41, %c128_42] : memref<3x3x384xf32, #tpu.memory_space<vmem>>, vector<1x1x128xf32>
    %78 = vector.shape_cast %77 : vector<1x1x128xf32> to vector<128xf32>
    %79 = vector.shape_cast %78 : vector<128xf32> to vector<1x128xf32>
    %80 = vector.broadcast %79 : vector<1x128xf32> to vector<224x128xf32>
    %81 = arith.mulf %76, %80 : vector<224x128xf32>
    %82 = arith.addf %75, %81 : vector<224x128xf32>
    %c223_i32_43 = arith.constant 223 : i32
    %83 = tpu.dynamic_rotate %76 by %c223_i32_43 dim 0 : vector<224x128xf32>, i32 -> vector<224x128xf32>
    %c0_44 = arith.constant 0 : index
    %c1_45 = arith.constant 1 : index
    %c128_46 = arith.constant 128 : index
    %84 = vector.load %arg2[%c0_44, %c1_45, %c128_46] : memref<3x3x384xf32, #tpu.memory_space<vmem>>, vector<1x1x128xf32>
    %85 = vector.shape_cast %84 : vector<1x1x128xf32> to vector<128xf32>
    %86 = vector.shape_cast %85 : vector<128xf32> to vector<1x128xf32>
    %87 = vector.broadcast %86 : vector<1x128xf32> to vector<224x128xf32>
    %88 = arith.mulf %83, %87 : vector<224x128xf32>
    %89 = arith.addf %82, %88 : vector<224x128xf32>
    %c222_i32_47 = arith.constant 222 : i32
    %90 = tpu.dynamic_rotate %76 by %c222_i32_47 dim 0 : vector<224x128xf32>, i32 -> vector<224x128xf32>
    %c0_48 = arith.constant 0 : index
    %c2_49 = arith.constant 2 : index
    %c128_50 = arith.constant 128 : index
    %91 = vector.load %arg2[%c0_48, %c2_49, %c128_50] : memref<3x3x384xf32, #tpu.memory_space<vmem>>, vector<1x1x128xf32>
    %92 = vector.shape_cast %91 : vector<1x1x128xf32> to vector<128xf32>
    %93 = vector.shape_cast %92 : vector<128xf32> to vector<1x128xf32>
    %94 = vector.broadcast %93 : vector<1x128xf32> to vector<224x128xf32>
    %95 = arith.mulf %90, %94 : vector<224x128xf32>
    %96 = arith.addf %89, %95 : vector<224x128xf32>
    %c16_51 = arith.constant 16 : index
    %c128_52 = arith.constant 128 : index
    %97 = vector.load %arg1[%c16_51, %c128_52] : memref<512x384xf32, #tpu.memory_space<vmem>>, vector<224x128xf32>
    %c1_53 = arith.constant 1 : index
    %c0_54 = arith.constant 0 : index
    %c128_55 = arith.constant 128 : index
    %98 = vector.load %arg2[%c1_53, %c0_54, %c128_55] : memref<3x3x384xf32, #tpu.memory_space<vmem>>, vector<1x1x128xf32>
    %99 = vector.shape_cast %98 : vector<1x1x128xf32> to vector<128xf32>
    %100 = vector.shape_cast %99 : vector<128xf32> to vector<1x128xf32>
    %101 = vector.broadcast %100 : vector<1x128xf32> to vector<224x128xf32>
    %102 = arith.mulf %97, %101 : vector<224x128xf32>
    %103 = arith.addf %96, %102 : vector<224x128xf32>
    %c223_i32_56 = arith.constant 223 : i32
    %104 = tpu.dynamic_rotate %97 by %c223_i32_56 dim 0 : vector<224x128xf32>, i32 -> vector<224x128xf32>
    %c1_57 = arith.constant 1 : index
    %c1_58 = arith.constant 1 : index
    %c128_59 = arith.constant 128 : index
    %105 = vector.load %arg2[%c1_57, %c1_58, %c128_59] : memref<3x3x384xf32, #tpu.memory_space<vmem>>, vector<1x1x128xf32>
    %106 = vector.shape_cast %105 : vector<1x1x128xf32> to vector<128xf32>
    %107 = vector.shape_cast %106 : vector<128xf32> to vector<1x128xf32>
    %108 = vector.broadcast %107 : vector<1x128xf32> to vector<224x128xf32>
    %109 = arith.mulf %104, %108 : vector<224x128xf32>
    %110 = arith.addf %103, %109 : vector<224x128xf32>
    %c222_i32_60 = arith.constant 222 : i32
    %111 = tpu.dynamic_rotate %97 by %c222_i32_60 dim 0 : vector<224x128xf32>, i32 -> vector<224x128xf32>
    %c1_61 = arith.constant 1 : index
    %c2_62 = arith.constant 2 : index
    %c128_63 = arith.constant 128 : index
    %112 = vector.load %arg2[%c1_61, %c2_62, %c128_63] : memref<3x3x384xf32, #tpu.memory_space<vmem>>, vector<1x1x128xf32>
    %113 = vector.shape_cast %112 : vector<1x1x128xf32> to vector<128xf32>
    %114 = vector.shape_cast %113 : vector<128xf32> to vector<1x128xf32>
    %115 = vector.broadcast %114 : vector<1x128xf32> to vector<224x128xf32>
    %116 = arith.mulf %111, %115 : vector<224x128xf32>
    %117 = arith.addf %110, %116 : vector<224x128xf32>
    %c32_64 = arith.constant 32 : index
    %c128_65 = arith.constant 128 : index
    %118 = vector.load %arg1[%c32_64, %c128_65] : memref<512x384xf32, #tpu.memory_space<vmem>>, vector<224x128xf32>
    %c2_66 = arith.constant 2 : index
    %c0_67 = arith.constant 0 : index
    %c128_68 = arith.constant 128 : index
    %119 = vector.load %arg2[%c2_66, %c0_67, %c128_68] : memref<3x3x384xf32, #tpu.memory_space<vmem>>, vector<1x1x128xf32>
    %120 = vector.shape_cast %119 : vector<1x1x128xf32> to vector<128xf32>
    %121 = vector.shape_cast %120 : vector<128xf32> to vector<1x128xf32>
    %122 = vector.broadcast %121 : vector<1x128xf32> to vector<224x128xf32>
    %123 = arith.mulf %118, %122 : vector<224x128xf32>
    %124 = arith.addf %117, %123 : vector<224x128xf32>
    %c223_i32_69 = arith.constant 223 : i32
    %125 = tpu.dynamic_rotate %118 by %c223_i32_69 dim 0 : vector<224x128xf32>, i32 -> vector<224x128xf32>
    %c2_70 = arith.constant 2 : index
    %c1_71 = arith.constant 1 : index
    %c128_72 = arith.constant 128 : index
    %126 = vector.load %arg2[%c2_70, %c1_71, %c128_72] : memref<3x3x384xf32, #tpu.memory_space<vmem>>, vector<1x1x128xf32>
    %127 = vector.shape_cast %126 : vector<1x1x128xf32> to vector<128xf32>
    %128 = vector.shape_cast %127 : vector<128xf32> to vector<1x128xf32>
    %129 = vector.broadcast %128 : vector<1x128xf32> to vector<224x128xf32>
    %130 = arith.mulf %125, %129 : vector<224x128xf32>
    %131 = arith.addf %124, %130 : vector<224x128xf32>
    %c222_i32_73 = arith.constant 222 : i32
    %132 = tpu.dynamic_rotate %118 by %c222_i32_73 dim 0 : vector<224x128xf32>, i32 -> vector<224x128xf32>
    %c2_74 = arith.constant 2 : index
    %c2_75 = arith.constant 2 : index
    %c128_76 = arith.constant 128 : index
    %133 = vector.load %arg2[%c2_74, %c2_75, %c128_76] : memref<3x3x384xf32, #tpu.memory_space<vmem>>, vector<1x1x128xf32>
    %134 = vector.shape_cast %133 : vector<1x1x128xf32> to vector<128xf32>
    %135 = vector.shape_cast %134 : vector<128xf32> to vector<1x128xf32>
    %136 = vector.broadcast %135 : vector<1x128xf32> to vector<224x128xf32>
    %137 = arith.mulf %132, %136 : vector<224x128xf32>
    %138 = arith.addf %131, %137 : vector<224x128xf32>
    %c0_77 = arith.constant 0 : index
    %c128_78 = arith.constant 128 : index
    %139 = vector.load %arg3[%c0_77, %c128_78] : memref<1x384xf32, #tpu.memory_space<vmem>>, vector<1x128xf32>
    %140 = vector.shape_cast %139 : vector<1x128xf32> to vector<128xf32>
    %141 = vector.shape_cast %140 : vector<128xf32> to vector<1x128xf32>
    %142 = vector.broadcast %141 : vector<1x128xf32> to vector<224x128xf32>
    %143 = arith.addf %138, %142 : vector<224x128xf32>
    %cst_79 = arith.constant 0.000000e+00 : f32
    %cst_80 = arith.constant 6.000000e+00 : f32
    %144 = vector.broadcast %cst_79 : f32 to vector<224x128xf32>
    %145 = arith.maximumf %144, %143 : vector<224x128xf32>
    %146 = vector.broadcast %cst_80 : f32 to vector<224x128xf32>
    %147 = arith.minimumf %146, %145 : vector<224x128xf32>
    %148 = arith.truncf %147 : vector<224x128xf32> to vector<224x128xbf16>
    %c0_81 = arith.constant 0 : index
    %c128_82 = arith.constant 128 : index
    %149 = vector.load %arg7[%c0_81, %c128_82] : memref<448x384xbf16, #tpu.memory_space<vmem>>, vector<224x128xbf16>
    tpu.vector_store %arg7[%c0_81, %c128_82], %148 {strides = array<i32>} : memref<448x384xbf16, #tpu.memory_space<vmem>>, vector<224x128xbf16>,
    %cst_83 = arith.constant 0.000000e+00 : f32
    %150 = vector.broadcast %cst_83 : f32 to vector<224x128xf32>
    %c0_84 = arith.constant 0 : index
    %c256 = arith.constant 256 : index
    %151 = vector.load %arg1[%c0_84, %c256] : memref<512x384xf32, #tpu.memory_space<vmem>>, vector<224x128xf32>
    %c0_85 = arith.constant 0 : index
    %c0_86 = arith.constant 0 : index
    %c256_87 = arith.constant 256 : index
    %152 = vector.load %arg2[%c0_85, %c0_86, %c256_87] : memref<3x3x384xf32, #tpu.memory_space<vmem>>, vector<1x1x128xf32>
    %153 = vector.shape_cast %152 : vector<1x1x128xf32> to vector<128xf32>
    %154 = vector.shape_cast %153 : vector<128xf32> to vector<1x128xf32>
    %155 = vector.broadcast %154 : vector<1x128xf32> to vector<224x128xf32>
    %156 = arith.mulf %151, %155 : vector<224x128xf32>
    %157 = arith.addf %150, %156 : vector<224x128xf32>
    %c223_i32_88 = arith.constant 223 : i32
    %158 = tpu.dynamic_rotate %151 by %c223_i32_88 dim 0 : vector<224x128xf32>, i32 -> vector<224x128xf32>
    %c0_89 = arith.constant 0 : index
    %c1_90 = arith.constant 1 : index
    %c256_91 = arith.constant 256 : index
    %159 = vector.load %arg2[%c0_89, %c1_90, %c256_91] : memref<3x3x384xf32, #tpu.memory_space<vmem>>, vector<1x1x128xf32>
    %160 = vector.shape_cast %159 : vector<1x1x128xf32> to vector<128xf32>
    %161 = vector.shape_cast %160 : vector<128xf32> to vector<1x128xf32>
    %162 = vector.broadcast %161 : vector<1x128xf32> to vector<224x128xf32>
    %163 = arith.mulf %158, %162 : vector<224x128xf32>
    %164 = arith.addf %157, %163 : vector<224x128xf32>
    %c222_i32_92 = arith.constant 222 : i32
    %165 = tpu.dynamic_rotate %151 by %c222_i32_92 dim 0 : vector<224x128xf32>, i32 -> vector<224x128xf32>
    %c0_93 = arith.constant 0 : index
    %c2_94 = arith.constant 2 : index
    %c256_95 = arith.constant 256 : index
    %166 = vector.load %arg2[%c0_93, %c2_94, %c256_95] : memref<3x3x384xf32, #tpu.memory_space<vmem>>, vector<1x1x128xf32>
    %167 = vector.shape_cast %166 : vector<1x1x128xf32> to vector<128xf32>
    %168 = vector.shape_cast %167 : vector<128xf32> to vector<1x128xf32>
    %169 = vector.broadcast %168 : vector<1x128xf32> to vector<224x128xf32>
    %170 = arith.mulf %165, %169 : vector<224x128xf32>
    %171 = arith.addf %164, %170 : vector<224x128xf32>
    %c16_96 = arith.constant 16 : index
    %c256_97 = arith.constant 256 : index
    %172 = vector.load %arg1[%c16_96, %c256_97] : memref<512x384xf32, #tpu.memory_space<vmem>>, vector<224x128xf32>
    %c1_98 = arith.constant 1 : index
    %c0_99 = arith.constant 0 : index
    %c256_100 = arith.constant 256 : index
    %173 = vector.load %arg2[%c1_98, %c0_99, %c256_100] : memref<3x3x384xf32, #tpu.memory_space<vmem>>, vector<1x1x128xf32>
    %174 = vector.shape_cast %173 : vector<1x1x128xf32> to vector<128xf32>
    %175 = vector.shape_cast %174 : vector<128xf32> to vector<1x128xf32>
    %176 = vector.broadcast %175 : vector<1x128xf32> to vector<224x128xf32>
    %177 = arith.mulf %172, %176 : vector<224x128xf32>
    %178 = arith.addf %171, %177 : vector<224x128xf32>
    %c223_i32_101 = arith.constant 223 : i32
    %179 = tpu.dynamic_rotate %172 by %c223_i32_101 dim 0 : vector<224x128xf32>, i32 -> vector<224x128xf32>
    %c1_102 = arith.constant 1 : index
    %c1_103 = arith.constant 1 : index
    %c256_104 = arith.constant 256 : index
    %180 = vector.load %arg2[%c1_102, %c1_103, %c256_104] : memref<3x3x384xf32, #tpu.memory_space<vmem>>, vector<1x1x128xf32>
    %181 = vector.shape_cast %180 : vector<1x1x128xf32> to vector<128xf32>
    %182 = vector.shape_cast %181 : vector<128xf32> to vector<1x128xf32>
    %183 = vector.broadcast %182 : vector<1x128xf32> to vector<224x128xf32>
    %184 = arith.mulf %179, %183 : vector<224x128xf32>
    %185 = arith.addf %178, %184 : vector<224x128xf32>
    %c222_i32_105 = arith.constant 222 : i32
    %186 = tpu.dynamic_rotate %172 by %c222_i32_105 dim 0 : vector<224x128xf32>, i32 -> vector<224x128xf32>
    %c1_106 = arith.constant 1 : index
    %c2_107 = arith.constant 2 : index
    %c256_108 = arith.constant 256 : index
    %187 = vector.load %arg2[%c1_106, %c2_107, %c256_108] : memref<3x3x384xf32, #tpu.memory_space<vmem>>, vector<1x1x128xf32>
    %188 = vector.shape_cast %187 : vector<1x1x128xf32> to vector<128xf32>
    %189 = vector.shape_cast %188 : vector<128xf32> to vector<1x128xf32>
    %190 = vector.broadcast %189 : vector<1x128xf32> to vector<224x128xf32>
    %191 = arith.mulf %186, %190 : vector<224x128xf32>
    %192 = arith.addf %185, %191 : vector<224x128xf32>
    %c32_109 = arith.constant 32 : index
    %c256_110 = arith.constant 256 : index
    %193 = vector.load %arg1[%c32_109, %c256_110] : memref<512x384xf32, #tpu.memory_space<vmem>>, vector<224x128xf32>
    %c2_111 = arith.constant 2 : index
    %c0_112 = arith.constant 0 : index
    %c256_113 = arith.constant 256 : index
    %194 = vector.load %arg2[%c2_111, %c0_112, %c256_113] : memref<3x3x384xf32, #tpu.memory_space<vmem>>, vector<1x1x128xf32>
    %195 = vector.shape_cast %194 : vector<1x1x128xf32> to vector<128xf32>
    %196 = vector.shape_cast %195 : vector<128xf32> to vector<1x128xf32>
    %197 = vector.broadcast %196 : vector<1x128xf32> to vector<224x128xf32>
    %198 = arith.mulf %193, %197 : vector<224x128xf32>
    %199 = arith.addf %192, %198 : vector<224x128xf32>
    %c223_i32_114 = arith.constant 223 : i32
    %200 = tpu.dynamic_rotate %193 by %c223_i32_114 dim 0 : vector<224x128xf32>, i32 -> vector<224x128xf32>
    %c2_115 = arith.constant 2 : index
    %c1_116 = arith.constant 1 : index
    %c256_117 = arith.constant 256 : index
    %201 = vector.load %arg2[%c2_115, %c1_116, %c256_117] : memref<3x3x384xf32, #tpu.memory_space<vmem>>, vector<1x1x128xf32>
    %202 = vector.shape_cast %201 : vector<1x1x128xf32> to vector<128xf32>
    %203 = vector.shape_cast %202 : vector<128xf32> to vector<1x128xf32>
    %204 = vector.broadcast %203 : vector<1x128xf32> to vector<224x128xf32>
    %205 = arith.mulf %200, %204 : vector<224x128xf32>
    %206 = arith.addf %199, %205 : vector<224x128xf32>
    %c222_i32_118 = arith.constant 222 : i32
    %207 = tpu.dynamic_rotate %193 by %c222_i32_118 dim 0 : vector<224x128xf32>, i32 -> vector<224x128xf32>
    %c2_119 = arith.constant 2 : index
    %c2_120 = arith.constant 2 : index
    %c256_121 = arith.constant 256 : index
    %208 = vector.load %arg2[%c2_119, %c2_120, %c256_121] : memref<3x3x384xf32, #tpu.memory_space<vmem>>, vector<1x1x128xf32>
    %209 = vector.shape_cast %208 : vector<1x1x128xf32> to vector<128xf32>
    %210 = vector.shape_cast %209 : vector<128xf32> to vector<1x128xf32>
    %211 = vector.broadcast %210 : vector<1x128xf32> to vector<224x128xf32>
    %212 = arith.mulf %207, %211 : vector<224x128xf32>
    %213 = arith.addf %206, %212 : vector<224x128xf32>
    %c0_122 = arith.constant 0 : index
    %c256_123 = arith.constant 256 : index
    %214 = vector.load %arg3[%c0_122, %c256_123] : memref<1x384xf32, #tpu.memory_space<vmem>>, vector<1x128xf32>
    %215 = vector.shape_cast %214 : vector<1x128xf32> to vector<128xf32>
    %216 = vector.shape_cast %215 : vector<128xf32> to vector<1x128xf32>
    %217 = vector.broadcast %216 : vector<1x128xf32> to vector<224x128xf32>
    %218 = arith.addf %213, %217 : vector<224x128xf32>
    %cst_124 = arith.constant 0.000000e+00 : f32
    %cst_125 = arith.constant 6.000000e+00 : f32
    %219 = vector.broadcast %cst_124 : f32 to vector<224x128xf32>
    %220 = arith.maximumf %219, %218 : vector<224x128xf32>
    %221 = vector.broadcast %cst_125 : f32 to vector<224x128xf32>
    %222 = arith.minimumf %221, %220 : vector<224x128xf32>
    %223 = arith.truncf %222 : vector<224x128xf32> to vector<224x128xbf16>
    %c0_126 = arith.constant 0 : index
    %c256_127 = arith.constant 256 : index
    %224 = vector.load %arg7[%c0_126, %c256_127] : memref<448x384xbf16, #tpu.memory_space<vmem>>, vector<224x128xbf16>
    tpu.vector_store %arg7[%c0_126, %c256_127], %223 {strides = array<i32>} : memref<448x384xbf16, #tpu.memory_space<vmem>>, vector<224x128xbf16>,
    %cst_128 = arith.constant 0.000000e+00 : f32
    %225 = vector.broadcast %cst_128 : f32 to vector<224x128xf32>
    %c256_129 = arith.constant 256 : index
    %c0_130 = arith.constant 0 : index
    %226 = vector.load %arg1[%c256_129, %c0_130] : memref<512x384xf32, #tpu.memory_space<vmem>>, vector<224x128xf32>
    %c0_131 = arith.constant 0 : index
    %c0_132 = arith.constant 0 : index
    %c0_133 = arith.constant 0 : index
    %227 = vector.load %arg2[%c0_131, %c0_132, %c0_133] : memref<3x3x384xf32, #tpu.memory_space<vmem>>, vector<1x1x128xf32>
    %228 = vector.shape_cast %227 : vector<1x1x128xf32> to vector<128xf32>
    %229 = vector.shape_cast %228 : vector<128xf32> to vector<1x128xf32>
    %230 = vector.broadcast %229 : vector<1x128xf32> to vector<224x128xf32>
    %231 = arith.mulf %226, %230 : vector<224x128xf32>
    %232 = arith.addf %225, %231 : vector<224x128xf32>
    %c223_i32_134 = arith.constant 223 : i32
    %233 = tpu.dynamic_rotate %226 by %c223_i32_134 dim 0 : vector<224x128xf32>, i32 -> vector<224x128xf32>
    %c0_135 = arith.constant 0 : index
    %c1_136 = arith.constant 1 : index
    %c0_137 = arith.constant 0 : index
    %234 = vector.load %arg2[%c0_135, %c1_136, %c0_137] : memref<3x3x384xf32, #tpu.memory_space<vmem>>, vector<1x1x128xf32>
    %235 = vector.shape_cast %234 : vector<1x1x128xf32> to vector<128xf32>
    %236 = vector.shape_cast %235 : vector<128xf32> to vector<1x128xf32>
    %237 = vector.broadcast %236 : vector<1x128xf32> to vector<224x128xf32>
    %238 = arith.mulf %233, %237 : vector<224x128xf32>
    %239 = arith.addf %232, %238 : vector<224x128xf32>
    %c222_i32_138 = arith.constant 222 : i32
    %240 = tpu.dynamic_rotate %226 by %c222_i32_138 dim 0 : vector<224x128xf32>, i32 -> vector<224x128xf32>
    %c0_139 = arith.constant 0 : index
    %c2_140 = arith.constant 2 : index
    %c0_141 = arith.constant 0 : index
    %241 = vector.load %arg2[%c0_139, %c2_140, %c0_141] : memref<3x3x384xf32, #tpu.memory_space<vmem>>, vector<1x1x128xf32>
    %242 = vector.shape_cast %241 : vector<1x1x128xf32> to vector<128xf32>
    %243 = vector.shape_cast %242 : vector<128xf32> to vector<1x128xf32>
    %244 = vector.broadcast %243 : vector<1x128xf32> to vector<224x128xf32>
    %245 = arith.mulf %240, %244 : vector<224x128xf32>
    %246 = arith.addf %239, %245 : vector<224x128xf32>
    %c272 = arith.constant 272 : index
    %c0_142 = arith.constant 0 : index
    %247 = vector.load %arg1[%c272, %c0_142] : memref<512x384xf32, #tpu.memory_space<vmem>>, vector<224x128xf32>
    %c1_143 = arith.constant 1 : index
    %c0_144 = arith.constant 0 : index
    %c0_145 = arith.constant 0 : index
    %248 = vector.load %arg2[%c1_143, %c0_144, %c0_145] : memref<3x3x384xf32, #tpu.memory_space<vmem>>, vector<1x1x128xf32>
    %249 = vector.shape_cast %248 : vector<1x1x128xf32> to vector<128xf32>
    %250 = vector.shape_cast %249 : vector<128xf32> to vector<1x128xf32>
    %251 = vector.broadcast %250 : vector<1x128xf32> to vector<224x128xf32>
    %252 = arith.mulf %247, %251 : vector<224x128xf32>
    %253 = arith.addf %246, %252 : vector<224x128xf32>
    %c223_i32_146 = arith.constant 223 : i32
    %254 = tpu.dynamic_rotate %247 by %c223_i32_146 dim 0 : vector<224x128xf32>, i32 -> vector<224x128xf32>
    %c1_147 = arith.constant 1 : index
    %c1_148 = arith.constant 1 : index
    %c0_149 = arith.constant 0 : index
    %255 = vector.load %arg2[%c1_147, %c1_148, %c0_149] : memref<3x3x384xf32, #tpu.memory_space<vmem>>, vector<1x1x128xf32>
    %256 = vector.shape_cast %255 : vector<1x1x128xf32> to vector<128xf32>
    %257 = vector.shape_cast %256 : vector<128xf32> to vector<1x128xf32>
    %258 = vector.broadcast %257 : vector<1x128xf32> to vector<224x128xf32>
    %259 = arith.mulf %254, %258 : vector<224x128xf32>
    %260 = arith.addf %253, %259 : vector<224x128xf32>
    %c222_i32_150 = arith.constant 222 : i32
    %261 = tpu.dynamic_rotate %247 by %c222_i32_150 dim 0 : vector<224x128xf32>, i32 -> vector<224x128xf32>
    %c1_151 = arith.constant 1 : index
    %c2_152 = arith.constant 2 : index
    %c0_153 = arith.constant 0 : index
    %262 = vector.load %arg2[%c1_151, %c2_152, %c0_153] : memref<3x3x384xf32, #tpu.memory_space<vmem>>, vector<1x1x128xf32>
    %263 = vector.shape_cast %262 : vector<1x1x128xf32> to vector<128xf32>
    %264 = vector.shape_cast %263 : vector<128xf32> to vector<1x128xf32>
    %265 = vector.broadcast %264 : vector<1x128xf32> to vector<224x128xf32>
    %266 = arith.mulf %261, %265 : vector<224x128xf32>
    %267 = arith.addf %260, %266 : vector<224x128xf32>
    %c288 = arith.constant 288 : index
    %c0_154 = arith.constant 0 : index
    %268 = vector.load %arg1[%c288, %c0_154] : memref<512x384xf32, #tpu.memory_space<vmem>>, vector<224x128xf32>
    %c2_155 = arith.constant 2 : index
    %c0_156 = arith.constant 0 : index
    %c0_157 = arith.constant 0 : index
    %269 = vector.load %arg2[%c2_155, %c0_156, %c0_157] : memref<3x3x384xf32, #tpu.memory_space<vmem>>, vector<1x1x128xf32>
    %270 = vector.shape_cast %269 : vector<1x1x128xf32> to vector<128xf32>
    %271 = vector.shape_cast %270 : vector<128xf32> to vector<1x128xf32>
    %272 = vector.broadcast %271 : vector<1x128xf32> to vector<224x128xf32>
    %273 = arith.mulf %268, %272 : vector<224x128xf32>
    %274 = arith.addf %267, %273 : vector<224x128xf32>
    %c223_i32_158 = arith.constant 223 : i32
    %275 = tpu.dynamic_rotate %268 by %c223_i32_158 dim 0 : vector<224x128xf32>, i32 -> vector<224x128xf32>
    %c2_159 = arith.constant 2 : index
    %c1_160 = arith.constant 1 : index
    %c0_161 = arith.constant 0 : index
    %276 = vector.load %arg2[%c2_159, %c1_160, %c0_161] : memref<3x3x384xf32, #tpu.memory_space<vmem>>, vector<1x1x128xf32>
    %277 = vector.shape_cast %276 : vector<1x1x128xf32> to vector<128xf32>
    %278 = vector.shape_cast %277 : vector<128xf32> to vector<1x128xf32>
    %279 = vector.broadcast %278 : vector<1x128xf32> to vector<224x128xf32>
    %280 = arith.mulf %275, %279 : vector<224x128xf32>
    %281 = arith.addf %274, %280 : vector<224x128xf32>
    %c222_i32_162 = arith.constant 222 : i32
    %282 = tpu.dynamic_rotate %268 by %c222_i32_162 dim 0 : vector<224x128xf32>, i32 -> vector<224x128xf32>
    %c2_163 = arith.constant 2 : index
    %c2_164 = arith.constant 2 : index
    %c0_165 = arith.constant 0 : index
    %283 = vector.load %arg2[%c2_163, %c2_164, %c0_165] : memref<3x3x384xf32, #tpu.memory_space<vmem>>, vector<1x1x128xf32>
    %284 = vector.shape_cast %283 : vector<1x1x128xf32> to vector<128xf32>
    %285 = vector.shape_cast %284 : vector<128xf32> to vector<1x128xf32>
    %286 = vector.broadcast %285 : vector<1x128xf32> to vector<224x128xf32>
    %287 = arith.mulf %282, %286 : vector<224x128xf32>
    %288 = arith.addf %281, %287 : vector<224x128xf32>
    %c0_166 = arith.constant 0 : index
    %c0_167 = arith.constant 0 : index
    %289 = vector.load %arg3[%c0_166, %c0_167] : memref<1x384xf32, #tpu.memory_space<vmem>>, vector<1x128xf32>
    %290 = vector.shape_cast %289 : vector<1x128xf32> to vector<128xf32>
    %291 = vector.shape_cast %290 : vector<128xf32> to vector<1x128xf32>
    %292 = vector.broadcast %291 : vector<1x128xf32> to vector<224x128xf32>
    %293 = arith.addf %288, %292 : vector<224x128xf32>
    %cst_168 = arith.constant 0.000000e+00 : f32
    %cst_169 = arith.constant 6.000000e+00 : f32
    %294 = vector.broadcast %cst_168 : f32 to vector<224x128xf32>
    %295 = arith.maximumf %294, %293 : vector<224x128xf32>
    %296 = vector.broadcast %cst_169 : f32 to vector<224x128xf32>
    %297 = arith.minimumf %296, %295 : vector<224x128xf32>
    %298 = arith.truncf %297 : vector<224x128xf32> to vector<224x128xbf16>
    %c224 = arith.constant 224 : index
    %c0_170 = arith.constant 0 : index
    %299 = vector.load %arg7[%c224, %c0_170] : memref<448x384xbf16, #tpu.memory_space<vmem>>, vector<224x128xbf16>
    tpu.vector_store %arg7[%c224, %c0_170], %298 {strides = array<i32>} : memref<448x384xbf16, #tpu.memory_space<vmem>>, vector<224x128xbf16>,
    %cst_171 = arith.constant 0.000000e+00 : f32
    %300 = vector.broadcast %cst_171 : f32 to vector<224x128xf32>
    %c256_172 = arith.constant 256 : index
    %c128_173 = arith.constant 128 : index
    %301 = vector.load %arg1[%c256_172, %c128_173] : memref<512x384xf32, #tpu.memory_space<vmem>>, vector<224x128xf32>
    %c0_174 = arith.constant 0 : index
    %c0_175 = arith.constant 0 : index
    %c128_176 = arith.constant 128 : index
    %302 = vector.load %arg2[%c0_174, %c0_175, %c128_176] : memref<3x3x384xf32, #tpu.memory_space<vmem>>, vector<1x1x128xf32>
    %303 = vector.shape_cast %302 : vector<1x1x128xf32> to vector<128xf32>
    %304 = vector.shape_cast %303 : vector<128xf32> to vector<1x128xf32>
    %305 = vector.broadcast %304 : vector<1x128xf32> to vector<224x128xf32>
    %306 = arith.mulf %301, %305 : vector<224x128xf32>
    %307 = arith.addf %300, %306 : vector<224x128xf32>
    %c223_i32_177 = arith.constant 223 : i32
    %308 = tpu.dynamic_rotate %301 by %c223_i32_177 dim 0 : vector<224x128xf32>, i32 -> vector<224x128xf32>
    %c0_178 = arith.constant 0 : index
    %c1_179 = arith.constant 1 : index
    %c128_180 = arith.constant 128 : index
    %309 = vector.load %arg2[%c0_178, %c1_179, %c128_180] : memref<3x3x384xf32, #tpu.memory_space<vmem>>, vector<1x1x128xf32>
    %310 = vector.shape_cast %309 : vector<1x1x128xf32> to vector<128xf32>
    %311 = vector.shape_cast %310 : vector<128xf32> to vector<1x128xf32>
    %312 = vector.broadcast %311 : vector<1x128xf32> to vector<224x128xf32>
    %313 = arith.mulf %308, %312 : vector<224x128xf32>
    %314 = arith.addf %307, %313 : vector<224x128xf32>
    %c222_i32_181 = arith.constant 222 : i32
    %315 = tpu.dynamic_rotate %301 by %c222_i32_181 dim 0 : vector<224x128xf32>, i32 -> vector<224x128xf32>
    %c0_182 = arith.constant 0 : index
    %c2_183 = arith.constant 2 : index
    %c128_184 = arith.constant 128 : index
    %316 = vector.load %arg2[%c0_182, %c2_183, %c128_184] : memref<3x3x384xf32, #tpu.memory_space<vmem>>, vector<1x1x128xf32>
    %317 = vector.shape_cast %316 : vector<1x1x128xf32> to vector<128xf32>
    %318 = vector.shape_cast %317 : vector<128xf32> to vector<1x128xf32>
    %319 = vector.broadcast %318 : vector<1x128xf32> to vector<224x128xf32>
    %320 = arith.mulf %315, %319 : vector<224x128xf32>
    %321 = arith.addf %314, %320 : vector<224x128xf32>
    %c272_185 = arith.constant 272 : index
    %c128_186 = arith.constant 128 : index
    %322 = vector.load %arg1[%c272_185, %c128_186] : memref<512x384xf32, #tpu.memory_space<vmem>>, vector<224x128xf32>
    %c1_187 = arith.constant 1 : index
    %c0_188 = arith.constant 0 : index
    %c128_189 = arith.constant 128 : index
    %323 = vector.load %arg2[%c1_187, %c0_188, %c128_189] : memref<3x3x384xf32, #tpu.memory_space<vmem>>, vector<1x1x128xf32>
    %324 = vector.shape_cast %323 : vector<1x1x128xf32> to vector<128xf32>
    %325 = vector.shape_cast %324 : vector<128xf32> to vector<1x128xf32>
    %326 = vector.broadcast %325 : vector<1x128xf32> to vector<224x128xf32>
    %327 = arith.mulf %322, %326 : vector<224x128xf32>
    %328 = arith.addf %321, %327 : vector<224x128xf32>
    %c223_i32_190 = arith.constant 223 : i32
    %329 = tpu.dynamic_rotate %322 by %c223_i32_190 dim 0 : vector<224x128xf32>, i32 -> vector<224x128xf32>
    %c1_191 = arith.constant 1 : index
    %c1_192 = arith.constant 1 : index
    %c128_193 = arith.constant 128 : index
    %330 = vector.load %arg2[%c1_191, %c1_192, %c128_193] : memref<3x3x384xf32, #tpu.memory_space<vmem>>, vector<1x1x128xf32>
    %331 = vector.shape_cast %330 : vector<1x1x128xf32> to vector<128xf32>
    %332 = vector.shape_cast %331 : vector<128xf32> to vector<1x128xf32>
    %333 = vector.broadcast %332 : vector<1x128xf32> to vector<224x128xf32>
    %334 = arith.mulf %329, %333 : vector<224x128xf32>
    %335 = arith.addf %328, %334 : vector<224x128xf32>
    %c222_i32_194 = arith.constant 222 : i32
    %336 = tpu.dynamic_rotate %322 by %c222_i32_194 dim 0 : vector<224x128xf32>, i32 -> vector<224x128xf32>
    %c1_195 = arith.constant 1 : index
    %c2_196 = arith.constant 2 : index
    %c128_197 = arith.constant 128 : index
    %337 = vector.load %arg2[%c1_195, %c2_196, %c128_197] : memref<3x3x384xf32, #tpu.memory_space<vmem>>, vector<1x1x128xf32>
    %338 = vector.shape_cast %337 : vector<1x1x128xf32> to vector<128xf32>
    %339 = vector.shape_cast %338 : vector<128xf32> to vector<1x128xf32>
    %340 = vector.broadcast %339 : vector<1x128xf32> to vector<224x128xf32>
    %341 = arith.mulf %336, %340 : vector<224x128xf32>
    %342 = arith.addf %335, %341 : vector<224x128xf32>
    %c288_198 = arith.constant 288 : index
    %c128_199 = arith.constant 128 : index
    %343 = vector.load %arg1[%c288_198, %c128_199] : memref<512x384xf32, #tpu.memory_space<vmem>>, vector<224x128xf32>
    %c2_200 = arith.constant 2 : index
    %c0_201 = arith.constant 0 : index
    %c128_202 = arith.constant 128 : index
    %344 = vector.load %arg2[%c2_200, %c0_201, %c128_202] : memref<3x3x384xf32, #tpu.memory_space<vmem>>, vector<1x1x128xf32>
    %345 = vector.shape_cast %344 : vector<1x1x128xf32> to vector<128xf32>
    %346 = vector.shape_cast %345 : vector<128xf32> to vector<1x128xf32>
    %347 = vector.broadcast %346 : vector<1x128xf32> to vector<224x128xf32>
    %348 = arith.mulf %343, %347 : vector<224x128xf32>
    %349 = arith.addf %342, %348 : vector<224x128xf32>
    %c223_i32_203 = arith.constant 223 : i32
    %350 = tpu.dynamic_rotate %343 by %c223_i32_203 dim 0 : vector<224x128xf32>, i32 -> vector<224x128xf32>
    %c2_204 = arith.constant 2 : index
    %c1_205 = arith.constant 1 : index
    %c128_206 = arith.constant 128 : index
    %351 = vector.load %arg2[%c2_204, %c1_205, %c128_206] : memref<3x3x384xf32, #tpu.memory_space<vmem>>, vector<1x1x128xf32>
    %352 = vector.shape_cast %351 : vector<1x1x128xf32> to vector<128xf32>
    %353 = vector.shape_cast %352 : vector<128xf32> to vector<1x128xf32>
    %354 = vector.broadcast %353 : vector<1x128xf32> to vector<224x128xf32>
    %355 = arith.mulf %350, %354 : vector<224x128xf32>
    %356 = arith.addf %349, %355 : vector<224x128xf32>
    %c222_i32_207 = arith.constant 222 : i32
    %357 = tpu.dynamic_rotate %343 by %c222_i32_207 dim 0 : vector<224x128xf32>, i32 -> vector<224x128xf32>
    %c2_208 = arith.constant 2 : index
    %c2_209 = arith.constant 2 : index
    %c128_210 = arith.constant 128 : index
    %358 = vector.load %arg2[%c2_208, %c2_209, %c128_210] : memref<3x3x384xf32, #tpu.memory_space<vmem>>, vector<1x1x128xf32>
    %359 = vector.shape_cast %358 : vector<1x1x128xf32> to vector<128xf32>
    %360 = vector.shape_cast %359 : vector<128xf32> to vector<1x128xf32>
    %361 = vector.broadcast %360 : vector<1x128xf32> to vector<224x128xf32>
    %362 = arith.mulf %357, %361 : vector<224x128xf32>
    %363 = arith.addf %356, %362 : vector<224x128xf32>
    %c0_211 = arith.constant 0 : index
    %c128_212 = arith.constant 128 : index
    %364 = vector.load %arg3[%c0_211, %c128_212] : memref<1x384xf32, #tpu.memory_space<vmem>>, vector<1x128xf32>
    %365 = vector.shape_cast %364 : vector<1x128xf32> to vector<128xf32>
    %366 = vector.shape_cast %365 : vector<128xf32> to vector<1x128xf32>
    %367 = vector.broadcast %366 : vector<1x128xf32> to vector<224x128xf32>
    %368 = arith.addf %363, %367 : vector<224x128xf32>
    %cst_213 = arith.constant 0.000000e+00 : f32
    %cst_214 = arith.constant 6.000000e+00 : f32
    %369 = vector.broadcast %cst_213 : f32 to vector<224x128xf32>
    %370 = arith.maximumf %369, %368 : vector<224x128xf32>
    %371 = vector.broadcast %cst_214 : f32 to vector<224x128xf32>
    %372 = arith.minimumf %371, %370 : vector<224x128xf32>
    %373 = arith.truncf %372 : vector<224x128xf32> to vector<224x128xbf16>
    %c224_215 = arith.constant 224 : index
    %c128_216 = arith.constant 128 : index
    %374 = vector.load %arg7[%c224_215, %c128_216] : memref<448x384xbf16, #tpu.memory_space<vmem>>, vector<224x128xbf16>
    tpu.vector_store %arg7[%c224_215, %c128_216], %373 {strides = array<i32>} : memref<448x384xbf16, #tpu.memory_space<vmem>>, vector<224x128xbf16>,
    %cst_217 = arith.constant 0.000000e+00 : f32
    %375 = vector.broadcast %cst_217 : f32 to vector<224x128xf32>
    %c256_218 = arith.constant 256 : index
    %c256_219 = arith.constant 256 : index
    %376 = vector.load %arg1[%c256_218, %c256_219] : memref<512x384xf32, #tpu.memory_space<vmem>>, vector<224x128xf32>
    %c0_220 = arith.constant 0 : index
    %c0_221 = arith.constant 0 : index
    %c256_222 = arith.constant 256 : index
    %377 = vector.load %arg2[%c0_220, %c0_221, %c256_222] : memref<3x3x384xf32, #tpu.memory_space<vmem>>, vector<1x1x128xf32>
    %378 = vector.shape_cast %377 : vector<1x1x128xf32> to vector<128xf32>
    %379 = vector.shape_cast %378 : vector<128xf32> to vector<1x128xf32>
    %380 = vector.broadcast %379 : vector<1x128xf32> to vector<224x128xf32>
    %381 = arith.mulf %376, %380 : vector<224x128xf32>
    %382 = arith.addf %375, %381 : vector<224x128xf32>
    %c223_i32_223 = arith.constant 223 : i32
    %383 = tpu.dynamic_rotate %376 by %c223_i32_223 dim 0 : vector<224x128xf32>, i32 -> vector<224x128xf32>
    %c0_224 = arith.constant 0 : index
    %c1_225 = arith.constant 1 : index
    %c256_226 = arith.constant 256 : index
    %384 = vector.load %arg2[%c0_224, %c1_225, %c256_226] : memref<3x3x384xf32, #tpu.memory_space<vmem>>, vector<1x1x128xf32>
    %385 = vector.shape_cast %384 : vector<1x1x128xf32> to vector<128xf32>
    %386 = vector.shape_cast %385 : vector<128xf32> to vector<1x128xf32>
    %387 = vector.broadcast %386 : vector<1x128xf32> to vector<224x128xf32>
    %388 = arith.mulf %383, %387 : vector<224x128xf32>
    %389 = arith.addf %382, %388 : vector<224x128xf32>
    %c222_i32_227 = arith.constant 222 : i32
    %390 = tpu.dynamic_rotate %376 by %c222_i32_227 dim 0 : vector<224x128xf32>, i32 -> vector<224x128xf32>
    %c0_228 = arith.constant 0 : index
    %c2_229 = arith.constant 2 : index
    %c256_230 = arith.constant 256 : index
    %391 = vector.load %arg2[%c0_228, %c2_229, %c256_230] : memref<3x3x384xf32, #tpu.memory_space<vmem>>, vector<1x1x128xf32>
    %392 = vector.shape_cast %391 : vector<1x1x128xf32> to vector<128xf32>
    %393 = vector.shape_cast %392 : vector<128xf32> to vector<1x128xf32>
    %394 = vector.broadcast %393 : vector<1x128xf32> to vector<224x128xf32>
    %395 = arith.mulf %390, %394 : vector<224x128xf32>
    %396 = arith.addf %389, %395 : vector<224x128xf32>
    %c272_231 = arith.constant 272 : index
    %c256_232 = arith.constant 256 : index
    %397 = vector.load %arg1[%c272_231, %c256_232] : memref<512x384xf32, #tpu.memory_space<vmem>>, vector<224x128xf32>
    %c1_233 = arith.constant 1 : index
    %c0_234 = arith.constant 0 : index
    %c256_235 = arith.constant 256 : index
    %398 = vector.load %arg2[%c1_233, %c0_234, %c256_235] : memref<3x3x384xf32, #tpu.memory_space<vmem>>, vector<1x1x128xf32>
    %399 = vector.shape_cast %398 : vector<1x1x128xf32> to vector<128xf32>
    %400 = vector.shape_cast %399 : vector<128xf32> to vector<1x128xf32>
    %401 = vector.broadcast %400 : vector<1x128xf32> to vector<224x128xf32>
    %402 = arith.mulf %397, %401 : vector<224x128xf32>
    %403 = arith.addf %396, %402 : vector<224x128xf32>
    %c223_i32_236 = arith.constant 223 : i32
    %404 = tpu.dynamic_rotate %397 by %c223_i32_236 dim 0 : vector<224x128xf32>, i32 -> vector<224x128xf32>
    %c1_237 = arith.constant 1 : index
    %c1_238 = arith.constant 1 : index
    %c256_239 = arith.constant 256 : index
    %405 = vector.load %arg2[%c1_237, %c1_238, %c256_239] : memref<3x3x384xf32, #tpu.memory_space<vmem>>, vector<1x1x128xf32>
    %406 = vector.shape_cast %405 : vector<1x1x128xf32> to vector<128xf32>
    %407 = vector.shape_cast %406 : vector<128xf32> to vector<1x128xf32>
    %408 = vector.broadcast %407 : vector<1x128xf32> to vector<224x128xf32>
    %409 = arith.mulf %404, %408 : vector<224x128xf32>
    %410 = arith.addf %403, %409 : vector<224x128xf32>
    %c222_i32_240 = arith.constant 222 : i32
    %411 = tpu.dynamic_rotate %397 by %c222_i32_240 dim 0 : vector<224x128xf32>, i32 -> vector<224x128xf32>
    %c1_241 = arith.constant 1 : index
    %c2_242 = arith.constant 2 : index
    %c256_243 = arith.constant 256 : index
    %412 = vector.load %arg2[%c1_241, %c2_242, %c256_243] : memref<3x3x384xf32, #tpu.memory_space<vmem>>, vector<1x1x128xf32>
    %413 = vector.shape_cast %412 : vector<1x1x128xf32> to vector<128xf32>
    %414 = vector.shape_cast %413 : vector<128xf32> to vector<1x128xf32>
    %415 = vector.broadcast %414 : vector<1x128xf32> to vector<224x128xf32>
    %416 = arith.mulf %411, %415 : vector<224x128xf32>
    %417 = arith.addf %410, %416 : vector<224x128xf32>
    %c288_244 = arith.constant 288 : index
    %c256_245 = arith.constant 256 : index
    %418 = vector.load %arg1[%c288_244, %c256_245] : memref<512x384xf32, #tpu.memory_space<vmem>>, vector<224x128xf32>
    %c2_246 = arith.constant 2 : index
    %c0_247 = arith.constant 0 : index
    %c256_248 = arith.constant 256 : index
    %419 = vector.load %arg2[%c2_246, %c0_247, %c256_248] : memref<3x3x384xf32, #tpu.memory_space<vmem>>, vector<1x1x128xf32>
    %420 = vector.shape_cast %419 : vector<1x1x128xf32> to vector<128xf32>
    %421 = vector.shape_cast %420 : vector<128xf32> to vector<1x128xf32>
    %422 = vector.broadcast %421 : vector<1x128xf32> to vector<224x128xf32>
    %423 = arith.mulf %418, %422 : vector<224x128xf32>
    %424 = arith.addf %417, %423 : vector<224x128xf32>
    %c223_i32_249 = arith.constant 223 : i32
    %425 = tpu.dynamic_rotate %418 by %c223_i32_249 dim 0 : vector<224x128xf32>, i32 -> vector<224x128xf32>
    %c2_250 = arith.constant 2 : index
    %c1_251 = arith.constant 1 : index
    %c256_252 = arith.constant 256 : index
    %426 = vector.load %arg2[%c2_250, %c1_251, %c256_252] : memref<3x3x384xf32, #tpu.memory_space<vmem>>, vector<1x1x128xf32>
    %427 = vector.shape_cast %426 : vector<1x1x128xf32> to vector<128xf32>
    %428 = vector.shape_cast %427 : vector<128xf32> to vector<1x128xf32>
    %429 = vector.broadcast %428 : vector<1x128xf32> to vector<224x128xf32>
    %430 = arith.mulf %425, %429 : vector<224x128xf32>
    %431 = arith.addf %424, %430 : vector<224x128xf32>
    %c222_i32_253 = arith.constant 222 : i32
    %432 = tpu.dynamic_rotate %418 by %c222_i32_253 dim 0 : vector<224x128xf32>, i32 -> vector<224x128xf32>
    %c2_254 = arith.constant 2 : index
    %c2_255 = arith.constant 2 : index
    %c256_256 = arith.constant 256 : index
    %433 = vector.load %arg2[%c2_254, %c2_255, %c256_256] : memref<3x3x384xf32, #tpu.memory_space<vmem>>, vector<1x1x128xf32>
    %434 = vector.shape_cast %433 : vector<1x1x128xf32> to vector<128xf32>
    %435 = vector.shape_cast %434 : vector<128xf32> to vector<1x128xf32>
    %436 = vector.broadcast %435 : vector<1x128xf32> to vector<224x128xf32>
    %437 = arith.mulf %432, %436 : vector<224x128xf32>
    %438 = arith.addf %431, %437 : vector<224x128xf32>
    %c0_257 = arith.constant 0 : index
    %c256_258 = arith.constant 256 : index
    %439 = vector.load %arg3[%c0_257, %c256_258] : memref<1x384xf32, #tpu.memory_space<vmem>>, vector<1x128xf32>
    %440 = vector.shape_cast %439 : vector<1x128xf32> to vector<128xf32>
    %441 = vector.shape_cast %440 : vector<128xf32> to vector<1x128xf32>
    %442 = vector.broadcast %441 : vector<1x128xf32> to vector<224x128xf32>
    %443 = arith.addf %438, %442 : vector<224x128xf32>
    %cst_259 = arith.constant 0.000000e+00 : f32
    %cst_260 = arith.constant 6.000000e+00 : f32
    %444 = vector.broadcast %cst_259 : f32 to vector<224x128xf32>
    %445 = arith.maximumf %444, %443 : vector<224x128xf32>
    %446 = vector.broadcast %cst_260 : f32 to vector<224x128xf32>
    %447 = arith.minimumf %446, %445 : vector<224x128xf32>
    %448 = arith.truncf %447 : vector<224x128xf32> to vector<224x128xbf16>
    %c224_261 = arith.constant 224 : index
    %c256_262 = arith.constant 256 : index
    %449 = vector.load %arg7[%c224_261, %c256_262] : memref<448x384xbf16, #tpu.memory_space<vmem>>, vector<224x128xbf16>
    tpu.vector_store %arg7[%c224_261, %c256_262], %448 {strides = array<i32>} : memref<448x384xbf16, #tpu.memory_space<vmem>>, vector<224x128xbf16>,
    %c0_263 = arith.constant 0 : index
    %c0_264 = arith.constant 0 : index
    %450 = vector.load %arg7[%c0_263, %c0_264] : memref<448x384xbf16, #tpu.memory_space<vmem>>, vector<448x384xbf16>
    %c0_265 = arith.constant 0 : index
    %c0_266 = arith.constant 0 : index
    %451 = vector.load %arg4[%c0_265, %c0_266] : memref<384x128xbf16, #tpu.memory_space<vmem>>, vector<384x128xbf16>
    %cst_267 = arith.constant dense<0.000000e+00> : vector<448x128xf32>
    %452 = tpu.matmul %450, %451, %cst_267 {dimension_numbers = #tpu.dot_dimension_numbers<[1], [0], [0], [1], [0, 0, 1, 1], [], []>} : vector<448x384xbf16>, vector<384x128xbf16>, vector<448x128xf32> -> vector<448x128xf32>
    %c0_268 = arith.constant 0 : index
    %c0_269 = arith.constant 0 : index
    %453 = vector.load %arg5[%c0_268, %c0_269] : memref<1x128xf32, #tpu.memory_space<vmem>>, vector<1x128xf32>
    %454 = vector.broadcast %453 : vector<1x128xf32> to vector<448x128xf32>
    %455 = arith.addf %452, %454 : vector<448x128xf32>
    %c0_270 = arith.constant 0 : index
    %c0_271 = arith.constant 0 : index
    %456 = vector.load %arg6[%c0_270, %c0_271] : memref<448x128xf32, #tpu.memory_space<vmem>>, vector<448x128xf32>
    tpu.vector_store %arg6[%c0_270, %c0_271], %455 {strides = array<i32>} : memref<448x128xf32, #tpu.memory_space<vmem>>, vector<448x128xf32>,
    return
  }
  func.func @transform_0(%arg0: i32) -> (i32, i32) {
    %c0_i32 = arith.constant 0 : i32
    %c0_i32_0 = arith.constant 0 : i32
    return %arg0, %c0_i32 : i32, i32
  }
  func.func @transform_1(%arg0: i32) -> (i32, i32, i32) {
    %c0_i32 = arith.constant 0 : i32
    %c0_i32_0 = arith.constant 0 : i32
    %c0_i32_1 = arith.constant 0 : i32
    %c0_i32_2 = arith.constant 0 : i32
    return %c0_i32, %c0_i32_0, %c0_i32_1 : i32, i32, i32
  }
  func.func @transform_2(%arg0: i32) -> (i32, i32) {
    %c0_i32 = arith.constant 0 : i32
    %c0_i32_0 = arith.constant 0 : i32
    %c0_i32_1 = arith.constant 0 : i32
    return %c0_i32, %c0_i32_0 : i32, i32
  }
  func.func @transform_3(%arg0: i32) -> (i32, i32) {
    %c0_i32 = arith.constant 0 : i32
    %c0_i32_0 = arith.constant 0 : i32
    %c0_i32_1 = arith.constant 0 : i32
    return %c0_i32, %c0_i32_0 : i32, i32
  }
  func.func @transform_4(%arg0: i32) -> (i32, i32) {
    %c0_i32 = arith.constant 0 : i32
    %c0_i32_0 = arith.constant 0 : i32
    %c0_i32_1 = arith.constant 0 : i32
    return %c0_i32, %c0_i32_0 : i32, i32
  }
  func.func @transform_5(%arg0: i32) -> (i32, i32) {
    %c0_i32 = arith.constant 0 : i32
    %c0_i32_0 = arith.constant 0 : i32
    return %arg0, %c0_i32 : i32, i32
  }
}

</mosaic_0001>

<bundles_post_ra>
// kernel: tpu_custom_call.1
= control target key start
LH: loop header
LB: loop body
LE: loop exit
PB: predicated region body
PF: predicated region fallthrough
CT: control target
= control target key end

     0   :  { %10 = vsyncpa [#allocation4], 0  ;;  %s16313_s0 = inlined_call_operand.hbm [shape: f32[1024,384], index: 0, kind: input, shape index: {}]   ;;  %s16314_s1 = inlined_call_operand.hbm [shape: f32[3,3,384], index: 1, kind: input, shape index: {}]   ;;  %s16315_s2 = inlined_call_operand.hbm [shape: f32[1,384], index: 2, kind: input, shape index: {}]   ;;  %s16316_s3 = inlined_call_operand.hbm [shape: bf16[384,128], index: 3, kind: input, shape index: {}]   ;;  %s16317_s4 = inlined_call_operand.hbm [shape: f32[1,128], index: 4, kind: input, shape index: {}]   ;;  %s16318_s5 = inlined_call_operand.hbm [shape: f32[896,128], index: 5, kind: output, shape index: {}]  }
   0x1   :  { %12 = vsyncpa [#allocation4 + $0x1], 0 }
   0x2   :  { %13 = vsyncpa [#allocation7], 0 }
   0x3   :  { %14 = vsyncpa [#allocation10], 0 }
   0x4   :  { %15 = vsyncpa [#allocation5], 0 }
   0x5   :  { %17 = vsyncpa [#allocation5 + $0x1], 0  ;;  %s9041_s18 = smov 0   ;;  %s9043_s19 = smov 0  }
   0x6   :  { %s9045_s20 = smov 0   ;;  %s9047_s21 = smov 0  }
   0x7 LB: > { %s9062_s22 = sadd.s32 4294967295, %s8994_s21   ;;  %s7681_s23 = sadd.s32 4294967294, %s8994_s21   ;;  %s8994_s21 = sphi %s9047_s21, %s17726_s21   ;;  %s8990_s20 = sphi %s9045_s20, %s17725_s20   ;;  %s8986_s19 = sphi %s9043_s19, %s17724_s19   ;;  %s8982_s18 = sphi %s9041_s18, %s17723_s18  }
   0x8   : > { %p43_p0 = scmp.ne.s32.totalorder %s8986_s19, %s8982_s18  ;;  %p16319_p1 = scmp.eq.s32.totalorder %s9062_s22, 0 }
   0x9   : > { %p157_p3 = scmp.eq.s32.totalorder %s7681_s23, 1  ;;  %p7682_p5 = scmp.ge.s32.totalorder %s8994_s21, 1 }
   0xa   : > { %p9071_p4 = por %p16319_p1, %p43_p0  ;;  %p164_p7 = scmp.lt.s32.totalorder %s8994_s21, 3 }
   0xb   : > { %p9076_p6 = por %p157_p3, %p43_p0  ;;  %s8996_s27 = smov [#allocation6]  }
   0xc   : > { %s16792_s24 = scalar_select %p9071_p4, 1, 0 }
   0xd   : > { %s16793_s25 = scalar_select %p9076_p6, 1, 0 }
   0xe   : > { %p9081_p8 = pnand %p7682_p5, %p164_p7  ;;  %s176_s28 = sshll.u32 %s8996_s27, 4  ;;  %s177_s28 = int_to_ptr.vmem [resolvable:$true] %s176_s28 }
   0xf   : > { %s8997_s30 = smov [#allocation9]   ;;  %s8801_s7 = scalar_lea.vmem %s177_s28, 576 }
  0x10   : > { %s16794_s26 = scalar_select %p9081_p8, 1, 0 }
  0x11   : > { %p8369_p9 = pneg %p9081_p8  ;;  %s200_s6 = sshll.u32 %s8997_s30, 4  ;;  %s201_s6 = int_to_ptr.vmem [resolvable:$true] %s200_s6 }
  0x12   : > { %p8802_p13 = scmp.ne.s32.totalorder %s177_s28, %s8801_s7  ;;  %p8809_p5 = scmp.lt.s32.totalorder %s177_s28, %s177_s28 }
  0x13   : > { %p9090_p11 = pnand %p8369_p9, %p16319_p1  ;;  %p8810_p7 = scmp.lt.s32.totalorder %s8801_s7, %s8801_s7 }
  0x15   : > { %p8792_p12 = pneg %p9090_p11  ;;  %p8811_p10 = por %p8810_p7, %p8809_p5 }
  0x17   : > { %p8804_p0 = pnand %p8802_p13, %p8792_p12 }
  0x19   : > { %p8805_p3 = pneg %p8804_p0 }
  0x1b   : > { %p8812_p9 = pnand %p8811_p10, %p8805_p3 }
  0x1d   : > { %8815 = shalt.err (!%p8812_p9)
}
  0x1e   : > { %s8998_s8 = smov 192   ;;  %s8999_s9 = smov 12  }
  0x1f   : > { %8372 = dma.hbm_to_vmem [thread:$0]  (!%p9090_p11), %s16314_s1, 576, %s177_s28, [#allocation7], %s8998_s8, %s8998_s8, %s8999_s9  }
  0x20   : > { %s8827_s12 = scalar_lea.vmem %s201_s6, 3072  ;;  %p8835_p2 = scmp.lt.s32.totalorder %s201_s6, %s201_s6 }
  0x21   : > { %p8828_p1 = scmp.ne.s32.totalorder %s201_s6, %s8827_s12  ;;  %p8836_p6 = scmp.lt.s32.totalorder %s8827_s12, %s8827_s12 }
  0x23   : > { %p8830_p13 = pnand %p8828_p1, %p8792_p12  ;;  %p8837_p5 = por %p8836_p6, %p8835_p2 }
  0x25   : > { %p8831_p0 = pneg %p8830_p13 }
  0x27   : > { %p8838_p10 = pnand %p8837_p5, %p8831_p0 }
  0x29   : > { %8841 = shalt.err (!%p8838_p10)
}
  0x2a   : > { %s9000_s13 = smov 64   ;;  %s9001_s14 = smov 4  }
  0x2b   : > { %8378 = dma.hbm_to_vmem [thread:$0]  (!%p9090_p11), %s16316_s3, 3072, %s201_s6, [#allocation10], %s9000_s13, %s9000_s13, %s9001_s14  }
  0x2c   : > { %s9002_s17 = smov [#allocation8]   ;;  %s9003_s27 = smov [#allocation11]  }
  0x2d   : > { %s190_s23 = sshll.u32 %s9002_s17, 4  ;;  %s214_s28 = sshll.u32 %s9003_s27, 4  ;;  %s191_s23 = int_to_ptr.vmem [resolvable:$true] %s190_s23  ;;  %s215_s28 = int_to_ptr.vmem [resolvable:$true] %s214_s28 }
  0x2e   : > { %s8853_s30 = scalar_lea.vmem %s191_s23, 48  ;;  %s8860_s7 = scalar_lea.vmem %s191_s23, 64 }
  0x2f   : > { %p8854_p1 = scmp.ne.s32.totalorder %s191_s23, %s8853_s30  ;;  %p8861_p3 = scmp.lt.s32.totalorder %s191_s23, %s191_s23 }
  0x30   : > { %p8862_p7 = scmp.lt.s32.totalorder %s8860_s7, %s8853_s30 }
  0x31   : > { %p8856_p2 = pnand %p8854_p1, %p8792_p12 }
  0x32   : > { %p8863_p9 = por %p8862_p7, %p8861_p3 }
  0x33   : > { %p8857_p6 = pneg %p8856_p2 }
  0x35   : > { %p8864_p13 = pnand %p8863_p9, %p8857_p6 }
  0x37   : > { %8867 = shalt.err (!%p8864_p13)
}
  0x38   : > { %8375 = dma.hbm_to_vmem [thread:$0]  (!%p9090_p11), %s16315_s2, 48, %s191_s23, [#allocation7]  }
  0x39   : > { %s8879_s9 = scalar_lea.vmem %s215_s28, 16  ;;  %s8886_s10 = scalar_lea.vmem %s215_s28, 32 }
  0x3a   : > { %p8880_p0 = scmp.ne.s32.totalorder %s215_s28, %s8879_s9  ;;  %p8887_p1 = scmp.lt.s32.totalorder %s215_s28, %s215_s28 }
  0x3b   : > { %p8888_p2 = scmp.lt.s32.totalorder %s8886_s10, %s8879_s9 }
  0x3c   : > { %p8882_p5 = pnand %p8880_p0, %p8792_p12 }
  0x3d   : > { %p8889_p4 = por %p8888_p2, %p8887_p1 }
  0x3e   : > { %p8883_p10 = pneg %p8882_p5 }
  0x40   : > { %p8890_p3 = pnand %p8889_p4, %p8883_p10 }
  0x42   : > { %8893 = shalt.err (!%p8890_p3)
}
  0x43   : > { %8381 = dma.hbm_to_vmem [thread:$0]  (!%p9090_p11), %s16317_s4, 16, %s215_s28, [#allocation10]  }
  0x44   : > { %s9129_s13 = sadd.s32 1, %s8994_s21   ;;  %s30_s29 = sadd.s32 1, %s8990_s20 }
  0x45   : > { %s27_s14 = ssub.s32 %s8994_s21, %s9129_s13  ;;  %p37_p12 = scmp.ne.s32.totalorder %s8990_s20, %s8986_s19 }
  0x46   : > { %p28_p4 = scmp.eq.s32.totalorder %s27_s14, 0  ;;  %p38_p6 = scmp.eq.s32.totalorder %s8994_s21, 0 }
  0x47   : > { %p16796_p9 = scmp.eq.s32.totalorder %s9062_s22, 1  ;;  %p8394_p0 = scmp.lt.s32.totalorder %s8994_s21, 2 }
  0x48   : > { %s9138_s15 = scalar_select %p28_p4, %s8990_s20, %s30_s29  }
  0x49   : > { %p39_p7 = por %p38_p6, %p37_p12  ;;  %p9142_p13 = por %p16796_p9, %p37_p12 }
  0x4a   : > { %s225_s17 = sand.u32 1, %s8990_s20   ;;  %s8346_s27 = smul.u32 24576, %s8994_s21 }
  0x4b   : > { %s16797_s16 = scalar_select %p9142_p13, 1, 0 }
  0x4c   : > { %s8345_s23 = smul.u32 1536, %s225_s17  ;;  %p9149_p11 = pnand %p8394_p0, %p39_p7 }
  0x4d   : > { %s9156_s6 = scalar_lea.hbm %s16313_s0, %s8346_s27  ;;  %s9160_s10 = scalar_lea.sflag [#allocation4], %s225_s17 }
  0x4e   : > { %s229_s8 = scalar_lea.vmem [#allocation3], %s8345_s23  ;;  %s8894_s11 = scalar_lea.hbm %s9156_s6, 24576 }
  0x4f   : > { %s237_s9 = sshll.u32 %s229_s8, 4  ;;  %p8895_p5 = scmp.ne.s32.totalorder %s9156_s6, %s8894_s11  ;;  %s9158_s9 = int_to_ptr.vmem [resolvable:$true] %s237_s9 }
  0x50   : > { %p8896_p10 = pneg %p9149_p11  ;;  %s8899_s29 = scalar_lea.hbm %s16313_s0, 49152 }
  0x51   : > { %p8900_p3 = scmp.lt.s32.totalorder %s9156_s6, %s16313_s0  ;;  %p8901_p4 = scmp.lt.s32.totalorder %s8899_s29, %s8894_s11 }
  0x52   : > { %p8897_p1 = pnand %p8896_p10, %p8895_p5 }
  0x53   : > { %p8902_p12 = por %p8901_p4, %p8900_p3 }
  0x54   : > { %p8898_p2 = pneg %p8897_p1 }
  0x56   : > { %p8903_p6 = pnand %p8902_p12, %p8898_p2 }
  0x58   : > { %8906 = shalt.err (!%p8903_p6)
}
  0x59   : > { %s8907_s17 = scalar_lea.vmem %s9158_s9, 24576  ;;  %s9004_s23 = smov [#allocation3]  }
  0x5a   : > { %p8908_p7 = scmp.ne.s32.totalorder %s9158_s9, %s8907_s17  ;;  %s8912_s7 = sshll.u32 %s9004_s23, 4  ;;  %s8913_s7 = int_to_ptr.vmem [resolvable:$false] %s8912_s7 }
  0x5b   : > { %s8914_s8 = scalar_lea.vmem %s8913_s7, 49152  ;;  %p8915_p5 = scmp.lt.s32.totalorder %s9158_s9, %s8913_s7 }
  0x5c   : > { %p8910_p9 = pnand %p8908_p7, %p8896_p10  ;;  %p8916_p1 = scmp.lt.s32.totalorder %s8914_s8, %s8907_s17 }
  0x5e   : > { %p8911_p0 = pneg %p8910_p9  ;;  %p8917_p13 = por %p8916_p1, %p8915_p5 }
  0x60   : > { %p8918_p8 = pnand %p8917_p13, %p8911_p0 }
  0x62   : > { %8921 = shalt.err (!%p8918_p8)
}
  0x63   : > { %s9005_s11 = smov 384   ;;  %s9006_s12 = smov 24  }
  0x64   : > { %8385 = dma.hbm_to_vmem [thread:$0]  (!%p9149_p11), %s9156_s6, 24576, %s9158_s9, %s9160_s10, %s9005_s11, %s9005_s11, %s9006_s12  }
  0x65   : > { %p16799_p10 = scmp.ne.s32.totalorder %s16794_s26, 0 }
  0x67   : > { %249 = sbr.rel (%p16799_p10) target bundleno = 1507 (0x5e3), region = 40 }
  0x6c   : > { %s9184_s14 = sand.u32 1, %s8986_s19   ;;  %p16800_p8 = scmp.ne.s32.totalorder %s16792_s24, 0 }
  0x6d   : > { %s8347_s29 = smul.u32 1536, %s9184_s14  ;;  %s252_s27 = scalar_lea.sflag [#allocation4], %s9184_s14 }
  0x6f   : > { %s9188_s30 = scalar_lea.vmem [#allocation3], %s8347_s29 }
  0x70   : > { %8965 = dma.done.wait (%p16800_p8), %s252_s27, 24576  }
  0x71   : > { %8967 = vsyncadd (%p16800_p8), %s252_s27, 4294942720  ;;  %p16801_p13 = scmp.eq.s32.totalorder %s9062_s22, 0 }
  0x73   : > { %8969 = dma.done.wait (%p16801_p13), [#allocation7], 624   ;;  %p16802_p11 = pmov %p16801_p13 }
  0x75   : > { %8971 = vsyncadd (%p16802_p11), [#allocation7], 4294966672  ;;  %p16803_p2 = pmov %p16802_p11 }
  0x77   : > { %8973 = dma.done.wait (%p16803_p2), [#allocation10], 3088   ;;  %p16804_p3 = pmov %p16803_p2 }
  0x78   : > { %v16331_v0 = vmov 0   ;;  %v8445_v1 = vld [vmem:[#allocation9 + $0x38] sm:$0xff]   ;;  %v8446_v2 = vld [vmem:[#allocation9 + $0x30] sm:$0xff]   ;;  %v8447_v3 = vld [vmem:[#allocation9 + $0x28] sm:$0xff]   ;;  %v418_v4 = vlaneseq  ;;  %s8348_s24 = smul.u32 448, %s9184_s14  ;;  %p17720_p12 = scmp.ne.s32.totalorder %s16797_s16, 0 }
  0x79   : > { %8975 = vsyncadd (%p16804_p3), [#allocation10], 4294964208  ;;  %6986 = vmatprep.subr.bf16.mxu0 %v16331_v0  ;;  %8313 = vmatprep.subr.bf16.mxu1 %v16331_v0  ;;  %v8448_v5 = vld [vmem:[#allocation9 + $0x20] sm:$0xff]   ;;  %v8449_v7 = vld [vmem:[#allocation9 + $0x18] sm:$0xff]   ;;  %s8204_s28 = smul.u32 7168, %s9062_s22  ;;  %s7557_s22 = scalar_lea.sflag [#allocation5], %s9184_s14 }
  0x7a   : > { %6987 = vmatpush1.bf16.msra.mxu0 %v8445_v1  ;;  %8329 = vmatpush1.bf16.msra.mxu1 %v8445_v1  ;;  %v9210_v6 = vshrl.u32 %v418_v4, 7  ;;  %v9215_v8 = vld [vmem:[%s9188_s30] sm:$0xff]  ;;  %v302_v9 = vld [vmem:[%s9188_s30 + $0x18] sm:$0xff]  ;;  %v303_v10 = vld [vmem:[%s9188_s30 + $0x30] sm:$0xff]  ;;  %s16105_s26 = scalar_lea.vmem [#allocation12], %s8348_s24  ;;  %s9008_s7 = smov [#allocation12]  }
  0x7b   : > { %6988 = vmatprep.subr.bf16.mxu0 %v16331_v0  ;;  %8314 = vmatprep.subr.bf16.mxu1 %v16331_v0  ;;  %16805 = vst [vmem:[#allocation17_spill] sm:$0xff] %v9215_v8  ;;  %v304_v11 = vld [vmem:[%s9188_s30 + $0x48] sm:$0xff]  ;;  %v9223_v12 = vld [vmem:[%s9188_s30 + $0x60] sm:$0xff]  ;;  %v16324_v14 = vrot.slane %v9215_v8, 1  ;;  %v391_v15 = vrot.slane %v302_v9, 1  ;;  %v8450_v16 = vld [vmem:[#allocation9 + $0x10] sm:$0xff]   ;;  %s16266_s17 = scalar_lea.hbm %s16318_s5, %s8204_s28 }
  0x7c   : > { %vm420_vm0 = vcmp.lt.s32.totalorder %v9210_v6, 7  ;;  %vm538_vm1 = vcmp.lt.s32.totalorder %v9210_v6, 6  ;;  %v9225_v13 = vld [vmem:[#allocation6] ss:$0 sm:$0xff]  ;;  %v9232_v20 = vrot.slane %v303_v10, 1  ;;  %v393_v23 = vrot.slane %v304_v11, 1 }
  0x7d   : > { %v334_v17 = vmul.f32 %v9225_v13, %v9215_v8  ;;  %v335_v18 = vmul.f32 %v9225_v13, %v302_v9  ;;  %v336_v19 = vmul.f32 %v9225_v13, %v303_v10  ;;  %v9234_v21 = vld [vmem:[#allocation6 + $0x1] ss:$0 sm:$0xff]  ;;  %v337_v22 = vmul.f32 %v9225_v13, %v304_v11  ;;  %v9260_v34 = vld [vmem:[#allocation6 + $0x2] ss:$0 sm:$0xff]  ;;  %v8451_v35 = vld [vmem:[#allocation9 + $0x8] sm:$0xff]   ;;  %s7570_s6 = sshll.u32 %s16105_s26, 4  ;;  %s16268_s6 = int_to_ptr.vmem [resolvable:$true] %s7570_s6 }
  0x7e   : > { %6989 = vmatpush1.bf16.msra.mxu0 %v8446_v2  ;;  %8330 = vmatpush1.bf16.msra.mxu1 %v8446_v2  ;;  %16806 = vst [vmem:[#allocation18_spill] sm:$0xff] %v9232_v20  ;;  %v9240_v24 = vrot.slane %v9223_v12, 1  ;;  %v447_v25 = vsel %vm420_vm0, %v16324_v14, %v391_v15  ;;  %v446_v26 = vsel %vm420_vm0, %v391_v15, %v9232_v20  ;;  %v16323_v28 = vrot.slane %v9215_v8, 2  ;;  %v9264_v40 = vld [vmem:[#allocation6 + $0xc] ss:$0 sm:$0xff]  ;;  %v9279_v45 = vld [vmem:[%s9188_s30 + $0x78] sm:$0xff] }
  0x7f   : > { %6990 = vmatprep.subr.bf16.mxu0 %v16331_v0  ;;  %8315 = vmatprep.subr.bf16.mxu1 %v16331_v0  ;;  %v454_v27 = vmul.f32 %v9234_v21, %v447_v25  ;;  %v511_v29 = vrot.slane %v302_v9, 2  ;;  %v445_v31 = vsel %vm420_vm0, %v9232_v20, %v393_v23  ;;  %v455_v32 = vmul.f32 %v9234_v21, %v446_v26  ;;  %v9286_v50 = vld [vmem:[%s9188_s30 + $0x90] sm:$0xff]  ;;  %v8452_v55 = vld [vmem:[#allocation9] sm:$0xff]   ;;  %s8922_s23 = scalar_lea.vmem %s16268_s6, 7168  ;;  %s8926_s8 = sshll.u32 %s9008_s7, 4  ;;  %s8927_s8 = int_to_ptr.vmem [resolvable:$false] %s8926_s8 }
  0x80   : > { %16807 = vst [vmem:[#allocation19_spill] sm:$0xff] %v9240_v24  ;;  %v444_v30 = vsel %vm420_vm0, %v393_v23, %v9240_v24  ;;  %v9258_v33 = vrot.slane %v303_v10, 2  ;;  %v456_v36 = vmul.f32 %v9234_v21, %v445_v31  ;;  %v513_v39 = vrot.slane %v304_v11, 2  ;;  %v9302_v1 = vld [vmem:[#allocation6 + $0xd] ss:$0 sm:$0xff]  ;;  %p8923_p4 = scmp.ne.s32.totalorder %s16268_s6, %s8922_s23  ;;  %s8928_s11 = scalar_lea.vmem %s8927_s8, 14336 }
  0x81   : > { %v457_v37 = vmul.f32 %v9234_v21, %v444_v30  ;;  %v482_v38 = vadd.f32 %v454_v27, %v334_v17  ;;  %v483_v41 = vadd.f32 %v455_v32, %v335_v18  ;;  %v9269_v42 = vrot.slane %v9223_v12, 2  ;;  %p8929_p9 = scmp.lt.s32.totalorder %s16268_s6, %s8927_s8  ;;  %p8930_p0 = scmp.lt.s32.totalorder %s8928_s11, %s8922_s23 }
  0x82   : > { %6991 = vmatpush1.bf16.msra.mxu0 %v8447_v3  ;;  %8331 = vmatpush1.bf16.msra.mxu1 %v8447_v3  ;;  %16808 = vst [vmem:[#allocation20_spill] sm:$0xff] %v9258_v33  ;;  %v564_v43 = vsel %vm538_vm1, %v511_v29, %v9258_v33  ;;  %v565_v44 = vsel %vm538_vm1, %v16323_v28, %v511_v29  ;;  %v721_v59 = vrot.slane %v9279_v45, 1  ;;  %v16328_v63 = vrot.slane %v9286_v50, 1  ;;  %v9329_v29 = vld [vmem:[%s9188_s30 + $0x8] sm:$0xff]  ;;  %p8924_p6 = pnand %p8923_p4, %p17720_p12 }
  0x83   : > { %6992 = vmatprep.subr.bf16.mxu0 %v16331_v0  ;;  %8316 = vmatprep.subr.bf16.mxu1 %v16331_v0  ;;  %16809 = vst [vmem:[#allocation21_spill] sm:$0xff] %v9269_v42  ;;  %v484_v46 = vadd.f32 %v456_v36, %v336_v19  ;;  %v485_v47 = vadd.f32 %v457_v37, %v337_v22  ;;  %v838_v22 = vrot.slane %v9279_v45, 2  ;;  %v16327_v26 = vrot.slane %v9286_v50, 2  ;;  %v9335_v36 = vld [vmem:[#allocation6 + $0x18] ss:$0 sm:$0xff]  ;;  %p8931_p5 = por %p8930_p0, %p8929_p9 }
  0x84   : > { %v563_v48 = vsel %vm538_vm1, %v9258_v33, %v513_v39  ;;  %v572_v49 = vmul.f32 %v9260_v34, %v565_v44  ;;  %v562_v51 = vsel %vm538_vm1, %v513_v39, %v9269_v42  ;;  %v573_v52 = vmul.f32 %v9260_v34, %v564_v43  ;;  %16811 = vst [vmem:[#allocation23_spill] sm:$0xff] %v9329_v29  ;;  %v9337_v37 = vld [vmem:[#allocation6 + $0x19] ss:$0 sm:$0xff]  ;;  %p8925_p7 = pneg %p8924_p6 }
  0x85   : > { %v574_v53 = vmul.f32 %v9260_v34, %v563_v48  ;;  %v662_v54 = vmul.f32 %v9264_v40, %v303_v10  ;;  %v575_v56 = vmul.f32 %v9260_v34, %v562_v51  ;;  %v663_v58 = vmul.f32 %v9264_v40, %v304_v11 }
  0x86   : > { %6993 = vmatpush1.bf16.msra.mxu0 %v8448_v5  ;;  %8332 = vmatpush1.bf16.msra.mxu1 %v8448_v5  ;;  %v600_v57 = vadd.f32 %v572_v49, %v482_v38  ;;  %v601_v60 = vadd.f32 %v573_v52, %v483_v41  ;;  %v664_v62 = vmul.f32 %v9264_v40, %v9223_v12  ;;  %v9340_v38 = vld [vmem:[%s9188_s30 + $0x20] sm:$0xff]  ;;  %v16817_v33 = vmov 0   ;;  %p8932_p1 = pnand %p8931_p5, %p8925_p7 }
  0x87   : > { %6994 = vmatprep.subr.bf16.mxu0 %v16331_v0  ;;  %8317 = vmatprep.subr.bf16.mxu1 %v16331_v0  ;;  %v602_v61 = vadd.f32 %v574_v53, %v484_v46  ;;  %v603_v2 = vadd.f32 %v575_v56, %v485_v47  ;;  %v665_v3 = vmul.f32 %v9264_v40, %v9279_v45  ;;  %v9347_v46 = vld [vmem:[#allocation6 + $0x1a] ss:$0 sm:$0xff]  ;;  %v9350_v52 = vld [vmem:[#allocation6 + $0x4] ss:$0 sm:$0xff]  ;;  %v16325_v53 = vrot.slane %v9329_v29, 1 }
  0x88   : > { %v9308_v4 = vmul.f32 %v9264_v40, %v9286_v50  ;;  %v690_v5 = vadd.f32 %v662_v54, %v600_v57  ;;  %v691_v9 = vadd.f32 %v663_v58, %v601_v60  ;;  %v769_v11 = vsel %vm420_vm0, %v721_v59, %v16328_v63  ;;  %v8454_v47 = vld [vmem:[#allocation9 + $0x70] sm:$0xff]   ;;  %v9365_v58 = vld [vmem:[%s9188_s30 + $0x50] sm:$0xff] }
  0x89   : > { %v692_v10 = vadd.f32 %v664_v62, %v602_v61  ;;  %v770_v15 = vsel %vm420_vm0, %v9240_v24, %v721_v59  ;;  %v693_v17 = vadd.f32 %v665_v3, %v603_v2  ;;  %v779_v18 = vmul.f32 %v9302_v1, %v445_v31  ;;  %v9362_v57 = vld [vmem:[%s9188_s30 + $0x38] sm:$0xff]  ;;  %v9368_v59 = vld [vmem:[%s9188_s30 + $0x68] sm:$0xff]  ;;  %v8459_v63 = vld [vmem:[#allocation9 + $0x48] sm:$0xff]  }
  0x8a   : > { %6995 = vmatpush1.bf16.msra.mxu0 %v8449_v7  ;;  %8333 = vmatpush1.bf16.msra.mxu1 %v8449_v7  ;;  %16810 = vst [vmem:[#allocation22_spill] sm:$0xff] %v9308_v4  ;;  %v9310_v7 = vld [vmem:[#allocation6 + $0xe] ss:$0 sm:$0xff]  ;;  %v780_v19 = vmul.f32 %v9302_v1, %v444_v30  ;;  %v781_v23 = vmul.f32 %v9302_v1, %v770_v15  ;;  %v1469_v60 = vrot.slane %v9340_v38, 1  ;;  %v9455_v28 = vrot.slane %v9362_v57, 2 }
  0x8b   : > { %6996 = vmatprep.subr.bf16.mxu0 %v16331_v0  ;;  %8318 = vmatprep.subr.bf16.mxu1 %v16331_v0  ;;  %v782_v25 = vmul.f32 %v9302_v1, %v769_v11  ;;  %v896_v27 = vmul.f32 %v9310_v7, %v563_v48  ;;  %v807_v31 = vadd.f32 %v779_v18, %v690_v5 }
  0x8c   : > { %v808_v32 = vadd.f32 %v780_v19, %v691_v9  ;;  %v887_v30 = vsel %vm538_vm1, %v9269_v42, %v838_v22  ;;  %v809_v39 = vadd.f32 %v781_v23, %v692_v10  ;;  %v886_v43 = vsel %vm538_vm1, %v838_v22, %v16327_v26  ;;  %v9378_v9 = vld [vmem:[%s9188_s30 + $0x80] sm:$0xff]  ;;  %v9381_v10 = vld [vmem:[%s9188_s30 + $0x98] sm:$0xff]  ;;  %16814 = vst [vmem:[#allocation26_spill] sm:$0xff] %v9455_v28 }
  0x8d   : > { %v810_v41 = vadd.f32 %v782_v25, %v693_v17  ;;  %v898_v44 = vmul.f32 %v9310_v7, %v887_v30  ;;  %v899_v48 = vmul.f32 %v9310_v7, %v886_v43  ;;  %v924_v49 = vadd.f32 %v896_v27, %v807_v31  ;;  %v8455_v17 = vld [vmem:[#allocation9 + $0x68] sm:$0xff]   ;;  %v9396_v25 = vld [vmem:[#allocation8] ss:$0 sm:$0xff] }
  0x8e   : > { %6997 = vmatpush1.bf16.msra.mxu0 %v8450_v16  ;;  %8334 = vmatpush1.bf16.msra.mxu1 %v8450_v16  ;;  %v8453_v16 = vld [vmem:[#allocation9 + $0x78] sm:$0xff]   ;;  %v961_v56 = vmul.f32 %v9335_v36, %v9279_v45  ;;  %v1026_v62 = vmul.f32 %v9337_v37, %v770_v15  ;;  %v1027_v2 = vmul.f32 %v9337_v37, %v769_v11  ;;  %v9392_v19 = vrot.slane %v9362_v57, 1 }
  0x8f   : > { %6998 = vmatprep.subr.bf16.mxu0 %v16331_v0  ;;  %8319 = vmatprep.subr.bf16.mxu1 %v16331_v0  ;;  %v9355_v54 = vadd.f32 %v898_v44, %v809_v39  ;;  %v9371_v61 = vadd.f32 %v899_v48, %v810_v41  ;;  %v1092_v3 = vmul.f32 %v9347_v46, %v887_v30  ;;  %v1471_v31 = vrot.slane %v9365_v58, 1 }
  0x90   : > { %v1093_v45 = vmul.f32 %v9347_v46, %v886_v43  ;;  %v1413_v15 = vmul.f32 %v9350_v52, %v9340_v38  ;;  %v1414_v11 = vmul.f32 %v9350_v52, %v9362_v57  ;;  %v1415_v18 = vmul.f32 %v9350_v52, %v9365_v58  ;;  %16812 = vst [vmem:[#allocation24_spill] sm:$0xff] %v9392_v19 }
  0x91   : > { %v1416_v27 = vmul.f32 %v9350_v52, %v9368_v59  ;;  %v1417_v30 = vmul.f32 %v9350_v52, %v9378_v9  ;;  %v1473_v39 = vrot.slane %v9378_v9, 1  ;;  %v16326_v41 = vrot.slane %v9381_v10, 1 }
  0x92   : > { %6999 = vmatpush1.bf16.msra.mxu0 %v8451_v35  ;;  %8335 = vmatpush1.bf16.msra.mxu1 %v8451_v35  ;;  %v897_v35 = vmul.f32 %v9310_v7, %v562_v51  ;;  %v1521_v48 = vsel %vm420_vm0, %v1469_v60, %v9392_v19 }
  0x93   : > { %7000 = vmatprep.subr.bf16.mxu0 %v16331_v0  ;;  %8320 = vmatprep.subr.bf16.mxu1 %v16331_v0 }
  0x94   : > { %v925_v51 = vadd.f32 %v897_v35, %v808_v32  ;;  %v9401_v32 = vld [vmem:[#allocation6 + $0x5] ss:$0 sm:$0xff]  ;;  %v9406_v35 = vrot.slane %v9368_v59, 1 }
  0x96   : > { %7001 = vmatpush1.bf16.msra.mxu0 %v8452_v55  ;;  %8336 = vmatpush1.bf16.msra.mxu1 %v8452_v55  ;;  %v960_v55 = vmul.f32 %v9335_v36, %v9223_v12  ;;  %v989_v5 = vadd.f32 %v961_v56, %v925_v51  ;;  %16813 = vst [vmem:[#allocation25_spill] sm:$0xff] %v9406_v35 }
  0x97   : > { %7002 = vmatprep.subr.bf16.mxu0 %v16331_v0  ;;  %8321 = vmatprep.subr.bf16.mxu1 %v16331_v0  ;;  %v9422_v51 = vsel %vm420_vm0, %v1473_v39, %v16326_v41  ;;  %v9432_v56 = vsel %vm420_vm0, %v1471_v31, %v9406_v35  ;;  %v9460_v41 = vld [vmem:[%s9188_s30 + $0x450] sm:$0xff] }
  0x98   : > { %v988_v12 = vadd.f32 %v960_v55, %v924_v49  ;;  %v1055_v23 = vadd.f32 %v1027_v2, %v989_v5  ;;  %v8456_v49 = vld [vmem:[#allocation9 + $0x60] sm:$0xff]   ;;  %v9427_v55 = vsel %vm420_vm0, %v9406_v35, %v1473_v39  ;;  %v1586_v5 = vrot.slane %v9340_v38, 2  ;;  %v8457_v38 = vld [vmem:[#allocation9 + $0x58] sm:$0xff]   ;;  %16815 = vst [vmem:[#allocation27_spill] sm:$0xff] %v9460_v41 }
  0x99   : > { %v16353_v24 = vrot.slane %v9460_v41, 2 }
  0x9a   : > { %7003 = vmatpush2.bf16.msra.mxu0 %v8453_v16  ;;  %8337 = vmatpush2.bf16.msra.mxu1 %v8453_v16  ;;  %v1412_v16 = vmul.f32 %v9350_v52, %v9329_v29  ;;  %v1054_v22 = vadd.f32 %v1026_v62, %v988_v12  ;;  %v1121_v44 = vadd.f32 %v1093_v45, %v1055_v23  ;;  %v16330_v62 = vrot.slane %v9329_v29, 2 }
  0x9b   : > { %7004 = vmatprep.subr.bf16.mxu0 %v16331_v0  ;;  %8322 = vmatprep.subr.bf16.mxu1 %v16331_v0  ;;  %v1522_v12 = vsel %vm420_vm0, %v16325_v53, %v1469_v60  ;;  %v1532_v23 = vmul.f32 %v9401_v32, %v9432_v56  ;;  %v1534_v60 = vmul.f32 %v9401_v32, %v9422_v51 }
  0x9c   : > { %v1120_v43 = vadd.f32 %v1092_v3, %v1054_v22  ;;  %v1156_v3 = vadd.f32 %v9396_v25, %v1121_v44  ;;  %v1529_v45 = vmul.f32 %v9401_v32, %v1522_v12 }
  0x9d   : > { %v1560_v14 = vadd.f32 %v1532_v23, %v1415_v18  ;;  %v1562_v26 = vadd.f32 %v1534_v60, %v1417_v30  ;;  %v1638_v18 = vsel %vm538_vm1, %v1586_v5, %v9455_v28  ;;  %v9519_v60 = vld [vmem:[%s9188_s30 + $0x498] sm:$0xff] }
  0x9e   : > { %7005 = vmatpush2.bf16.msra.mxu0 %v8454_v47  ;;  %8338 = vmatpush2.bf16.msra.mxu1 %v8454_v47  ;;  %v9413_v47 = vsel %vm420_vm0, %v9392_v19, %v1471_v31  ;;  %v1155_v2 = vadd.f32 %v9396_v25, %v1120_v43  ;;  %v1184_v39 = vmax.f32 %v1156_v3, 0.0  ;;  %v1533_v43 = vmul.f32 %v9401_v32, %v9427_v55  ;;  %v9554_v19 = vld [vmem:[#allocation6 + $0x12] ss:$0 sm:$0xff] }
  0x9f   : > { %7006 = vmatprep.subr.bf16.mxu0 %v16331_v0  ;;  %8323 = vmatprep.subr.bf16.mxu1 %v16331_v0  ;;  %v1531_v22 = vmul.f32 %v9401_v32, %v9413_v47  ;;  %v1557_v44 = vadd.f32 %v1529_v45, %v1412_v16  ;;  %v9464_v16 = vrot.slane %v9368_v59, 2  ;;  %v9470_v45 = vld [vmem:[%s9188_s30 + $0x468] sm:$0xff] }
  0xa0   : > { %v1183_v31 = vmax.f32 %v1155_v2, 0.0  ;;  %v1212_v3 = vmin.f32 %v1184_v39, 6.0  ;;  %v1561_v53 = vadd.f32 %v1533_v43, %v1416_v27  ;;  %v8458_v27 = vld [vmem:[#allocation9 + $0x50] sm:$0xff]   ;;  %v9491_v43 = vld [vmem:[#allocation6 + $0x10] ss:$0 sm:$0xff] }
  0xa1   : > { %v1559_v12 = vadd.f32 %v1531_v22, %v1414_v11  ;;  %16816 = vst [vmem:[#allocation28_spill] sm:$0xff] %v9464_v16  ;;  %v9467_v11 = vld [vmem:[#allocation6 + $0x6] ss:$0 sm:$0xff] }
  0xa2   : > { %7007 = vmatpush2.bf16.msra.mxu0 %v8455_v17  ;;  %8339 = vmatpush2.bf16.msra.mxu1 %v8455_v17  ;;  %v1530_v17 = vmul.f32 %v9401_v32, %v1521_v48  ;;  %v1211_v2 = vmin.f32 %v1183_v31, 6.0  ;;  %v8037_v22 = vpack.c.bf16 %v1212_v3, %v1212_v3  ;;  %v16329_v31 = vrot.slane %v9381_v10, 2 }
  0xa3   : > { %7008 = vmatprep.subr.bf16.mxu0 %v16331_v0  ;;  %8324 = vmatprep.subr.bf16.mxu1 %v16331_v0  ;;  %v1647_v3 = vmul.f32 %v9467_v11, %v1638_v18 }
  0xa4   : > { %v1558_v48 = vadd.f32 %v1530_v17, %v1413_v15  ;;  %v1590_v15 = vrot.slane %v9378_v9, 2  ;;  %v8036_v17 = vpack.c.bf16 %v1211_v2, %v1211_v2  ;;  %1352 = vst [vmem:[#allocation2 + $0xc] sm:$0xf] %v8037_v22  ;;  %v1639_v2 = vsel %vm538_vm1, %v16330_v62, %v1586_v5 }
  0xa5   : > { %v1709_v62 = vmul.f32 %v9491_v43, %v9362_v57  ;;  %v9533_v57 = vld [vmem:[%s9188_s30 + $0xb0] sm:$0xff] }
  0xa6   : > { %7009 = vmatpush2.bf16.msra.mxu0 %v8456_v49  ;;  %8340 = vmatpush2.bf16.msra.mxu1 %v8456_v49  ;;  %v1588_v49 = vrot.slane %v9365_v58, 2  ;;  %v9479_v30 = vsel %vm538_vm1, %v9464_v16, %v1590_v15  ;;  %1351 = vst [vmem:[#allocation2] sm:$0xf] %v8036_v17  ;;  %v1646_v17 = vmul.f32 %v9467_v11, %v1639_v2 }
  0xa7   : > { %7010 = vmatprep.subr.bf16.mxu0 %v16331_v0  ;;  %8325 = vmatprep.subr.bf16.mxu1 %v16331_v0  ;;  %v1675_v18 = vadd.f32 %v1647_v3, %v1558_v48  ;;  %v1710_v2 = vmul.f32 %v9491_v43, %v9365_v58  ;;  %v1711_v58 = vmul.f32 %v9491_v43, %v9368_v59 }
  0xa8   : > { %v9484_v23 = vsel %vm538_vm1, %v1588_v49, %v9464_v16  ;;  %v9489_v39 = vsel %vm538_vm1, %v9455_v28, %v1588_v49  ;;  %v9508_v49 = vld [vmem:[%s9188_s30 + $0x480] sm:$0xff]  ;;  %v9527_v28 = vld [vmem:[#allocation6 + $0x11] ss:$0 sm:$0xff] }
  0xa9   : > { %v1648_v22 = vmul.f32 %v9467_v11, %v9489_v39 }
  0xaa   : > { %7011 = vmatpush2.bf16.msra.mxu0 %v8457_v38  ;;  %8341 = vmatpush2.bf16.msra.mxu1 %v8457_v38  ;;  %v9500_v38 = vsel %vm538_vm1, %v1590_v15, %v16329_v31  ;;  %v1649_v15 = vmul.f32 %v9467_v11, %v9484_v23  ;;  %v1650_v31 = vmul.f32 %v9467_v11, %v9479_v30 }
  0xab   : > { %7012 = vmatprep.subr.bf16.mxu0 %v16331_v0  ;;  %8326 = vmatprep.subr.bf16.mxu1 %v16331_v0  ;;  %v1651_v5 = vmul.f32 %v9467_v11, %v9500_v38  ;;  %v1674_v0 = vadd.f32 %v1646_v17, %v1557_v44  ;;  %v1676_v16 = vadd.f32 %v1648_v22, %v1559_v12  ;;  %v8460_v44 = vld [vmem:[#allocation9 + $0x40] sm:$0xff]  }
  0xac   : > { %v1677_v35 = vadd.f32 %v1649_v15, %v1560_v14  ;;  %v1678_v48 = vadd.f32 %v1650_v31, %v1561_v53  ;;  %v1712_v14 = vmul.f32 %v9491_v43, %v9378_v9  ;;  %v1713_v12 = vmul.f32 %v9491_v43, %v9381_v10  ;;  %v9548_v15 = vld [vmem:[%s9188_s30 + $0x4c8] sm:$0xff] }
  0xad   : > { %v1679_v3 = vadd.f32 %v1651_v5, %v1562_v26  ;;  %v1714_v17 = vmul.f32 %v9491_v43, %v9533_v57  ;;  %v1737_v22 = vadd.f32 %v1709_v62, %v1674_v0  ;;  %v1738_v26 = vadd.f32 %v1710_v2, %v1675_v18  ;;  %v9560_v62 = vld [vmem:[#allocation6 + $0x1c] ss:$0 sm:$0xff]  ;;  %v9573_v2 = vld [vmem:[#allocation9 + $0xb8] sm:$0xff]  }
  0xae   : > { %7013 = vmatpush2.bf16.msra.mxu0 %v8458_v27  ;;  %8342 = vmatpush2.bf16.msra.mxu1 %v8458_v27  ;;  %v9538_v27 = vld [vmem:[%s9188_s30 + $0x4b0] sm:$0xff]  ;;  %v1739_v53 = vadd.f32 %v1711_v58, %v1676_v16  ;;  %v1775_v31 = vmul.f32 %v9527_v28, %v9413_v47  ;;  %v1776_v5 = vmul.f32 %v9527_v28, %v9432_v56  ;;  %v3375_v18 = vrot.slane %v9548_v15, 1 }
  0xaf   : > { %7014 = vmatprep.subr.bf16.mxu0 %v16817_v33  ;;  %8327 = vmatprep.subr.bf16.mxu1 %v16817_v33  ;;  %v1740_v20 = vadd.f32 %v1712_v14, %v1677_v35  ;;  %v9556_v8 = vadd.f32 %v1713_v12, %v1678_v48  ;;  %v9558_v0 = vadd.f32 %v1714_v17, %v1679_v3  ;;  %v3374_v16 = vrot.slane %v9538_v27, 1  ;;  %v9570_v35 = vld [vmem:[%s9188_s30 + $0x4e0] sm:$0xff]  ;;  %v9581_v14 = vld [vmem:[#allocation6 + $0x1d] ss:$0 sm:$0xff] }
  0xb0   : > { %v1777_v47 = vmul.f32 %v9527_v28, %v9427_v55  ;;  %v1803_v56 = vadd.f32 %v1775_v31, %v1737_v22  ;;  %16820 = vst [vmem:[#allocation31_spill] sm:$0xff] %v9573_v2  ;;  %v1804_v48 = vadd.f32 %v1776_v5, %v1738_v26  ;;  %v1841_v3 = vmul.f32 %v9554_v19, %v9489_v39  ;;  %v9587_v26 = vld [vmem:[#allocation6 + $0x1e] ss:$0 sm:$0xff] }
  0xb1   : > { %16818 = vst [vmem:[#allocation29_spill] sm:$0xff] %v9556_v8  ;;  %16819 = vst [vmem:[#allocation30_spill] sm:$0xff] %v9558_v0  ;;  %v1843_v58 = vmul.f32 %v9554_v19, %v9479_v30  ;;  %v1844_v22 = vmul.f32 %v9554_v19, %v9500_v38  ;;  %v1904_v31 = vmul.f32 %v9560_v62, %v9368_v59  ;;  %v16343_v29 = vrot.slane %v9570_v35, 1 }
  0xb2   : > { %7015 = vmatpush2.bf16.msra.mxu0 %v8459_v63  ;;  %8343 = vmatpush2.bf16.msra.mxu1 %v8459_v63  ;;  %v1778_v63 = vmul.f32 %v9527_v28, %v9422_v51  ;;  %v1805_v12 = vadd.f32 %v1777_v47, %v1739_v53  ;;  %v1869_v39 = vadd.f32 %v1841_v3, %v1803_v56 }
  0xb3   : > { %7016 = vmatprep.subr.bf16.mxu0 %v16817_v33  ;;  %8328 = vmatprep.subr.bf16.mxu1 %v16817_v33  ;;  %v1842_v33 = vmul.f32 %v9554_v19, %v9484_v23  ;;  %v1905_v23 = vmul.f32 %v9560_v62, %v9378_v9  ;;  %v1970_v53 = vmul.f32 %v9581_v14, %v9427_v55 }
  0xb4   : > { %v1806_v17 = vadd.f32 %v1778_v63, %v1740_v20  ;;  %v9592_v0 = vadd.f32 %v1843_v58, %v1805_v12  ;;  %v1971_v59 = vmul.f32 %v9581_v14, %v9422_v51  ;;  %v2036_v63 = vmul.f32 %v9587_v26, %v9479_v30  ;;  %v9617_v58 = vld [vmem:[#allocation8 + $0x1] ss:$0 sm:$0xff] }
  0xb5   : > { %v1870_v5 = vadd.f32 %v1842_v33, %v1804_v48  ;;  %v2037_v9 = vmul.f32 %v9587_v26, %v9500_v38  ;;  %v3314_v56 = vmul.f32 %v9225_v13, %v9460_v41  ;;  %v3315_v48 = vmul.f32 %v9225_v13, %v9470_v45 }
  0xb6   : > { %7017 = vmatpush2.bf16.msra.mxu0 %v8460_v44  ;;  %8344 = vmatpush2.bf16.msra.mxu1 %v8460_v44  ;;  %16821 = vst [vmem:[#allocation32_spill] sm:$0xff] %v9592_v0  ;;  %v9594_v20 = vadd.f32 %v1844_v22, %v1806_v17  ;;  %v1932_v44 = vadd.f32 %v1904_v31, %v1869_v39  ;;  %v16823_v22 = vrot.slane %v9519_v60, 1  ;;  %v16826_v39 = vrot.slane %v9508_v49, 1 }
  0xb7   : > { %8241 = vmatprep.subr.bf16.mxu1 %v9573_v2  ;;  %v1933_v47 = vadd.f32 %v1905_v23, %v1870_v5  ;;  %v3316_v55 = vmul.f32 %v9225_v13, %v9508_v49  ;;  %v3317_v51 = vmul.f32 %v9225_v13, %v9519_v60  ;;  %v3318_v30 = vmul.f32 %v9225_v13, %v9538_v27 }
  0xb8   : > { %16822 = vst [vmem:[#allocation33_spill] sm:$0xff] %v9594_v20  ;;  %v1998_v3 = vadd.f32 %v1970_v53, %v1932_v44  ;;  %v3319_v38 = vmul.f32 %v9225_v13, %v9548_v15  ;;  %v9623_v12 = vsel %vm420_vm0, %v3375_v18, %v16343_v29  ;;  %v9627_v17 = vsel %vm420_vm0, %v3374_v16, %v3375_v18 }
  0xb9   : > { %v1999_v33 = vadd.f32 %v1971_v59, %v1933_v47  ;;  %v9633_v31 = vsel %vm420_vm0, %v16823_v22, %v3374_v16  ;;  %v16825_v13 = vmov %v16823_v22  ;;  %v16828_v59 = vmov %v16826_v39 }
  0xba   : > { %16824 = vst [vmem:[#allocation34_spill] sm:$0xff] %v9633_v31  ;;  %v9641_v5 = vsel %vm420_vm0, %v16826_v39, %v16825_v13  ;;  %v2064_v23 = vadd.f32 %v2036_v63, %v1998_v3  ;;  %v16829_v18 = vrot.slane %v9470_v45, 1  ;;  %v16832_v47 = vrot.slane %v9460_v41, 1 }
  0xbb   : > { %16827 = vst [vmem:[#allocation35_spill] sm:$0xff] %v9641_v5  ;;  %v2065_v53 = vadd.f32 %v2037_v9, %v1999_v33  ;;  %v3433_v3 = vmul.f32 %v9234_v21, %v9641_v5  ;;  %v3434_v33 = vmul.f32 %v9234_v21, %v9633_v31  ;;  %v3490_v2 = vrot.slane %v9519_v60, 2 }
  0xbc   : > { %v9649_v44 = vsel %vm420_vm0, %v16829_v18, %v16828_v59  ;;  %v16831_v16 = vmov %v16829_v18  ;;  %v2099_v13 = vadd.f32 %v9617_v58, %v2064_v23  ;;  %v3435_v59 = vmul.f32 %v9234_v21, %v9627_v17 }
  0xbd   : > { %16830 = vst [vmem:[#allocation36_spill] sm:$0xff] %v9649_v44  ;;  %v9657_v22 = vsel %vm420_vm0, %v16832_v47, %v16831_v16  ;;  %v3432_v9 = vmul.f32 %v9234_v21, %v9649_v44  ;;  %v2100_v39 = vadd.f32 %v9617_v58, %v2065_v53  ;;  %v3436_v18 = vmul.f32 %v9234_v21, %v9623_v12 }
  0xbe   : > { %16833 = vst [vmem:[#allocation37_spill] sm:$0xff] %v9657_v22  ;;  %v3431_v63 = vmul.f32 %v9234_v21, %v9657_v22  ;;  %v3461_v29 = vadd.f32 %v3433_v3, %v3316_v55  ;;  %v3462_v44 = vadd.f32 %v3434_v33, %v3317_v51  ;;  %v2127_v22 = vmax.f32 %v2099_v13, 0.0 }
  0xbf   : > { %v3460_v47 = vadd.f32 %v3432_v9, %v3315_v48  ;;  %v2128_v8 = vmax.f32 %v2100_v39, 0.0  ;;  %v3463_v4 = vadd.f32 %v3435_v59, %v3318_v30  ;;  %v3464_v42 = vadd.f32 %v3436_v18, %v3319_v38 }
  0xc0   : > { %v3459_v16 = vadd.f32 %v3431_v63, %v3314_v56  ;;  %v3488_v23 = vrot.slane %v9470_v45, 2  ;;  %v3489_v53 = vrot.slane %v9508_v49, 2  ;;  %v2155_v20 = vmin.f32 %v2127_v22, 6.0 }
  0xc1   : > { %v2156_v0 = vmin.f32 %v2128_v8, 6.0  ;;  %v3491_v21 = vrot.slane %v9538_v27, 2  ;;  %v3492_v56 = vrot.slane %v9548_v15, 2  ;;  %v16354_v48 = vrot.slane %v9570_v35, 2 }
  0xc2   : > { %v9682_v55 = vsel %vm538_vm1, %v3489_v53, %v3490_v2  ;;  %v9686_v51 = vsel %vm538_vm1, %v3488_v23, %v3489_v53  ;;  %v9692_v45 = vsel %vm538_vm1, %v16353_v24, %v3488_v23  ;;  %v8064_v8 = vpack.c.bf16 %v2155_v20, %v2155_v20  ;;  %v9719_v53 = vld [vmem:[%s9188_s30 + $0x4f8] sm:$0xff] }
  0xc3   : > { %16834 = vst [vmem:[#allocation38_spill] sm:$0xff] %v9682_v55  ;;  %16835 = vst [vmem:[#allocation39_spill] sm:$0xff] %v9686_v51  ;;  %v8065_v30 = vpack.c.bf16 %v2156_v0, %v2156_v0  ;;  %v3509_v38 = vsel %vm538_vm1, %v3491_v21, %v3492_v56  ;;  %v9698_v22 = vsel %vm538_vm1, %v3490_v2, %v3491_v21 }
  0xc4   : > { %16836 = vst [vmem:[#allocation40_spill] sm:$0xff] %v9692_v45  ;;  %16837 = vst [vmem:[#allocation41_spill] sm:$0xff] %v9698_v22  ;;  %v3508_v63 = vsel %vm538_vm1, %v3492_v56, %v16354_v48  ;;  %v3548_v9 = vmul.f32 %v9260_v34, %v9692_v45  ;;  %v3549_v20 = vmul.f32 %v9260_v34, %v9686_v51 }
  0xc5   : > { %v3550_v0 = vmul.f32 %v9260_v34, %v9682_v55  ;;  %2295 = vst [vmem:[#allocation2 + $0x4] sm:$0xf] %v8064_v8  ;;  %2296 = vst [vmem:[#allocation2 + $0x10] sm:$0xf] %v8065_v30  ;;  %v3551_v2 = vmul.f32 %v9260_v34, %v9698_v22  ;;  %v3552_v3 = vmul.f32 %v9260_v34, %v3509_v38 }
  0xc6   : > { %v3553_v33 = vmul.f32 %v9260_v34, %v3508_v63  ;;  %v3611_v13 = vmul.f32 %v9264_v40, %v9508_v49  ;;  %v3576_v39 = vadd.f32 %v3548_v9, %v3459_v16  ;;  %v3577_v59 = vadd.f32 %v3549_v20, %v3460_v47 }
  0xc7   : > { %v3578_v18 = vadd.f32 %v3550_v0, %v3461_v29  ;;  %v3612_v23 = vmul.f32 %v9264_v40, %v9519_v60  ;;  %v3579_v21 = vadd.f32 %v3551_v2, %v3462_v44  ;;  %v3580_v56 = vadd.f32 %v3552_v3, %v3463_v4 }
  0xc8   : > { %v3581_v8 = vadd.f32 %v3553_v33, %v3464_v42  ;;  %v3613_v30 = vmul.f32 %v9264_v40, %v9538_v27  ;;  %v3614_v34 = vmul.f32 %v9264_v40, %v9548_v15  ;;  %v3615_v49 = vmul.f32 %v9264_v40, %v9570_v35 }
  0xc9   : > { %v3616_v29 = vmul.f32 %v9264_v40, %v9719_v53  ;;  %v3639_v16 = vadd.f32 %v3611_v13, %v3576_v39  ;;  %v3640_v47 = vadd.f32 %v3612_v23, %v3577_v59  ;;  %v3677_v44 = vmul.f32 %v9302_v1, %v9641_v5  ;;  %v8461_v13 = vld [vmem:[#allocation2] ss:$12 sps:$4 sm:$0xff]  }
  0xca   : > { %v3641_v60 = vadd.f32 %v3613_v30, %v3578_v18  ;;  %v3678_v42 = vmul.f32 %v9302_v1, %v9633_v31  ;;  %v3642_v4 = vadd.f32 %v3614_v34, %v3579_v21  ;;  %v9733_v9 = vadd.f32 %v3615_v49, %v3580_v56 }
  0xcb   : > { %v9735_v20 = vadd.f32 %v3616_v29, %v3581_v8  ;;  %v3679_v0 = vmul.f32 %v9302_v1, %v9627_v17  ;;  %v3680_v40 = vmul.f32 %v9302_v1, %v9623_v12  ;;  %v3705_v2 = vadd.f32 %v3677_v44, %v3639_v16 }
  0xcc   : > { %16838 = vst [vmem:[#allocation42_spill] sm:$0xff] %v9733_v9  ;;  %v3706_v3 = vadd.f32 %v3678_v42, %v3640_v47  ;;  %v3743_v33 = vmul.f32 %v9310_v7, %v9682_v55  ;;  %v3744_v59 = vmul.f32 %v9310_v7, %v9698_v22  ;;  %v3745_v18 = vmul.f32 %v9310_v7, %v3509_v38  ;;  %v8463_v21 = vld [vmem:[#allocation2 + $0x4] ss:$12 sps:$4 sm:$0xff]  }
  0xcd   : > { %16839 = vst [vmem:[#allocation43_spill] sm:$0xff] %v9735_v20  ;;  %v3707_v39 = vadd.f32 %v3679_v0, %v3641_v60  ;;  %v3746_v23 = vmul.f32 %v9310_v7, %v3508_v63  ;;  %v3708_v56 = vadd.f32 %v3680_v40, %v3642_v4  ;;  %v3806_v30 = vmul.f32 %v9335_v36, %v9538_v27  ;;  %v9765_v4 = vld [vmem:[%s9188_s30 + $0x470] sm:$0xff]  ;;  %v9768_v0 = vld [vmem:[%s9188_s30 + $0x488] sm:$0xff] }
  0xce   : > { %v3771_v8 = vadd.f32 %v3743_v33, %v3705_v2  ;;  %v3807_v34 = vmul.f32 %v9335_v36, %v9548_v15  ;;  %v3772_v49 = vadd.f32 %v3744_v59, %v3706_v3  ;;  %v3872_v16 = vmul.f32 %v9337_v37, %v9627_v17  ;;  %7018 = vmatprep.mubr.bf16.mxu0 %v8463_v21  ;;  %v9762_v15 = vld [vmem:[%s9188_s30 + $0x458] sm:$0xff]  ;;  %v9771_v17 = vld [vmem:[%s9188_s30 + $0x4a0] sm:$0xff] }
  0xcf   : > { %v9751_v29 = vadd.f32 %v3745_v18, %v3707_v39  ;;  %v3873_v47 = vmul.f32 %v9337_v37, %v9623_v12  ;;  %v9757_v60 = vadd.f32 %v3746_v23, %v3708_v56  ;;  %v3938_v27 = vmul.f32 %v9347_v46, %v3509_v38  ;;  %16842 = vst [vmem:[#allocation46_spill] sm:$0xff] %v9762_v15  ;;  %v9774_v2 = vld [vmem:[%s9188_s30 + $0x4b8] sm:$0xff]  ;;  %v9777_v12 = vld [vmem:[%s9188_s30 + $0x4d0] sm:$0xff]  ;;  %v9786_v39 = vld [vmem:[%s9188_s30 + $0x4e8] sm:$0xff] }
  0xd0   : > { %v3834_v44 = vadd.f32 %v3806_v30, %v3771_v8  ;;  %v3939_v42 = vmul.f32 %v9347_v46, %v3508_v63  ;;  %v3835_v40 = vadd.f32 %v3807_v34, %v3772_v49  ;;  %v4258_v3 = vmul.f32 %v9350_v52, %v9762_v15  ;;  %7019 = vmatmul.mubr.bf16.vlgmr.msra.gmra.mxu0 %v8461_v13 }
  0xd1   : > { %16840 = vst [vmem:[#allocation44_spill] sm:$0xff] %v9751_v29  ;;  %16841 = vst [vmem:[#allocation45_spill] sm:$0xff] %v9757_v60  ;;  %v4259_v38 = vmul.f32 %v9350_v52, %v9765_v4  ;;  %v4260_v63 = vmul.f32 %v9350_v52, %v9768_v0  ;;  %v4261_v59 = vmul.f32 %v9350_v52, %v9771_v17  ;;  %v16355_v56 = vrot.slane %v9762_v15, 1 }
  0xd2   : > { %v3900_v33 = vadd.f32 %v3872_v16, %v3834_v44  ;;  %v4262_v18 = vmul.f32 %v9350_v52, %v9774_v2  ;;  %v4263_v23 = vmul.f32 %v9350_v52, %v9777_v12  ;;  %v3901_v21 = vadd.f32 %v3873_v47, %v3835_v40 }
  0xd3   : > { %v4315_v8 = vrot.slane %v9765_v4, 1  ;;  %v4316_v30 = vrot.slane %v9768_v0, 1  ;;  %v4317_v34 = vrot.slane %v9771_v17, 1  ;;  %v4318_v49 = vrot.slane %v9774_v2, 1 }
  0xd4   : > { %v3966_v13 = vadd.f32 %v3938_v27, %v3900_v33  ;;  %v4319_v16 = vrot.slane %v9777_v12, 1  ;;  %v3967_v44 = vadd.f32 %v3939_v42, %v3901_v21  ;;  %v16357_v24 = vrot.slane %v9786_v39, 1 }
  0xd5   : > { %v9803_v48 = vsel %vm420_vm0, %v4315_v8, %v4316_v30  ;;  %v9809_v47 = vsel %vm420_vm0, %v16355_v56, %v4315_v8  ;;  %v9818_v42 = vsel %vm420_vm0, %v4317_v34, %v4318_v49  ;;  %v9822_v33 = vsel %vm420_vm0, %v4316_v30, %v4317_v34 }
  0xd6   : > { %16843 = vst [vmem:[#allocation47_spill] sm:$0xff] %v9803_v48  ;;  %16844 = vst [vmem:[#allocation48_spill] sm:$0xff] %v9809_v47  ;;  %v4001_v27 = vadd.f32 %v9396_v25, %v3966_v13  ;;  %v9814_v40 = vsel %vm420_vm0, %v4318_v49, %v4319_v16  ;;  %v4002_v21 = vadd.f32 %v9396_v25, %v3967_v44  ;;  %v16371_v45 = vrot.slane %v9762_v15, 2 }
  0xd7   : > { %16845 = vst [vmem:[#allocation49_spill] sm:$0xff] %v9818_v42  ;;  %16846 = vst [vmem:[#allocation50_spill] sm:$0xff] %v9822_v33  ;;  %v9829_v8 = vsel %vm420_vm0, %v4319_v16, %v16357_v24  ;;  %v4375_v13 = vmul.f32 %v9401_v32, %v9809_v47  ;;  %v4376_v56 = vmul.f32 %v9401_v32, %v9803_v48  ;;  %v4432_v41 = vrot.slane %v9765_v4, 2 }
  0xd8   : > { %v4029_v49 = vmax.f32 %v4001_v27, 0.0  ;;  %v4377_v22 = vmul.f32 %v9401_v32, %v9822_v33  ;;  %v4378_v30 = vmul.f32 %v9401_v32, %v9818_v42  ;;  %v4379_v34 = vmul.f32 %v9401_v32, %v9814_v40 }
  0xd9   : > { %v4030_v44 = vmax.f32 %v4002_v21, 0.0  ;;  %v4380_v16 = vmul.f32 %v9401_v32, %v9829_v8  ;;  %v4403_v24 = vadd.f32 %v4375_v13, %v4258_v3  ;;  %v4404_v55 = vadd.f32 %v4376_v56, %v4259_v38 }
  0xda   : > { %v4057_v31 = vmin.f32 %v4029_v49, 6.0  ;;  %v4405_v5 = vadd.f32 %v4377_v22, %v4260_v63  ;;  %v4406_v47 = vadd.f32 %v4378_v30, %v4261_v59  ;;  %v4407_v48 = vadd.f32 %v4379_v34, %v4262_v18 }
  0xdb   : > { %v4058_v27 = vmin.f32 %v4030_v44, 6.0  ;;  %v4408_v51 = vadd.f32 %v4380_v16, %v4263_v23  ;;  %v4433_v9 = vrot.slane %v9768_v0, 2  ;;  %v4434_v21 = vrot.slane %v9771_v17, 2  ;;  %v9889_v44 = vld [vmem:[%s9188_s30 + $0x500] sm:$0xff] }
  0xdc   : > { %v8134_v20 = vpack.c.bf16 %v4057_v31, %v4057_v31  ;;  %v4435_v60 = vrot.slane %v9774_v2, 2  ;;  %v4436_v3 = vrot.slane %v9777_v12, 2  ;;  %v16376_v22 = vrot.slane %v9786_v39, 2 }
  0xdd   : > { %v8135_v29 = vpack.c.bf16 %v4058_v27, %v4058_v27  ;;  %v9854_v38 = vsel %vm538_vm1, %v16371_v45, %v4432_v41  ;;  %v9862_v4 = vsel %vm538_vm1, %v4433_v9, %v4434_v21  ;;  %v9866_v63 = vsel %vm538_vm1, %v4432_v41, %v4433_v9 }
  0xde   : > { %16847 = vst [vmem:[#allocation51_spill] sm:$0xff] %v9854_v38  ;;  %4197 = vst [vmem:[#allocation2 + $0x1f8] sm:$0xf] %v8134_v20  ;;  %v9858_v31 = vsel %vm538_vm1, %v4434_v21, %v4435_v60  ;;  %v4492_v59 = vmul.f32 %v9467_v11, %v9854_v38  ;;  %v4452_v20 = vsel %vm538_vm1, %v4436_v3, %v16376_v22 }
  0xdf   : > { %16848 = vst [vmem:[#allocation52_spill] sm:$0xff] %v9858_v31  ;;  %16849 = vst [vmem:[#allocation53_spill] sm:$0xff] %v9862_v4  ;;  %v4453_v18 = vsel %vm538_vm1, %v4435_v60, %v4436_v3  ;;  %v4493_v23 = vmul.f32 %v9467_v11, %v9866_v63  ;;  %v4494_v56 = vmul.f32 %v9467_v11, %v9862_v4 }
  0xe0   : > { %16850 = vst [vmem:[#allocation54_spill] sm:$0xff] %v9866_v63  ;;  %4198 = vst [vmem:[#allocation2 + $0x204] sm:$0xf] %v8135_v29  ;;  %v4495_v41 = vmul.f32 %v9467_v11, %v9858_v31  ;;  %v4496_v9 = vmul.f32 %v9467_v11, %v4453_v18  ;;  %v4497_v29 = vmul.f32 %v9467_v11, %v4452_v20 }
  0xe1   : > { %v4520_v13 = vadd.f32 %v4492_v59, %v4403_v24  ;;  %v4521_v49 = vadd.f32 %v4493_v23, %v4404_v55  ;;  %v4522_v30 = vadd.f32 %v4494_v56, %v4405_v5  ;;  %v4555_v34 = vmul.f32 %v9491_v43, %v9768_v0 }
  0xe2   : > { %v4556_v60 = vmul.f32 %v9491_v43, %v9771_v17  ;;  %v4523_v16 = vadd.f32 %v4495_v41, %v4406_v47  ;;  %v4524_v27 = vadd.f32 %v4496_v9, %v4407_v48  ;;  %v4525_v21 = vadd.f32 %v4497_v29, %v4408_v51 }
  0xe3   : > { %v4557_v3 = vmul.f32 %v9491_v43, %v9774_v2  ;;  %v4558_v45 = vmul.f32 %v9491_v43, %v9777_v12  ;;  %v4559_v24 = vmul.f32 %v9491_v43, %v9786_v39  ;;  %v4560_v5 = vmul.f32 %v9491_v43, %v9889_v44 }
  0xe4   : > { %v4583_v55 = vadd.f32 %v4555_v34, %v4520_v13  ;;  %v4584_v0 = vadd.f32 %v4556_v60, %v4521_v49  ;;  %v4621_v47 = vmul.f32 %v9527_v28, %v9822_v33  ;;  %v4622_v48 = vmul.f32 %v9527_v28, %v9818_v42  ;;  %v10110_v33 = vld [vmem:[#allocation6 + $0xe] ss:$0 sm:$0xff] }
  0xe5   : > { %v4585_v17 = vadd.f32 %v4557_v3, %v4522_v30  ;;  %v4586_v51 = vadd.f32 %v4558_v45, %v4523_v16  ;;  %v9903_v59 = vadd.f32 %v4559_v24, %v4524_v27  ;;  %v9905_v23 = vadd.f32 %v4560_v5, %v4525_v21  ;;  %v9922_v21 = vld [vmem:[%s9188_s30 + $0xa8] sm:$0xff]  ;;  %v9925_v3 = vld [vmem:[%s9188_s30 + $0xc0] sm:$0xff] }
  0xe6   : > { %v4623_v56 = vmul.f32 %v9527_v28, %v9814_v40  ;;  %v4624_v43 = vmul.f32 %v9527_v28, %v9829_v8  ;;  %v4649_v41 = vadd.f32 %v4621_v47, %v4583_v55  ;;  %v4650_v9 = vadd.f32 %v4622_v48, %v4584_v0 }
  0xe7   : > { %16851 = vst [vmem:[#allocation55_spill] sm:$0xff] %v9905_v23  ;;  %v4687_v29 = vmul.f32 %v9554_v19, %v9862_v4  ;;  %v4688_v45 = vmul.f32 %v9554_v19, %v9858_v31  ;;  %v4689_v49 = vmul.f32 %v9554_v19, %v4453_v18  ;;  %v4690_v30 = vmul.f32 %v9554_v19, %v4452_v20  ;;  %v8472_v4 = vld [vmem:[#allocation9 + $0xb0] sm:$0xff]  }
  0xe8   : > { %v4651_v13 = vadd.f32 %v4623_v56, %v4585_v17  ;;  %v4652_v34 = vadd.f32 %v4624_v43, %v4586_v51  ;;  %v4750_v16 = vmul.f32 %v9560_v62, %v9774_v2  ;;  %v4751_v27 = vmul.f32 %v9560_v62, %v9777_v12 }
  0xe9   : > { %v4715_v60 = vadd.f32 %v4687_v29, %v4649_v41  ;;  %v4716_v24 = vadd.f32 %v4688_v45, %v4650_v9  ;;  %v4816_v55 = vmul.f32 %v9581_v14, %v9814_v40  ;;  %v4817_v0 = vmul.f32 %v9581_v14, %v9829_v8 }
  0xea   : > { %v9927_v5 = vadd.f32 %v4689_v49, %v4651_v13  ;;  %v9933_v17 = vadd.f32 %v4690_v30, %v4652_v34  ;;  %v4882_v2 = vmul.f32 %v9587_v26, %v4453_v18  ;;  %v4883_v12 = vmul.f32 %v9587_v26, %v4452_v20 }
  0xeb   : > { %v4778_v47 = vadd.f32 %v4750_v16, %v4715_v60  ;;  %v4779_v48 = vadd.f32 %v4751_v27, %v4716_v24  ;;  %v9938_v51 = vrot.slane %v9922_v21, 1  ;;  %v16375_v56 = vrot.slane %v9925_v3, 1 }
  0xec   : > { %v9942_v43 = vrot.slane %v9922_v21, 2  ;;  %v16374_v41 = vrot.slane %v9925_v3, 2  ;;  %v962_v8 = vmul.f32 %v9335_v36, %v9286_v50  ;;  %v963_v18 = vmul.f32 %v9335_v36, %v9922_v21 }
  0xed   : > { %16852 = vst [vmem:[#allocation56_spill] sm:$0xff] %v9938_v51  ;;  %v4844_v40 = vadd.f32 %v4816_v55, %v4778_v47  ;;  %v4845_v9 = vadd.f32 %v4817_v0, %v4779_v48  ;;  %v9954_v20 = vsel %vm420_vm0, %v9938_v51, %v16375_v56  ;;  %v16855_v29 = vrot.slane %v9286_v50, 1 }
  0xee   : > { %16853 = vst [vmem:[#allocation57_spill] sm:$0xff] %v9942_v43  ;;  %16854 = vst [vmem:[#allocation58_spill] sm:$0xff] %v9954_v20  ;;  %v16856_v45 = vrot.slane %v9286_v50, 2  ;;  %v9971_v34 = vmul.f32 %v9302_v1, %v9954_v20  ;;  %v9978_v60 = vsel %vm538_vm1, %v9942_v43, %v16374_v41  ;;  %v990_v24 = vadd.f32 %v962_v8, %v9355_v54 }
  0xef   : > { %v768_v13 = vsel %vm420_vm0, %v16855_v29, %v9938_v51  ;;  %v4910_v49 = vadd.f32 %v4882_v2, %v4844_v40  ;;  %16857 = vst [vmem:[#allocation59_spill] sm:$0xff] %v9978_v60  ;;  %v4911_v16 = vadd.f32 %v4883_v12, %v4845_v9  ;;  %v9985_v27 = vmul.f32 %v9310_v7, %v9978_v60  ;;  %v9994_v2 = vld [vmem:[%s9188_s30 + $0xc8] sm:$0xff] }
  0xf0   : > { %v885_v36 = vsel %vm538_vm1, %v16856_v45, %v9942_v43  ;;  %v9967_v30 = vmul.f32 %v9302_v1, %v768_v13  ;;  %v991_v55 = vadd.f32 %v963_v18, %v9371_v61  ;;  %v1028_v0 = vmul.f32 %v9337_v37, %v768_v13  ;;  %v10128_v43 = vld [vmem:[#allocation6 + $0x1a] ss:$0 sm:$0xff] }
  0xf1   : > { %v9981_v50 = vmul.f32 %v9310_v7, %v885_v36  ;;  %v4945_v1 = vadd.f32 %v9617_v58, %v4910_v49  ;;  %v1029_v47 = vmul.f32 %v9337_v37, %v9954_v20  ;;  %v4946_v12 = vadd.f32 %v9617_v58, %v4911_v16 }
  0xf2   : > { %v1094_v48 = vmul.f32 %v9347_v46, %v885_v36  ;;  %v1095_v7 = vmul.f32 %v9347_v46, %v9978_v60  ;;  %v1418_v54 = vmul.f32 %v9350_v52, %v9381_v10  ;;  %v1056_v8 = vadd.f32 %v1028_v0, %v990_v24 }
  0xf3   : > { %v4973_v40 = vmax.f32 %v4945_v1, 0.0  ;;  %v1057_v61 = vadd.f32 %v1029_v47, %v991_v55  ;;  %v1419_v18 = vmul.f32 %v9350_v52, %v9533_v57  ;;  %v4974_v9 = vmax.f32 %v4946_v12, 0.0 }
  0xf4   : > { %v1475_v37 = vrot.slane %v9533_v57, 1  ;;  %v16373_v29 = vrot.slane %v9994_v2, 1  ;;  %v1592_v13 = vrot.slane %v9533_v57, 2  ;;  %v1122_v36 = vadd.f32 %v1094_v48, %v1056_v8 }
  0xf5   : > { %v5001_v45 = vmin.f32 %v4973_v40, 6.0  ;;  %v1123_v49 = vadd.f32 %v1095_v7, %v1057_v61  ;;  %v16372_v46 = vrot.slane %v9994_v2, 2  ;;  %v5002_v16 = vmin.f32 %v4974_v9, 6.0 }
  0xf6   : > { %v1515_v24 = vsel %vm420_vm0, %v1475_v37, %v16373_v29  ;;  %v16858_v52 = vrot.slane %v9381_v10, 1  ;;  %v16859_v55 = vrot.slane %v9381_v10, 2  ;;  %v1157_v12 = vadd.f32 %v9396_v25, %v1122_v36 }
  0xf7   : > { %v8162_v47 = vpack.c.bf16 %v5001_v45, %v5001_v45  ;;  %v1158_v48 = vadd.f32 %v9396_v25, %v1123_v49  ;;  %v8163_v40 = vpack.c.bf16 %v5002_v16, %v5002_v16  ;;  %v1536_v8 = vmul.f32 %v9401_v32, %v1515_v24 }
  0xf8   : > { %v1516_v1 = vsel %vm420_vm0, %v16858_v52, %v1475_v37  ;;  %v1633_v0 = vsel %vm538_vm1, %v16859_v55, %v1592_v13  ;;  %v1632_v61 = vsel %vm538_vm1, %v1592_v13, %v16372_v46  ;;  %v1185_v37 = vmax.f32 %v1157_v12, 0.0 }
  0xf9   : > { %v1535_v7 = vmul.f32 %v9401_v32, %v1516_v1  ;;  %v1652_v9 = vmul.f32 %v9467_v11, %v1633_v0  ;;  %5141 = vst [vmem:[#allocation2 + $0x1fc] sm:$0xf] %v8162_v47  ;;  %v1186_v52 = vmax.f32 %v1158_v48, 0.0  ;;  %v1653_v36 = vmul.f32 %v9467_v11, %v1632_v61  ;;  %5142 = vst [vmem:[#allocation2 + $0x208] sm:$0xf] %v8163_v40  ;;  %v10052_v40 = vld [vmem:[%s9188_s30 + $0x510] sm:$0xff] }
  0xfa   : > { %v1564_v25 = vadd.f32 %v1536_v8, %v1419_v18  ;;  %v10031_v49 = vmul.f32 %v9527_v28, %v1516_v1  ;;  %v10034_v32 = vmul.f32 %v9527_v28, %v1515_v24  ;;  %v10037_v16 = vmul.f32 %v9554_v19, %v1633_v0 }
  0xfb   : > { %v1563_v45 = vadd.f32 %v1535_v7, %v1418_v54  ;;  %v1213_v13 = vmin.f32 %v1185_v37, 6.0  ;;  %v1214_v55 = vmin.f32 %v1186_v52, 6.0  ;;  %v10042_v12 = vmul.f32 %v9554_v19, %v1632_v61 }
  0xfc   : > { %v10044_v54 = vadd.f32 %v1653_v36, %v1564_v25  ;;  %v1906_v18 = vmul.f32 %v9560_v62, %v9381_v10  ;;  %v1907_v48 = vmul.f32 %v9560_v62, %v9533_v57  ;;  %v1972_v7 = vmul.f32 %v9581_v14, %v1516_v1  ;;  %v16863_v36 = vld [vmem:[#allocation33_spill] sm:$0xff]  ;;  %v10059_v10 = vld [vmem:[#allocation6] ss:$0 sm:$0xff] }
  0xfd   : > { %v10039_v47 = vadd.f32 %v1652_v9, %v1563_v45  ;;  %v8038_v8 = vpack.c.bf16 %v1213_v13, %v1213_v13  ;;  %v8039_v37 = vpack.c.bf16 %v1214_v55, %v1214_v55  ;;  %v1973_v9 = vmul.f32 %v9581_v14, %v1515_v24  ;;  %v16862_v45 = vld [vmem:[#allocation32_spill] sm:$0xff] }
  0xfe   : > { %16861 = vst [vmem:[#allocation61_spill] sm:$0xff] %v10044_v54  ;;  %v2038_v52 = vmul.f32 %v9587_v26, %v1633_v0  ;;  %v1934_v46 = vadd.f32 %v1906_v18, %v16862_v45  ;;  %v1935_v25 = vadd.f32 %v1907_v48, %v16863_v36  ;;  %v2039_v29 = vmul.f32 %v9587_v26, %v1632_v61  ;;  %v10069_v48 = vld [vmem:[#allocation6 + $0x18] ss:$0 sm:$0xff]  ;;  %v10087_v61 = vld [vmem:[#allocation6 + $0x1] ss:$0 sm:$0xff] }
  0xff   : > { %16860 = vst [vmem:[#allocation60_spill] sm:$0xff] %v10039_v47  ;;  %v3320_v57 = vmul.f32 %v10059_v10, %v9570_v35  ;;  %1353 = vst [vmem:[#allocation2 + $0x18] sm:$0xf] %v8038_v8  ;;  %v3321_v1 = vmul.f32 %v10059_v10, %v9719_v53  ;;  %v3377_v24 = vrot.slane %v9719_v53, 1  ;;  %v16378_v0 = vrot.slane %v10052_v40, 1 }
 0x100   : > { %1354 = vst [vmem:[#allocation2 + $0x24] sm:$0xf] %v8039_v37  ;;  %v3494_v13 = vrot.slane %v9719_v53, 2  ;;  %v2000_v55 = vadd.f32 %v1972_v7, %v1934_v46  ;;  %v2001_v18 = vadd.f32 %v1973_v9, %v1935_v25  ;;  %v3808_v45 = vmul.f32 %v10069_v48, %v9570_v35  ;;  %v8464_v8 = vld [vmem:[#allocation2 + $0x1f8] ss:$12 sps:$4 sm:$0xff]  }
 0x101   : > { %v8466_v37 = vld [vmem:[#allocation2 + $0x1fc] ss:$12 sps:$4 sm:$0xff]   ;;  %v3389_v36 = vsel %vm420_vm0, %v3377_v24, %v16378_v0  ;;  %v16864_v41 = vrot.slane %v9570_v35, 1  ;;  %v16865_v7 = vrot.slane %v9570_v35, 2  ;;  %v3809_v25 = vmul.f32 %v10069_v48, %v9719_v53  ;;  %v10098_v53 = vld [vmem:[#allocation6 + $0xd] ss:$0 sm:$0xff] }
 0x102   : > { %v2066_v56 = vadd.f32 %v2038_v52, %v2000_v55  ;;  %v2067_v22 = vadd.f32 %v2039_v29, %v2001_v18  ;;  %v3438_v0 = vmul.f32 %v10087_v61, %v3389_v36  ;;  %7186 = vmatprep.mubr.bf16.mxu1 %v8466_v37  ;;  %v10104_v52 = vmul.f32 %v10098_v53, %v3389_v36 }
 0x103   : > { %v3390_v46 = vsel %vm420_vm0, %v16864_v41, %v3377_v24  ;;  %v3507_v9 = vsel %vm538_vm1, %v16865_v7, %v3494_v13  ;;  %v16866_v41 = vrot.slane %v10052_v40, 2  ;;  %v10095_v24 = vld [vmem:[#allocation6 + $0x2] ss:$0 sm:$0xff]  ;;  %7187 = vmatmul.mubr.bf16.vlgmr.msra.gmra.mxu1 %v8464_v8  ;;  %v16872_v20 = vrot.slane %v9786_v39, 1 }
 0x104   : > { %v3437_v31 = vmul.f32 %v10087_v61, %v3390_v46  ;;  %v3554_v7 = vmul.f32 %v10095_v24, %v3507_v9  ;;  %v10101_v29 = vmul.f32 %v10098_v53, %v3390_v46  ;;  %v2101_v55 = vadd.f32 %v9617_v58, %v2066_v56  ;;  %v16868_v8 = vld [vmem:[#allocation44_spill] sm:$0xff] }
 0x105   : > { %v3506_v35 = vsel %vm538_vm1, %v3494_v13, %v16866_v41  ;;  %v2102_v18 = vadd.f32 %v9617_v58, %v2067_v22  ;;  %v3466_v42 = vadd.f32 %v3438_v0, %v3321_v1  ;;  %v16867_v13 = vld [vmem:[#allocation31_spill] sm:$0xff]  ;;  %v10113_v63 = vmul.f32 %v10110_v33, %v3507_v9  ;;  %v8475_v1 = vld [vmem:[#allocation9 + $0xa8] sm:$0xff]  }
 0x106   : > { %v3465_v37 = vadd.f32 %v3437_v31, %v3320_v57  ;;  %8242 = vmatpush3.bf16.msra.mxu1 %v16867_v13  ;;  %v3555_v41 = vmul.f32 %v10095_v24, %v3506_v35  ;;  %v10116_v38 = vmul.f32 %v10110_v33, %v3506_v35  ;;  %v3836_v15 = vadd.f32 %v3808_v45, %v16868_v8  ;;  %v16870_v31 = vld [vmem:[#allocation45_spill] sm:$0xff]  ;;  %v10124_v13 = vld [vmem:[#allocation6 + $0x19] ss:$0 sm:$0xff] }
 0x107   : > { %v2129_v56 = vmax.f32 %v2101_v55, 0.0  ;;  %v2130_v54 = vmax.f32 %v2102_v18, 0.0  ;;  %v3837_v57 = vadd.f32 %v3809_v25, %v16870_v31  ;;  %8243 = vmatprep.subr.bf16.mxu1 %v8472_v4  ;;  %v3874_v47 = vmul.f32 %v10124_v13, %v3390_v46  ;;  %v10132_v55 = vld [vmem:[%s9188_s30 + $0x518] sm:$0xff] }
 0x108   : > { %v10119_v22 = vadd.f32 %v3554_v7, %v3465_v37  ;;  %v10122_v0 = vadd.f32 %v3555_v41, %v3466_v42  ;;  %v3875_v60 = vmul.f32 %v10124_v13, %v3389_v36  ;;  %v3940_v45 = vmul.f32 %v10128_v43, %v3507_v9  ;;  %v10135_v37 = vld [vmem:[#allocation6 + $0x4] ss:$0 sm:$0xff] }
 0x109   : > { %v2157_v7 = vmin.f32 %v2129_v56, 6.0  ;;  %v2158_v18 = vmin.f32 %v2130_v54, 6.0  ;;  %v3941_v25 = vmul.f32 %v10128_v43, %v3506_v35  ;;  %v4264_v42 = vmul.f32 %v10135_v37, %v9786_v39  ;;  %v8482_v35 = vld [vmem:[#allocation9 + $0xa0] sm:$0xff]  }
 0x10a   : > { %16869 = vst [vmem:[#allocation32_spill] sm:$0xff] %v10119_v22  ;;  %16871 = vst [vmem:[#allocation33_spill] sm:$0xff] %v10122_v0  ;;  %v3902_v41 = vadd.f32 %v3874_v47, %v3836_v15  ;;  %v3903_v8 = vadd.f32 %v3875_v60, %v3837_v57  ;;  %v4265_v36 = vmul.f32 %v10135_v37, %v9889_v44  ;;  %v4321_v46 = vrot.slane %v9889_v44, 1  ;;  %v10153_v47 = vld [vmem:[#allocation6 + $0x5] ss:$0 sm:$0xff] }
 0x10b   : > { %8244 = vmatpush3.bf16.msra.mxu1 %v8472_v4  ;;  %v8066_v9 = vpack.c.bf16 %v2157_v7, %v2157_v7  ;;  %v8067_v31 = vpack.c.bf16 %v2158_v18, %v2158_v18  ;;  %v16391_v56 = vrot.slane %v10132_v55, 1  ;;  %v4438_v54 = vrot.slane %v9889_v44, 2  ;;  %v10163_v18 = vld [vmem:[#allocation8] ss:$0 sm:$0xff] }
 0x10c   : > { %8245 = vmatprep.subr.bf16.mxu1 %v8475_v1  ;;  %v3968_v0 = vadd.f32 %v3940_v45, %v3902_v41  ;;  %v3969_v22 = vadd.f32 %v3941_v25, %v3903_v8  ;;  %v4334_v15 = vsel %vm420_vm0, %v16872_v20, %v4321_v46  ;;  %v16397_v60 = vrot.slane %v10132_v55, 2 }
 0x10d   : > { %2297 = vst [vmem:[#allocation2 + $0x1c] sm:$0xf] %v8066_v9  ;;  %2298 = vst [vmem:[#allocation2 + $0x28] sm:$0xf] %v8067_v31  ;;  %v4333_v4 = vsel %vm420_vm0, %v4321_v46, %v16391_v56  ;;  %v4381_v57 = vmul.f32 %v10153_v47, %v4334_v15  ;;  %v16873_v45 = vrot.slane %v9786_v39, 2  ;;  %v10161_v20 = vmul.f32 %v9527_v28, %v4334_v15 }
 0x10e   : > { %v4003_v25 = vadd.f32 %v10163_v18, %v3968_v0  ;;  %v4004_v41 = vadd.f32 %v10163_v18, %v3969_v22  ;;  %v4382_v8 = vmul.f32 %v10153_v47, %v4333_v4  ;;  %v4450_v46 = vsel %vm538_vm1, %v4438_v54, %v16397_v60  ;;  %v8489_v0 = vld [vmem:[#allocation9 + $0x98] sm:$0xff]  }
 0x10f   : > { %v4451_v7 = vsel %vm538_vm1, %v16873_v45, %v4438_v54  ;;  %16874 = vst [vmem:[#allocation31_spill] sm:$0xff] %v10161_v20  ;;  %8246 = vmatpush3.bf16.msra.mxu1 %v8475_v1  ;;  %v4409_v9 = vadd.f32 %v4381_v57, %v4264_v42  ;;  %v4499_v45 = vmul.f32 %v9467_v11, %v4450_v46 }
 0x110   : > { %v4498_v31 = vmul.f32 %v9467_v11, %v4451_v7  ;;  %v10175_v56 = vmul.f32 %v9527_v28, %v4333_v4  ;;  %8247 = vmatprep.subr.bf16.mxu1 %v8482_v35  ;;  %v4031_v22 = vmax.f32 %v4003_v25, 0.0  ;;  %v4032_v51 = vmax.f32 %v4004_v41, 0.0  ;;  %v306_v41 = vld [vmem:[%s9188_s30 + $0x78] sm:$0xff] }
 0x111   : > { %v4410_v23 = vadd.f32 %v4382_v8, %v4265_v36  ;;  %v10178_v20 = vmul.f32 %v9554_v19, %v4451_v7  ;;  %v10183_v42 = vmul.f32 %v9554_v19, %v4450_v46  ;;  %v4752_v11 = vmul.f32 %v9560_v62, %v9786_v39 }
 0x112   : > { %v10180_v1 = vadd.f32 %v4498_v31, %v4409_v9  ;;  %v4753_v28 = vmul.f32 %v9560_v62, %v9889_v44  ;;  %v4059_v54 = vmin.f32 %v4031_v22, 6.0  ;;  %v4060_v57 = vmin.f32 %v4032_v51, 6.0  ;;  %v10198_v31 = vld [vmem:[%s9188_s30 + $0x90] sm:$0xff]  ;;  %v10201_v62 = vld [vmem:[%s9188_s30 + $0xd8] sm:$0xff] }
 0x113   : > { %v10189_v36 = vadd.f32 %v4499_v45, %v4410_v23  ;;  %v4818_v25 = vmul.f32 %v9581_v14, %v4334_v15  ;;  %8248 = vmatpush3.bf16.msra.mxu1 %v8482_v35  ;;  %v4780_v8 = vadd.f32 %v4752_v11, %v9927_v5  ;;  %v4819_v9 = vmul.f32 %v9581_v14, %v4333_v4  ;;  %v8591_v45 = vld [vmem:[%s9188_s30 + $0x60] sm:$0xff] }
 0x114   : > { %16875 = vst [vmem:[#allocation44_spill] sm:$0xff] %v10180_v1  ;;  %v4781_v19 = vadd.f32 %v4753_v28, %v9933_v17  ;;  %v4884_v39 = vmul.f32 %v9587_v26, %v4451_v7  ;;  %8249 = vmatprep.subr.bf16.mxu1 %v8489_v0  ;;  %v8468_v44 = vld [vmem:[#allocation2 + $0x1c] ss:$12 sps:$4 sm:$0xff]   ;;  %v8136_v23 = vpack.c.bf16 %v4059_v54, %v4059_v54  ;;  %v8473_v17 = vld [vmem:[#allocation2 + $0x18] ss:$12 sps:$4 sm:$0xff]   ;;  %v395_v4 = vrot.slane %v306_v41, 1 }
 0x115   : > { %16876 = vst [vmem:[#allocation45_spill] sm:$0xff] %v10189_v36  ;;  %v8137_v51 = vpack.c.bf16 %v4060_v57, %v4060_v57  ;;  %v4885_v15 = vmul.f32 %v9587_v26, %v4450_v46  ;;  %v338_v35 = vmul.f32 %v8591_v45, %v10059_v10  ;;  %v4846_v5 = vadd.f32 %v4818_v25, %v4780_v8  ;;  %v10209_v54 = vld [vmem:[#allocation6 + $0xc] ss:$0 sm:$0xff]  ;;  %v16877_v25 = vld [vmem:[#allocation19_spill] sm:$0xff] }
 0x116   : > { %v4847_v22 = vadd.f32 %v4819_v9, %v4781_v19  ;;  %v339_v14 = vmul.f32 %v10059_v10, %v306_v41  ;;  %7026 = vmatprep.mubr.bf16.mxu0 %v8468_v44  ;;  %4199 = vst [vmem:[#allocation2 + $0x210] sm:$0xf] %v8136_v23  ;;  %v16394_v7 = vrot.slane %v10198_v31, 1  ;;  %v515_v11 = vrot.slane %v306_v41, 2  ;;  %v10217_v19 = vld [vmem:[%s9188_s30 + $0xf0] sm:$0xff] }
 0x117   : > { %4200 = vst [vmem:[#allocation2 + $0x21c] sm:$0xf] %v8137_v51  ;;  %v16393_v28 = vrot.slane %v10198_v31, 2  ;;  %v667_v26 = vmul.f32 %v10209_v54, %v9922_v21  ;;  %8250 = vmatpush3.bf16.msra.mxu1 %v8489_v0  ;;  %v4912_v46 = vadd.f32 %v4884_v39, %v4846_v5  ;;  %7027 = vmatmul.mubr.bf16.gmra.mxu0 %v8473_v17  ;;  %v725_v9 = vrot.slane %v10201_v62, 1  ;;  %v16878_v39 = vld [vmem:[#allocation21_spill] sm:$0xff] }
 0x118   : > { %v4913_v57 = vadd.f32 %v4885_v15, %v4847_v22  ;;  %v443_v8 = vsel %vm420_vm0, %v16877_v25, %v395_v4  ;;  %v442_v41 = vsel %vm420_vm0, %v395_v4, %v16394_v7  ;;  %v561_v23 = vsel %vm538_vm1, %v16878_v39, %v515_v11 }
 0x119   : > { %v458_v44 = vmul.f32 %v10087_v61, %v443_v8  ;;  %v560_v0 = vsel %vm538_vm1, %v515_v11, %v16393_v28  ;;  %v4947_v51 = vadd.f32 %v9617_v58, %v4912_v46  ;;  %v459_v45 = vmul.f32 %v10087_v61, %v442_v41 }
 0x11a   : > { %v4948_v15 = vadd.f32 %v9617_v58, %v4913_v57  ;;  %v576_v5 = vmul.f32 %v10095_v24, %v561_v23  ;;  %v577_v17 = vmul.f32 %v10095_v24, %v560_v0  ;;  %v16396_v4 = vrot.slane %v10217_v19, 1 }
 0x11b   : > { %v486_v22 = vadd.f32 %v458_v44, %v338_v35  ;;  %v16879_v8 = vrot.slane %v9925_v3, 1  ;;  %v4975_v11 = vmax.f32 %v4947_v51, 0.0  ;;  %v487_v46 = vadd.f32 %v459_v45, %v339_v14 }
 0x11c   : > { %v4976_v7 = vmax.f32 %v4948_v15, 0.0  ;;  %v10252_v35 = vsel %vm420_vm0, %v725_v9, %v16396_v4  ;;  %v842_v41 = vrot.slane %v10201_v62, 2  ;;  %v16395_v44 = vrot.slane %v10217_v19, 2  ;;  %v16882_v15 = vld [vmem:[#allocation22_spill] sm:$0xff] }
 0x11d   : > { %v10242_v28 = vsel %vm420_vm0, %v16879_v8, %v725_v9  ;;  %v604_v57 = vadd.f32 %v576_v5, %v486_v22  ;;  %16881 = vst [vmem:[#allocation63_spill] sm:$0xff] %v10252_v35  ;;  %v5003_v0 = vmin.f32 %v4975_v11, 6.0  ;;  %v605_v14 = vadd.f32 %v577_v17, %v487_v46 }
 0x11e   : > { %16880 = vst [vmem:[#allocation62_spill] sm:$0xff] %v10242_v28  ;;  %v10246_v58 = vmul.f32 %v10098_v53, %v10242_v28  ;;  %v5004_v23 = vmin.f32 %v4976_v7, 6.0  ;;  %v10258_v51 = vmul.f32 %v10098_v53, %v10252_v35  ;;  %v10265_v9 = vsel %vm538_vm1, %v842_v41, %v16395_v44 }
 0x11f   : > { %v694_v45 = vadd.f32 %v16882_v15, %v604_v57  ;;  %16883 = vst [vmem:[#allocation22_spill] sm:$0xff] %v10265_v9  ;;  %v16884_v5 = vrot.slane %v9925_v3, 2  ;;  %v964_v7 = vmul.f32 %v10069_v48, %v9925_v3  ;;  %v8164_v17 = vpack.c.bf16 %v5003_v0, %v5003_v0  ;;  %v10280_v57 = vld [vmem:[%s9188_s30 + $0xe0] sm:$0xff] }
 0x120   : > { %v8165_v8 = vpack.c.bf16 %v5004_v23, %v5004_v23  ;;  %v695_v11 = vadd.f32 %v667_v26, %v605_v14  ;;  %v10285_v44 = vmul.f32 %v10110_v33, %v10265_v9  ;;  %v1030_v0 = vmul.f32 %v10124_v13, %v10242_v28  ;;  %v10292_v23 = vld [vmem:[%s9188_s30 + $0xf8] sm:$0xff] }
 0x121   : > { %v10271_v22 = vsel %vm538_vm1, %v16884_v5, %v842_v41  ;;  %v811_v15 = vadd.f32 %v9967_v30, %v694_v45  ;;  %v965_v41 = vmul.f32 %v10069_v48, %v10201_v62  ;;  %16886 = vst [vmem:[#allocation65_spill] sm:$0xff] %v10292_v23  ;;  %5143 = vst [vmem:[#allocation2 + $0x214] sm:$0xf] %v8164_v17  ;;  %v1594_v60 = vrot.slane %v10280_v57, 2 }
 0x122   : > { %16885 = vst [vmem:[#allocation64_spill] sm:$0xff] %v10271_v22  ;;  %v10277_v46 = vmul.f32 %v10110_v33, %v10271_v22  ;;  %5144 = vst [vmem:[#allocation2 + $0x220] sm:$0xf] %v8165_v8  ;;  %v812_v26 = vadd.f32 %v9971_v34, %v695_v11  ;;  %v1031_v14 = vmul.f32 %v10124_v13, %v10252_v35  ;;  %v1477_v8 = vrot.slane %v10280_v57, 1  ;;  %v16889_v35 = vld [vmem:[#allocation30_spill] sm:$0xff] }
 0x123   : > { %v1096_v30 = vmul.f32 %v10128_v43, %v10271_v22  ;;  %v1097_v45 = vmul.f32 %v10128_v43, %v10265_v9  ;;  %v928_v5 = vadd.f32 %v9981_v50, %v811_v15  ;;  %v1420_v4 = vmul.f32 %v10135_v37, %v9994_v2  ;;  %v16888_v15 = vld [vmem:[#allocation29_spill] sm:$0xff] }
 0x124   : > { %v1421_v17 = vmul.f32 %v10135_v37, %v10280_v57  ;;  %v929_v34 = vadd.f32 %v9985_v27, %v812_v26  ;;  %v16402_v11 = vrot.slane %v10292_v23, 1  ;;  %v16403_v39 = vrot.slane %v10292_v23, 2 }
 0x125   : > { %v992_v25 = vadd.f32 %v964_v7, %v928_v5  ;;  %v16887_v9 = vrot.slane %v9994_v2, 1  ;;  %v1807_v22 = vadd.f32 %v10031_v49, %v16888_v15  ;;  %v1808_v28 = vadd.f32 %v10034_v32, %v16889_v35  ;;  %v10333_v35 = vld [vmem:[#allocation6 + $0x6] ss:$0 sm:$0xff] }
 0x126   : > { %v993_v36 = vadd.f32 %v965_v41, %v929_v34  ;;  %v1513_v27 = vsel %vm420_vm0, %v1477_v8, %v16402_v11  ;;  %v1630_v7 = vsel %vm538_vm1, %v1594_v60, %v16403_v39  ;;  %v16890_v49 = vrot.slane %v9994_v2, 2  ;;  %v10337_v11 = vld [vmem:[#allocation6 + $0x11] ss:$0 sm:$0xff] }
 0x127   : > { %v1514_v50 = vsel %vm420_vm0, %v16887_v9, %v1477_v8  ;;  %v1058_v9 = vadd.f32 %v1030_v0, %v992_v25  ;;  %v1538_v5 = vmul.f32 %v10153_v47, %v1513_v27  ;;  %v1655_v41 = vmul.f32 %v10333_v35, %v1630_v7 }
 0x128   : > { %v1537_v26 = vmul.f32 %v10153_v47, %v1514_v50  ;;  %v1631_v32 = vsel %vm538_vm1, %v16890_v49, %v1594_v60  ;;  %v1059_v8 = vadd.f32 %v1031_v14, %v993_v36  ;;  %v10340_v39 = vmul.f32 %v10337_v11, %v1514_v50  ;;  %v10345_v60 = vld [vmem:[#allocation6 + $0x12] ss:$0 sm:$0xff] }
 0x129   : > { %v1654_v15 = vmul.f32 %v10333_v35, %v1631_v32  ;;  %v8470_v25 = vld [vmem:[#allocation2 + $0x214] ss:$12 sps:$4 sm:$0xff]   ;;  %v1124_v0 = vadd.f32 %v1096_v30, %v1058_v9  ;;  %v1566_v1 = vadd.f32 %v1538_v5, %v1421_v17  ;;  %v10343_v23 = vmul.f32 %v10337_v11, %v1513_v27  ;;  %v8474_v36 = vld [vmem:[#allocation2 + $0x210] ss:$12 sps:$4 sm:$0xff]  }
 0x12a   : > { %v1565_v34 = vadd.f32 %v1537_v26, %v1420_v4  ;;  %16891 = vst [vmem:[#allocation29_spill] sm:$0xff] %v10340_v39  ;;  %v10348_v49 = vmul.f32 %v10345_v60, %v1631_v32  ;;  %v1125_v4 = vadd.f32 %v1097_v45, %v1059_v8  ;;  %v10353_v26 = vmul.f32 %v10345_v60, %v1630_v7 }
 0x12b   : > { %16892 = vst [vmem:[#allocation30_spill] sm:$0xff] %v10343_v23  ;;  %v1873_v30 = vadd.f32 %v10037_v16, %v1807_v22  ;;  %7194 = vmatprep.mubr.bf16.mxu1 %v8470_v25  ;;  %v1159_v17 = vadd.f32 %v10163_v18, %v1124_v0  ;;  %v10357_v9 = vadd.f32 %v1655_v41, %v1566_v1  ;;  %v10360_v23 = vld [vmem:[#allocation6 + $0x1c] ss:$0 sm:$0xff]  ;;  %v10372_v22 = vld [vmem:[%s9188_s30 + $0x528] sm:$0xff]  ;;  %v10377_v25 = vld [vmem:[#allocation6 + $0x1e] ss:$0 sm:$0xff] }
 0x12c   : > { %16893 = vst [vmem:[#allocation66_spill] sm:$0xff] %v10348_v49  ;;  %v10350_v14 = vadd.f32 %v1654_v15, %v1565_v34  ;;  %16895 = vst [vmem:[#allocation68_spill] sm:$0xff] %v10353_v26  ;;  %v1874_v5 = vadd.f32 %v10042_v12, %v1808_v28  ;;  %v1908_v45 = vmul.f32 %v10360_v23, %v9994_v2  ;;  %7195 = vmatmul.mubr.bf16.gmra.mxu1 %v8474_v36  ;;  %v10367_v15 = vld [vmem:[#allocation6 + $0x1d] ss:$0 sm:$0xff]  ;;  %v10375_v12 = vld [vmem:[%s9188_s30 + $0x540] sm:$0xff] }
 0x12d   : > { %16896 = vst [vmem:[#allocation69_spill] sm:$0xff] %v10357_v9  ;;  %v1160_v8 = vadd.f32 %v10163_v18, %v1125_v4  ;;  %v1909_v34 = vmul.f32 %v10360_v23, %v10280_v57  ;;  %v1974_v16 = vmul.f32 %v10367_v15, %v1514_v50  ;;  %v1975_v1 = vmul.f32 %v10367_v15, %v1513_v27 }
 0x12e   : > { %16894 = vst [vmem:[#allocation67_spill] sm:$0xff] %v10350_v14  ;;  %16897 = vst [vmem:[#allocation70_spill] sm:$0xff] %v10375_v12  ;;  %v1187_v28 = vmax.f32 %v1159_v17, 0.0  ;;  %v1936_v41 = vadd.f32 %v1908_v45, %v1873_v30  ;;  %v2040_v0 = vmul.f32 %v10377_v25, %v1631_v32  ;;  %v2041_v36 = vmul.f32 %v10377_v25, %v1630_v7 }
 0x12f   : > { %v1188_v4 = vmax.f32 %v1160_v8, 0.0  ;;  %v1937_v9 = vadd.f32 %v1909_v34, %v1874_v5  ;;  %v3322_v14 = vmul.f32 %v10059_v10, %v10052_v40  ;;  %v3323_v50 = vmul.f32 %v10059_v10, %v10372_v22 }
 0x130   : > { %v1215_v27 = vmin.f32 %v1187_v28, 6.0  ;;  %v2002_v26 = vadd.f32 %v1974_v16, %v1936_v41  ;;  %v3379_v49 = vrot.slane %v10372_v22, 1  ;;  %v16406_v30 = vrot.slane %v10375_v12, 1 }
 0x131   : > { %v1216_v17 = vmin.f32 %v1188_v4, 6.0  ;;  %v2003_v45 = vadd.f32 %v1975_v1, %v1937_v9  ;;  %v3496_v32 = vrot.slane %v10372_v22, 2  ;;  %v16407_v7 = vrot.slane %v10375_v12, 2  ;;  %v10399_v4 = vld [vmem:[#allocation8 + $0x1] ss:$0 sm:$0xff]  ;;  %v16902_v12 = vld [vmem:[#allocation42_spill] sm:$0xff] }
 0x132   : > { %v8040_v8 = vpack.c.bf16 %v1215_v27, %v1215_v27  ;;  %v2068_v5 = vadd.f32 %v2040_v0, %v2002_v26  ;;  %v3387_v34 = vsel %vm420_vm0, %v3379_v49, %v16406_v30  ;;  %v16898_v28 = vrot.slane %v10052_v40, 1 }
 0x133   : > { %v8041_v41 = vpack.c.bf16 %v1216_v17, %v1216_v17  ;;  %v2069_v39 = vadd.f32 %v2041_v36, %v2003_v45  ;;  %v3440_v1 = vmul.f32 %v10087_v61, %v3387_v34  ;;  %v3504_v0 = vsel %vm538_vm1, %v3496_v32, %v16407_v7 }
 0x134   : > { %v3388_v16 = vsel %vm420_vm0, %v16898_v28, %v3379_v49  ;;  %1355 = vst [vmem:[#allocation2 + $0x30] sm:$0xf] %v8040_v8  ;;  %v2103_v26 = vadd.f32 %v10399_v4, %v2068_v5  ;;  %v16899_v27 = vrot.slane %v10052_v40, 2  ;;  %v3557_v30 = vmul.f32 %v10095_v24, %v3504_v0 }
 0x135   : > { %v3439_v9 = vmul.f32 %v10087_v61, %v3388_v16  ;;  %v10411_v36 = vmul.f32 %v10098_v53, %v3388_v16  ;;  %1356 = vst [vmem:[#allocation2 + $0x3c] sm:$0xf] %v8041_v41  ;;  %v2104_v17 = vadd.f32 %v10399_v4, %v2069_v39  ;;  %v3468_v8 = vadd.f32 %v3440_v1, %v3323_v50  ;;  %v16904_v41 = vld [vmem:[#allocation43_spill] sm:$0xff] }
 0x136   : > { %v3505_v49 = vsel %vm538_vm1, %v16899_v27, %v3496_v32  ;;  %v2131_v28 = vmax.f32 %v2103_v26, 0.0  ;;  %v10417_v7 = vmul.f32 %v10098_v53, %v3387_v34  ;;  %v3709_v32 = vadd.f32 %v10101_v29, %v16902_v12 }
 0x137   : > { %16900 = vst [vmem:[#allocation71_spill] sm:$0xff] %v10411_v36  ;;  %v3467_v45 = vadd.f32 %v3439_v9, %v3322_v14  ;;  %v3556_v5 = vmul.f32 %v10095_v24, %v3505_v49  ;;  %v2132_v27 = vmax.f32 %v2104_v17, 0.0  ;;  %v3710_v39 = vadd.f32 %v10104_v52, %v16904_v41  ;;  %v10440_v17 = vld [vmem:[%s9188_s30 + $0x530] sm:$0xff] }
 0x138   : > { %16901 = vst [vmem:[#allocation72_spill] sm:$0xff] %v10417_v7  ;;  %v10426_v14 = vmul.f32 %v10110_v33, %v3505_v49  ;;  %v2159_v50 = vmin.f32 %v2131_v28, 6.0  ;;  %v10428_v9 = vadd.f32 %v3557_v30, %v3468_v8  ;;  %v10431_v1 = vmul.f32 %v10110_v33, %v3504_v0 }
 0x139   : > { %v10421_v36 = vadd.f32 %v3556_v5, %v3467_v45  ;;  %v3775_v26 = vadd.f32 %v10113_v63, %v3709_v32  ;;  %v2160_v7 = vmin.f32 %v2132_v27, 6.0  ;;  %v3776_v29 = vadd.f32 %v10116_v38, %v3710_v39  ;;  %v10443_v45 = vld [vmem:[%s9188_s30 + $0x548] sm:$0xff] }
 0x13a   : > { %16905 = vst [vmem:[#allocation43_spill] sm:$0xff] %v10428_v9  ;;  %v3810_v12 = vmul.f32 %v10069_v48, %v10052_v40  ;;  %v3811_v52 = vmul.f32 %v10069_v48, %v10372_v22  ;;  %v8068_v30 = vpack.c.bf16 %v2159_v50, %v2159_v50  ;;  %v3876_v8 = vmul.f32 %v10124_v13, %v3388_v16 }
 0x13b   : > { %16903 = vst [vmem:[#allocation42_spill] sm:$0xff] %v10421_v36  ;;  %v3877_v5 = vmul.f32 %v10124_v13, %v3387_v34  ;;  %v3942_v63 = vmul.f32 %v10128_v43, %v3505_v49  ;;  %v8069_v28 = vpack.c.bf16 %v2160_v7, %v2160_v7  ;;  %v3943_v27 = vmul.f32 %v10128_v43, %v3504_v0 }
 0x13c   : > { %v3838_v32 = vadd.f32 %v3810_v12, %v3775_v26  ;;  %v3839_v38 = vadd.f32 %v3811_v52, %v3776_v29  ;;  %2299 = vst [vmem:[#allocation2 + $0x34] sm:$0xf] %v8068_v30  ;;  %v4266_v41 = vmul.f32 %v10135_v37, %v10132_v55  ;;  %v4267_v39 = vmul.f32 %v10135_v37, %v10440_v17  ;;  %v16907_v12 = vld [vmem:[#allocation31_spill] sm:$0xff] }
 0x13d   : > { %v4323_v50 = vrot.slane %v10440_v17, 1  ;;  %v16410_v16 = vrot.slane %v10443_v45, 1  ;;  %2300 = vst [vmem:[#allocation2 + $0x40] sm:$0xf] %v8069_v28  ;;  %v4440_v7 = vrot.slane %v10440_v17, 2  ;;  %v16411_v49 = vrot.slane %v10443_v45, 2 }
 0x13e   : > { %v3904_v34 = vadd.f32 %v3876_v8, %v3838_v32  ;;  %v3905_v9 = vadd.f32 %v3877_v5, %v3839_v38  ;;  %v16906_v26 = vrot.slane %v10132_v55, 1  ;;  %v4653_v52 = vadd.f32 %v16907_v12, %v9903_v59  ;;  %v16908_v30 = vld [vmem:[#allocation55_spill] sm:$0xff] }
 0x13f   : > { %v4331_v0 = vsel %vm420_vm0, %v4323_v50, %v16410_v16  ;;  %v4654_v8 = vadd.f32 %v10175_v56, %v16908_v30  ;;  %v4448_v16 = vsel %vm538_vm1, %v4440_v7, %v16411_v49  ;;  %v16909_v36 = vrot.slane %v10132_v55, 2 }
 0x140   : > { %v4332_v29 = vsel %vm420_vm0, %v16906_v26, %v4323_v50  ;;  %v3970_v5 = vadd.f32 %v3942_v63, %v3904_v34  ;;  %v3971_v28 = vadd.f32 %v3943_v27, %v3905_v9  ;;  %v4384_v38 = vmul.f32 %v10153_v47, %v4331_v0 }
 0x141   : > { %v4383_v32 = vmul.f32 %v10153_v47, %v4332_v29  ;;  %v4449_v50 = vsel %vm538_vm1, %v16909_v36, %v4440_v7  ;;  %v10480_v59 = vmul.f32 %v10337_v11, %v4332_v29  ;;  %v10483_v56 = vmul.f32 %v10337_v11, %v4331_v0 }
 0x142   : > { %v4005_v9 = vadd.f32 %v10163_v18, %v3970_v5  ;;  %v4006_v63 = vadd.f32 %v10163_v18, %v3971_v28  ;;  %v4412_v34 = vadd.f32 %v4384_v38, %v4267_v39  ;;  %v4500_v26 = vmul.f32 %v10333_v35, %v4449_v50 }
 0x143   : > { %16910 = vst [vmem:[#allocation31_spill] sm:$0xff] %v10480_v59  ;;  %16911 = vst [vmem:[#allocation55_spill] sm:$0xff] %v10483_v56  ;;  %v4411_v27 = vadd.f32 %v4383_v32, %v4266_v41  ;;  %v4501_v12 = vmul.f32 %v10333_v35, %v4448_v16  ;;  %v10490_v30 = vmul.f32 %v10345_v60, %v4449_v50  ;;  %v8496_v59 = vld [vmem:[#allocation9 + $0x90] sm:$0xff]  }
 0x144   : > { %v10493_v36 = vmul.f32 %v10345_v60, %v4448_v16  ;;  %v4033_v7 = vmax.f32 %v4005_v9, 0.0  ;;  %v4034_v49 = vmax.f32 %v4006_v63, 0.0  ;;  %v4719_v56 = vadd.f32 %v10178_v20, %v4653_v52  ;;  %v8476_v28 = vld [vmem:[#allocation2 + $0x34] ss:$12 sps:$4 sm:$0xff]   ;;  %8251 = vmatprep.subr.bf16.mxu1 %v8496_v59 }
 0x145   : > { %16912 = vst [vmem:[#allocation73_spill] sm:$0xff] %v10490_v30  ;;  %v4720_v5 = vadd.f32 %v10183_v42, %v4654_v8  ;;  %v10497_v41 = vadd.f32 %v4500_v26, %v4411_v27  ;;  %v10499_v39 = vadd.f32 %v4501_v12, %v4412_v34  ;;  %v4754_v32 = vmul.f32 %v10360_v23, %v10132_v55  ;;  %v8480_v30 = vld [vmem:[#allocation2 + $0x30] ss:$12 sps:$4 sm:$0xff]  }
 0x146   : > { %16913 = vst [vmem:[#allocation74_spill] sm:$0xff] %v10493_v36  ;;  %v4755_v38 = vmul.f32 %v10360_v23, %v10440_v17  ;;  %v4061_v36 = vmin.f32 %v4033_v7, 6.0  ;;  %v4062_v9 = vmin.f32 %v4034_v49, 6.0  ;;  %v4820_v63 = vmul.f32 %v10367_v15, %v4332_v29  ;;  %7034 = vmatprep.mubr.bf16.mxu0 %v8476_v28  ;;  %v16916_v7 = vld [vmem:[#allocation56_spill] sm:$0xff]  ;;  %8252 = vmatpush3.bf16.msra.mxu1 %v8496_v59 }
 0x147   : > { %16914 = vst [vmem:[#allocation75_spill] sm:$0xff] %v10497_v41  ;;  %16915 = vst [vmem:[#allocation76_spill] sm:$0xff] %v10499_v39  ;;  %v4821_v20 = vmul.f32 %v10367_v15, %v4331_v0  ;;  %v4782_v42 = vadd.f32 %v4754_v32, %v4719_v56  ;;  %v4886_v8 = vmul.f32 %v10377_v25, %v4449_v50  ;;  %7035 = vmatmul.mubr.bf16.gmra.mxu0 %v8480_v30  ;;  %v16918_v50 = vld [vmem:[#allocation58_spill] sm:$0xff]  ;;  %v10524_v30 = vld [vmem:[%s9188_s30 + $0x120] sm:$0xff] }
 0x148   : > { %v4783_v52 = vadd.f32 %v4755_v38, %v4720_v5  ;;  %v4887_v27 = vmul.f32 %v10377_v25, %v4448_v16  ;;  %v8138_v34 = vpack.c.bf16 %v4061_v36, %v4061_v36  ;;  %v8139_v26 = vpack.c.bf16 %v4062_v9, %v4062_v9  ;;  %v10521_v36 = vld [vmem:[%s9188_s30 + $0x108] sm:$0xff]  ;;  %v16921_v9 = vld [vmem:[#allocation59_spill] sm:$0xff] }
 0x149   : > { %v340_v49 = vmul.f32 %v10059_v10, %v10198_v31  ;;  %v341_v29 = vmul.f32 %v10059_v10, %v9922_v21  ;;  %v4848_v0 = vadd.f32 %v4820_v63, %v4782_v42  ;;  %v16917_v28 = vrot.slane %v10198_v31, 1  ;;  %v16919_v5 = vld [vmem:[#allocation57_spill] sm:$0xff] }
 0x14a   : > { %v4849_v12 = vadd.f32 %v4821_v20, %v4783_v52  ;;  %v461_v16 = vmul.f32 %v10087_v61, %v16918_v50  ;;  %4201 = vst [vmem:[#allocation2 + $0x228] sm:$0xf] %v8138_v34  ;;  %4202 = vst [vmem:[#allocation2 + $0x234] sm:$0xf] %v8139_v26  ;;  %v16920_v32 = vrot.slane %v10198_v31, 2  ;;  %v579_v63 = vmul.f32 %v10095_v24, %v16921_v9 }
 0x14b   : > { %v441_v56 = vsel %vm420_vm0, %v16917_v28, %v16916_v7  ;;  %v668_v20 = vmul.f32 %v10209_v54, %v9925_v3  ;;  %v4914_v42 = vadd.f32 %v4886_v8, %v4848_v0  ;;  %v669_v26 = vmul.f32 %v10209_v54, %v10201_v62 }
 0x14c   : > { %v460_v21 = vmul.f32 %v10087_v61, %v441_v56  ;;  %v559_v38 = vsel %vm538_vm1, %v16920_v32, %v16919_v5  ;;  %v4915_v52 = vadd.f32 %v4887_v27, %v4849_v12  ;;  %v489_v7 = vadd.f32 %v461_v16, %v341_v29 }
 0x14d   : > { %v578_v59 = vmul.f32 %v10095_v24, %v559_v38  ;;  %v727_v31 = vrot.slane %v10521_v36, 1  ;;  %v16413_v28 = vrot.slane %v10524_v30, 1  ;;  %v4949_v56 = vadd.f32 %v10399_v4, %v4914_v42 }
 0x14e   : > { %v488_v34 = vadd.f32 %v460_v21, %v340_v49  ;;  %v4950_v50 = vadd.f32 %v10399_v4, %v4915_v52  ;;  %v607_v5 = vadd.f32 %v579_v63, %v489_v7  ;;  %v844_v3 = vrot.slane %v10521_v36, 2 }
 0x14f   : > { %v10548_v27 = vsel %vm420_vm0, %v727_v31, %v16413_v28  ;;  %v16923_v49 = vrot.slane %v10217_v19, 1  ;;  %v16412_v0 = vrot.slane %v10524_v30, 2  ;;  %v4977_v12 = vmax.f32 %v4949_v56, 0.0 }
 0x150   : > { %v606_v8 = vadd.f32 %v578_v59, %v488_v34  ;;  %16922 = vst [vmem:[#allocation56_spill] sm:$0xff] %v10548_v27  ;;  %v4978_v16 = vmax.f32 %v4950_v50, 0.0  ;;  %v697_v21 = vadd.f32 %v669_v26, %v607_v5  ;;  %v10563_v9 = vmul.f32 %v10098_v53, %v10548_v27  ;;  %v10592_v5 = vld [vmem:[%s9188_s30 + $0x110] sm:$0xff] }
 0x151   : > { %v10554_v29 = vsel %vm420_vm0, %v16923_v49, %v727_v31  ;;  %v10569_v63 = vsel %vm538_vm1, %v844_v3, %v16412_v0  ;;  %v16926_v42 = vrot.slane %v10217_v19, 2  ;;  %v5005_v7 = vmin.f32 %v4977_v12, 6.0 }
 0x152   : > { %16924 = vst [vmem:[#allocation58_spill] sm:$0xff] %v10554_v29  ;;  %v10559_v32 = vmul.f32 %v10098_v53, %v10554_v29  ;;  %v696_v38 = vadd.f32 %v668_v20, %v606_v8  ;;  %16925 = vst [vmem:[#allocation57_spill] sm:$0xff] %v10569_v63  ;;  %v5006_v59 = vmin.f32 %v4978_v16, 6.0  ;;  %v814_v20 = vadd.f32 %v10258_v51, %v697_v21 }
 0x153   : > { %v10575_v52 = vsel %vm538_vm1, %v16926_v42, %v844_v3  ;;  %v10585_v31 = vmul.f32 %v10110_v33, %v10569_v63  ;;  %v966_v56 = vmul.f32 %v10069_v48, %v10217_v19  ;;  %v967_v50 = vmul.f32 %v10069_v48, %v10521_v36 }
 0x154   : > { %16927 = vst [vmem:[#allocation59_spill] sm:$0xff] %v10575_v52  ;;  %v10580_v34 = vmul.f32 %v10110_v33, %v10575_v52  ;;  %v813_v26 = vadd.f32 %v10246_v58, %v696_v38  ;;  %v8166_v3 = vpack.c.bf16 %v5005_v7, %v5005_v7  ;;  %v8167_v51 = vpack.c.bf16 %v5006_v59, %v5006_v59  ;;  %v10598_v58 = vld [vmem:[%s9188_s30 + $0x128] sm:$0xff] }
 0x155   : > { %16929 = vst [vmem:[#allocation78_spill] sm:$0xff] %v10585_v31  ;;  %v931_v8 = vadd.f32 %v10285_v44, %v814_v20  ;;  %v1032_v49 = vmul.f32 %v10124_v13, %v10554_v29  ;;  %16930 = vst [vmem:[#allocation79_spill] sm:$0xff] %v10598_v58  ;;  %v1033_v16 = vmul.f32 %v10124_v13, %v10548_v27  ;;  %v16931_v44 = vld [vmem:[#allocation65_spill] sm:$0xff]  ;;  %v1596_v0 = vrot.slane %v10592_v5, 2 }
 0x156   : > { %16928 = vst [vmem:[#allocation77_spill] sm:$0xff] %v10580_v34  ;;  %v930_v12 = vadd.f32 %v10277_v46, %v813_v26  ;;  %v1098_v21 = vmul.f32 %v10128_v43, %v10575_v52  ;;  %v1099_v38 = vmul.f32 %v10128_v43, %v10569_v63  ;;  %5145 = vst [vmem:[#allocation2 + $0x22c] sm:$0xf] %v8166_v3  ;;  %v1479_v46 = vrot.slane %v10592_v5, 1 }
 0x157   : > { %5146 = vst [vmem:[#allocation2 + $0x238] sm:$0xf] %v8167_v51  ;;  %v995_v42 = vadd.f32 %v967_v50, %v931_v8  ;;  %v1422_v7 = vmul.f32 %v10135_v37, %v16931_v44  ;;  %v1423_v59 = vmul.f32 %v10135_v37, %v10592_v5  ;;  %v16418_v26 = vrot.slane %v10598_v58, 1  ;;  %v10619_v51 = vld [vmem:[#allocation6 + $0x10] ss:$0 sm:$0xff] }
 0x158   : > { %v994_v20 = vadd.f32 %v966_v56, %v930_v12  ;;  %v16932_v3 = vrot.slane %v16931_v44, 1  ;;  %v1715_v8 = vmul.f32 %v10619_v51, %v9994_v2  ;;  %v1716_v56 = vmul.f32 %v10619_v51, %v10280_v57 }
 0x159   : > { %v1061_v52 = vadd.f32 %v1033_v16, %v995_v42  ;;  %v1511_v28 = vsel %vm420_vm0, %v1479_v46, %v16418_v26  ;;  %v16933_v42 = vrot.slane %v10598_v58, 2  ;;  %v16934_v2 = vrot.slane %v16931_v44, 2  ;;  %v16935_v26 = vld [vmem:[#allocation60_spill] sm:$0xff] }
 0x15a   : > { %v1512_v50 = vsel %vm420_vm0, %v16932_v3, %v1479_v46  ;;  %v1060_v12 = vadd.f32 %v1032_v49, %v994_v20  ;;  %v1540_v27 = vmul.f32 %v10153_v47, %v1511_v28  ;;  %v1743_v39 = vadd.f32 %v1715_v8, %v16935_v26  ;;  %v8481_v26 = vld [vmem:[#allocation2 + $0x228] ss:$12 sps:$4 sm:$0xff]  }
 0x15b   : > { %v1539_v16 = vmul.f32 %v10153_v47, %v1512_v50  ;;  %v1628_v3 = vsel %vm538_vm1, %v1596_v0, %v16933_v42  ;;  %v1127_v63 = vadd.f32 %v1099_v38, %v1061_v52  ;;  %v1629_v57 = vsel %vm538_vm1, %v16934_v2, %v1596_v0  ;;  %v16936_v42 = vld [vmem:[#allocation61_spill] sm:$0xff]  ;;  %v16942_v2 = vld [vmem:[#allocation66_spill] sm:$0xff] }
 0x15c   : > { %v1657_v49 = vmul.f32 %v10333_v35, %v1628_v3  ;;  %v1126_v20 = vadd.f32 %v1098_v21, %v1060_v12  ;;  %v1656_v46 = vmul.f32 %v10333_v35, %v1629_v57  ;;  %v1568_v58 = vadd.f32 %v1540_v27, %v1423_v59  ;;  %v16940_v27 = vld [vmem:[#allocation30_spill] sm:$0xff] }
 0x15d   : > { %v1567_v29 = vadd.f32 %v1539_v16, %v1422_v7  ;;  %v1162_v41 = vadd.f32 %v10163_v18, %v1127_v63  ;;  %v1744_v52 = vadd.f32 %v1716_v56, %v16936_v42  ;;  %v10645_v38 = vmul.f32 %v10337_v11, %v1512_v50  ;;  %v16938_v7 = vld [vmem:[#allocation29_spill] sm:$0xff] }
 0x15e   : > { %v8478_v31 = vld [vmem:[#allocation2 + $0x22c] ss:$12 sps:$4 sm:$0xff]   ;;  %v1161_v34 = vadd.f32 %v10163_v18, %v1126_v20  ;;  %v10651_v21 = vmul.f32 %v10337_v11, %v1511_v28  ;;  %v1809_v12 = vadd.f32 %v16938_v7, %v1743_v39  ;;  %v10654_v63 = vadd.f32 %v1657_v49, %v1568_v58  ;;  %v16943_v58 = vld [vmem:[#allocation68_spill] sm:$0xff] }
 0x15f   : > { %v10648_v0 = vadd.f32 %v1656_v46, %v1567_v29  ;;  %v1190_v8 = vmax.f32 %v1162_v41, 0.0  ;;  %v1810_v59 = vadd.f32 %v16940_v27, %v1744_v52  ;;  %v10658_v56 = vmul.f32 %v10345_v60, %v1629_v57  ;;  %7202 = vmatprep.mubr.bf16.mxu1 %v8478_v31  ;;  %v10671_v52 = vld [vmem:[%s9188_s30 + $0x558] sm:$0xff]  ;;  %v10676_v27 = vld [vmem:[%s9188_s30 + $0x570] sm:$0xff] }
 0x160   : > { %16939 = vst [vmem:[#allocation60_spill] sm:$0xff] %v10654_v63  ;;  %v1189_v16 = vmax.f32 %v1161_v34, 0.0  ;;  %v10661_v29 = vmul.f32 %v10345_v60, %v1628_v3  ;;  %v1875_v20 = vadd.f32 %v16942_v2, %v1809_v12  ;;  %v1910_v39 = vmul.f32 %v10360_v23, %v16931_v44  ;;  %7203 = vmatmul.mubr.bf16.gmra.mxu1 %v8481_v26 }
 0x161   : > { %16937 = vst [vmem:[#allocation65_spill] sm:$0xff] %v10648_v0  ;;  %v1218_v41 = vmin.f32 %v1190_v8, 6.0  ;;  %v1876_v49 = vadd.f32 %v16943_v58, %v1810_v59  ;;  %v1911_v46 = vmul.f32 %v10360_v23, %v10592_v5  ;;  %v1976_v42 = vmul.f32 %v10367_v15, %v1512_v50  ;;  %16944 = vst [vmem:[#allocation29_spill] sm:$0xff] %v10676_v27  ;;  %v16945_v59 = vld [vmem:[#allocation70_spill] sm:$0xff] }
 0x162   : > { %16941 = vst [vmem:[#allocation61_spill] sm:$0xff] %v10661_v29  ;;  %v1217_v34 = vmin.f32 %v1189_v16, 6.0  ;;  %v1938_v31 = vadd.f32 %v1910_v39, %v1875_v20  ;;  %v1977_v7 = vmul.f32 %v10367_v15, %v1511_v28  ;;  %v2042_v12 = vmul.f32 %v10377_v25, %v1629_v57 }
 0x163   : > { %v8043_v2 = vpack.c.bf16 %v1218_v41, %v1218_v41  ;;  %v1939_v26 = vadd.f32 %v1911_v46, %v1876_v49  ;;  %v2043_v8 = vmul.f32 %v10377_v25, %v1628_v3  ;;  %v3324_v58 = vmul.f32 %v10059_v10, %v16945_v59 }
 0x164   : > { %v8042_v63 = vpack.c.bf16 %v1217_v34, %v1217_v34  ;;  %v2004_v0 = vadd.f32 %v1976_v42, %v1938_v31  ;;  %v3325_v50 = vmul.f32 %v10059_v10, %v10671_v52  ;;  %v3381_v16 = vrot.slane %v10671_v52, 1 }
 0x165   : > { %1358 = vst [vmem:[#allocation2 + $0x54] sm:$0xf] %v8043_v2  ;;  %v2005_v28 = vadd.f32 %v1977_v7, %v1939_v26  ;;  %v16422_v57 = vrot.slane %v10676_v27, 1  ;;  %v3498_v20 = vrot.slane %v10671_v52, 2  ;;  %v16421_v39 = vrot.slane %v10676_v27, 2 }
 0x166   : > { %1357 = vst [vmem:[#allocation2 + $0x48] sm:$0xf] %v8042_v63  ;;  %v2070_v3 = vadd.f32 %v2042_v12, %v2004_v0  ;;  %v16946_v41 = vrot.slane %v16945_v59, 1  ;;  %v3617_v10 = vmul.f32 %v10209_v54, %v10052_v40  ;;  %v3618_v46 = vmul.f32 %v10209_v54, %v10372_v22 }
 0x167   : > { %v2071_v42 = vadd.f32 %v2043_v8, %v2005_v28  ;;  %v3385_v34 = vsel %vm420_vm0, %v3381_v16, %v16422_v57  ;;  %v3502_v0 = vsel %vm538_vm1, %v3498_v20, %v16421_v39  ;;  %v16947_v7 = vrot.slane %v16945_v59, 2  ;;  %v16949_v57 = vld [vmem:[#allocation33_spill] sm:$0xff] }
 0x168   : > { %v3386_v49 = vsel %vm420_vm0, %v16946_v41, %v3381_v16  ;;  %v2105_v31 = vadd.f32 %v10399_v4, %v2070_v3  ;;  %v3442_v40 = vmul.f32 %v10087_v61, %v3385_v34  ;;  %v3559_v12 = vmul.f32 %v10095_v24, %v3502_v0  ;;  %v16948_v16 = vld [vmem:[#allocation32_spill] sm:$0xff] }
 0x169   : > { %v3441_v63 = vmul.f32 %v10087_v61, %v3386_v49  ;;  %v3503_v22 = vsel %vm538_vm1, %v16947_v7, %v3498_v20  ;;  %v2106_v2 = vadd.f32 %v10399_v4, %v2071_v42  ;;  %v3645_v28 = vadd.f32 %v3617_v10, %v16948_v16  ;;  %v16953_v10 = vld [vmem:[#allocation72_spill] sm:$0xff] }
 0x16a   : > { %v3558_v8 = vmul.f32 %v10095_v24, %v3503_v22  ;;  %v2133_v41 = vmax.f32 %v2105_v31, 0.0  ;;  %v3470_v39 = vadd.f32 %v3442_v40, %v3325_v50  ;;  %v3646_v3 = vadd.f32 %v3618_v46, %v16949_v57 }
 0x16b   : > { %v3469_v26 = vadd.f32 %v3441_v63, %v3324_v58  ;;  %v10716_v61 = vmul.f32 %v10098_v53, %v3386_v49  ;;  %v2134_v27 = vmax.f32 %v2106_v2, 0.0  ;;  %v10721_v20 = vmul.f32 %v10098_v53, %v3385_v34  ;;  %v16951_v58 = vld [vmem:[#allocation71_spill] sm:$0xff] }
 0x16c   : > { %v3711_v42 = vadd.f32 %v16951_v58, %v3645_v28  ;;  %v2161_v24 = vmin.f32 %v2133_v41, 6.0  ;;  %v10724_v63 = vadd.f32 %v3559_v12, %v3470_v39  ;;  %v3712_v50 = vadd.f32 %v16953_v10, %v3646_v3 }
 0x16d   : > { %v10718_v29 = vadd.f32 %v3558_v8, %v3469_v26  ;;  %v10728_v57 = vmul.f32 %v10110_v33, %v3503_v22  ;;  %v2162_v46 = vmin.f32 %v2134_v27, 6.0  ;;  %v10731_v31 = vmul.f32 %v10110_v33, %v3502_v0  ;;  %v10741_v26 = vld [vmem:[%s9188_s30 + $0x560] sm:$0xff]  ;;  %v10744_v8 = vld [vmem:[%s9188_s30 + $0x578] sm:$0xff] }
 0x16e   : > { %16952 = vst [vmem:[#allocation66_spill] sm:$0xff] %v10724_v63  ;;  %v3777_v40 = vadd.f32 %v10426_v14, %v3711_v42  ;;  %v3812_v53 = vmul.f32 %v10069_v48, %v16945_v59  ;;  %v8070_v7 = vpack.c.bf16 %v2161_v24, %v2161_v24  ;;  %v3778_v2 = vadd.f32 %v10431_v1, %v3712_v50  ;;  %v8503_v42 = vld [vmem:[#allocation9 + $0x88] sm:$0xff]   ;;  %v10913_v63 = vld [vmem:[#allocation6 + $0x1a] ss:$0 sm:$0xff] }
 0x16f   : > { %16950 = vst [vmem:[#allocation30_spill] sm:$0xff] %v10718_v29  ;;  %v3813_v39 = vmul.f32 %v10069_v48, %v10671_v52  ;;  %v3878_v12 = vmul.f32 %v10124_v13, %v3386_v49  ;;  %v8071_v27 = vpack.c.bf16 %v2162_v46, %v2162_v46  ;;  %v3879_v16 = vmul.f32 %v10124_v13, %v3385_v34  ;;  %v16987_v29 = vld [vmem:[#allocation79_spill] sm:$0xff] }
 0x170   : > { %v3840_v33 = vadd.f32 %v3812_v53, %v3777_v40  ;;  %v3944_v14 = vmul.f32 %v10128_v43, %v3503_v22  ;;  %2301 = vst [vmem:[#allocation2 + $0x4c] sm:$0xf] %v8070_v7  ;;  %v3945_v41 = vmul.f32 %v10128_v43, %v3502_v0  ;;  %v4268_v1 = vmul.f32 %v10135_v37, %v10443_v45 }
 0x171   : > { %v3841_v28 = vadd.f32 %v3813_v39, %v3778_v2  ;;  %v4269_v48 = vmul.f32 %v10135_v37, %v10741_v26  ;;  %2302 = vst [vmem:[#allocation2 + $0x58] sm:$0xf] %v8071_v27  ;;  %v4325_v3 = vrot.slane %v10741_v26, 1  ;;  %v16426_v58 = vrot.slane %v10744_v8, 1  ;;  %8253 = vmatprep.subr.bf16.mxu1 %v8503_v42  ;;  %v16956_v27 = vld [vmem:[#allocation44_spill] sm:$0xff] }
 0x172   : > { %v3906_v49 = vadd.f32 %v3878_v12, %v3840_v33  ;;  %v4442_v13 = vrot.slane %v10741_v26, 2  ;;  %v16425_v22 = vrot.slane %v10744_v8, 2  ;;  %v4561_v43 = vmul.f32 %v10619_v51, %v10132_v55  ;;  %8254 = vmatpush3.bf16.msra.mxu1 %v8503_v42 }
 0x173   : > { %v3907_v34 = vadd.f32 %v3879_v16, %v3841_v28  ;;  %v4562_v0 = vmul.f32 %v10619_v51, %v10440_v17  ;;  %v4329_v37 = vsel %vm420_vm0, %v4325_v3, %v16426_v58  ;;  %v16954_v10 = vrot.slane %v10443_v45, 1 }
 0x174   : > { %v3972_v24 = vadd.f32 %v3944_v14, %v3906_v49  ;;  %v16955_v46 = vrot.slane %v10443_v45, 2  ;;  %v4386_v53 = vmul.f32 %v10153_v47, %v4329_v37  ;;  %v4446_v7 = vsel %vm538_vm1, %v4442_v13, %v16425_v22 }
 0x175   : > { %v4330_v50 = vsel %vm420_vm0, %v16954_v10, %v4325_v3  ;;  %v3973_v40 = vadd.f32 %v3945_v41, %v3907_v34  ;;  %v4503_v12 = vmul.f32 %v10333_v35, %v4446_v7  ;;  %v4589_v33 = vadd.f32 %v4561_v43, %v16956_v27  ;;  %v16958_v34 = vld [vmem:[#allocation31_spill] sm:$0xff]  ;;  %v16963_v27 = vld [vmem:[#allocation74_spill] sm:$0xff] }
 0x176   : > { %v4447_v55 = vsel %vm538_vm1, %v16955_v46, %v4442_v13  ;;  %v4385_v17 = vmul.f32 %v10153_v47, %v4330_v50  ;;  %v4007_v2 = vadd.f32 %v10163_v18, %v3972_v24  ;;  %v4414_v28 = vadd.f32 %v4386_v53, %v4269_v48  ;;  %v16957_v47 = vld [vmem:[#allocation45_spill] sm:$0xff] }
 0x177   : > { %v4502_v39 = vmul.f32 %v10333_v35, %v4447_v55  ;;  %v4008_v16 = vadd.f32 %v10163_v18, %v3973_v40  ;;  %v4590_v41 = vadd.f32 %v4562_v0, %v16957_v47  ;;  %v10786_v3 = vmul.f32 %v10337_v11, %v4330_v50  ;;  %v16961_v18 = vld [vmem:[#allocation55_spill] sm:$0xff]  ;;  %v8487_v48 = vld [vmem:[#allocation2 + $0x48] ss:$12 sps:$4 sm:$0xff]  }
 0x178   : > { %v4413_v14 = vadd.f32 %v4385_v17, %v4268_v1  ;;  %v4035_v49 = vmax.f32 %v4007_v2, 0.0  ;;  %v10789_v13 = vmul.f32 %v10337_v11, %v4329_v37  ;;  %v4655_v24 = vadd.f32 %v16958_v34, %v4589_v33  ;;  %v8483_v10 = vld [vmem:[#allocation2 + $0x4c] ss:$12 sps:$4 sm:$0xff]  }
 0x179   : > { %v4036_v46 = vmax.f32 %v4008_v16, 0.0  ;;  %v10794_v43 = vadd.f32 %v4503_v12, %v4414_v28  ;;  %v4656_v1 = vadd.f32 %v16961_v18, %v4590_v41  ;;  %v10798_v0 = vmul.f32 %v10345_v60, %v4447_v55  ;;  %v16962_v17 = vld [vmem:[#allocation73_spill] sm:$0xff]  ;;  %7042 = vmatprep.mubr.bf16.mxu0 %v8483_v10  ;;  %v10813_v10 = vld [vmem:[#allocation6] ss:$0 sm:$0xff] }
 0x17a   : > { %v10792_v22 = vadd.f32 %v4502_v39, %v4413_v14  ;;  %v4063_v42 = vmin.f32 %v4035_v49, 6.0  ;;  %v10801_v40 = vmul.f32 %v10345_v60, %v4446_v7  ;;  %v4721_v53 = vadd.f32 %v16962_v17, %v4655_v24  ;;  %7043 = vmatmul.mubr.bf16.gmra.mxu0 %v8487_v48  ;;  %16964 = vst [vmem:[#allocation32_spill] sm:$0xff] %v10813_v10  ;;  %v16967_v48 = vld [vmem:[#allocation63_spill] sm:$0xff] }
 0x17b   : > { %16960 = vst [vmem:[#allocation70_spill] sm:$0xff] %v10794_v43  ;;  %v4064_v2 = vmin.f32 %v4036_v46, 6.0  ;;  %v4722_v39 = vadd.f32 %v16963_v27, %v4656_v1  ;;  %v4756_v12 = vmul.f32 %v10360_v23, %v10443_v45  ;;  %v4757_v33 = vmul.f32 %v10360_v23, %v10741_v26  ;;  %v8602_v46 = vld [vmem:[%s9188_s30 + $0xc0] sm:$0xff]  ;;  %v10826_v17 = vld [vmem:[%s9188_s30 + $0x138] sm:$0xff] }
 0x17c   : > { %16959 = vst [vmem:[#allocation68_spill] sm:$0xff] %v10792_v22  ;;  %v8140_v16 = vpack.c.bf16 %v4063_v42, %v4063_v42  ;;  %v4822_v14 = vmul.f32 %v10367_v15, %v4330_v50  ;;  %v4823_v28 = vmul.f32 %v10367_v15, %v4329_v37  ;;  %v4888_v47 = vmul.f32 %v10377_v25, %v4447_v55  ;;  %v10819_v1 = vld [vmem:[#allocation6 + $0x1] ss:$0 sm:$0xff]  ;;  %v16966_v37 = vld [vmem:[#allocation62_spill] sm:$0xff]  ;;  %v10831_v27 = vld [vmem:[#allocation6 + $0x2] ss:$0 sm:$0xff] }
 0x17d   : > { %v8141_v41 = vpack.c.bf16 %v4064_v2, %v4064_v2  ;;  %v4784_v49 = vadd.f32 %v4756_v12, %v4721_v53  ;;  %v4785_v34 = vadd.f32 %v4757_v33, %v4722_v39  ;;  %v4889_v24 = vmul.f32 %v10377_v25, %v4446_v7  ;;  %16965 = vst [vmem:[#allocation33_spill] sm:$0xff] %v10819_v1  ;;  %v10829_v7 = vld [vmem:[%s9188_s30 + $0x150] sm:$0xff]  ;;  %v16971_v39 = vld [vmem:[#allocation64_spill] sm:$0xff] }
 0x17e   : > { %4203 = vst [vmem:[#allocation2 + $0x240] sm:$0xf] %v8140_v16  ;;  %v342_v18 = vmul.f32 %v8602_v46, %v10813_v10  ;;  %v343_v50 = vmul.f32 %v10813_v10, %v10201_v62  ;;  %v462_v55 = vmul.f32 %v10819_v1, %v16966_v37  ;;  %v463_v42 = vmul.f32 %v10819_v1, %v16967_v48  ;;  %v16972_v12 = vld [vmem:[#allocation22_spill] sm:$0xff] }
 0x17f   : > { %16968 = vst [vmem:[#allocation71_spill] sm:$0xff] %v10826_v17  ;;  %16969 = vst [vmem:[#allocation72_spill] sm:$0xff] %v10829_v7  ;;  %v4850_v53 = vadd.f32 %v4822_v14, %v4784_v49  ;;  %v4851_v2 = vadd.f32 %v4823_v28, %v4785_v34  ;;  %v580_v62 = vmul.f32 %v10831_v27, %v16971_v39  ;;  %v729_v14 = vrot.slane %v10826_v17, 1 }
 0x180   : > { %4204 = vst [vmem:[#allocation2 + $0x24c] sm:$0xf] %v8141_v41  ;;  %16970 = vst [vmem:[#allocation44_spill] sm:$0xff] %v10831_v27  ;;  %v581_v33 = vmul.f32 %v10831_v27, %v16972_v12  ;;  %v490_v16 = vadd.f32 %v462_v55, %v342_v18  ;;  %v491_v46 = vadd.f32 %v463_v42, %v343_v50  ;;  %v16428_v28 = vrot.slane %v10829_v7, 1  ;;  %v10859_v42 = vld [vmem:[#allocation6 + $0xd] ss:$0 sm:$0xff] }
 0x181   : > { %v670_v37 = vmul.f32 %v10209_v54, %v10217_v19  ;;  %v671_v48 = vmul.f32 %v10209_v54, %v10521_v36  ;;  %v4916_v58 = vadd.f32 %v4888_v47, %v4850_v53  ;;  %v4917_v41 = vadd.f32 %v4889_v24, %v4851_v2 }
 0x182   : > { %v608_v49 = vadd.f32 %v580_v62, %v490_v16  ;;  %v609_v34 = vadd.f32 %v581_v33, %v491_v46  ;;  %v846_v39 = vrot.slane %v10826_v17, 2  ;;  %v16427_v12 = vrot.slane %v10829_v7, 2 }
 0x183   : > { %v4951_v18 = vadd.f32 %v10399_v4, %v4916_v58  ;;  %v4952_v50 = vadd.f32 %v10399_v4, %v4917_v41  ;;  %v10851_v54 = vsel %vm420_vm0, %v729_v14, %v16428_v28  ;;  %v16974_v19 = vrot.slane %v10524_v30, 1  ;;  %v10883_v41 = vld [vmem:[#allocation6 + $0xe] ss:$0 sm:$0xff]  ;;  %v10911_v28 = vld [vmem:[%s9188_s30 + $0x158] sm:$0xff] }
 0x184   : > { %16973 = vst [vmem:[#allocation45_spill] sm:$0xff] %v10851_v54  ;;  %v698_v24 = vadd.f32 %v670_v37, %v608_v49  ;;  %v699_v55 = vadd.f32 %v671_v48, %v609_v34  ;;  %v10867_v53 = vmul.f32 %v10859_v42, %v10851_v54  ;;  %v10873_v33 = vsel %vm538_vm1, %v846_v39, %v16427_v12 }
 0x185   : > { %v10857_v47 = vsel %vm420_vm0, %v16974_v19, %v729_v14  ;;  %v4979_v2 = vmax.f32 %v4951_v18, 0.0  ;;  %v4980_v62 = vmax.f32 %v4952_v50, 0.0  ;;  %16978 = vst [vmem:[#allocation74_spill] sm:$0xff] %v10873_v33  ;;  %v16979_v16 = vrot.slane %v10524_v30, 2  ;;  %v16983_v50 = vld [vmem:[#allocation77_spill] sm:$0xff]  ;;  %16985 = vst [vmem:[#allocation22_spill] sm:$0xff] %v10911_v28 }
 0x186   : > { %16975 = vst [vmem:[#allocation31_spill] sm:$0xff] %v10857_v47  ;;  %v10863_v58 = vmul.f32 %v10859_v42, %v10857_v47  ;;  %16977 = vst [vmem:[#allocation73_spill] sm:$0xff] %v10867_v53  ;;  %v815_v37 = vadd.f32 %v10559_v32, %v698_v24  ;;  %v816_v48 = vadd.f32 %v10563_v9, %v699_v55  ;;  %v16984_v24 = vld [vmem:[#allocation78_spill] sm:$0xff] }
 0x187   : > { %v10879_v46 = vsel %vm538_vm1, %v16979_v16, %v846_v39  ;;  %v10891_v49 = vmul.f32 %v10883_v41, %v10873_v33  ;;  %v5007_v34 = vmin.f32 %v4979_v2, 6.0  ;;  %v5008_v18 = vmin.f32 %v4980_v62, 6.0  ;;  %v10893_v39 = vld [vmem:[#allocation6 + $0x18] ss:$0 sm:$0xff]  ;;  %v10901_v16 = vld [vmem:[#allocation6 + $0x19] ss:$0 sm:$0xff] }
 0x188   : > { %16976 = vst [vmem:[#allocation55_spill] sm:$0xff] %v10863_v58  ;;  %16980 = vst [vmem:[#allocation62_spill] sm:$0xff] %v10879_v46  ;;  %v10887_v14 = vmul.f32 %v10883_v41, %v10879_v46  ;;  %v968_v32 = vmul.f32 %v10893_v39, %v10524_v30  ;;  %v969_v9 = vmul.f32 %v10893_v39, %v10826_v17  ;;  %v10908_v62 = vld [vmem:[%s9188_s30 + $0x140] sm:$0xff] }
 0x189   : > { %16982 = vst [vmem:[#allocation64_spill] sm:$0xff] %v10891_v49  ;;  %v932_v19 = vadd.f32 %v16983_v50, %v815_v37  ;;  %v933_v55 = vadd.f32 %v16984_v24, %v816_v48  ;;  %v1034_v12 = vmul.f32 %v10901_v16, %v10857_v47  ;;  %v1035_v2 = vmul.f32 %v10901_v16, %v10851_v54  ;;  %v10919_v47 = vld [vmem:[#allocation6 + $0x4] ss:$0 sm:$0xff] }
 0x18a   : > { %16981 = vst [vmem:[#allocation63_spill] sm:$0xff] %v10887_v14  ;;  %v8168_v43 = vpack.c.bf16 %v5007_v34, %v5007_v34  ;;  %v8169_v22 = vpack.c.bf16 %v5008_v18, %v5008_v18  ;;  %v1100_v37 = vmul.f32 %v10913_v63, %v10879_v46  ;;  %v1101_v48 = vmul.f32 %v10913_v63, %v10873_v33  ;;  %v10957_v17 = vld [vmem:[#allocation8] ss:$0 sm:$0xff] }
 0x18b   : > { %v996_v50 = vadd.f32 %v968_v32, %v932_v19  ;;  %v997_v24 = vadd.f32 %v969_v9, %v933_v55  ;;  %16986 = vst [vmem:[#allocation77_spill] sm:$0xff] %v10919_v47  ;;  %v1424_v54 = vmul.f32 %v10919_v47, %v16987_v29  ;;  %v1425_v49 = vmul.f32 %v10919_v47, %v10908_v62 }
 0x18c   : > { %5147 = vst [vmem:[#allocation2 + $0x244] sm:$0xf] %v8168_v43  ;;  %5148 = vst [vmem:[#allocation2 + $0x250] sm:$0xf] %v8169_v22  ;;  %v1481_v34 = vrot.slane %v10908_v62, 1  ;;  %v16433_v18 = vrot.slane %v10911_v28, 1  ;;  %v1717_v19 = vmul.f32 %v10619_v51, %v16931_v44  ;;  %v1718_v55 = vmul.f32 %v10619_v51, %v10592_v5 }
 0x18d   : > { %v1598_v46 = vrot.slane %v10908_v62, 2  ;;  %v16436_v33 = vrot.slane %v10911_v28, 2  ;;  %v1062_v32 = vadd.f32 %v1034_v12, %v996_v50  ;;  %v1063_v9 = vadd.f32 %v1035_v2, %v997_v24  ;;  %v10949_v24 = vld [vmem:[#allocation6 + $0x5] ss:$0 sm:$0xff]  ;;  %v16991_v28 = vld [vmem:[#allocation67_spill] sm:$0xff] }
 0x18e   : > { %v1509_v22 = vsel %vm420_vm0, %v1481_v34, %v16433_v18  ;;  %v16988_v43 = vrot.slane %v16987_v29, 1  ;;  %v16989_v44 = vrot.slane %v16987_v29, 2  ;;  %16990 = vst [vmem:[#allocation78_spill] sm:$0xff] %v10949_v24  ;;  %v1745_v58 = vadd.f32 %v1717_v19, %v16991_v28 }
 0x18f   : > { %v1626_v12 = vsel %vm538_vm1, %v1598_v46, %v16436_v33  ;;  %v1128_v2 = vadd.f32 %v1100_v37, %v1062_v32  ;;  %v1129_v50 = vadd.f32 %v1101_v48, %v1063_v9  ;;  %v1542_v53 = vmul.f32 %v10949_v24, %v1509_v22  ;;  %v16992_v33 = vld [vmem:[#allocation69_spill] sm:$0xff] }
 0x190   : > { %v1510_v14 = vsel %vm420_vm0, %v16988_v43, %v1481_v34  ;;  %v1627_v5 = vsel %vm538_vm1, %v16989_v44, %v1598_v46  ;;  %v1659_v43 = vmul.f32 %v10333_v35, %v1626_v12  ;;  %v1746_v7 = vadd.f32 %v1718_v55, %v16992_v33 }
 0x191   : > { %v1541_v18 = vmul.f32 %v10949_v24, %v1510_v14  ;;  %v1658_v34 = vmul.f32 %v10333_v35, %v1627_v5  ;;  %v1163_v46 = vadd.f32 %v10957_v17, %v1128_v2  ;;  %v1164_v37 = vadd.f32 %v10957_v17, %v1129_v50 }
 0x192   : > { %v1570_v32 = vadd.f32 %v1542_v53, %v1425_v49  ;;  %v10962_v9 = vmul.f32 %v10337_v11, %v1510_v14  ;;  %v10965_v44 = vmul.f32 %v10337_v11, %v1509_v22  ;;  %v1811_v35 = vadd.f32 %v10645_v38, %v1745_v58  ;;  %v16995_v58 = vld [vmem:[#allocation61_spill] sm:$0xff] }
 0x193   : > { %v1569_v48 = vadd.f32 %v1541_v18, %v1424_v54  ;;  %v1812_v28 = vadd.f32 %v10651_v21, %v1746_v7  ;;  %v8485_v33 = vld [vmem:[#allocation2 + $0x244] ss:$12 sps:$4 sm:$0xff]   ;;  %v1191_v19 = vmax.f32 %v1163_v46, 0.0  ;;  %v1192_v55 = vmax.f32 %v1164_v37, 0.0  ;;  %v8488_v54 = vld [vmem:[#allocation2 + $0x240] ss:$12 sps:$4 sm:$0xff]  }
 0x194   : > { %v10971_v50 = vadd.f32 %v1659_v43, %v1570_v32  ;;  %v10974_v53 = vmul.f32 %v10345_v60, %v1627_v5  ;;  %v10977_v11 = vmul.f32 %v10345_v60, %v1626_v12  ;;  %v1877_v38 = vadd.f32 %v10658_v56, %v1811_v35  ;;  %7210 = vmatprep.mubr.bf16.mxu1 %v8485_v33  ;;  %v10986_v43 = vld [vmem:[%s9188_s30 + $0x300] sm:$0xff]  ;;  %v10989_v46 = vld [vmem:[%s9188_s30 + $0x588] sm:$0xff] }
 0x195   : > { %v10969_v2 = vadd.f32 %v1658_v34, %v1569_v48  ;;  %v1878_v21 = vadd.f32 %v16995_v58, %v1812_v28  ;;  %v1219_v7 = vmin.f32 %v1191_v19, 6.0  ;;  %v1220_v49 = vmin.f32 %v1192_v55, 6.0  ;;  %16996 = vst [vmem:[#allocation69_spill] sm:$0xff] %v10986_v43  ;;  %7211 = vmatmul.mubr.bf16.gmra.mxu1 %v8488_v54  ;;  %v10996_v19 = vld [vmem:[%s9188_s30 + $0x5a0] sm:$0xff] }
 0x196   : > { %16994 = vst [vmem:[#allocation67_spill] sm:$0xff] %v10971_v50  ;;  %v1912_v18 = vmul.f32 %v10360_v23, %v16987_v29  ;;  %v1913_v34 = vmul.f32 %v10360_v23, %v10908_v62  ;;  %v1978_v60 = vmul.f32 %v10367_v15, %v1510_v14  ;;  %v1979_v56 = vmul.f32 %v10367_v15, %v1509_v22  ;;  %v16997_v23 = vld [vmem:[#allocation29_spill] sm:$0xff] }
 0x197   : > { %16993 = vst [vmem:[#allocation79_spill] sm:$0xff] %v10969_v2  ;;  %v2044_v37 = vmul.f32 %v10377_v25, %v1627_v5  ;;  %v2045_v48 = vmul.f32 %v10377_v25, %v1626_v12  ;;  %v8044_v32 = vpack.c.bf16 %v1219_v7, %v1219_v7  ;;  %v8045_v35 = vpack.c.bf16 %v1220_v49, %v1220_v49  ;;  %v11004_v12 = vld [vmem:[#allocation6 + $0xc] ss:$0 sm:$0xff] }
 0x198   : > { %v1940_v28 = vadd.f32 %v1912_v18, %v1877_v38  ;;  %v1941_v33 = vadd.f32 %v1913_v34, %v1878_v21  ;;  %v3326_v55 = vmul.f32 %v10813_v10, %v16997_v23  ;;  %v16441_v58 = vrot.slane %v10986_v43, 1 }
 0x199   : > { %v3383_v54 = vrot.slane %v10989_v46, 1  ;;  %v16442_v14 = vrot.slane %v10986_v43, 2  ;;  %1359 = vst [vmem:[#allocation2 + $0x60] sm:$0xf] %v8044_v32  ;;  %1360 = vst [vmem:[#allocation2 + $0x6c] sm:$0xf] %v8045_v35  ;;  %v3619_v5 = vmul.f32 %v11004_v12, %v16945_v59  ;;  %v3620_v49 = vmul.f32 %v11004_v12, %v10671_v52 }
 0x19a   : > { %v2006_v15 = vadd.f32 %v1978_v60, %v1940_v28  ;;  %v2007_v22 = vadd.f32 %v1979_v56, %v1941_v33  ;;  %v3500_v25 = vrot.slane %v10989_v46, 2  ;;  %v16998_v38 = vrot.slane %v16997_v23, 1  ;;  %v17001_v52 = vld [vmem:[#allocation42_spill] sm:$0xff] }
 0x19b   : > { %v3411_v7 = vsel %vm420_vm0, %v3383_v54, %v16441_v58  ;;  %v16443_v18 = vrot.slane %v10996_v19, 1  ;;  %v17000_v32 = vrot.slane %v16997_v23, 2  ;;  %v3647_v33 = vadd.f32 %v3619_v5, %v17001_v52 }
 0x19c   : > { %v3384_v21 = vsel %vm420_vm0, %v16998_v38, %v3383_v54  ;;  %v2072_v34 = vadd.f32 %v2044_v37, %v2006_v15  ;;  %v2073_v60 = vadd.f32 %v2045_v48, %v2007_v22  ;;  %v11021_v59 = vmul.f32 %v10819_v1, %v3411_v7  ;;  %v17002_v38 = vld [vmem:[#allocation43_spill] sm:$0xff] }
 0x19d   : > { %v3443_v56 = vmul.f32 %v10819_v1, %v3384_v21  ;;  %v3501_v35 = vsel %vm538_vm1, %v17000_v32, %v3500_v25  ;;  %v3528_v28 = vsel %vm538_vm1, %v3500_v25, %v16442_v14  ;;  %v3648_v37 = vadd.f32 %v3620_v49, %v17002_v38 }
 0x19e   : > { %16999 = vst [vmem:[#allocation61_spill] sm:$0xff] %v11021_v59  ;;  %v2107_v48 = vadd.f32 %v10399_v4, %v2072_v34  ;;  %v2108_v15 = vadd.f32 %v10399_v4, %v2073_v60  ;;  %v3560_v7 = vmul.f32 %v10831_v27, %v3501_v35  ;;  %v11037_v58 = vmul.f32 %v10831_v27, %v3528_v28  ;;  %v17014_v59 = vld [vmem:[#allocation58_spill] sm:$0xff] }
 0x19f   : > { %v3471_v22 = vadd.f32 %v3443_v56, %v3326_v55  ;;  %v3656_v32 = vsel %vm420_vm0, %v3383_v54, %v16443_v18  ;;  %v11044_v14 = vmul.f32 %v10859_v42, %v3384_v21  ;;  %v3713_v5 = vadd.f32 %v10716_v61, %v3647_v33 }
 0x1a0   : > { %17003 = vst [vmem:[#allocation29_spill] sm:$0xff] %v11037_v58  ;;  %v2135_v49 = vmax.f32 %v2107_v48, 0.0  ;;  %v2136_v34 = vmax.f32 %v2108_v15, 0.0  ;;  %v11050_v55 = vmul.f32 %v10859_v42, %v3656_v32  ;;  %v3714_v60 = vadd.f32 %v10721_v20, %v3648_v37  ;;  %v11070_v15 = vld [vmem:[%s9188_s30 + $0x308] sm:$0xff] }
 0x1a1   : > { %v11047_v4 = vadd.f32 %v3560_v7, %v3471_v22  ;;  %v16447_v56 = vrot.slane %v10996_v19, 2  ;;  %v11055_v54 = vmul.f32 %v10883_v41, %v3501_v35  ;;  %v3779_v28 = vadd.f32 %v10728_v57, %v3713_v5  ;;  %17005 = vst [vmem:[#allocation43_spill] sm:$0xff] %v11070_v15  ;;  %v11073_v22 = vld [vmem:[%s9188_s30 + $0x590] sm:$0xff] }
 0x1a2   : > { %v2163_v52 = vmin.f32 %v2135_v49, 6.0  ;;  %v2164_v61 = vmin.f32 %v2136_v34, 6.0  ;;  %v3814_v33 = vmul.f32 %v10893_v39, %v16997_v23  ;;  %v3815_v38 = vmul.f32 %v10893_v39, %v10989_v46 }
 0x1a3   : > { %17004 = vst [vmem:[#allocation42_spill] sm:$0xff] %v11047_v4  ;;  %v3722_v20 = vsel %vm538_vm1, %v3500_v25, %v16447_v56  ;;  %v3780_v37 = vadd.f32 %v10731_v31, %v3714_v60  ;;  %v3880_v48 = vmul.f32 %v10901_v16, %v3384_v21  ;;  %v3881_v57 = vmul.f32 %v10901_v16, %v3656_v32  ;;  %v11083_v21 = vld [vmem:[%s9188_s30 + $0x5a8] sm:$0xff]  ;;  %v11128_v4 = vld [vmem:[#allocation6 + $0x11] ss:$0 sm:$0xff] }
 0x1a4   : > { %v8072_v7 = vpack.c.bf16 %v2163_v52, %v2163_v52  ;;  %v8073_v5 = vpack.c.bf16 %v2164_v61, %v2164_v61  ;;  %v11076_v49 = vmul.f32 %v10883_v41, %v3722_v20  ;;  %v3842_v34 = vadd.f32 %v3814_v33, %v3779_v28  ;;  %v8510_v32 = vld [vmem:[#allocation9 + $0x80] sm:$0xff]  }
 0x1a5   : > { %v3843_v18 = vadd.f32 %v3815_v38, %v3780_v37  ;;  %v3946_v43 = vmul.f32 %v10913_v63, %v3501_v35  ;;  %v3947_v25 = vmul.f32 %v10913_v63, %v3722_v20  ;;  %v4270_v31 = vmul.f32 %v10919_v47, %v10744_v8  ;;  %8255 = vmatprep.subr.bf16.mxu1 %v8510_v32 }
 0x1a6   : > { %2303 = vst [vmem:[#allocation2 + $0x64] sm:$0xf] %v8072_v7  ;;  %2304 = vst [vmem:[#allocation2 + $0x70] sm:$0xf] %v8073_v5  ;;  %v3908_v60 = vadd.f32 %v3880_v48, %v3842_v34  ;;  %v16446_v52 = vrot.slane %v11070_v15, 1  ;;  %v4327_v61 = vrot.slane %v11073_v22, 1  ;;  %v4563_v38 = vmul.f32 %v10619_v51, %v10443_v45  ;;  %8256 = vmatpush3.bf16.msra.mxu1 %v8510_v32 }
 0x1a7   : > { %v16450_v28 = vrot.slane %v11070_v15, 2  ;;  %v3909_v33 = vadd.f32 %v3881_v57, %v3843_v18  ;;  %v4444_v35 = vrot.slane %v11073_v22, 2  ;;  %v4564_v20 = vmul.f32 %v10619_v51, %v10741_v26  ;;  %v17009_v32 = vld [vmem:[#allocation75_spill] sm:$0xff] }
 0x1a8   : > { %v3974_v37 = vadd.f32 %v3946_v43, %v3908_v60  ;;  %v17006_v7 = vrot.slane %v10744_v8, 1  ;;  %v4355_v18 = vsel %vm420_vm0, %v4327_v61, %v16446_v52  ;;  %v17008_v43 = vrot.slane %v10744_v8, 2  ;;  %v11115_v52 = vld [vmem:[#allocation6 + $0x6] ss:$0 sm:$0xff] }
 0x1a9   : > { %v3975_v5 = vadd.f32 %v3947_v25, %v3909_v33  ;;  %v11104_v26 = vmul.f32 %v10949_v24, %v4355_v18  ;;  %v4591_v33 = vadd.f32 %v4563_v38, %v17009_v32  ;;  %v17012_v15 = vrot.slane %v11083_v21, 1 }
 0x1aa   : > { %v4328_v48 = vsel %vm420_vm0, %v17006_v7, %v4327_v61  ;;  %v4445_v34 = vsel %vm538_vm1, %v17008_v43, %v4444_v35  ;;  %v4009_v60 = vadd.f32 %v10957_v17, %v3974_v37  ;;  %v4472_v7 = vsel %vm538_vm1, %v4444_v35, %v16450_v28  ;;  %v17011_v43 = vld [vmem:[#allocation76_spill] sm:$0xff] }
 0x1ab   : > { %v4387_v45 = vmul.f32 %v10949_v24, %v4328_v48  ;;  %17007 = vst [vmem:[#allocation80_spill] sm:$0xff] %v11104_v26  ;;  %v4504_v25 = vmul.f32 %v11115_v52, %v4445_v34  ;;  %v4010_v18 = vadd.f32 %v10957_v17, %v3975_v5  ;;  %v11121_v57 = vmul.f32 %v11115_v52, %v4472_v7 }
 0x1ac   : > { %v4592_v26 = vadd.f32 %v4564_v20, %v17011_v43  ;;  %v4037_v37 = vmax.f32 %v4009_v60, 0.0  ;;  %v4600_v28 = vsel %vm420_vm0, %v4327_v61, %v17012_v15  ;;  %v11131_v58 = vmul.f32 %v11128_v4, %v4328_v48  ;;  %v11141_v15 = vld [vmem:[#allocation6 + $0x12] ss:$0 sm:$0xff] }
 0x1ad   : > { %v4415_v56 = vadd.f32 %v4387_v45, %v4270_v31  ;;  %17010 = vst [vmem:[#allocation75_spill] sm:$0xff] %v11121_v57  ;;  %v4657_v38 = vadd.f32 %v10786_v3, %v4591_v33  ;;  %v8490_v5 = vld [vmem:[#allocation2 + $0x64] ss:$12 sps:$4 sm:$0xff]   ;;  %v4038_v31 = vmax.f32 %v4010_v18, 0.0  ;;  %v11137_v7 = vmul.f32 %v11128_v4, %v4600_v28  ;;  %v8494_v3 = vld [vmem:[#allocation2 + $0x60] ss:$12 sps:$4 sm:$0xff]  }
 0x1ae   : > { %v4658_v20 = vadd.f32 %v10789_v13, %v4592_v26  ;;  %v4065_v60 = vmin.f32 %v4037_v37, 6.0  ;;  %v16451_v32 = vrot.slane %v11083_v21, 2  ;;  %v11144_v61 = vmul.f32 %v11141_v15, %v4445_v34  ;;  %7050 = vmatprep.mubr.bf16.mxu0 %v8490_v5  ;;  %v11158_v37 = vld [vmem:[#allocation6 + $0x1d] ss:$0 sm:$0xff]  ;;  %v8620_v57 = vld [vmem:[%s9188_s30 + $0xf0] sm:$0xff] }
 0x1af   : > { %v11134_v45 = vadd.f32 %v4504_v25, %v4415_v56  ;;  %v4723_v43 = vadd.f32 %v10798_v0, %v4657_v38  ;;  %v4066_v33 = vmin.f32 %v4038_v31, 6.0  ;;  %v11148_v25 = vld [vmem:[#allocation6 + $0x1c] ss:$0 sm:$0xff]  ;;  %v4824_v38 = vmul.f32 %v11158_v37, %v4328_v48  ;;  %7051 = vmatmul.mubr.bf16.gmra.mxu0 %v8494_v3 }
 0x1b0   : > { %v4724_v56 = vadd.f32 %v10801_v40, %v4658_v20  ;;  %v4758_v13 = vmul.f32 %v11148_v25, %v10744_v8  ;;  %v4759_v26 = vmul.f32 %v11148_v25, %v11073_v22  ;;  %v8142_v18 = vpack.c.bf16 %v4065_v60, %v4065_v60 }
 0x1b1   : > { %17013 = vst [vmem:[#allocation76_spill] sm:$0xff] %v11134_v45  ;;  %v4666_v0 = vsel %vm538_vm1, %v4444_v35, %v16451_v32  ;;  %v4825_v40 = vmul.f32 %v11158_v37, %v4600_v28  ;;  %v8143_v5 = vpack.c.bf16 %v4066_v33, %v4066_v33  ;;  %v11165_v45 = vld [vmem:[#allocation6 + $0x1e] ss:$0 sm:$0xff]  ;;  %v344_v48 = vmul.f32 %v8620_v57, %v10813_v10  ;;  %v17019_v57 = vld [vmem:[#allocation57_spill] sm:$0xff] }
 0x1b2   : > { %v11163_v31 = vmul.f32 %v11141_v15, %v4666_v0  ;;  %v4786_v20 = vadd.f32 %v4758_v13, %v4723_v43  ;;  %v4787_v60 = vadd.f32 %v4759_v26, %v4724_v56  ;;  %4205 = vst [vmem:[#allocation2 + $0x258] sm:$0xf] %v8142_v18  ;;  %v4890_v35 = vmul.f32 %v11165_v45, %v4445_v34  ;;  %v17015_v56 = vld [vmem:[#allocation56_spill] sm:$0xff]  ;;  %v17018_v18 = vld [vmem:[#allocation59_spill] sm:$0xff] }
 0x1b3   : > { %v4891_v32 = vmul.f32 %v11165_v45, %v4666_v0  ;;  %v345_v28 = vmul.f32 %v10813_v10, %v10521_v36  ;;  %4206 = vst [vmem:[#allocation2 + $0x264] sm:$0xf] %v8143_v5  ;;  %v464_v43 = vmul.f32 %v10819_v1, %v17014_v59  ;;  %v465_v13 = vmul.f32 %v10819_v1, %v17015_v56  ;;  %v11178_v26 = vld [vmem:[%s9188_s30 + $0x168] sm:$0xff]  ;;  %v11181_v34 = vld [vmem:[%s9188_s30 + $0x180] sm:$0xff] }
 0x1b4   : > { %v4852_v3 = vadd.f32 %v4824_v38, %v4786_v20  ;;  %v4853_v33 = vadd.f32 %v4825_v40, %v4787_v60  ;;  %17016 = vst [vmem:[#allocation58_spill] sm:$0xff] %v11178_v26  ;;  %17017 = vst [vmem:[#allocation56_spill] sm:$0xff] %v11181_v34  ;;  %v582_v0 = vmul.f32 %v10831_v27, %v17018_v18  ;;  %v17020_v38 = vld [vmem:[#allocation71_spill] sm:$0xff]  ;;  %v731_v56 = vrot.slane %v11178_v26, 1  ;;  %v11195_v10 = vld [vmem:[#allocation8 + $0x1] ss:$0 sm:$0xff] }
 0x1b5   : > { %v583_v50 = vmul.f32 %v10831_v27, %v17019_v57  ;;  %v672_v36 = vmul.f32 %v11004_v12, %v10524_v30  ;;  %v673_v40 = vmul.f32 %v11004_v12, %v17020_v38  ;;  %v492_v20 = vadd.f32 %v464_v43, %v344_v48 }
 0x1b6   : > { %v4918_v59 = vadd.f32 %v4890_v35, %v4852_v3  ;;  %v4919_v5 = vadd.f32 %v4891_v32, %v4853_v33  ;;  %v493_v60 = vadd.f32 %v465_v13, %v345_v28  ;;  %v16459_v2 = vrot.slane %v11181_v34, 1  ;;  %v17022_v35 = vld [vmem:[#allocation72_spill] sm:$0xff] }
 0x1b7   : > { %v848_v1 = vrot.slane %v11178_v26, 2  ;;  %v16458_v18 = vrot.slane %v11181_v34, 2  ;;  %v610_v27 = vadd.f32 %v582_v0, %v492_v20  ;;  %v17023_v48 = vrot.slane %v17022_v35, 1 }
 0x1b8   : > { %v4953_v57 = vadd.f32 %v11195_v10, %v4918_v59  ;;  %v4954_v30 = vadd.f32 %v11195_v10, %v4919_v5  ;;  %v611_v38 = vadd.f32 %v583_v50, %v493_v60  ;;  %v11203_v32 = vsel %vm420_vm0, %v731_v56, %v16459_v2  ;;  %v11250_v2 = vld [vmem:[%s9188_s30 + $0x170] sm:$0xff] }
 0x1b9   : > { %17021 = vst [vmem:[#allocation59_spill] sm:$0xff] %v11203_v32  ;;  %v11209_v28 = vsel %vm420_vm0, %v17023_v48, %v731_v56  ;;  %v11215_v3 = vsel %vm538_vm1, %v848_v1, %v16458_v18  ;;  %v17026_v50 = vrot.slane %v17022_v35, 2  ;;  %v700_v0 = vadd.f32 %v672_v36, %v610_v27  ;;  %v17032_v27 = vld [vmem:[#allocation55_spill] sm:$0xff] }
 0x1ba   : > { %17024 = vst [vmem:[#allocation57_spill] sm:$0xff] %v11209_v28  ;;  %17025 = vst [vmem:[#allocation81_spill] sm:$0xff] %v11215_v3  ;;  %v4981_v43 = vmax.f32 %v4953_v57, 0.0  ;;  %v4982_v13 = vmax.f32 %v4954_v30, 0.0  ;;  %v701_v59 = vadd.f32 %v673_v40, %v611_v38  ;;  %v11225_v5 = vmul.f32 %v10859_v42, %v11209_v28  ;;  %v17033_v38 = vld [vmem:[#allocation73_spill] sm:$0xff] }
 0x1bb   : > { %v11221_v33 = vsel %vm538_vm1, %v17026_v50, %v848_v1  ;;  %v11229_v20 = vmul.f32 %v10859_v42, %v11203_v32  ;;  %v11237_v1 = vmul.f32 %v10883_v41, %v11215_v3  ;;  %v817_v36 = vadd.f32 %v17032_v27, %v700_v0  ;;  %v17035_v27 = vld [vmem:[#allocation63_spill] sm:$0xff] }
 0x1bc   : > { %17027 = vst [vmem:[#allocation82_spill] sm:$0xff] %v11221_v33  ;;  %17028 = vst [vmem:[#allocation83_spill] sm:$0xff] %v11225_v5  ;;  %v11233_v60 = vmul.f32 %v10883_v41, %v11221_v33  ;;  %v5009_v56 = vmin.f32 %v4981_v43, 6.0  ;;  %v5010_v57 = vmin.f32 %v4982_v13, 6.0  ;;  %v818_v40 = vadd.f32 %v17033_v38, %v701_v59  ;;  %v11253_v43 = vld [vmem:[%s9188_s30 + $0x188] sm:$0xff] }
 0x1bd   : > { %17029 = vst [vmem:[#allocation84_spill] sm:$0xff] %v11229_v20  ;;  %17031 = vst [vmem:[#allocation86_spill] sm:$0xff] %v11237_v1  ;;  %v970_v30 = vmul.f32 %v10893_v39, %v17022_v35  ;;  %v971_v48 = vmul.f32 %v10893_v39, %v11178_v26  ;;  %v1036_v50 = vmul.f32 %v10901_v16, %v11209_v28  ;;  %v17036_v38 = vld [vmem:[#allocation64_spill] sm:$0xff]  ;;  %v17037_v28 = vld [vmem:[#allocation22_spill] sm:$0xff] }
 0x1be   : > { %17030 = vst [vmem:[#allocation85_spill] sm:$0xff] %v11233_v60  ;;  %v1037_v18 = vmul.f32 %v10901_v16, %v11203_v32  ;;  %17034 = vst [vmem:[#allocation55_spill] sm:$0xff] %v11253_v43  ;;  %v8170_v13 = vpack.c.bf16 %v5009_v56, %v5009_v56  ;;  %v8171_v0 = vpack.c.bf16 %v5010_v57, %v5010_v57 }
 0x1bf   : > { %v934_v59 = vadd.f32 %v17035_v27, %v817_v36  ;;  %v935_v1 = vadd.f32 %v17036_v38, %v818_v40  ;;  %v1102_v60 = vmul.f32 %v10913_v63, %v11221_v33  ;;  %v1103_v20 = vmul.f32 %v10913_v63, %v11215_v3 }
 0x1c0   : > { %v1426_v5 = vmul.f32 %v10919_v47, %v17037_v28  ;;  %v1427_v32 = vmul.f32 %v10919_v47, %v11250_v2  ;;  %5149 = vst [vmem:[#allocation2 + $0x25c] sm:$0xf] %v8170_v13  ;;  %5150 = vst [vmem:[#allocation2 + $0x268] sm:$0xf] %v8171_v0  ;;  %v1483_v36 = vrot.slane %v11250_v2, 1  ;;  %v16468_v40 = vrot.slane %v11253_v43, 1 }
 0x1c1   : > { %v998_v56 = vadd.f32 %v970_v30, %v934_v59  ;;  %v999_v57 = vadd.f32 %v971_v48, %v935_v1  ;;  %v1600_v27 = vrot.slane %v11250_v2, 2  ;;  %v16475_v38 = vrot.slane %v11253_v43, 2 }
 0x1c2   : > { %v1719_v3 = vmul.f32 %v10619_v51, %v16987_v29  ;;  %v1720_v33 = vmul.f32 %v10619_v51, %v10908_v62  ;;  %v1507_v1 = vsel %vm420_vm0, %v1483_v36, %v16468_v40  ;;  %v17038_v30 = vrot.slane %v17037_v28, 1 }
 0x1c3   : > { %v1064_v34 = vadd.f32 %v1036_v50, %v998_v56  ;;  %v1065_v47 = vadd.f32 %v1037_v18, %v999_v57  ;;  %v1544_v0 = vmul.f32 %v10949_v24, %v1507_v1  ;;  %v1624_v51 = vsel %vm538_vm1, %v1600_v27, %v16475_v38 }
 0x1c4   : > { %v1508_v48 = vsel %vm420_vm0, %v17038_v30, %v1483_v36  ;;  %v17039_v29 = vrot.slane %v17037_v28, 2  ;;  %v1661_v56 = vmul.f32 %v11115_v52, %v1624_v51  ;;  %v17040_v30 = vld [vmem:[#allocation65_spill] sm:$0xff] }
 0x1c5   : > { %v1543_v13 = vmul.f32 %v10949_v24, %v1508_v48  ;;  %v1130_v18 = vadd.f32 %v1102_v60, %v1064_v34  ;;  %v1131_v50 = vadd.f32 %v1103_v20, %v1065_v47  ;;  %v1572_v36 = vadd.f32 %v1544_v0, %v1427_v32  ;;  %v17041_v24 = vld [vmem:[#allocation60_spill] sm:$0xff] }
 0x1c6   : > { %v1625_v62 = vsel %vm538_vm1, %v17039_v29, %v1600_v27  ;;  %v1747_v40 = vadd.f32 %v1719_v3, %v17040_v30  ;;  %v1748_v43 = vadd.f32 %v1720_v33, %v17041_v24  ;;  %v11298_v35 = vmul.f32 %v11128_v4, %v1508_v48  ;;  %v8495_v24 = vld [vmem:[#allocation2 + $0x258] ss:$12 sps:$4 sm:$0xff]  }
 0x1c7   : > { %v1660_v59 = vmul.f32 %v11115_v52, %v1625_v62  ;;  %v1571_v57 = vadd.f32 %v1543_v13, %v1426_v5  ;;  %v1165_v26 = vadd.f32 %v10957_v17, %v1130_v18  ;;  %v1166_v38 = vadd.f32 %v10957_v17, %v1131_v50  ;;  %v8492_v47 = vld [vmem:[#allocation2 + $0x25c] ss:$12 sps:$4 sm:$0xff]  }
 0x1c8   : > { %v11301_v34 = vmul.f32 %v11128_v4, %v1507_v1  ;;  %v11305_v60 = vadd.f32 %v1661_v56, %v1572_v36  ;;  %v1813_v32 = vadd.f32 %v10962_v9, %v1747_v40  ;;  %v1814_v3 = vadd.f32 %v10965_v44, %v1748_v43  ;;  %7218 = vmatprep.mubr.bf16.mxu1 %v8492_v47  ;;  %v11324_v18 = vld [vmem:[%s9188_s30 + $0x5b8] sm:$0xff] }
 0x1c9   : > { %v11303_v20 = vadd.f32 %v1660_v59, %v1571_v57  ;;  %v1193_v33 = vmax.f32 %v1165_v26, 0.0  ;;  %v1194_v5 = vmax.f32 %v1166_v38, 0.0  ;;  %v11310_v27 = vmul.f32 %v11141_v15, %v1625_v62  ;;  %7219 = vmatmul.mubr.bf16.gmra.mxu1 %v8495_v24 }
 0x1ca   : > { %17043 = vst [vmem:[#allocation63_spill] sm:$0xff] %v11305_v60  ;;  %v11313_v13 = vmul.f32 %v11141_v15, %v1624_v51  ;;  %v1879_v0 = vadd.f32 %v10974_v53, %v1813_v32  ;;  %v1880_v29 = vadd.f32 %v10977_v11, %v1814_v3  ;;  %v1914_v9 = vmul.f32 %v11148_v25, %v17037_v28  ;;  %v17045_v3 = vld [vmem:[#allocation66_spill] sm:$0xff] }
 0x1cb   : > { %17042 = vst [vmem:[#allocation73_spill] sm:$0xff] %v11303_v20  ;;  %v1915_v44 = vmul.f32 %v11148_v25, %v11250_v2  ;;  %v1221_v26 = vmin.f32 %v1193_v33, 6.0  ;;  %v1222_v43 = vmin.f32 %v1194_v5, 6.0  ;;  %v1980_v40 = vmul.f32 %v11158_v37, %v1508_v48  ;;  %v11341_v33 = vld [vmem:[%s9188_s30 + $0x5d0] sm:$0xff] }
 0x1cc   : > { %v1981_v38 = vmul.f32 %v11158_v37, %v1507_v1  ;;  %v1942_v50 = vadd.f32 %v1914_v9, %v1879_v0  ;;  %v2046_v11 = vmul.f32 %v11165_v45, %v1625_v62  ;;  %v2047_v59 = vmul.f32 %v11165_v45, %v1624_v51  ;;  %v17044_v62 = vld [vmem:[#allocation30_spill] sm:$0xff] }
 0x1cd   : > { %v1943_v53 = vadd.f32 %v1915_v44, %v1880_v29  ;;  %v8046_v56 = vpack.c.bf16 %v1221_v26, %v1221_v26  ;;  %v8047_v57 = vpack.c.bf16 %v1222_v43, %v1222_v43  ;;  %v3621_v36 = vmul.f32 %v11004_v12, %v16997_v23 }
 0x1ce   : > { %v3622_v30 = vmul.f32 %v11004_v12, %v10989_v46  ;;  %v2008_v48 = vadd.f32 %v1980_v40, %v1942_v50  ;;  %v11333_v1 = vrot.slane %v11324_v18, 1  ;;  %v11336_v32 = vrot.slane %v11324_v18, 2 }
 0x1cf   : > { %v2009_v47 = vadd.f32 %v1981_v38, %v1943_v53  ;;  %1361 = vst [vmem:[#allocation2 + $0x78] sm:$0xf] %v8046_v56  ;;  %1362 = vst [vmem:[#allocation2 + $0x84] sm:$0xf] %v8047_v57  ;;  %v3649_v51 = vadd.f32 %v3621_v36, %v17044_v62  ;;  %v3816_v23 = vmul.f32 %v10893_v39, %v10996_v19  ;;  %v17046_v9 = vrot.slane %v10996_v19, 1 }
 0x1d0   : > { %v3650_v24 = vadd.f32 %v3622_v30, %v17045_v3  ;;  %v3817_v5 = vmul.f32 %v10893_v39, %v11324_v18  ;;  %v2074_v0 = vadd.f32 %v2046_v11, %v2008_v48  ;;  %v17047_v26 = vrot.slane %v10996_v19, 2  ;;  %v11381_v3 = vld [vmem:[#allocation6 + $0x10] ss:$0 sm:$0xff] }
 0x1d1   : > { %v2075_v29 = vadd.f32 %v2047_v59, %v2009_v47  ;;  %v3655_v44 = vsel %vm420_vm0, %v17046_v9, %v11333_v1  ;;  %v3715_v38 = vadd.f32 %v11044_v14, %v3649_v51  ;;  %v16479_v56 = vrot.slane %v11341_v33, 1  ;;  %v11379_v51 = vld [vmem:[%s9188_s30 + $0x5c0] sm:$0xff] }
 0x1d2   : > { %v3721_v43 = vsel %vm538_vm1, %v17047_v26, %v11336_v32  ;;  %v11358_v40 = vmul.f32 %v10859_v42, %v3655_v44  ;;  %v3716_v50 = vadd.f32 %v11050_v55, %v3650_v24  ;;  %v2109_v11 = vadd.f32 %v11195_v10, %v2074_v0 }
 0x1d3   : > { %v11363_v53 = vmul.f32 %v10883_v41, %v3721_v43  ;;  %v2110_v59 = vadd.f32 %v11195_v10, %v2075_v29  ;;  %v3882_v57 = vmul.f32 %v10901_v16, %v3655_v44  ;;  %v3781_v36 = vadd.f32 %v11055_v54, %v3715_v38 }
 0x1d4   : > { %v3782_v30 = vadd.f32 %v11076_v49, %v3716_v50  ;;  %v16478_v48 = vrot.slane %v11341_v33, 2  ;;  %v3948_v14 = vmul.f32 %v10913_v63, %v3721_v43  ;;  %v2137_v55 = vmax.f32 %v2109_v11, 0.0 }
 0x1d5   : > { %v2138_v47 = vmax.f32 %v2110_v59, 0.0  ;;  %v3851_v62 = vsel %vm420_vm0, %v11333_v1, %v16479_v56  ;;  %v4565_v54 = vmul.f32 %v11381_v3, %v10744_v8  ;;  %v3844_v49 = vadd.f32 %v3816_v23, %v3781_v36  ;;  %v17048_v23 = vld [vmem:[#allocation68_spill] sm:$0xff]  ;;  %v17049_v36 = vld [vmem:[#allocation70_spill] sm:$0xff] }
 0x1d6   : > { %v3845_v24 = vadd.f32 %v3817_v5, %v3782_v30  ;;  %v3883_v0 = vmul.f32 %v10901_v16, %v3851_v62  ;;  %v3917_v29 = vsel %vm538_vm1, %v11336_v32, %v16478_v48  ;;  %v2165_v9 = vmin.f32 %v2137_v55, 6.0  ;;  %v8501_v60 = vld [vmem:[#allocation2 + $0x78] ss:$12 sps:$4 sm:$0xff]  }
 0x1d7   : > { %v2166_v44 = vmin.f32 %v2138_v47, 6.0  ;;  %v3949_v26 = vmul.f32 %v10913_v63, %v3917_v29  ;;  %v4566_v43 = vmul.f32 %v11381_v3, %v11073_v22  ;;  %v3910_v38 = vadd.f32 %v3882_v57, %v3844_v49  ;;  %v11409_v49 = vld [vmem:[%s9188_s30 + $0x5d8] sm:$0xff] }
 0x1d8   : > { %v3911_v8 = vadd.f32 %v3883_v0, %v3845_v24  ;;  %v4593_v5 = vadd.f32 %v4565_v54, %v17048_v23  ;;  %v11396_v50 = vrot.slane %v11379_v51, 1  ;;  %v8074_v11 = vpack.c.bf16 %v2165_v9, %v2165_v9  ;;  %17051 = vst [vmem:[#allocation64_spill] sm:$0xff] %v11409_v49 }
 0x1d9   : > { %v8075_v59 = vpack.c.bf16 %v2166_v44, %v2166_v44  ;;  %v4594_v30 = vadd.f32 %v4566_v43, %v17049_v36  ;;  %v11400_v55 = vrot.slane %v11379_v51, 2  ;;  %v3976_v47 = vadd.f32 %v3948_v14, %v3910_v38 }
 0x1da   : > { %v3977_v62 = vadd.f32 %v3949_v26, %v3911_v8  ;;  %v17050_v29 = vrot.slane %v11083_v21, 1  ;;  %v4659_v54 = vadd.f32 %v11131_v58, %v4593_v5  ;;  %2305 = vst [vmem:[#allocation2 + $0x7c] sm:$0xf] %v8074_v11  ;;  %v17053_v14 = vrot.slane %v11083_v21, 2 }
 0x1db   : > { %2306 = vst [vmem:[#allocation2 + $0x88] sm:$0xf] %v8075_v59  ;;  %v4660_v0 = vadd.f32 %v11137_v7, %v4594_v30  ;;  %v4760_v44 = vmul.f32 %v11148_v25, %v11083_v21  ;;  %v4011_v58 = vadd.f32 %v10957_v17, %v3976_v47  ;;  %v4761_v8 = vmul.f32 %v11148_v25, %v11379_v51 }
 0x1dc   : > { %v4599_v57 = vsel %vm420_vm0, %v17050_v29, %v11396_v50  ;;  %v4665_v9 = vsel %vm538_vm1, %v17053_v14, %v11400_v55  ;;  %v4012_v26 = vadd.f32 %v10957_v17, %v3977_v62  ;;  %v4725_v38 = vadd.f32 %v11144_v61, %v4659_v54  ;;  %v8623_v62 = vld [vmem:[%s9188_s30 + $0x120] sm:$0xff] }
 0x1dd   : > { %v11412_v24 = vmul.f32 %v11128_v4, %v4599_v57  ;;  %v11425_v43 = vmul.f32 %v11141_v15, %v4665_v9  ;;  %v4726_v7 = vadd.f32 %v11163_v31, %v4660_v0  ;;  %v16477_v23 = vrot.slane %v11409_v49, 1  ;;  %v17055_v29 = vld [vmem:[#allocation32_spill] sm:$0xff] }
 0x1de   : > { %v4826_v5 = vmul.f32 %v11158_v37, %v4599_v57  ;;  %v4039_v11 = vmax.f32 %v4011_v58, 0.0  ;;  %v4040_v59 = vmax.f32 %v4012_v26, 0.0  ;;  %v4788_v36 = vadd.f32 %v4760_v44, %v4725_v38  ;;  %v17056_v26 = vld [vmem:[#allocation71_spill] sm:$0xff] }
 0x1df   : > { %17052 = vst [vmem:[#allocation22_spill] sm:$0xff] %v11412_v24  ;;  %17054 = vst [vmem:[#allocation65_spill] sm:$0xff] %v11425_v43  ;;  %v16480_v30 = vrot.slane %v11409_v49, 2  ;;  %v4789_v47 = vadd.f32 %v4761_v8, %v4726_v7  ;;  %v4795_v61 = vsel %vm420_vm0, %v11396_v50, %v16477_v23  ;;  %v4892_v31 = vmul.f32 %v11165_v45, %v4665_v9  ;;  %v17057_v7 = vld [vmem:[#allocation31_spill] sm:$0xff]  ;;  %v17058_v8 = vld [vmem:[#allocation33_spill] sm:$0xff] }
 0x1e0   : > { %v346_v54 = vmul.f32 %v8623_v62, %v17055_v29  ;;  %v4067_v57 = vmin.f32 %v4039_v11, 6.0  ;;  %v4068_v0 = vmin.f32 %v4040_v59, 6.0  ;;  %v4827_v14 = vmul.f32 %v11158_v37, %v4795_v61  ;;  %v17059_v23 = vld [vmem:[#allocation45_spill] sm:$0xff]  ;;  %v11455_v11 = vld [vmem:[%s9188_s30 + $0x198] sm:$0xff]  ;;  %v17061_v43 = vld [vmem:[#allocation44_spill] sm:$0xff] }
 0x1e1   : > { %v4854_v44 = vadd.f32 %v4826_v5, %v4788_v36  ;;  %v4861_v58 = vsel %vm538_vm1, %v11400_v55, %v16480_v30  ;;  %v347_v38 = vmul.f32 %v17055_v29, %v17056_v26  ;;  %v466_v9 = vmul.f32 %v17058_v8, %v17057_v7  ;;  %v11458_v59 = vld [vmem:[%s9188_s30 + $0x1b0] sm:$0xff]  ;;  %v17063_v49 = vld [vmem:[#allocation72_spill] sm:$0xff] }
 0x1e2   : > { %v467_v62 = vmul.f32 %v17058_v8, %v17059_v23  ;;  %v8497_v5 = vld [vmem:[#allocation2 + $0x7c] ss:$12 sps:$4 sm:$0xff]   ;;  %v8144_v36 = vpack.c.bf16 %v4067_v57, %v4067_v57  ;;  %v8145_v61 = vpack.c.bf16 %v4068_v0, %v4068_v0  ;;  %v4855_v48 = vadd.f32 %v4827_v14, %v4789_v47  ;;  %v17060_v26 = vld [vmem:[#allocation62_spill] sm:$0xff] }
 0x1e3   : > { %v4893_v56 = vmul.f32 %v11165_v45, %v4861_v58  ;;  %v4920_v30 = vadd.f32 %v4892_v31, %v4854_v44  ;;  %v494_v20 = vadd.f32 %v466_v9, %v346_v54  ;;  %v584_v7 = vmul.f32 %v17061_v43, %v17060_v26  ;;  %7058 = vmatprep.mubr.bf16.mxu0 %v8497_v5  ;;  %v17062_v8 = vld [vmem:[#allocation74_spill] sm:$0xff] }
 0x1e4   : > { %v495_v29 = vadd.f32 %v467_v62, %v347_v38  ;;  %4207 = vst [vmem:[#allocation2 + $0x270] sm:$0xf] %v8144_v36  ;;  %4208 = vst [vmem:[#allocation2 + $0x27c] sm:$0xf] %v8145_v61  ;;  %v585_v24 = vmul.f32 %v17061_v43, %v17062_v8  ;;  %v674_v57 = vmul.f32 %v11004_v12, %v17063_v49  ;;  %v17064_v47 = vld [vmem:[#allocation58_spill] sm:$0xff]  ;;  %7059 = vmatmul.mubr.bf16.gmra.mxu0 %v8501_v60 }
 0x1e5   : > { %v4921_v23 = vadd.f32 %v4893_v56, %v4855_v48  ;;  %v675_v0 = vmul.f32 %v11004_v12, %v17064_v47  ;;  %v4955_v31 = vadd.f32 %v11195_v10, %v4920_v30  ;;  %v612_v54 = vadd.f32 %v584_v7, %v494_v20  ;;  %v17068_v20 = vld [vmem:[#allocation56_spill] sm:$0xff] }
 0x1e6   : > { %v733_v14 = vrot.slane %v11455_v11, 1  ;;  %v11472_v44 = vrot.slane %v11458_v59, 1  ;;  %v613_v48 = vadd.f32 %v585_v24, %v495_v29  ;;  %v850_v43 = vrot.slane %v11455_v11, 2  ;;  %v17071_v29 = vld [vmem:[#allocation83_spill] sm:$0xff] }
 0x1e7   : > { %v4956_v56 = vadd.f32 %v11195_v10, %v4921_v23  ;;  %v11477_v58 = vrot.slane %v11458_v59, 2  ;;  %v4983_v49 = vmax.f32 %v4955_v31, 0.0  ;;  %v702_v38 = vadd.f32 %v674_v57, %v612_v54 }
 0x1e8   : > { %17065 = vst [vmem:[#allocation60_spill] sm:$0xff] %v11472_v44  ;;  %v11482_v60 = vsel %vm420_vm0, %v733_v14, %v11472_v44  ;;  %v17069_v30 = vrot.slane %v17068_v20, 1  ;;  %v703_v24 = vadd.f32 %v675_v0, %v613_v48  ;;  %v17073_v23 = vrot.slane %v17068_v20, 2  ;;  %v17075_v0 = vld [vmem:[#allocation84_spill] sm:$0xff] }
 0x1e9   : > { %17066 = vst [vmem:[#allocation30_spill] sm:$0xff] %v11477_v58  ;;  %17067 = vst [vmem:[#allocation66_spill] sm:$0xff] %v11482_v60  ;;  %v4984_v62 = vmax.f32 %v4956_v56, 0.0  ;;  %v11496_v36 = vmul.f32 %v10859_v42, %v11482_v60  ;;  %v5011_v61 = vmin.f32 %v4983_v49, 6.0  ;;  %v819_v26 = vadd.f32 %v17071_v29, %v702_v38  ;;  %v17078_v56 = vld [vmem:[#allocation85_spill] sm:$0xff]  ;;  %v11525_v38 = vld [vmem:[%s9188_s30 + $0x1a0] sm:$0xff] }
 0x1ea   : > { %v11488_v9 = vsel %vm420_vm0, %v17069_v30, %v733_v14  ;;  %v11502_v7 = vsel %vm538_vm1, %v850_v43, %v11477_v58  ;;  %v11508_v8 = vsel %vm538_vm1, %v17073_v23, %v850_v43  ;;  %v820_v31 = vadd.f32 %v17075_v0, %v703_v24  ;;  %v11528_v30 = vld [vmem:[%s9188_s30 + $0x1b8] sm:$0xff] }
 0x1eb   : > { %17070 = vst [vmem:[#allocation68_spill] sm:$0xff] %v11488_v9  ;;  %v11492_v5 = vmul.f32 %v10859_v42, %v11488_v9  ;;  %17072 = vst [vmem:[#allocation70_spill] sm:$0xff] %v11502_v7  ;;  %v5012_v57 = vmin.f32 %v4984_v62, 6.0  ;;  %v11513_v42 = vmul.f32 %v10883_v41, %v11508_v8  ;;  %v11517_v54 = vmul.f32 %v10883_v41, %v11502_v7  ;;  %v17080_v24 = vld [vmem:[#allocation86_spill] sm:$0xff]  ;;  %v17081_v0 = vld [vmem:[#allocation55_spill] sm:$0xff] }
 0x1ec   : > { %17074 = vst [vmem:[#allocation32_spill] sm:$0xff] %v11508_v8  ;;  %v8172_v14 = vpack.c.bf16 %v5011_v61, %v5011_v61  ;;  %v936_v48 = vadd.f32 %v17078_v56, %v819_v26  ;;  %v972_v49 = vmul.f32 %v10893_v39, %v17068_v20  ;;  %v973_v43 = vmul.f32 %v10893_v39, %v11455_v11  ;;  %v17082_v56 = vld [vmem:[#allocation77_spill] sm:$0xff] }
 0x1ed   : > { %17076 = vst [vmem:[#allocation71_spill] sm:$0xff] %v11513_v42  ;;  %17077 = vst [vmem:[#allocation31_spill] sm:$0xff] %v11517_v54  ;;  %v8173_v62 = vpack.c.bf16 %v5012_v57, %v5012_v57  ;;  %v937_v29 = vadd.f32 %v17080_v24, %v820_v31  ;;  %v1038_v41 = vmul.f32 %v10901_v16, %v11488_v9  ;;  %v1485_v24 = vrot.slane %v11525_v38, 1  ;;  %v17088_v42 = vld [vmem:[#allocation67_spill] sm:$0xff] }
 0x1ee   : > { %17079 = vst [vmem:[#allocation33_spill] sm:$0xff] %v11528_v30  ;;  %v1039_v61 = vmul.f32 %v10901_v16, %v11482_v60  ;;  %5151 = vst [vmem:[#allocation2 + $0x274] sm:$0xf] %v8172_v14  ;;  %v1000_v26 = vadd.f32 %v972_v49, %v936_v48  ;;  %v1104_v23 = vmul.f32 %v10913_v63, %v11508_v8  ;;  %v16485_v16 = vrot.slane %v11528_v30, 1 }
 0x1ef   : > { %v1105_v39 = vmul.f32 %v10913_v63, %v11502_v7  ;;  %v1428_v54 = vmul.f32 %v17082_v56, %v17081_v0  ;;  %5152 = vst [vmem:[#allocation2 + $0x280] sm:$0xf] %v8173_v62  ;;  %v1001_v57 = vadd.f32 %v973_v43, %v937_v29  ;;  %v1429_v31 = vmul.f32 %v17082_v56, %v11525_v38  ;;  %v17084_v56 = vld [vmem:[#allocation78_spill] sm:$0xff] }
 0x1f0   : > { %v1066_v14 = vadd.f32 %v1038_v41, %v1000_v26  ;;  %v1602_v48 = vrot.slane %v11525_v38, 2  ;;  %v1721_v63 = vmul.f32 %v11381_v3, %v17037_v28  ;;  %v1505_v43 = vsel %vm420_vm0, %v1485_v24, %v16485_v16 }
 0x1f1   : > { %v1067_v7 = vadd.f32 %v1039_v61, %v1001_v57  ;;  %v17083_v62 = vrot.slane %v17081_v0, 1  ;;  %v1722_v41 = vmul.f32 %v11381_v3, %v11250_v2  ;;  %v1546_v8 = vmul.f32 %v17084_v56, %v1505_v43 }
 0x1f2   : > { %v1132_v26 = vadd.f32 %v1104_v23, %v1066_v14  ;;  %v17085_v28 = vrot.slane %v11528_v30, 2  ;;  %v17086_v16 = vrot.slane %v17081_v0, 2 }
 0x1f3   : > { %v1506_v29 = vsel %vm420_vm0, %v17083_v62, %v1485_v24  ;;  %v1133_v57 = vadd.f32 %v1105_v39, %v1067_v7  ;;  %v17087_v62 = vld [vmem:[#allocation79_spill] sm:$0xff]  ;;  %v1574_v9 = vadd.f32 %v1546_v8, %v1429_v31  ;;  %v11579_v39 = vmul.f32 %v11128_v4, %v1505_v43 }
 0x1f4   : > { %v1545_v49 = vmul.f32 %v17084_v56, %v1506_v29  ;;  %v1622_v61 = vsel %vm538_vm1, %v1602_v48, %v17085_v28  ;;  %v1623_v60 = vsel %vm538_vm1, %v17086_v16, %v1602_v48  ;;  %v1749_v2 = vadd.f32 %v1721_v63, %v17087_v62  ;;  %v8502_v48 = vld [vmem:[#allocation2 + $0x270] ss:$12 sps:$4 sm:$0xff]  }
 0x1f5   : > { %v1663_v24 = vmul.f32 %v11115_v52, %v1622_v61  ;;  %v1167_v23 = vadd.f32 %v10957_v17, %v1132_v26  ;;  %v1662_v56 = vmul.f32 %v11115_v52, %v1623_v60  ;;  %v1168_v30 = vadd.f32 %v10957_v17, %v1133_v57  ;;  %v3269_v26 = vld [vmem:[%s9188_s30 + $0x330] sm:$0xff] }
 0x1f6   : > { %v1573_v14 = vadd.f32 %v1545_v49, %v1428_v54  ;;  %v1750_v28 = vadd.f32 %v1722_v41, %v17088_v42  ;;  %v11576_v7 = vmul.f32 %v11128_v4, %v1506_v29  ;;  %v8499_v16 = vld [vmem:[#allocation2 + $0x274] ss:$12 sps:$4 sm:$0xff]   ;;  %v1815_v52 = vadd.f32 %v11298_v35, %v1749_v2 }
 0x1f7   : > { %v1195_v63 = vmax.f32 %v1167_v23, 0.0  ;;  %v11583_v54 = vadd.f32 %v1663_v24, %v1574_v9  ;;  %v1196_v17 = vmax.f32 %v1168_v30, 0.0  ;;  %v11588_v42 = vmul.f32 %v11141_v15, %v1623_v60  ;;  %7226 = vmatprep.mubr.bf16.mxu1 %v8499_v16  ;;  %v3271_v2 = vld [vmem:[%s9188_s30 + $0x360] sm:$0xff] }
 0x1f8   : > { %v11581_v62 = vadd.f32 %v1662_v56, %v1573_v14  ;;  %v1816_v8 = vadd.f32 %v11301_v34, %v1750_v28  ;;  %v11591_v31 = vmul.f32 %v11141_v15, %v1622_v61  ;;  %v1881_v41 = vadd.f32 %v11310_v27, %v1815_v52  ;;  %7227 = vmatmul.mubr.bf16.gmra.mxu1 %v8502_v48 }
 0x1f9   : > { %17089 = vst [vmem:[#allocation45_spill] sm:$0xff] %v11583_v54  ;;  %v1223_v49 = vmin.f32 %v1195_v63, 6.0  ;;  %v1916_v9 = vmul.f32 %v11148_v25, %v17081_v0  ;;  %v1917_v35 = vmul.f32 %v11148_v25, %v11525_v38  ;;  %v1224_v30 = vmin.f32 %v1196_v17, 6.0  ;;  %v11605_v63 = vld [vmem:[#allocation6] ss:$0 sm:$0xff] }
 0x1fa   : > { %v1882_v34 = vadd.f32 %v11313_v13, %v1816_v8  ;;  %v1982_v57 = vmul.f32 %v11158_v37, %v1506_v29  ;;  %v1983_v24 = vmul.f32 %v11158_v37, %v1505_v43  ;;  %v2048_v27 = vmul.f32 %v11165_v45, %v1623_v60 }
 0x1fb   : > { %v8048_v23 = vpack.c.bf16 %v1223_v49, %v1223_v49  ;;  %v1944_v14 = vadd.f32 %v1916_v9, %v1881_v41  ;;  %v2049_v56 = vmul.f32 %v11165_v45, %v1622_v61  ;;  %v8049_v28 = vpack.c.bf16 %v1224_v30, %v1224_v30  ;;  %v17094_v61 = vld [vmem:[#allocation61_spill] sm:$0xff]  ;;  %v11631_v30 = vld [vmem:[#allocation6 + $0x18] ss:$0 sm:$0xff] }
 0x1fc   : > { %v1945_v16 = vadd.f32 %v1917_v35, %v1882_v34  ;;  %v3327_v48 = vmul.f32 %v11605_v63, %v10989_v46  ;;  %v11609_v13 = vrot.slane %v3269_v26, 1  ;;  %v11611_v43 = vrot.slane %v3271_v2, 1  ;;  %v3786_v41 = vld [vmem:[%s9188_s30 + $0x5e8] sm:$0xff] }
 0x1fd   : > { %1363 = vst [vmem:[#allocation2 + $0x90] sm:$0xf] %v8048_v23  ;;  %v2010_v29 = vadd.f32 %v1982_v57, %v1944_v14  ;;  %v11613_v52 = vrot.slane %v3269_v26, 2  ;;  %v11615_v17 = vrot.slane %v3271_v2, 2  ;;  %1364 = vst [vmem:[#allocation2 + $0x9c] sm:$0xf] %v8049_v28  ;;  %v3623_v49 = vmul.f32 %v11004_v12, %v10996_v19 }
 0x1fe   : > { %17090 = vst [vmem:[#allocation62_spill] sm:$0xff] %v11609_v13  ;;  %17091 = vst [vmem:[#allocation44_spill] sm:$0xff] %v11611_v43  ;;  %v2011_v60 = vadd.f32 %v1983_v24, %v1945_v16  ;;  %v3472_v8 = vadd.f32 %v17094_v61, %v3327_v48  ;;  %v3624_v46 = vmul.f32 %v11004_v12, %v11324_v18  ;;  %v17095_v57 = vld [vmem:[#allocation29_spill] sm:$0xff]  ;;  %v17096_v18 = vld [vmem:[#allocation42_spill] sm:$0xff]  ;;  %v3849_v28 = vrot.slane %v3786_v41, 1 }
 0x1ff   : > { %17092 = vst [vmem:[#allocation74_spill] sm:$0xff] %v11613_v52  ;;  %17093 = vst [vmem:[#allocation72_spill] sm:$0xff] %v11615_v17  ;;  %v2076_v9 = vadd.f32 %v2048_v27, %v2010_v29  ;;  %v3657_v35 = vsel %vm420_vm0, %v11333_v1, %v11609_v13  ;;  %v3723_v26 = vsel %vm538_vm1, %v11336_v32, %v11613_v52  ;;  %v11637_v2 = vld [vmem:[#allocation6 + $0xd] ss:$0 sm:$0xff]  ;;  %v11641_v14 = vld [vmem:[#allocation6 + $0xe] ss:$0 sm:$0xff] }
 0x200   : > { %v3818_v19 = vmul.f32 %v11631_v30, %v11341_v33  ;;  %v2077_v34 = vadd.f32 %v2049_v56, %v2011_v60  ;;  %v3589_v12 = vadd.f32 %v17095_v57, %v3472_v8  ;;  %v3651_v24 = vadd.f32 %v3623_v49, %v17096_v18  ;;  %v4213_v57 = vld [vmem:[%s9188_s30 + $0x338] sm:$0xff] }
 0x201   : > { %v3690_v23 = vmul.f32 %v11637_v2, %v3657_v35  ;;  %v2111_v1 = vadd.f32 %v11195_v10, %v2076_v9  ;;  %v3756_v32 = vmul.f32 %v11641_v14, %v3723_v26  ;;  %v3819_v27 = vmul.f32 %v11631_v30, %v3786_v41  ;;  %v11654_v9 = vld [vmem:[#allocation6 + $0x4] ss:$0 sm:$0xff] }
 0x202   : > { %v2112_v56 = vadd.f32 %v11195_v10, %v2077_v34  ;;  %v3652_v16 = vadd.f32 %v3624_v46, %v3589_v12  ;;  %v3717_v48 = vadd.f32 %v11358_v40, %v3651_v24  ;;  %v3915_v29 = vrot.slane %v3786_v41, 2  ;;  %v11659_v41 = vld [vmem:[#allocation6 + $0x19] ss:$0 sm:$0xff]  ;;  %v4215_v12 = vld [vmem:[%s9188_s30 + $0x368] sm:$0xff] }
 0x203   : > { %v2139_v60 = vmax.f32 %v2111_v1, 0.0  ;;  %v17097_v61 = vrot.slane %v11341_v33, 1  ;;  %v3852_v49 = vsel %vm420_vm0, %v3849_v28, %v11611_v43  ;;  %v4271_v35 = vmul.f32 %v11654_v9, %v11073_v22  ;;  %v17101_v43 = vld [vmem:[#allocation80_spill] sm:$0xff] }
 0x204   : > { %v2140_v26 = vmax.f32 %v2112_v56, 0.0  ;;  %v3718_v46 = vadd.f32 %v3690_v23, %v3652_v16  ;;  %v3783_v40 = vadd.f32 %v11363_v53, %v3717_v48  ;;  %v3885_v24 = vmul.f32 %v11659_v41, %v3852_v49  ;;  %v11672_v16 = vld [vmem:[#allocation6 + $0x1a] ss:$0 sm:$0xff] }
 0x205   : > { %v3850_v8 = vsel %vm420_vm0, %v17097_v61, %v3849_v28  ;;  %v2167_v18 = vmin.f32 %v2139_v60, 6.0  ;;  %v17098_v1 = vrot.slane %v11341_v33, 2  ;;  %v3918_v22 = vsel %vm538_vm1, %v3915_v29, %v11615_v17  ;;  %v11902_v17 = vld [vmem:[%s9188_s30 + $0x70] sm:$0xff] }
 0x206   : > { %v3884_v34 = vmul.f32 %v11659_v41, %v3850_v8  ;;  %v2168_v23 = vmin.f32 %v2140_v26, 6.0  ;;  %v3784_v53 = vadd.f32 %v3756_v32, %v3718_v46  ;;  %v3846_v56 = vadd.f32 %v3818_v19, %v3783_v40 }
 0x207   : > { %v3916_v28 = vsel %vm538_vm1, %v17098_v1, %v3915_v29  ;;  %v8076_v61 = vpack.c.bf16 %v2167_v18, %v2167_v18  ;;  %v3951_v60 = vmul.f32 %v11672_v16, %v3918_v22  ;;  %v11676_v8 = vrot.slane %v4213_v57, 1 }
 0x208   : > { %v3950_v48 = vmul.f32 %v11672_v16, %v3916_v28  ;;  %v11678_v33 = vrot.slane %v4215_v12, 1  ;;  %v8077_v49 = vpack.c.bf16 %v2168_v23, %v2168_v23  ;;  %v3847_v1 = vadd.f32 %v3819_v27, %v3784_v53  ;;  %v17104_v28 = vld [vmem:[#allocation75_spill] sm:$0xff]  ;;  %v4730_v27 = vld [vmem:[%s9188_s30 + $0x5f0] sm:$0xff] }
 0x209   : > { %17099 = vst [vmem:[#allocation58_spill] sm:$0xff] %v11676_v8  ;;  %v3912_v52 = vadd.f32 %v3884_v34, %v3846_v56  ;;  %v4416_v29 = vadd.f32 %v17101_v43, %v4271_v35  ;;  %2307 = vst [vmem:[#allocation2 + $0x94] sm:$0xf] %v8076_v61  ;;  %v11681_v32 = vrot.slane %v4213_v57, 2  ;;  %v11683_v19 = vrot.slane %v4215_v12, 2  ;;  %v17105_v35 = vld [vmem:[#allocation76_spill] sm:$0xff] }
 0x20a   : > { %17100 = vst [vmem:[#allocation56_spill] sm:$0xff] %v11678_v33  ;;  %v4567_v26 = vmul.f32 %v11381_v3, %v11083_v21  ;;  %v4568_v46 = vmul.f32 %v11381_v3, %v11379_v51  ;;  %2308 = vst [vmem:[#allocation2 + $0xa0] sm:$0xf] %v8077_v49  ;;  %v3913_v40 = vadd.f32 %v3885_v24, %v3847_v1  ;;  %v17106_v51 = vld [vmem:[#allocation64_spill] sm:$0xff]  ;;  %v17108_v56 = vld [vmem:[#allocation22_spill] sm:$0xff]  ;;  %v4793_v61 = vrot.slane %v4730_v27, 1 }
 0x20b   : > { %17102 = vst [vmem:[#allocation83_spill] sm:$0xff] %v11681_v32  ;;  %17103 = vst [vmem:[#allocation84_spill] sm:$0xff] %v11683_v19  ;;  %v3978_v18 = vadd.f32 %v3950_v48, %v3912_v52  ;;  %v4533_v22 = vadd.f32 %v17104_v28, %v4416_v29  ;;  %v4601_v43 = vsel %vm420_vm0, %v11396_v50, %v11676_v8  ;;  %v11703_v24 = vld [vmem:[#allocation8] ss:$0 sm:$0xff]  ;;  %v4859_v49 = vrot.slane %v4730_v27, 2 }
 0x20c   : > { %v4595_v34 = vadd.f32 %v4567_v26, %v17105_v35  ;;  %v4634_v57 = vmul.f32 %v11128_v4, %v4601_v43  ;;  %v4667_v21 = vsel %vm538_vm1, %v11400_v55, %v11681_v32  ;;  %v4762_v52 = vmul.f32 %v11148_v25, %v17106_v51  ;;  %17107 = vst [vmem:[#allocation85_spill] sm:$0xff] %v11703_v24  ;;  %v8632_v26 = vld [vmem:[%s9188_s30 + $0x150] sm:$0xff] }
 0x20d   : > { %v3979_v12 = vadd.f32 %v3951_v60, %v3913_v40  ;;  %v4013_v23 = vadd.f32 %v11703_v24, %v3978_v18  ;;  %v4596_v50 = vadd.f32 %v4568_v46, %v4533_v22  ;;  %v4700_v53 = vmul.f32 %v11141_v15, %v4667_v21  ;;  %v17109_v40 = vld [vmem:[#allocation65_spill] sm:$0xff] }
 0x20e   : > { %v4661_v48 = vadd.f32 %v17108_v56, %v4595_v34  ;;  %v4763_v4 = vmul.f32 %v11148_v25, %v4730_v27  ;;  %v348_v60 = vmul.f32 %v8632_v26, %v11605_v63  ;;  %v17110_v18 = vrot.slane %v17106_v51, 1  ;;  %v17113_v26 = vld [vmem:[#allocation59_spill] sm:$0xff] }
 0x20f   : > { %v4014_v1 = vadd.f32 %v11703_v24, %v3979_v12  ;;  %v4041_v55 = vmax.f32 %v4013_v23, 0.0  ;;  %v4662_v29 = vadd.f32 %v4634_v57, %v4596_v50  ;;  %v4796_v25 = vsel %vm420_vm0, %v4793_v61, %v11678_v33  ;;  %v8508_v50 = vld [vmem:[#allocation2 + $0x90] ss:$12 sps:$4 sm:$0xff]   ;;  %v11891_v33 = vld [vmem:[%s9188_s30 + $0x28] sm:$0xff] }
 0x210   : > { %v4727_v28 = vadd.f32 %v17109_v40, %v4661_v48  ;;  %v4794_v15 = vsel %vm420_vm0, %v17110_v18, %v4793_v61  ;;  %v17111_v46 = vrot.slane %v17106_v51, 2  ;;  %v4829_v12 = vmul.f32 %v11158_v37, %v4796_v25  ;;  %v11740_v40 = vld [vmem:[%s9188_s30 + $0x1c8] sm:$0xff]  ;;  %v11745_v18 = vld [vmem:[#allocation6 + $0x2] ss:$0 sm:$0xff] }
 0x211   : > { %v4042_v43 = vmax.f32 %v4014_v1, 0.0  ;;  %v4069_v27 = vmin.f32 %v4041_v55, 6.0  ;;  %v4728_v35 = vadd.f32 %v4700_v53, %v4662_v29  ;;  %v4828_v34 = vmul.f32 %v11158_v37, %v4794_v15  ;;  %v8504_v57 = vld [vmem:[#allocation2 + $0x94] ss:$12 sps:$4 sm:$0xff]   ;;  %v17112_v37 = vld [vmem:[#allocation57_spill] sm:$0xff] }
 0x212   : > { %v4860_v22 = vsel %vm538_vm1, %v17111_v46, %v4859_v49  ;;  %v4790_v21 = vadd.f32 %v4762_v52, %v4727_v28  ;;  %v4862_v23 = vsel %vm538_vm1, %v4859_v49, %v11683_v19  ;;  %7066 = vmatprep.mubr.bf16.mxu0 %v8504_v57  ;;  %v349_v52 = vmul.f32 %v11605_v63, %v17064_v47  ;;  %v11733_v55 = vld [vmem:[#allocation6 + $0x1] ss:$0 sm:$0xff]  ;;  %v17114_v15 = vld [vmem:[#allocation82_spill] sm:$0xff]  ;;  %v17115_v25 = vld [vmem:[#allocation81_spill] sm:$0xff] }
 0x213   : > { %v4894_v51 = vmul.f32 %v11165_v45, %v4860_v22  ;;  %v4070_v56 = vmin.f32 %v4042_v43, 6.0  ;;  %v8146_v48 = vpack.c.bf16 %v4069_v27, %v4069_v27  ;;  %v4791_v61 = vadd.f32 %v4763_v4, %v4728_v35  ;;  %v11743_v28 = vld [vmem:[%s9188_s30 + $0x1e0] sm:$0xff]  ;;  %7067 = vmatmul.mubr.bf16.gmra.mxu0 %v8508_v50  ;;  %v11751_v35 = vld [vmem:[#allocation6 + $0xc] ss:$0 sm:$0xff] }
 0x214   : > { %v4895_v53 = vmul.f32 %v11165_v45, %v4862_v23  ;;  %v4856_v1 = vadd.f32 %v4828_v34, %v4790_v21  ;;  %v468_v29 = vmul.f32 %v11733_v55, %v17112_v37  ;;  %v469_v49 = vmul.f32 %v11733_v55, %v17113_v26 }
 0x215   : > { %v8147_v4 = vpack.c.bf16 %v4070_v56, %v4070_v56  ;;  %4209 = vst [vmem:[#allocation2 + $0x288] sm:$0xf] %v8146_v48  ;;  %v4857_v45 = vadd.f32 %v4829_v12, %v4791_v61  ;;  %v586_v47 = vmul.f32 %v11745_v18, %v17114_v15  ;;  %v587_v46 = vmul.f32 %v11745_v18, %v17115_v25 }
 0x216   : > { %v4922_v22 = vadd.f32 %v4894_v51, %v4856_v1  ;;  %v496_v43 = vadd.f32 %v468_v29, %v348_v60  ;;  %v497_v27 = vadd.f32 %v469_v49, %v349_v52  ;;  %v676_v34 = vmul.f32 %v11751_v35, %v17068_v20 }
 0x217   : > { %4210 = vst [vmem:[#allocation2 + $0x294] sm:$0xf] %v8147_v4  ;;  %v4923_v57 = vadd.f32 %v4895_v53, %v4857_v45  ;;  %v677_v21 = vmul.f32 %v11751_v35, %v11455_v11  ;;  %v735_v12 = vrot.slane %v11740_v40, 1  ;;  %v16497_v23 = vrot.slane %v11743_v28, 1 }
 0x218   : > { %v4957_v50 = vadd.f32 %v11195_v10, %v4922_v22  ;;  %v614_v56 = vadd.f32 %v586_v47, %v496_v43  ;;  %v615_v51 = vadd.f32 %v587_v46, %v497_v27  ;;  %v852_v60 = vrot.slane %v11740_v40, 2 }
 0x219   : > { %v4958_v48 = vadd.f32 %v11195_v10, %v4923_v57  ;;  %v755_v20 = vsel %vm420_vm0, %v735_v12, %v16497_v23  ;;  %v756_v61 = vsel %vm420_vm0, %v11472_v44, %v735_v12  ;;  %v16496_v53 = vrot.slane %v11743_v28, 2  ;;  %v17116_v57 = vld [vmem:[#allocation71_spill] sm:$0xff]  ;;  %v11930_v44 = vld [vmem:[#allocation6 + $0x9] ss:$0 sm:$0xff] }
 0x21a   : > { %v4985_v1 = vmax.f32 %v4957_v50, 0.0  ;;  %v704_v52 = vadd.f32 %v676_v34, %v614_v56  ;;  %v705_v37 = vadd.f32 %v677_v21, %v615_v51  ;;  %v11771_v29 = vmul.f32 %v11637_v2, %v756_v61  ;;  %v17117_v12 = vld [vmem:[#allocation31_spill] sm:$0xff]  ;;  %v11799_v50 = vld [vmem:[%s9188_s30 + $0x1d0] sm:$0xff]  ;;  %v11802_v56 = vld [vmem:[%s9188_s30 + $0x1e8] sm:$0xff] }
 0x21b   : > { %v4986_v26 = vmax.f32 %v4958_v48, 0.0  ;;  %v11774_v10 = vmul.f32 %v11637_v2, %v755_v20  ;;  %v872_v49 = vsel %vm538_vm1, %v852_v60, %v16496_v53  ;;  %v873_v4 = vsel %vm538_vm1, %v11477_v58, %v852_v60 }
 0x21c   : > { %v5013_v45 = vmin.f32 %v4985_v1, 6.0  ;;  %v821_v15 = vadd.f32 %v11492_v5, %v704_v52  ;;  %v822_v47 = vadd.f32 %v11496_v36, %v705_v37  ;;  %v11786_v25 = vmul.f32 %v11641_v14, %v873_v4 }
 0x21d   : > { %v5014_v46 = vmin.f32 %v4986_v26, 6.0  ;;  %v11789_v22 = vmul.f32 %v11641_v14, %v872_v49  ;;  %v974_v43 = vmul.f32 %v11631_v30, %v11458_v59  ;;  %v975_v27 = vmul.f32 %v11631_v30, %v11740_v40  ;;  %v17118_v26 = vld [vmem:[#allocation33_spill] sm:$0xff] }
 0x21e   : > { %v8174_v34 = vpack.c.bf16 %v5013_v45, %v5013_v45  ;;  %v938_v21 = vadd.f32 %v17116_v57, %v821_v15  ;;  %v939_v5 = vadd.f32 %v17117_v12, %v822_v47  ;;  %v1040_v36 = vmul.f32 %v11659_v41, %v756_v61 }
 0x21f   : > { %v8175_v51 = vpack.c.bf16 %v5014_v46, %v5014_v46  ;;  %v1041_v60 = vmul.f32 %v11659_v41, %v755_v20  ;;  %v1106_v48 = vmul.f32 %v11672_v16, %v873_v4  ;;  %v1107_v1 = vmul.f32 %v11672_v16, %v872_v49 }
 0x220   : > { %5153 = vst [vmem:[#allocation2 + $0x28c] sm:$0xf] %v8174_v34  ;;  %v1002_v52 = vadd.f32 %v974_v43, %v938_v21  ;;  %v1003_v37 = vadd.f32 %v975_v27, %v939_v5  ;;  %v1430_v45 = vmul.f32 %v11654_v9, %v17118_v26  ;;  %v1431_v61 = vmul.f32 %v11654_v9, %v11799_v50 }
 0x221   : > { %5154 = vst [vmem:[#allocation2 + $0x298] sm:$0xf] %v8175_v51  ;;  %v1487_v15 = vrot.slane %v11799_v50, 1  ;;  %v16495_v47 = vrot.slane %v11802_v56, 1  ;;  %v1604_v20 = vrot.slane %v11799_v50, 2  ;;  %v16494_v4 = vrot.slane %v11802_v56, 2 }
 0x222   : > { %v1068_v46 = vadd.f32 %v1040_v36, %v1002_v52  ;;  %v1069_v49 = vadd.f32 %v1041_v60, %v1003_v37  ;;  %v1723_v43 = vmul.f32 %v11381_v3, %v17081_v0  ;;  %v1724_v27 = vmul.f32 %v11381_v3, %v11525_v38  ;;  %v11835_v36 = vld [vmem:[#allocation6 + $0x5] ss:$0 sm:$0xff]  ;;  %v11839_v52 = vld [vmem:[#allocation6 + $0x6] ss:$0 sm:$0xff] }
 0x223   : > { %v1503_v34 = vsel %vm420_vm0, %v1487_v15, %v16495_v47  ;;  %v17119_v57 = vrot.slane %v17118_v26, 1  ;;  %v1620_v12 = vsel %vm538_vm1, %v1604_v20, %v16494_v4  ;;  %v17120_v0 = vrot.slane %v17118_v26, 2  ;;  %17121 = vst [vmem:[#allocation86_spill] sm:$0xff] %v11835_v36  ;;  %17122 = vst [vmem:[#allocation55_spill] sm:$0xff] %v11839_v52  ;;  %v17124_v47 = vld [vmem:[#allocation63_spill] sm:$0xff] }
 0x224   : > { %v1134_v38 = vadd.f32 %v1106_v48, %v1068_v46  ;;  %v1135_v5 = vadd.f32 %v1107_v1, %v1069_v49  ;;  %v1548_v60 = vmul.f32 %v11835_v36, %v1503_v34  ;;  %v1752_v53 = vadd.f32 %v1724_v27, %v17124_v47  ;;  %v11847_v49 = vld [vmem:[#allocation6 + $0x11] ss:$0 sm:$0xff]  ;;  %v8509_v47 = vld [vmem:[#allocation2 + $0x288] ss:$12 sps:$4 sm:$0xff]  }
 0x225   : > { %v1504_v21 = vsel %vm420_vm0, %v17119_v57, %v1487_v15  ;;  %v1621_v3 = vsel %vm538_vm1, %v17120_v0, %v1604_v20  ;;  %v1665_v15 = vmul.f32 %v11839_v52, %v1620_v12  ;;  %v17123_v57 = vld [vmem:[#allocation73_spill] sm:$0xff]  ;;  %17125 = vst [vmem:[#allocation77_spill] sm:$0xff] %v11847_v49  ;;  %v11853_v23 = vmul.f32 %v11847_v49, %v1503_v34 }
 0x226   : > { %v1547_v51 = vmul.f32 %v11835_v36, %v1504_v21  ;;  %v1664_v37 = vmul.f32 %v11839_v52, %v1621_v3  ;;  %v1751_v4 = vadd.f32 %v1723_v43, %v17123_v57  ;;  %v1169_v20 = vadd.f32 %v11703_v24, %v1134_v38 }
 0x227   : > { %v1170_v48 = vadd.f32 %v11703_v24, %v1135_v5  ;;  %v1576_v46 = vadd.f32 %v1548_v60, %v1431_v61  ;;  %v11850_v0 = vmul.f32 %v11847_v49, %v1504_v21  ;;  %17127 = vst [vmem:[#allocation79_spill] sm:$0xff] %v11853_v23  ;;  %v1818_v43 = vadd.f32 %v11579_v39, %v1752_v53  ;;  %v11871_v53 = vld [vmem:[#allocation6 + $0x8] ss:$0 sm:$0xff]  ;;  %v11977_v24 = vld [vmem:[#allocation6 + $0xa] ss:$0 sm:$0xff] }
 0x228   : > { %v1575_v1 = vadd.f32 %v1547_v51, %v1430_v45  ;;  %v1817_v32 = vadd.f32 %v11576_v7, %v1751_v4  ;;  %v8506_v57 = vld [vmem:[#allocation2 + $0x28c] ss:$12 sps:$4 sm:$0xff]   ;;  %v1197_v27 = vmax.f32 %v1169_v20, 0.0  ;;  %v11861_v45 = vld [vmem:[#allocation6 + $0x12] ss:$0 sm:$0xff]  ;;  %17133 = vst [vmem:[#allocation75_spill] sm:$0xff] %v11871_v53 }
 0x229   : > { %17126 = vst [vmem:[#allocation78_spill] sm:$0xff] %v11850_v0  ;;  %v11859_v5 = vadd.f32 %v1665_v15, %v1576_v46  ;;  %17130 = vst [vmem:[#allocation29_spill] sm:$0xff] %v11861_v45  ;;  %v11864_v61 = vmul.f32 %v11861_v45, %v1621_v3  ;;  %v1198_v51 = vmax.f32 %v1170_v48, 0.0  ;;  %v11867_v60 = vmul.f32 %v11861_v45, %v1620_v12  ;;  %v11879_v48 = vld [vmem:[#allocation6 + $0x1d] ss:$0 sm:$0xff] }
 0x22a   : > { %v11857_v38 = vadd.f32 %v1664_v37, %v1575_v1  ;;  %v1883_v7 = vadd.f32 %v11588_v42, %v1817_v32  ;;  %v1884_v39 = vadd.f32 %v11591_v31, %v1818_v43  ;;  %7234 = vmatprep.mubr.bf16.mxu1 %v8506_v57  ;;  %v1225_v4 = vmin.f32 %v1197_v27, 6.0  ;;  %v11873_v37 = vld [vmem:[#allocation6 + $0x1c] ss:$0 sm:$0xff]  ;;  %17134 = vst [vmem:[#allocation76_spill] sm:$0xff] %v11879_v48  ;;  %v11883_v1 = vld [vmem:[#allocation6 + $0x1e] ss:$0 sm:$0xff] }
 0x22b   : > { %17129 = vst [vmem:[#allocation61_spill] sm:$0xff] %v11859_v5  ;;  %17131 = vst [vmem:[#allocation42_spill] sm:$0xff] %v11864_v61  ;;  %v1918_v15 = vmul.f32 %v11873_v37, %v17118_v26  ;;  %v1919_v20 = vmul.f32 %v11873_v37, %v11799_v50  ;;  %v1984_v42 = vmul.f32 %v11879_v48, %v1504_v21  ;;  %7235 = vmatmul.mubr.bf16.gmra.mxu1 %v8509_v47  ;;  %v11888_v57 = vld [vmem:[%s9188_s30 + $0x10] sm:$0xff]  ;;  %v11894_v21 = vld [vmem:[%s9188_s30 + $0x40] sm:$0xff] }
 0x22c   : > { %17128 = vst [vmem:[#allocation67_spill] sm:$0xff] %v11857_v38  ;;  %17132 = vst [vmem:[#allocation80_spill] sm:$0xff] %v11867_v60  ;;  %v1226_v31 = vmin.f32 %v1198_v51, 6.0  ;;  %v1985_v32 = vmul.f32 %v11879_v48, %v1503_v34  ;;  %v2050_v46 = vmul.f32 %v11883_v1, %v1621_v3  ;;  %v2051_v43 = vmul.f32 %v11883_v1, %v1620_v12  ;;  %v11897_v47 = vld [vmem:[%s9188_s30 + $0x58] sm:$0xff]  ;;  %v11905_v3 = vld [vmem:[%s9188_s30 + $0x88] sm:$0xff] }
 0x22d   : > { %17135 = vst [vmem:[#allocation64_spill] sm:$0xff] %v11883_v1  ;;  %17136 = vst [vmem:[#allocation22_spill] sm:$0xff] %v11888_v57  ;;  %v8050_v27 = vpack.c.bf16 %v1225_v4, %v1225_v4  ;;  %v1946_v19 = vadd.f32 %v1918_v15, %v1883_v7  ;;  %v1947_v8 = vadd.f32 %v1919_v20, %v1884_v39  ;;  %v11914_v20 = vld [vmem:[%s9188_s30 + $0xa0] sm:$0xff]  ;;  %v2413_v38 = vrot.slane %v11891_v33, 1 }
 0x22e   : > { %v2356_v34 = vmul.f32 %v11871_v53, %v11888_v57  ;;  %v8051_v51 = vpack.c.bf16 %v1226_v31, %v1226_v31  ;;  %v2357_v12 = vmul.f32 %v11871_v53, %v11891_v33  ;;  %v2358_v7 = vmul.f32 %v11871_v53, %v11894_v21 }
 0x22f   : > { %v2359_v39 = vmul.f32 %v11871_v53, %v11897_v47  ;;  %1365 = vst [vmem:[#allocation2 + $0xa8] sm:$0xf] %v8050_v27  ;;  %v2012_v4 = vadd.f32 %v1984_v42, %v1946_v19  ;;  %v2013_v15 = vadd.f32 %v1985_v32, %v1947_v8  ;;  %v2360_v31 = vmul.f32 %v11871_v53, %v11902_v17 }
 0x230   : > { %v2361_v13 = vmul.f32 %v11871_v53, %v11905_v3  ;;  %1366 = vst [vmem:[#allocation2 + $0xb4] sm:$0xf] %v8051_v51  ;;  %v11923_v58 = vrot.slane %v11894_v21, 1  ;;  %v2415_v27 = vrot.slane %v11897_v47, 1  ;;  %v11927_v42 = vrot.slane %v11902_v17, 1 }
 0x231   : > { %v2078_v19 = vadd.f32 %v2050_v46, %v2012_v4  ;;  %v2079_v8 = vadd.f32 %v2051_v43, %v2013_v15  ;;  %v2417_v32 = vrot.slane %v11905_v3, 1  ;;  %v17139_v46 = vrot.slane %v11888_v57, 1  ;;  %v11945_v4 = vld [vmem:[#allocation8 + $0x1] ss:$0 sm:$0xff] }
 0x232   : > { %17137 = vst [vmem:[#allocation65_spill] sm:$0xff] %v11923_v58  ;;  %17138 = vst [vmem:[#allocation57_spill] sm:$0xff] %v11927_v42  ;;  %v11936_v5 = vsel %vm420_vm0, %v11923_v58, %v2415_v27  ;;  %v2465_v53 = vsel %vm420_vm0, %v2413_v38, %v11923_v58  ;;  %v2463_v58 = vsel %vm420_vm0, %v2415_v27, %v11927_v42  ;;  %v17141_v48 = vrot.slane %v11914_v20, 1 }
 0x233   : > { %v2466_v43 = vsel %vm420_vm0, %v17139_v46, %v2413_v38  ;;  %17140 = vst [vmem:[#allocation59_spill] sm:$0xff] %v11945_v4  ;;  %v2113_v15 = vadd.f32 %v11945_v4, %v2078_v19  ;;  %v2114_v51 = vadd.f32 %v11945_v4, %v2079_v8  ;;  %v11952_v1 = vsel %vm420_vm0, %v11927_v42, %v2417_v32 }
 0x234   : > { %v11961_v38 = vsel %vm420_vm0, %v2417_v32, %v17141_v48  ;;  %v2473_v46 = vmul.f32 %v11930_v44, %v2466_v43  ;;  %v2474_v19 = vmul.f32 %v11930_v44, %v2465_v53  ;;  %v2475_v8 = vmul.f32 %v11930_v44, %v11936_v5 }
 0x235   : > { %v2141_v4 = vmax.f32 %v2113_v15, 0.0  ;;  %v2142_v60 = vmax.f32 %v2114_v51, 0.0  ;;  %v2476_v61 = vmul.f32 %v11930_v44, %v2463_v58  ;;  %v2477_v27 = vmul.f32 %v11930_v44, %v11952_v1 }
 0x236   : > { %v2478_v42 = vmul.f32 %v11930_v44, %v11961_v38  ;;  %v2501_v45 = vadd.f32 %v2473_v46, %v2356_v34  ;;  %v2502_v48 = vadd.f32 %v2474_v19, %v2357_v12  ;;  %v2503_v32 = vadd.f32 %v2475_v8, %v2358_v7 }
 0x237   : > { %v2169_v23 = vmin.f32 %v2141_v4, 6.0  ;;  %v2170_v43 = vmin.f32 %v2142_v60, 6.0  ;;  %v2504_v0 = vadd.f32 %v2476_v61, %v2359_v39  ;;  %v2505_v53 = vadd.f32 %v2477_v27, %v2360_v31 }
 0x238   : > { %v2506_v49 = vadd.f32 %v2478_v42, %v2361_v13  ;;  %v16532_v52 = vrot.slane %v11888_v57, 2  ;;  %v2530_v51 = vrot.slane %v11891_v33, 2  ;;  %v11975_v15 = vrot.slane %v11894_v21, 2  ;;  %v12000_v42 = vld [vmem:[#allocation6 + $0x14] ss:$0 sm:$0xff] }
 0x239   : > { %v8078_v36 = vpack.c.bf16 %v2169_v23, %v2169_v23  ;;  %v8079_v54 = vpack.c.bf16 %v2170_v43, %v2170_v43  ;;  %v2532_v34 = vrot.slane %v11897_v47, 2  ;;  %v11981_v12 = vrot.slane %v11902_v17, 2 }
 0x23a   : > { %17142 = vst [vmem:[#allocation82_spill] sm:$0xff] %v11975_v15  ;;  %v2534_v61 = vrot.slane %v11905_v3, 2  ;;  %v16533_v13 = vrot.slane %v11914_v20, 2  ;;  %v2582_v33 = vsel %vm538_vm1, %v2530_v51, %v11975_v15  ;;  %v2583_v60 = vsel %vm538_vm1, %v16532_v52, %v2530_v51  ;;  %v12013_v51 = vld [vmem:[#allocation6 + $0x15] ss:$0 sm:$0xff] }
 0x23b   : > { %17143 = vst [vmem:[#allocation81_spill] sm:$0xff] %v11981_v12  ;;  %2309 = vst [vmem:[#allocation2 + $0xac] sm:$0xf] %v8078_v36  ;;  %v2580_v23 = vsel %vm538_vm1, %v2532_v34, %v11981_v12  ;;  %v2581_v7 = vsel %vm538_vm1, %v11975_v15, %v2532_v34  ;;  %v2590_v39 = vmul.f32 %v11977_v24, %v2583_v60 }
 0x23c   : > { %2310 = vst [vmem:[#allocation2 + $0xb8] sm:$0xf] %v8079_v54  ;;  %v2591_v31 = vmul.f32 %v11977_v24, %v2582_v33  ;;  %v2578_v36 = vsel %vm538_vm1, %v2534_v61, %v16533_v13  ;;  %v2579_v54 = vsel %vm538_vm1, %v11981_v12, %v2534_v61  ;;  %v2592_v4 = vmul.f32 %v11977_v24, %v2581_v7 }
 0x23d   : > { %v2593_v46 = vmul.f32 %v11977_v24, %v2580_v23  ;;  %v2594_v19 = vmul.f32 %v11977_v24, %v2579_v54  ;;  %v2595_v8 = vmul.f32 %v11977_v24, %v2578_v36  ;;  %v2618_v27 = vadd.f32 %v2590_v39, %v2501_v45 }
 0x23e   : > { %v2619_v43 = vadd.f32 %v2591_v31, %v2502_v48  ;;  %v2620_v34 = vadd.f32 %v2592_v4, %v2503_v32  ;;  %v2653_v60 = vmul.f32 %v12000_v42, %v11894_v21  ;;  %v2654_v61 = vmul.f32 %v12000_v42, %v11897_v47  ;;  %v12027_v48 = vld [vmem:[#allocation6 + $0x16] ss:$0 sm:$0xff]  ;;  %v12036_v4 = vld [vmem:[#allocation6 + $0x20] ss:$0 sm:$0xff] }
 0x23f   : > { %v2621_v33 = vadd.f32 %v2593_v46, %v2504_v0  ;;  %v12019_v52 = vadd.f32 %v2594_v19, %v2505_v53  ;;  %v12021_v13 = vadd.f32 %v2595_v8, %v2506_v49  ;;  %v2655_v12 = vmul.f32 %v12000_v42, %v11902_v17 }
 0x240   : > { %v2656_v45 = vmul.f32 %v12000_v42, %v11905_v3  ;;  %v2681_v32 = vadd.f32 %v2653_v60, %v2618_v27  ;;  %v2682_v0 = vadd.f32 %v2654_v61, %v2619_v43  ;;  %v2719_v21 = vmul.f32 %v12013_v51, %v11936_v5  ;;  %v8514_v60 = vld [vmem:[#allocation2 + $0xa8] ss:$12 sps:$4 sm:$0xff]   ;;  %v12045_v61 = vld [vmem:[%s9188_s30 + $0xb8] sm:$0xff] }
 0x241   : > { %v2720_v39 = vmul.f32 %v12013_v51, %v2463_v58  ;;  %v2683_v47 = vadd.f32 %v2655_v12, %v2620_v34  ;;  %v2721_v49 = vmul.f32 %v12013_v51, %v11952_v1  ;;  %v2722_v31 = vmul.f32 %v12013_v51, %v11961_v38 }
 0x242   : > { %v2684_v53 = vadd.f32 %v2656_v45, %v2621_v33  ;;  %v2747_v19 = vadd.f32 %v2719_v21, %v2681_v32  ;;  %v2785_v27 = vmul.f32 %v12027_v48, %v2581_v7  ;;  %v2786_v5 = vmul.f32 %v12027_v48, %v2580_v23  ;;  %v12042_v33 = vld [vmem:[#allocation6 + $0x21] ss:$0 sm:$0xff] }
 0x243   : > { %v8511_v46 = vld [vmem:[#allocation2 + $0xac] ss:$12 sps:$4 sm:$0xff]   ;;  %v2748_v8 = vadd.f32 %v2720_v39, %v2682_v0  ;;  %v2749_v43 = vadd.f32 %v2721_v49, %v2683_v47  ;;  %v2787_v12 = vmul.f32 %v12027_v48, %v2579_v54  ;;  %v2788_v34 = vmul.f32 %v12027_v48, %v2578_v36  ;;  %17144 = vst [vmem:[#allocation71_spill] sm:$0xff] %v12042_v33  ;;  %v12051_v0 = vld [vmem:[#allocation6 + $0x22] ss:$0 sm:$0xff]  ;;  %v12058_v49 = vld [vmem:[%s9188_s30 + $0xd0] sm:$0xff] }
 0x244   : > { %v2750_v58 = vadd.f32 %v2722_v31, %v2684_v53  ;;  %7074 = vmatprep.mubr.bf16.mxu0 %v8511_v46  ;;  %v2813_v45 = vadd.f32 %v2785_v27, %v2747_v19  ;;  %v2848_v7 = vmul.f32 %v12036_v4, %v11902_v17  ;;  %v2849_v23 = vmul.f32 %v12036_v4, %v11905_v3 }
 0x245   : > { %v2814_v32 = vadd.f32 %v2786_v5, %v2748_v8  ;;  %17145 = vst [vmem:[#allocation31_spill] sm:$0xff] %v12051_v0  ;;  %v2815_v21 = vadd.f32 %v2787_v12, %v2749_v43  ;;  %v2850_v47 = vmul.f32 %v12036_v4, %v11914_v20  ;;  %v2851_v53 = vmul.f32 %v12036_v4, %v12045_v61 }
 0x246   : > { %v2816_v39 = vadd.f32 %v2788_v34, %v2750_v58  ;;  %7075 = vmatmul.mubr.bf16.gmra.mxu0 %v8514_v60  ;;  %v2876_v31 = vadd.f32 %v2848_v7, %v2813_v45  ;;  %v2914_v17 = vmul.f32 %v12042_v33, %v11952_v1  ;;  %v2915_v3 = vmul.f32 %v12042_v33, %v11961_v38  ;;  %v12068_v60 = vld [vmem:[#allocation8 + $0x2] ss:$0 sm:$0xff] }
 0x247   : > { %v2877_v46 = vadd.f32 %v2849_v23, %v2814_v32  ;;  %v2878_v19 = vadd.f32 %v2850_v47, %v2815_v21  ;;  %v2980_v27 = vmul.f32 %v12051_v0, %v2579_v54  ;;  %v2981_v5 = vmul.f32 %v12051_v0, %v2578_v36  ;;  %v8644_v32 = vld [vmem:[%s9188_s30 + $0x180] sm:$0xff] }
 0x248   : > { %v2879_v8 = vadd.f32 %v2851_v53, %v2816_v39  ;;  %v2942_v43 = vadd.f32 %v2914_v17, %v2876_v31  ;;  %v2419_v12 = vrot.slane %v12045_v61, 1  ;;  %v16536_v34 = vrot.slane %v12058_v49, 1 }
 0x249   : > { %v2943_v58 = vadd.f32 %v2915_v3, %v2877_v46  ;;  %v2536_v45 = vrot.slane %v12045_v61, 2  ;;  %v16535_v1 = vrot.slane %v12058_v49, 2  ;;  %v350_v38 = vmul.f32 %v8644_v32, %v11605_v63 }
 0x24a   : > { %v351_v54 = vmul.f32 %v11605_v63, %v11455_v11  ;;  %v3008_v7 = vadd.f32 %v2980_v27, %v2942_v43  ;;  %v12080_v23 = vsel %vm420_vm0, %v2419_v12, %v16536_v34  ;;  %v17146_v21 = vrot.slane %v11914_v20, 1 }
 0x24b   : > { %v3009_v36 = vadd.f32 %v2981_v5, %v2943_v58  ;;  %v12092_v47 = vsel %vm538_vm1, %v2536_v45, %v16535_v1  ;;  %v17147_v11 = vrot.slane %v11914_v20, 2  ;;  %v2917_v31 = vmul.f32 %v12042_v33, %v12080_v23  ;;  %v17148_v58 = vld [vmem:[#allocation68_spill] sm:$0xff]  ;;  %v17151_v1 = vld [vmem:[#allocation70_spill] sm:$0xff] }
 0x24c   : > { %v12086_v39 = vsel %vm420_vm0, %v17146_v21, %v2419_v12  ;;  %v3043_v46 = vadd.f32 %v12068_v60, %v3008_v7  ;;  %v2983_v27 = vmul.f32 %v12051_v0, %v12092_v47  ;;  %v470_v12 = vmul.f32 %v11733_v55, %v17148_v58 }
 0x24d   : > { %v12098_v63 = vsel %vm538_vm1, %v17147_v11, %v2536_v45  ;;  %v2916_v53 = vmul.f32 %v12042_v33, %v12086_v39  ;;  %v3044_v17 = vadd.f32 %v12068_v60, %v3009_v36  ;;  %v2945_v43 = vadd.f32 %v2917_v31, %v2879_v8  ;;  %v17149_v45 = vld [vmem:[#allocation66_spill] sm:$0xff]  ;;  %v17150_v11 = vld [vmem:[#allocation32_spill] sm:$0xff] }
 0x24e   : > { %v2982_v3 = vmul.f32 %v12051_v0, %v12098_v63  ;;  %v471_v32 = vmul.f32 %v11733_v55, %v17149_v45  ;;  %v3071_v21 = vmax.f32 %v3043_v46, 0.0  ;;  %v588_v36 = vmul.f32 %v11745_v18, %v17150_v11  ;;  %v12122_v8 = vld [vmem:[%s9188_s30 + $0x210] sm:$0xff] }
 0x24f   : > { %v2944_v5 = vadd.f32 %v2916_v53, %v2878_v19  ;;  %v3072_v7 = vmax.f32 %v3044_v17, 0.0  ;;  %v589_v34 = vmul.f32 %v11745_v18, %v17151_v1  ;;  %v3011_v57 = vadd.f32 %v2983_v27, %v2945_v43  ;;  %v12119_v19 = vld [vmem:[%s9188_s30 + $0x1f8] sm:$0xff] }
 0x250   : > { %v498_v33 = vadd.f32 %v470_v12, %v350_v38  ;;  %v499_v0 = vadd.f32 %v471_v32, %v351_v54  ;;  %17152 = vst [vmem:[#allocation33_spill] sm:$0xff] %v12119_v19  ;;  %v3099_v53 = vmin.f32 %v3071_v21, 6.0  ;;  %v678_v55 = vmul.f32 %v11751_v35, %v11458_v59 }
 0x251   : > { %v3010_v15 = vadd.f32 %v2982_v3, %v2944_v5  ;;  %v3100_v31 = vmin.f32 %v3072_v7, 6.0  ;;  %v679_v46 = vmul.f32 %v11751_v35, %v11740_v40  ;;  %v3046_v18 = vadd.f32 %v12068_v60, %v3011_v57 }
 0x252   : > { %v616_v1 = vadd.f32 %v588_v36, %v498_v33  ;;  %v617_v3 = vadd.f32 %v589_v34, %v499_v0  ;;  %v8092_v38 = vpack.c.bf16 %v3099_v53, %v3099_v53  ;;  %v12131_v27 = vrot.slane %v12119_v19, 1 }
 0x253   : > { %v3045_v17 = vadd.f32 %v12068_v60, %v3010_v15  ;;  %v8093_v54 = vpack.c.bf16 %v3100_v31, %v3100_v31  ;;  %v16547_v5 = vrot.slane %v12122_v8, 1  ;;  %v3074_v58 = vmax.f32 %v3046_v18, 0.0 }
 0x254   : > { %17153 = vst [vmem:[#allocation73_spill] sm:$0xff] %v12131_v27  ;;  %v706_v12 = vadd.f32 %v678_v55, %v616_v1  ;;  %v707_v59 = vadd.f32 %v679_v46, %v617_v3  ;;  %3239 = vst [vmem:[#allocation2 + $0x8] sm:$0xf] %v8092_v38  ;;  %v17155_v57 = vrot.slane %v11743_v28, 1  ;;  %v12147_v33 = vrot.slane %v12119_v19, 2  ;;  %v12185_v3 = vld [vmem:[%s9188_s30 + $0x200] sm:$0xff] }
 0x255   : > { %v3073_v43 = vmax.f32 %v3045_v17, 0.0  ;;  %3240 = vst [vmem:[#allocation2 + $0x14] sm:$0xf] %v8093_v54  ;;  %v12139_v40 = vsel %vm420_vm0, %v12131_v27, %v16547_v5  ;;  %v16546_v0 = vrot.slane %v12122_v8, 2  ;;  %v3102_v45 = vmin.f32 %v3074_v58, 6.0 }
 0x256   : > { %17154 = vst [vmem:[#allocation63_spill] sm:$0xff] %v12139_v40  ;;  %v754_v15 = vsel %vm420_vm0, %v17155_v57, %v12131_v27  ;;  %17156 = vst [vmem:[#allocation68_spill] sm:$0xff] %v12147_v33  ;;  %v12155_v21 = vmul.f32 %v11637_v2, %v12139_v40  ;;  %v823_v7 = vadd.f32 %v11771_v29, %v706_v12  ;;  %v17158_v53 = vrot.slane %v11743_v28, 2 }
 0x257   : > { %v3101_v34 = vmin.f32 %v3073_v43, 6.0  ;;  %v12151_v32 = vmul.f32 %v11637_v2, %v754_v15  ;;  %v824_v11 = vadd.f32 %v11774_v10, %v707_v59  ;;  %v12164_v36 = vsel %vm538_vm1, %v12147_v33, %v16546_v0  ;;  %v12200_v59 = vld [vmem:[#allocation6 + $0x10] ss:$0 sm:$0xff]  ;;  %v12259_v0 = vld [vmem:[%s9188_s30 + $0xe8] sm:$0xff] }
 0x258   : > { %17157 = vst [vmem:[#allocation66_spill] sm:$0xff] %v12164_v36  ;;  %v871_v31 = vsel %vm538_vm1, %v17158_v53, %v12147_v33  ;;  %v8095_v55 = vpack.c.bf16 %v3102_v45, %v3102_v45  ;;  %v12176_v10 = vmul.f32 %v11641_v14, %v12164_v36  ;;  %v940_v46 = vadd.f32 %v11786_v25, %v823_v7 }
 0x259   : > { %v8094_v2 = vpack.c.bf16 %v3101_v34, %v3101_v34  ;;  %v12172_v29 = vmul.f32 %v11641_v14, %v871_v31  ;;  %v941_v17 = vadd.f32 %v11789_v22, %v824_v11  ;;  %v976_v18 = vmul.f32 %v11631_v30, %v11743_v28  ;;  %v12194_v22 = vld [vmem:[%s9188_s30 + $0x218] sm:$0xff]  ;;  %17159 = vst [vmem:[#allocation32_spill] sm:$0xff] %v12200_v59 }
 0x25a   : > { %v977_v1 = vmul.f32 %v11631_v30, %v12119_v19  ;;  %3242 = vst [vmem:[#allocation2 + $0x2c] sm:$0xf] %v8095_v55  ;;  %v1042_v38 = vmul.f32 %v11659_v41, %v754_v15  ;;  %v1043_v14 = vmul.f32 %v11659_v41, %v12139_v40  ;;  %v1108_v54 = vmul.f32 %v11672_v16, %v871_v31 }
 0x25b   : > { %3241 = vst [vmem:[#allocation2 + $0x20] sm:$0xf] %v8094_v2  ;;  %v1109_v25 = vmul.f32 %v11672_v16, %v12164_v36  ;;  %v1004_v28 = vadd.f32 %v976_v18, %v940_v46  ;;  %v1432_v30 = vmul.f32 %v11654_v9, %v11802_v56  ;;  %v1433_v58 = vmul.f32 %v11654_v9, %v12185_v3  ;;  %v17162_v18 = vld [vmem:[#allocation86_spill] sm:$0xff] }
 0x25c   : > { %v1005_v43 = vadd.f32 %v977_v1, %v941_v17  ;;  %v8513_v12 = vld [vmem:[#allocation2 + $0x8] ss:$12 sps:$4 sm:$0xff]   ;;  %v1725_v41 = vmul.f32 %v12200_v59, %v17118_v26  ;;  %v1726_v57 = vmul.f32 %v12200_v59, %v11799_v50  ;;  %v1920_v16 = vmul.f32 %v11873_v37, %v11802_v56 }
 0x25d   : > { %v1921_v15 = vmul.f32 %v11873_v37, %v12185_v3  ;;  %v1070_v34 = vadd.f32 %v1042_v38, %v1004_v28  ;;  %v1489_v7 = vrot.slane %v12185_v3, 1  ;;  %v16545_v9 = vrot.slane %v12194_v22, 1  ;;  %8257 = vmatprep.mubr.bf16.mxu1 %v8513_v12  ;;  %v17160_v50 = vld [vmem:[#allocation45_spill] sm:$0xff] }
 0x25e   : > { %v1071_v45 = vadd.f32 %v1043_v14, %v1005_v43  ;;  %v1606_v11 = vrot.slane %v12185_v3, 2  ;;  %v16544_v26 = vrot.slane %v12194_v22, 2  ;;  %v1753_v53 = vadd.f32 %v1725_v41, %v11581_v62  ;;  %v17164_v28 = vld [vmem:[#allocation85_spill] sm:$0xff]  ;;  %v17165_v41 = vld [vmem:[#allocation55_spill] sm:$0xff] }
 0x25f   : > { %v1754_v31 = vadd.f32 %v1726_v57, %v17160_v50  ;;  %v1136_v2 = vadd.f32 %v1108_v54, %v1070_v34  ;;  %v1501_v37 = vsel %vm420_vm0, %v1489_v7, %v16545_v9  ;;  %v17161_v46 = vrot.slane %v11802_v56, 1  ;;  %v17166_v50 = vld [vmem:[#allocation77_spill] sm:$0xff]  ;;  %v17172_v9 = vld [vmem:[#allocation42_spill] sm:$0xff] }
 0x260   : > { %v1137_v55 = vadd.f32 %v1109_v25, %v1071_v45  ;;  %v1550_v38 = vmul.f32 %v17162_v18, %v1501_v37  ;;  %v1618_v62 = vsel %vm538_vm1, %v1606_v11, %v16544_v26  ;;  %v17163_v14 = vrot.slane %v11802_v56, 2 }
 0x261   : > { %v1502_v17 = vsel %vm420_vm0, %v17161_v46, %v1489_v7  ;;  %v1171_v43 = vadd.f32 %v17164_v28, %v1136_v2  ;;  %v1667_v34 = vmul.f32 %v17165_v41, %v1618_v62  ;;  %v12242_v56 = vmul.f32 %v17166_v50, %v1501_v37  ;;  %v17167_v2 = vld [vmem:[#allocation78_spill] sm:$0xff] }
 0x262   : > { %v1549_v1 = vmul.f32 %v17162_v18, %v1502_v17  ;;  %v1619_v54 = vsel %vm538_vm1, %v17163_v14, %v1606_v11  ;;  %v8515_v25 = vld [vmem:[#allocation2 + $0x20] ss:$12 sps:$4 sm:$0xff]   ;;  %v1172_v12 = vadd.f32 %v17164_v28, %v1137_v55  ;;  %v1578_v7 = vadd.f32 %v1550_v38, %v1433_v58 }
 0x263   : > { %v1666_v57 = vmul.f32 %v17165_v41, %v1619_v54  ;;  %v12239_v46 = vmul.f32 %v17166_v50, %v1502_v17  ;;  %8258 = vmatmul.mubr.bf16.vlgmr.msra.gmra.mxu1 %v8515_v25  ;;  %v1199_v11 = vmax.f32 %v1171_v43, 0.0  ;;  %v1819_v14 = vadd.f32 %v17167_v2, %v1753_v53  ;;  %v17168_v55 = vld [vmem:[#allocation79_spill] sm:$0xff]  ;;  %v17173_v43 = vld [vmem:[#allocation80_spill] sm:$0xff] }
 0x264   : > { %v1577_v45 = vadd.f32 %v1549_v1, %v1432_v30  ;;  %v1200_v18 = vmax.f32 %v1172_v12, 0.0  ;;  %v1820_v28 = vadd.f32 %v17168_v55, %v1754_v31  ;;  %v12248_v41 = vadd.f32 %v1667_v34, %v1578_v7  ;;  %v17171_v30 = vld [vmem:[#allocation29_spill] sm:$0xff]  ;;  %v12262_v53 = vld [vmem:[%s9188_s30 + $0x100] sm:$0xff] }
 0x265   : > { %v12251_v58 = vmul.f32 %v17171_v30, %v1619_v54  ;;  %v12254_v1 = vmul.f32 %v17171_v30, %v1618_v62  ;;  %v1227_v38 = vmin.f32 %v1199_v11, 6.0  ;;  %v1885_v25 = vadd.f32 %v17172_v9, %v1819_v14  ;;  %v17174_v31 = vld [vmem:[#allocation76_spill] sm:$0xff]  ;;  %v17176_v9 = vld [vmem:[#allocation75_spill] sm:$0xff] }
 0x266   : > { %v12246_v26 = vadd.f32 %v1666_v57, %v1577_v45  ;;  %17170 = vst [vmem:[#allocation45_spill] sm:$0xff] %v12248_v41  ;;  %v1228_v50 = vmin.f32 %v1200_v18, 6.0  ;;  %v1886_v12 = vadd.f32 %v17173_v43, %v1820_v28  ;;  %v1986_v57 = vmul.f32 %v17174_v31, %v1502_v17  ;;  %v17175_v45 = vld [vmem:[#allocation64_spill] sm:$0xff] }
 0x267   : > { %v1987_v34 = vmul.f32 %v17174_v31, %v1501_v37  ;;  %v2052_v7 = vmul.f32 %v17175_v45, %v1619_v54  ;;  %v2053_v2 = vmul.f32 %v17175_v45, %v1618_v62  ;;  %v8052_v55 = vpack.c.bf16 %v1227_v38, %v1227_v38 }
 0x268   : > { %17169 = vst [vmem:[#allocation70_spill] sm:$0xff] %v12246_v26  ;;  %v8053_v30 = vpack.c.bf16 %v1228_v50, %v1228_v50  ;;  %v1948_v11 = vadd.f32 %v1920_v16, %v1885_v25  ;;  %v1949_v18 = vadd.f32 %v1921_v15, %v1886_v12  ;;  %v2364_v14 = vmul.f32 %v17176_v9, %v12058_v49  ;;  %v17181_v26 = vld [vmem:[#allocation31_spill] sm:$0xff] }
 0x269   : > { %v2365_v28 = vmul.f32 %v17176_v9, %v12259_v0  ;;  %v2421_v43 = vrot.slane %v12259_v0, 1  ;;  %v16548_v17 = vrot.slane %v12262_v53, 1  ;;  %1367 = vst [vmem:[#allocation2 + $0xc0] sm:$0xf] %v8052_v55  ;;  %v2538_v62 = vrot.slane %v12259_v0, 2 }
 0x26a   : > { %1368 = vst [vmem:[#allocation2 + $0xcc] sm:$0xf] %v8053_v30  ;;  %v2014_v37 = vadd.f32 %v1986_v57, %v1948_v11  ;;  %v2015_v54 = vadd.f32 %v1987_v34, %v1949_v18  ;;  %v16549_v38 = vrot.slane %v12262_v53, 2  ;;  %v17177_v15 = vrot.slane %v12058_v49, 1 }
 0x26b   : > { %v2457_v16 = vsel %vm420_vm0, %v2421_v43, %v16548_v17  ;;  %v2657_v25 = vmul.f32 %v12000_v42, %v11914_v20  ;;  %v2658_v12 = vmul.f32 %v12000_v42, %v12045_v61  ;;  %v17178_v30 = vrot.slane %v12058_v49, 2 }
 0x26c   : > { %v2458_v50 = vsel %vm420_vm0, %v17177_v15, %v2421_v43  ;;  %v2080_v31 = vadd.f32 %v2052_v7, %v2014_v37  ;;  %v2081_v57 = vadd.f32 %v2053_v2, %v2015_v54  ;;  %v2482_v45 = vmul.f32 %v11930_v44, %v2457_v16  ;;  %v17179_v7 = vld [vmem:[#allocation59_spill] sm:$0xff] }
 0x26d   : > { %v2481_v34 = vmul.f32 %v11930_v44, %v2458_v50  ;;  %v2574_v55 = vsel %vm538_vm1, %v2538_v62, %v16549_v38  ;;  %v2575_v11 = vsel %vm538_vm1, %v17178_v30, %v2538_v62  ;;  %v2685_v18 = vadd.f32 %v2657_v25, %v12019_v52 }
 0x26e   : > { %v2686_v43 = vadd.f32 %v2658_v12, %v12021_v13  ;;  %v2115_v2 = vadd.f32 %v17179_v7, %v2080_v31  ;;  %v2116_v37 = vadd.f32 %v17179_v7, %v2081_v57  ;;  %v2510_v15 = vadd.f32 %v2482_v45, %v2365_v28 }
 0x26f   : > { %v2509_v54 = vadd.f32 %v2481_v34, %v2364_v14  ;;  %v2598_v5 = vmul.f32 %v11977_v24, %v2575_v11  ;;  %v2599_v17 = vmul.f32 %v11977_v24, %v2574_v55  ;;  %v2723_v38 = vmul.f32 %v12013_v51, %v12086_v39 }
 0x270   : > { %v2724_v62 = vmul.f32 %v12013_v51, %v12080_v23  ;;  %v2143_v30 = vmax.f32 %v2115_v2, 0.0  ;;  %v2144_v52 = vmax.f32 %v2116_v37, 0.0  ;;  %v12309_v13 = vmul.f32 %v12013_v51, %v2458_v50 }
 0x271   : > { %v12312_v25 = vmul.f32 %v12013_v51, %v2457_v16  ;;  %v12314_v14 = vadd.f32 %v2598_v5, %v2509_v54  ;;  %v12316_v28 = vadd.f32 %v2599_v17, %v2510_v15  ;;  %v2751_v12 = vadd.f32 %v2723_v38, %v2685_v18  ;;  %v12333_v15 = vld [vmem:[%s9188_s30 + $0x118] sm:$0xff] }
 0x272   : > { %v2752_v31 = vadd.f32 %v2724_v62, %v2686_v43  ;;  %v2171_v57 = vmin.f32 %v2143_v30, 6.0  ;;  %v2172_v34 = vmin.f32 %v2144_v52, 6.0  ;;  %v2789_v45 = vmul.f32 %v12027_v48, %v12098_v63  ;;  %v12336_v62 = vld [vmem:[%s9188_s30 + $0x130] sm:$0xff]  ;;  %v17180_v30 = vld [vmem:[#allocation71_spill] sm:$0xff] }
 0x273   : > { %v2790_v7 = vmul.f32 %v12027_v48, %v12092_v47  ;;  %v12323_v2 = vmul.f32 %v12027_v48, %v2575_v11  ;;  %v12326_v5 = vmul.f32 %v12027_v48, %v2574_v55  ;;  %v2852_v17 = vmul.f32 %v12036_v4, %v12058_v49 }
 0x274   : > { %v2853_v38 = vmul.f32 %v12036_v4, %v12259_v0  ;;  %v8080_v18 = vpack.c.bf16 %v2171_v57, %v2171_v57  ;;  %v8081_v43 = vpack.c.bf16 %v2172_v34, %v2172_v34  ;;  %v2817_v37 = vadd.f32 %v2789_v45, %v2751_v12 }
 0x275   : > { %v2818_v54 = vadd.f32 %v2790_v7, %v2752_v31  ;;  %v2918_v52 = vmul.f32 %v17180_v30, %v2458_v50  ;;  %v2919_v41 = vmul.f32 %v17180_v30, %v2457_v16  ;;  %v2984_v36 = vmul.f32 %v17181_v26, %v2575_v11 }
 0x276   : > { %v2985_v33 = vmul.f32 %v17181_v26, %v2574_v55  ;;  %2311 = vst [vmem:[#allocation2 + $0xc4] sm:$0xf] %v8080_v18  ;;  %2312 = vst [vmem:[#allocation2 + $0xd0] sm:$0xf] %v8081_v43  ;;  %v2880_v40 = vadd.f32 %v2852_v17, %v2817_v37  ;;  %v2362_v12 = vmul.f32 %v17176_v9, %v11914_v20  ;;  %v2423_v50 = vrot.slane %v12333_v15, 1 }
 0x277   : > { %v2881_v27 = vadd.f32 %v2853_v38, %v2818_v54  ;;  %v2363_v31 = vmul.f32 %v17176_v9, %v12045_v61  ;;  %v2366_v57 = vmul.f32 %v17176_v9, %v12262_v53  ;;  %v2367_v16 = vmul.f32 %v17176_v9, %v12333_v15 }
 0x278   : > { %v16556_v55 = vrot.slane %v12336_v62, 1  ;;  %v2946_v11 = vadd.f32 %v2918_v52, %v2880_v40  ;;  %v2479_v45 = vmul.f32 %v11930_v44, %v12086_v39  ;;  %v2480_v20 = vmul.f32 %v11930_v44, %v12080_v23 }
 0x279   : > { %v2947_v34 = vadd.f32 %v2919_v41, %v2881_v27  ;;  %v17182_v7 = vrot.slane %v12262_v53, 1  ;;  %v2540_v17 = vrot.slane %v12333_v15, 2  ;;  %v16555_v27 = vrot.slane %v12336_v62, 2 }
 0x27a   : > { %v2455_v61 = vsel %vm420_vm0, %v2423_v50, %v16556_v55  ;;  %v3012_v40 = vadd.f32 %v2984_v36, %v2946_v11  ;;  %v2507_v38 = vadd.f32 %v2479_v45, %v2362_v12  ;;  %v2508_v18 = vadd.f32 %v2480_v20, %v2363_v31 }
 0x27b   : > { %v2456_v9 = vsel %vm420_vm0, %v17182_v7, %v2423_v50  ;;  %v3013_v41 = vadd.f32 %v2985_v33, %v2947_v34  ;;  %v2484_v23 = vmul.f32 %v11930_v44, %v2455_v61  ;;  %v2572_v43 = vsel %vm538_vm1, %v2540_v17, %v16555_v27  ;;  %v8519_v7 = vld [vmem:[#allocation2 + $0xc0] ss:$12 sps:$4 sm:$0xff]  }
 0x27c   : > { %v2483_v39 = vmul.f32 %v11930_v44, %v2456_v9  ;;  %v17183_v37 = vrot.slane %v12262_v53, 2  ;;  %v3047_v52 = vadd.f32 %v12068_v60, %v3012_v40  ;;  %v2596_v44 = vmul.f32 %v11977_v24, %v12098_v63 }
 0x27d   : > { %v3048_v33 = vadd.f32 %v12068_v60, %v3013_v41  ;;  %v2512_v50 = vadd.f32 %v2484_v23, %v2367_v16  ;;  %v8516_v11 = vld [vmem:[#allocation2 + $0xc4] ss:$12 sps:$4 sm:$0xff]   ;;  %v2597_v12 = vmul.f32 %v11977_v24, %v12092_v47  ;;  %v2601_v34 = vmul.f32 %v11977_v24, %v2572_v43 }
 0x27e   : > { %v2573_v54 = vsel %vm538_vm1, %v17183_v37, %v2540_v17  ;;  %v2511_v36 = vadd.f32 %v2483_v39, %v2366_v57  ;;  %v3075_v45 = vmax.f32 %v3047_v52, 0.0  ;;  %v2659_v17 = vmul.f32 %v12000_v42, %v12058_v49  ;;  %7082 = vmatprep.mubr.bf16.mxu0 %v8516_v11  ;;  %v320_v11 = vld [vmem:[%s9188_s30 + $0x1c8] sm:$0xff] }
 0x27f   : > { %v2600_v31 = vmul.f32 %v11977_v24, %v2573_v54  ;;  %v3076_v20 = vmax.f32 %v3048_v33, 0.0  ;;  %v2660_v57 = vmul.f32 %v12000_v42, %v12259_v0  ;;  %v2624_v16 = vadd.f32 %v2596_v44, %v2507_v38  ;;  %7083 = vmatmul.mubr.bf16.gmra.mxu0 %v8519_v7  ;;  %v12410_v44 = vld [vmem:[%s9188_s30 + $0x1e0] sm:$0xff] }
 0x280   : > { %v2625_v40 = vadd.f32 %v2597_v12, %v2508_v18  ;;  %v12390_v47 = vadd.f32 %v2601_v34, %v2512_v50  ;;  %v3103_v41 = vmin.f32 %v3075_v45, 6.0  ;;  %v12393_v23 = vmul.f32 %v12013_v51, %v2456_v9 }
 0x281   : > { %v12388_v63 = vadd.f32 %v2600_v31, %v2511_v36  ;;  %v3104_v39 = vmin.f32 %v3076_v20, 6.0  ;;  %v12396_v49 = vmul.f32 %v12013_v51, %v2455_v61  ;;  %v2687_v37 = vadd.f32 %v2659_v17, %v2624_v16  ;;  %v12418_v17 = vld [vmem:[#allocation6] ss:$0 sm:$0xff] }
 0x282   : > { %v2688_v0 = vadd.f32 %v2660_v57, %v2625_v40  ;;  %v12399_v38 = vmul.f32 %v12027_v48, %v2573_v54  ;;  %v12402_v18 = vmul.f32 %v12027_v48, %v2572_v43  ;;  %v8096_v52 = vpack.c.bf16 %v3103_v41, %v3103_v41  ;;  %17184 = vst [vmem:[#allocation86_spill] sm:$0xff] %v12418_v17  ;;  %v8647_v57 = vld [vmem:[%s9188_s30 + $0x1b0] sm:$0xff] }
 0x283   : > { %v8097_v33 = vpack.c.bf16 %v3104_v39, %v3104_v39  ;;  %v2854_v36 = vmul.f32 %v12036_v4, %v12262_v53  ;;  %v2855_v50 = vmul.f32 %v12036_v4, %v12333_v15  ;;  %v2753_v12 = vadd.f32 %v12309_v13, %v2687_v37 }
 0x284   : > { %v2754_v31 = vadd.f32 %v12312_v25, %v2688_v0  ;;  %v2920_v34 = vmul.f32 %v17180_v30, %v2456_v9  ;;  %v2921_v45 = vmul.f32 %v17180_v30, %v2455_v61  ;;  %3243 = vst [vmem:[#allocation2 + $0x38] sm:$0xf] %v8096_v52  ;;  %v2986_v20 = vmul.f32 %v17181_v26, %v2573_v54 }
 0x285   : > { %3244 = vst [vmem:[#allocation2 + $0x44] sm:$0xf] %v8097_v33  ;;  %v2987_v7 = vmul.f32 %v17181_v26, %v2572_v43  ;;  %v352_v16 = vmul.f32 %v8647_v57, %v12418_v17  ;;  %v353_v13 = vmul.f32 %v12418_v17, %v320_v11  ;;  %v2819_v25 = vadd.f32 %v12323_v2, %v2753_v12  ;;  %v8648_v43 = vld [vmem:[%s9188_s30 + $0x1e0] sm:$0xff]  ;;  %v12461_v17 = vld [vmem:[#allocation6 + $0x18] ss:$0 sm:$0xff] }
 0x286   : > { %v2820_v9 = vadd.f32 %v12326_v5, %v2754_v31  ;;  %v409_v61 = vrot.slane %v320_v11, 1  ;;  %v16554_v40 = vrot.slane %v12410_v44, 1  ;;  %v529_v41 = vrot.slane %v320_v11, 2  ;;  %v17185_v5 = vld [vmem:[#allocation60_spill] sm:$0xff]  ;;  %v12444_v31 = vld [vmem:[#allocation6 + $0x1] ss:$0 sm:$0xff] }
 0x287   : > { %v16559_v54 = vrot.slane %v12410_v44, 2  ;;  %v680_v39 = vmul.f32 %v8648_v43, %v11751_v35  ;;  %v681_v37 = vmul.f32 %v11751_v35, %v12119_v19  ;;  %v2882_v0 = vadd.f32 %v2854_v36, %v2819_v25  ;;  %v12439_v11 = vld [vmem:[%s9188_s30 + $0x228] sm:$0xff]  ;;  %v12442_v12 = vld [vmem:[%s9188_s30 + $0x240] sm:$0xff]  ;;  %17186 = vst [vmem:[#allocation85_spill] sm:$0xff] %v12444_v31  ;;  %17188 = vst [vmem:[#allocation55_spill] sm:$0xff] %v12461_v17 }
 0x288   : > { %v2883_v52 = vadd.f32 %v2855_v50, %v2820_v9  ;;  %v428_v2 = vsel %vm420_vm0, %v409_v61, %v16554_v40  ;;  %v429_v33 = vsel %vm420_vm0, %v17185_v5, %v409_v61  ;;  %v17187_v50 = vld [vmem:[#allocation30_spill] sm:$0xff]  ;;  %v12455_v43 = vld [vmem:[#allocation6 + $0x2] ss:$0 sm:$0xff]  ;;  %v16564_v55 = vrot.slane %v12442_v12, 1 }
 0x289   : > { %v472_v57 = vmul.f32 %v12444_v31, %v429_v33  ;;  %v473_v35 = vmul.f32 %v12444_v31, %v428_v2  ;;  %v546_v36 = vsel %vm538_vm1, %v529_v41, %v16559_v54  ;;  %v547_v25 = vsel %vm538_vm1, %v17187_v50, %v529_v41 }
 0x28a   : > { %v2948_v9 = vadd.f32 %v2920_v34, %v2882_v0  ;;  %v2949_v61 = vadd.f32 %v2921_v45, %v2883_v52  ;;  %v590_v5 = vmul.f32 %v12455_v43, %v547_v25  ;;  %v591_v40 = vmul.f32 %v12455_v43, %v546_v36  ;;  %v12493_v25 = vld [vmem:[#allocation6 + $0x19] ss:$0 sm:$0xff] }
 0x28b   : > { %v500_v33 = vadd.f32 %v472_v57, %v352_v16  ;;  %v501_v27 = vadd.f32 %v473_v35, %v353_v13  ;;  %v739_v2 = vrot.slane %v12439_v11, 1  ;;  %v978_v34 = vmul.f32 %v12461_v17, %v12122_v8  ;;  %v12481_v57 = vld [vmem:[#allocation6 + $0xd] ss:$0 sm:$0xff]  ;;  %17194 = vst [vmem:[#allocation42_spill] sm:$0xff] %v12493_v25 }
 0x28c   : > { %v8518_v31 = vld [vmem:[#allocation2 + $0x38] ss:$12 sps:$4 sm:$0xff]   ;;  %v3014_v54 = vadd.f32 %v2986_v20, %v2948_v9  ;;  %v3015_v19 = vadd.f32 %v2987_v7, %v2949_v61  ;;  %v979_v45 = vmul.f32 %v12461_v17, %v12439_v11  ;;  %v17190_v13 = vrot.slane %v12122_v8, 1  ;;  %17192 = vst [vmem:[#allocation79_spill] sm:$0xff] %v12481_v57 }
 0x28d   : > { %v618_v41 = vadd.f32 %v590_v5, %v500_v33  ;;  %v619_v0 = vadd.f32 %v591_v40, %v501_v27  ;;  %v12471_v16 = vsel %vm420_vm0, %v739_v2, %v16564_v55  ;;  %8261 = vmatprep.mubr.bf16.mxu1 %v8518_v31  ;;  %v856_v50 = vrot.slane %v12439_v11, 2  ;;  %v12537_v55 = vld [vmem:[#allocation6 + $0x4] ss:$0 sm:$0xff] }
 0x28e   : > { %17189 = vst [vmem:[#allocation77_spill] sm:$0xff] %v12471_v16  ;;  %v12477_v20 = vsel %vm420_vm0, %v17190_v13, %v739_v2  ;;  %v3049_v7 = vadd.f32 %v12068_v60, %v3014_v54  ;;  %v3050_v52 = vadd.f32 %v12068_v60, %v3015_v19  ;;  %v12489_v40 = vmul.f32 %v12481_v57, %v12471_v16  ;;  %v12513_v13 = vld [vmem:[#allocation6 + $0xe] ss:$0 sm:$0xff] }
 0x28f   : > { %17191 = vst [vmem:[#allocation78_spill] sm:$0xff] %v12477_v20  ;;  %v12485_v27 = vmul.f32 %v12481_v57, %v12477_v20  ;;  %v708_v35 = vadd.f32 %v680_v39, %v618_v41  ;;  %v709_v36 = vadd.f32 %v681_v37, %v619_v0  ;;  %v16563_v31 = vrot.slane %v12442_v12, 2  ;;  %17198 = vst [vmem:[#allocation64_spill] sm:$0xff] %v12513_v13 }
 0x290   : > { %v3077_v54 = vmax.f32 %v3049_v7, 0.0  ;;  %v3078_v19 = vmax.f32 %v3050_v52, 0.0  ;;  %v1044_v9 = vmul.f32 %v12493_v25, %v12477_v20  ;;  %v1045_v61 = vmul.f32 %v12493_v25, %v12471_v16  ;;  %v12524_v7 = vld [vmem:[%s9188_s30 + $0x230] sm:$0xff]  ;;  %v12527_v52 = vld [vmem:[%s9188_s30 + $0x248] sm:$0xff]  ;;  %17203 = vst [vmem:[#allocation60_spill] sm:$0xff] %v12537_v55 }
 0x291   : > { %17193 = vst [vmem:[#allocation29_spill] sm:$0xff] %v12485_v27  ;;  %v825_v5 = vadd.f32 %v12151_v32, %v708_v35  ;;  %v826_v39 = vadd.f32 %v12155_v21, %v709_v36  ;;  %v12505_v37 = vsel %vm538_vm1, %v856_v50, %v16563_v31  ;;  %v17196_v33 = vrot.slane %v12122_v8, 2  ;;  %17201 = vst [vmem:[#allocation71_spill] sm:$0xff] %v12527_v52 }
 0x292   : > { %17195 = vst [vmem:[#allocation80_spill] sm:$0xff] %v12505_v37  ;;  %v3105_v41 = vmin.f32 %v3077_v54, 6.0  ;;  %v3106_v0 = vmin.f32 %v3078_v19, 6.0  ;;  %v12521_v21 = vmul.f32 %v12513_v13, %v12505_v37  ;;  %v1434_v16 = vmul.f32 %v12537_v55, %v12194_v22 }
 0x293   : > { %v12511_v2 = vsel %vm538_vm1, %v17196_v33, %v856_v50  ;;  %v942_v35 = vadd.f32 %v12172_v29, %v825_v5  ;;  %v943_v36 = vadd.f32 %v12176_v10, %v826_v39  ;;  %v12531_v50 = vld [vmem:[#allocation6 + $0x1a] ss:$0 sm:$0xff]  ;;  %v1435_v29 = vmul.f32 %v12537_v55, %v12524_v7 }
 0x294   : > { %17197 = vst [vmem:[#allocation76_spill] sm:$0xff] %v12511_v2  ;;  %v12517_v32 = vmul.f32 %v12513_v13, %v12511_v2  ;;  %17200 = vst [vmem:[#allocation59_spill] sm:$0xff] %v12521_v21  ;;  %v1110_v54 = vmul.f32 %v12531_v50, %v12511_v2  ;;  %v1111_v19 = vmul.f32 %v12531_v50, %v12505_v37  ;;  %v1491_v39 = vrot.slane %v12524_v7, 1  ;;  %v17208_v21 = vld [vmem:[#allocation61_spill] sm:$0xff] }
 0x295   : > { %17202 = vst [vmem:[#allocation31_spill] sm:$0xff] %v12531_v50  ;;  %v8098_v33 = vpack.c.bf16 %v3105_v41, %v3105_v41  ;;  %v8099_v31 = vpack.c.bf16 %v3106_v0, %v3106_v0  ;;  %v1006_v10 = vadd.f32 %v978_v34, %v942_v35  ;;  %v1007_v5 = vadd.f32 %v979_v45, %v943_v36  ;;  %v8657_v0 = vld [vmem:[%s9188_s30 + $0x1e8] sm:$0xff]  ;;  %v12559_v35 = vld [vmem:[#allocation6 + $0x5] ss:$0 sm:$0xff] }
 0x296   : > { %17199 = vst [vmem:[#allocation75_spill] sm:$0xff] %v12517_v32  ;;  %v16573_v20 = vrot.slane %v12527_v52, 1  ;;  %v1608_v37 = vrot.slane %v12524_v7, 2  ;;  %v16582_v41 = vrot.slane %v12527_v52, 2  ;;  %v1727_v2 = vmul.f32 %v8657_v0, %v12200_v59  ;;  %17205 = vst [vmem:[#allocation30_spill] sm:$0xff] %v12559_v35 }
 0x297   : > { %3245 = vst [vmem:[#allocation2 + $0x50] sm:$0xf] %v8098_v33  ;;  %3246 = vst [vmem:[#allocation2 + $0x5c] sm:$0xf] %v8099_v31  ;;  %v1728_v32 = vmul.f32 %v12200_v59, %v12185_v3  ;;  %v1072_v50 = vadd.f32 %v1044_v9, %v1006_v10  ;;  %v1073_v55 = vadd.f32 %v1045_v61, %v1007_v5  ;;  %v17204_v45 = vrot.slane %v12194_v22, 1  ;;  %v17207_v59 = vld [vmem:[#allocation67_spill] sm:$0xff] }
 0x298   : > { %v1499_v34 = vsel %vm420_vm0, %v1491_v39, %v16573_v20  ;;  %v1616_v3 = vsel %vm538_vm1, %v1608_v37, %v16582_v41  ;;  %v17206_v9 = vrot.slane %v12194_v22, 2  ;;  %v12571_v0 = vld [vmem:[#allocation6 + $0x6] ss:$0 sm:$0xff]  ;;  %v1755_v52 = vadd.f32 %v1727_v2, %v17207_v59  ;;  %v12577_v41 = vld [vmem:[#allocation8] ss:$0 sm:$0xff] }
 0x299   : > { %v1500_v31 = vsel %vm420_vm0, %v17204_v45, %v1491_v39  ;;  %v1552_v33 = vmul.f32 %v12559_v35, %v1499_v34  ;;  %v1138_v10 = vadd.f32 %v1110_v54, %v1072_v50  ;;  %v1139_v5 = vadd.f32 %v1111_v19, %v1073_v55  ;;  %v12581_v50 = vld [vmem:[#allocation6 + $0x11] ss:$0 sm:$0xff]  ;;  %v12595_v19 = vld [vmem:[#allocation6 + $0x12] ss:$0 sm:$0xff] }
 0x29a   : > { %v1551_v36 = vmul.f32 %v12559_v35, %v1500_v31  ;;  %v1617_v61 = vsel %vm538_vm1, %v17206_v9, %v1608_v37  ;;  %v1669_v45 = vmul.f32 %v12571_v0, %v1616_v3  ;;  %v1756_v25 = vadd.f32 %v1728_v32, %v17208_v21  ;;  %v12612_v9 = vld [vmem:[%s9188_s30 + $0x148] sm:$0xff] }
 0x29b   : > { %v1668_v39 = vmul.f32 %v12571_v0, %v1617_v61  ;;  %v1580_v35 = vadd.f32 %v1552_v33, %v1435_v29  ;;  %v1173_v27 = vadd.f32 %v12577_v41, %v1138_v10  ;;  %v1174_v37 = vadd.f32 %v12577_v41, %v1139_v5  ;;  %v12603_v33 = vld [vmem:[#allocation6 + $0x1c] ss:$0 sm:$0xff]  ;;  %v12615_v10 = vld [vmem:[%s9188_s30 + $0x160] sm:$0xff]  ;;  %v12617_v5 = vld [vmem:[#allocation6 + $0x1d] ss:$0 sm:$0xff] }
 0x29c   : > { %v1579_v20 = vadd.f32 %v1551_v36, %v1434_v16  ;;  %v12584_v55 = vmul.f32 %v12581_v50, %v1500_v31  ;;  %v12587_v54 = vmul.f32 %v12581_v50, %v1499_v34  ;;  %v1821_v2 = vadd.f32 %v12239_v46, %v1755_v52  ;;  %17212 = vst [vmem:[#allocation88_spill] sm:$0xff] %v12603_v33 }
 0x29d   : > { %v12591_v59 = vadd.f32 %v1669_v45, %v1580_v35  ;;  %v1822_v32 = vadd.f32 %v12242_v56, %v1756_v25  ;;  %v12598_v29 = vmul.f32 %v12595_v19, %v1617_v61  ;;  %v12601_v36 = vmul.f32 %v12595_v19, %v1616_v3  ;;  %17213 = vst [vmem:[#allocation89_spill] sm:$0xff] %v12617_v5 }
 0x29e   : > { %v12589_v16 = vadd.f32 %v1668_v39, %v1579_v20  ;;  %v8520_v21 = vld [vmem:[#allocation2 + $0x50] ss:$12 sps:$4 sm:$0xff]   ;;  %v1922_v20 = vmul.f32 %v12603_v33, %v12194_v22  ;;  %v1923_v35 = vmul.f32 %v12603_v33, %v12524_v7  ;;  %v1201_v46 = vmax.f32 %v1173_v27, 0.0 }
 0x29f   : > { %17210 = vst [vmem:[#allocation61_spill] sm:$0xff] %v12591_v59  ;;  %17211 = vst [vmem:[#allocation87_spill] sm:$0xff] %v12601_v36  ;;  %v1202_v52 = vmax.f32 %v1174_v37, 0.0  ;;  %v1887_v56 = vadd.f32 %v12251_v58, %v1821_v2  ;;  %v1888_v25 = vadd.f32 %v12254_v1, %v1822_v32  ;;  %8262 = vmatmul.mubr.bf16.gmra.mxu1 %v8520_v21  ;;  %v12621_v59 = vld [vmem:[#allocation6 + $0x1e] ss:$0 sm:$0xff] }
 0x2a0   : > { %17209 = vst [vmem:[#allocation67_spill] sm:$0xff] %v12589_v16  ;;  %v1988_v39 = vmul.f32 %v12617_v5, %v1500_v31  ;;  %v1989_v45 = vmul.f32 %v12617_v5, %v1499_v34  ;;  %17214 = vst [vmem:[#allocation90_spill] sm:$0xff] %v12621_v59  ;;  %v2054_v27 = vmul.f32 %v12621_v59, %v1617_v61  ;;  %v1229_v58 = vmin.f32 %v1201_v46, 6.0  ;;  %v12625_v16 = vld [vmem:[#allocation6 + $0x8] ss:$0 sm:$0xff] }
 0x2a1   : > { %v2055_v37 = vmul.f32 %v12621_v59, %v1616_v3  ;;  %v1230_v2 = vmin.f32 %v1202_v52, 6.0  ;;  %v1950_v1 = vadd.f32 %v1922_v20, %v1887_v56  ;;  %v1951_v32 = vadd.f32 %v1923_v35, %v1888_v25 }
 0x2a2   : > { %v2368_v21 = vmul.f32 %v12625_v16, %v12336_v62  ;;  %v2369_v31 = vmul.f32 %v12625_v16, %v12612_v9  ;;  %v2425_v34 = vrot.slane %v12612_v9, 1  ;;  %v16588_v5 = vrot.slane %v12615_v10, 1 }
 0x2a3   : > { %v8054_v36 = vpack.c.bf16 %v1229_v58, %v1229_v58  ;;  %v8055_v61 = vpack.c.bf16 %v1230_v2, %v1230_v2  ;;  %v2016_v33 = vadd.f32 %v1988_v39, %v1950_v1  ;;  %v2017_v3 = vadd.f32 %v1989_v45, %v1951_v32  ;;  %v12643_v39 = vld [vmem:[#allocation6 + $0x9] ss:$0 sm:$0xff] }
 0x2a4   : > { %v2453_v20 = vsel %vm420_vm0, %v2425_v34, %v16588_v5  ;;  %v17215_v35 = vrot.slane %v12336_v62, 1  ;;  %v2542_v52 = vrot.slane %v12612_v9, 2  ;;  %v16587_v56 = vrot.slane %v12615_v10, 2 }
 0x2a5   : > { %1369 = vst [vmem:[#allocation2 + $0xd8] sm:$0xf] %v8054_v36  ;;  %1370 = vst [vmem:[#allocation2 + $0xe4] sm:$0xf] %v8055_v61  ;;  %v2082_v25 = vadd.f32 %v2054_v27, %v2016_v33  ;;  %v2083_v58 = vadd.f32 %v2055_v37, %v2017_v3  ;;  %v2486_v2 = vmul.f32 %v12643_v39, %v2453_v20  ;;  %v17216_v32 = vrot.slane %v12336_v62, 2 }
 0x2a6   : > { %v2454_v46 = vsel %vm420_vm0, %v17215_v35, %v2425_v34  ;;  %v2570_v1 = vsel %vm538_vm1, %v2542_v52, %v16587_v56  ;;  %v2661_v36 = vmul.f32 %v12000_v42, %v12262_v53  ;;  %v2662_v33 = vmul.f32 %v12000_v42, %v12333_v15  ;;  %v12659_v27 = vld [vmem:[#allocation8 + $0x1] ss:$0 sm:$0xff] }
 0x2a7   : > { %v2485_v45 = vmul.f32 %v12643_v39, %v2454_v46  ;;  %v2571_v34 = vsel %vm538_vm1, %v17216_v32, %v2542_v52  ;;  %v2117_v37 = vadd.f32 %v12659_v27, %v2082_v25  ;;  %v2118_v61 = vadd.f32 %v12659_v27, %v2083_v58 }
 0x2a8   : > { %v2514_v35 = vadd.f32 %v2486_v2, %v2369_v31  ;;  %v2602_v56 = vmul.f32 %v11977_v24, %v2571_v34  ;;  %v2603_v5 = vmul.f32 %v11977_v24, %v2570_v1  ;;  %v2689_v52 = vadd.f32 %v2661_v36, %v12314_v14 }
 0x2a9   : > { %v2513_v3 = vadd.f32 %v2485_v45, %v2368_v21  ;;  %v2690_v32 = vadd.f32 %v2662_v33, %v12316_v28  ;;  %v2145_v53 = vmax.f32 %v2117_v37, 0.0  ;;  %v2146_v59 = vmax.f32 %v2118_v61, 0.0 }
 0x2aa   : > { %v2729_v42 = vmul.f32 %v12013_v51, %v2454_v46  ;;  %v2730_v15 = vmul.f32 %v12013_v51, %v2453_v20  ;;  %v12671_v21 = vadd.f32 %v2603_v5, %v2514_v35  ;;  %v2755_v31 = vadd.f32 %v12393_v23, %v2689_v52 }
 0x2ab   : > { %v12669_v25 = vadd.f32 %v2602_v56, %v2513_v3  ;;  %v2756_v24 = vadd.f32 %v12396_v49, %v2690_v32  ;;  %v2173_v58 = vmin.f32 %v2145_v53, 6.0  ;;  %v2174_v14 = vmin.f32 %v2146_v59, 6.0  ;;  %v12688_v56 = vld [vmem:[%s9188_s30 + $0x178] sm:$0xff]  ;;  %v12691_v49 = vld [vmem:[%s9188_s30 + $0x190] sm:$0xff] }
 0x2ac   : > { %v12676_v28 = vmul.f32 %v12027_v48, %v2571_v34  ;;  %v12679_v45 = vmul.f32 %v12027_v48, %v2570_v1  ;;  %v2821_v2 = vadd.f32 %v12399_v38, %v2755_v31  ;;  %v2856_v5 = vmul.f32 %v12036_v4, %v12336_v62  ;;  %v12713_v53 = vld [vmem:[#allocation6 + $0x14] ss:$0 sm:$0xff] }
 0x2ad   : > { %v2822_v51 = vadd.f32 %v12402_v18, %v2756_v24  ;;  %v2857_v23 = vmul.f32 %v12036_v4, %v12612_v9  ;;  %v8082_v59 = vpack.c.bf16 %v2173_v58, %v2173_v58  ;;  %v8083_v36 = vpack.c.bf16 %v2174_v14, %v2174_v14 }
 0x2ae   : > { %v2922_v33 = vmul.f32 %v17180_v30, %v2454_v46  ;;  %v2923_v48 = vmul.f32 %v17180_v30, %v2453_v20  ;;  %v2884_v37 = vadd.f32 %v2856_v5, %v2821_v2  ;;  %v2988_v18 = vmul.f32 %v17181_v26, %v2571_v34 }
 0x2af   : > { %v2885_v38 = vadd.f32 %v2857_v23, %v2822_v51  ;;  %v2989_v61 = vmul.f32 %v17181_v26, %v2570_v1  ;;  %2313 = vst [vmem:[#allocation2 + $0xdc] sm:$0xf] %v8082_v59  ;;  %2314 = vst [vmem:[#allocation2 + $0xe8] sm:$0xf] %v8083_v36  ;;  %v2370_v4 = vmul.f32 %v12625_v16, %v12615_v10  ;;  %v2427_v35 = vrot.slane %v12688_v56, 1 }
 0x2b0   : > { %v2371_v3 = vmul.f32 %v12625_v16, %v12688_v56  ;;  %v16592_v46 = vrot.slane %v12691_v49, 1  ;;  %v2950_v52 = vadd.f32 %v2922_v33, %v2884_v37  ;;  %v2544_v20 = vrot.slane %v12688_v56, 2 }
 0x2b1   : > { %v2951_v30 = vadd.f32 %v2923_v48, %v2885_v38  ;;  %v16591_v34 = vrot.slane %v12691_v49, 2  ;;  %v17217_v1 = vrot.slane %v12615_v10, 1  ;;  %v2663_v31 = vmul.f32 %v12713_v53, %v12336_v62  ;;  %v12733_v38 = vld [vmem:[#allocation6 + $0xa] ss:$0 sm:$0xff] }
 0x2b2   : > { %v2451_v26 = vsel %vm420_vm0, %v2427_v35, %v16592_v46  ;;  %v2664_v24 = vmul.f32 %v12713_v53, %v12612_v9  ;;  %v3016_v58 = vadd.f32 %v2988_v18, %v2950_v52  ;;  %v17218_v23 = vrot.slane %v12615_v10, 2  ;;  %17219 = vst [vmem:[#allocation91_spill] sm:$0xff] %v12733_v38 }
 0x2b3   : > { %v2452_v32 = vsel %vm420_vm0, %v17217_v1, %v2427_v35  ;;  %v3017_v14 = vadd.f32 %v2989_v61, %v2951_v30  ;;  %v2488_v51 = vmul.f32 %v12643_v39, %v2451_v26  ;;  %v2568_v5 = vsel %vm538_vm1, %v2544_v20, %v16591_v34  ;;  %v12737_v35 = vld [vmem:[#allocation6 + $0x15] ss:$0 sm:$0xff] }
 0x2b4   : > { %v2487_v2 = vmul.f32 %v12643_v39, %v2452_v32  ;;  %v2569_v59 = vsel %vm538_vm1, %v17218_v23, %v2544_v20  ;;  %v2691_v62 = vadd.f32 %v2663_v31, %v12388_v63  ;;  %v2692_v9 = vadd.f32 %v2664_v24, %v12390_v47  ;;  %v12749_v24 = vld [vmem:[#allocation6 + $0x16] ss:$0 sm:$0xff] }
 0x2b5   : > { %v3051_v36 = vadd.f32 %v12068_v60, %v3016_v58  ;;  %v3052_v33 = vadd.f32 %v12068_v60, %v3017_v14  ;;  %v2516_v37 = vadd.f32 %v2488_v51, %v2371_v3  ;;  %v2604_v18 = vmul.f32 %v12733_v38, %v2569_v59  ;;  %v8524_v3 = vld [vmem:[#allocation2 + $0xd8] ss:$12 sps:$4 sm:$0xff]  }
 0x2b6   : > { %v2515_v48 = vadd.f32 %v2487_v2, %v2370_v4  ;;  %v2605_v61 = vmul.f32 %v12733_v38, %v2568_v5  ;;  %v12740_v52 = vmul.f32 %v12737_v35, %v2452_v32  ;;  %v12743_v63 = vmul.f32 %v12737_v35, %v2451_v26  ;;  %v8521_v47 = vld [vmem:[#allocation2 + $0xdc] ss:$12 sps:$4 sm:$0xff]  }
 0x2b7   : > { %v3079_v30 = vmax.f32 %v3051_v36, 0.0  ;;  %v3080_v20 = vmax.f32 %v3052_v33, 0.0  ;;  %v2757_v60 = vadd.f32 %v2729_v42, %v2691_v62  ;;  %v2758_v4 = vadd.f32 %v2730_v15, %v2692_v9  ;;  %7090 = vmatprep.mubr.bf16.mxu0 %v8521_v47  ;;  %v12759_v15 = vld [vmem:[#allocation6 + $0x20] ss:$0 sm:$0xff]  ;;  %v12765_v36 = vld [vmem:[#allocation6 + $0x21] ss:$0 sm:$0xff] }
 0x2b8   : > { %v12745_v1 = vadd.f32 %v2604_v18, %v2515_v48  ;;  %v12747_v31 = vadd.f32 %v2605_v61, %v2516_v37  ;;  %v12752_v58 = vmul.f32 %v12749_v24, %v2569_v59  ;;  %v12755_v14 = vmul.f32 %v12749_v24, %v2568_v5  ;;  %7091 = vmatmul.mubr.bf16.gmra.mxu0 %v8524_v3 }
 0x2b9   : > { %v3107_v2 = vmin.f32 %v3079_v30, 6.0  ;;  %v3108_v51 = vmin.f32 %v3080_v20, 6.0  ;;  %v2823_v23 = vadd.f32 %v12676_v28, %v2757_v60  ;;  %v2824_v42 = vadd.f32 %v12679_v45, %v2758_v4  ;;  %v12769_v45 = vld [vmem:[#allocation6 + $0x22] ss:$0 sm:$0xff]  ;;  %v17222_v20 = vld [vmem:[#allocation86_spill] sm:$0xff]  ;;  %v17223_v4 = vld [vmem:[#allocation33_spill] sm:$0xff] }
 0x2ba   : > { %17220 = vst [vmem:[#allocation92_spill] sm:$0xff] %v12745_v1  ;;  %17221 = vst [vmem:[#allocation93_spill] sm:$0xff] %v12747_v31  ;;  %v2858_v62 = vmul.f32 %v12759_v15, %v12615_v10  ;;  %v2859_v9 = vmul.f32 %v12759_v15, %v12688_v56  ;;  %v2924_v33 = vmul.f32 %v12765_v36, %v2452_v32  ;;  %v12778_v32 = vld [vmem:[%s9188_s30 + $0x258] sm:$0xff]  ;;  %v12799_v31 = vld [vmem:[#allocation6 + $0xc] ss:$0 sm:$0xff] }
 0x2bb   : > { %v2925_v48 = vmul.f32 %v12765_v36, %v2451_v26  ;;  %v8100_v37 = vpack.c.bf16 %v3107_v2, %v3107_v2  ;;  %v8101_v28 = vpack.c.bf16 %v3108_v51, %v3108_v51  ;;  %v2990_v18 = vmul.f32 %v12769_v45, %v2569_v59  ;;  %v17224_v26 = vld [vmem:[#allocation73_spill] sm:$0xff]  ;;  %v17226_v51 = vld [vmem:[#allocation63_spill] sm:$0xff] }
 0x2bc   : > { %v2991_v61 = vmul.f32 %v12769_v45, %v2568_v5  ;;  %v2886_v47 = vadd.f32 %v2858_v62, %v2823_v23  ;;  %v2887_v30 = vadd.f32 %v2859_v9, %v2824_v42  ;;  %v354_v60 = vmul.f32 %v17222_v20, %v12410_v44  ;;  %v17227_v5 = vld [vmem:[#allocation85_spill] sm:$0xff]  ;;  %v17228_v42 = vld [vmem:[#allocation68_spill] sm:$0xff] }
 0x2bd   : > { %v355_v3 = vmul.f32 %v17222_v20, %v17223_v4  ;;  %3247 = vst [vmem:[#allocation2 + $0x68] sm:$0xf] %v8100_v37  ;;  %3248 = vst [vmem:[#allocation2 + $0x74] sm:$0xf] %v8101_v28  ;;  %v17225_v2 = vrot.slane %v12410_v44, 1  ;;  %v475_v23 = vmul.f32 %v17227_v5, %v17226_v51  ;;  %v17229_v62 = vrot.slane %v12410_v44, 2 }
 0x2be   : > { %v17230_v4 = vld [vmem:[#allocation66_spill] sm:$0xff]  ;;  %v2952_v28 = vadd.f32 %v2924_v33, %v2886_v47  ;;  %v2953_v46 = vadd.f32 %v2925_v48, %v2887_v30  ;;  %v682_v44 = vmul.f32 %v12799_v31, %v12122_v8  ;;  %v683_v51 = vmul.f32 %v12799_v31, %v12439_v11 }
 0x2bf   : > { %v427_v59 = vsel %vm420_vm0, %v17225_v2, %v17224_v26  ;;  %v545_v9 = vsel %vm538_vm1, %v17229_v62, %v17228_v42  ;;  %v593_v34 = vmul.f32 %v12455_v43, %v17230_v4  ;;  %v12795_v37 = vld [vmem:[%s9188_s30 + $0x270] sm:$0xff]  ;;  %v503_v2 = vadd.f32 %v475_v23, %v355_v3 }
 0x2c0   : > { %17231 = vst [vmem:[#allocation33_spill] sm:$0xff] %v12795_v37  ;;  %v474_v20 = vmul.f32 %v17227_v5, %v427_v59  ;;  %v592_v26 = vmul.f32 %v12455_v43, %v545_v9  ;;  %v741_v42 = vrot.slane %v12778_v32, 1  ;;  %v3018_v62 = vadd.f32 %v2990_v18, %v2952_v28  ;;  %v12815_v59 = vld [vmem:[#allocation8 + $0x2] ss:$0 sm:$0xff] }
 0x2c1   : > { %v3019_v4 = vadd.f32 %v2991_v61, %v2953_v46  ;;  %v16595_v33 = vrot.slane %v12795_v37, 1  ;;  %v621_v48 = vadd.f32 %v593_v34, %v503_v2  ;;  %v17232_v47 = vrot.slane %v12442_v12, 1 }
 0x2c2   : > { %v502_v1 = vadd.f32 %v474_v20, %v354_v60  ;;  %v858_v3 = vrot.slane %v12778_v32, 2  ;;  %v16594_v8 = vrot.slane %v12795_v37, 2  ;;  %v3053_v23 = vadd.f32 %v12815_v59, %v3018_v62 }
 0x2c3   : > { %v12811_v30 = vsel %vm420_vm0, %v17232_v47, %v741_v42  ;;  %v3054_v46 = vadd.f32 %v12815_v59, %v3019_v4  ;;  %v12823_v34 = vsel %vm420_vm0, %v741_v42, %v16595_v33  ;;  %v711_v61 = vadd.f32 %v683_v51, %v621_v48  ;;  %v17242_v47 = vld [vmem:[#allocation29_spill] sm:$0xff] }
 0x2c4   : > { %17233 = vst [vmem:[#allocation73_spill] sm:$0xff] %v12811_v30  ;;  %v620_v18 = vadd.f32 %v592_v26, %v502_v1  ;;  %17234 = vst [vmem:[#allocation63_spill] sm:$0xff] %v12823_v34  ;;  %v12827_v20 = vmul.f32 %v12481_v57, %v12811_v30  ;;  %v12831_v60 = vmul.f32 %v12481_v57, %v12823_v34  ;;  %v8523_v9 = vld [vmem:[#allocation2 + $0x68] ss:$12 sps:$4 sm:$0xff]   ;;  %v17238_v26 = vrot.slane %v12442_v12, 2 }
 0x2c5   : > { %v12837_v1 = vsel %vm538_vm1, %v858_v3, %v16594_v8  ;;  %v980_v42 = vmul.f32 %v12461_v17, %v12442_v12  ;;  %v3081_v62 = vmax.f32 %v3053_v23, 0.0  ;;  %v3082_v4 = vmax.f32 %v3054_v46, 0.0  ;;  %8265 = vmatprep.mubr.bf16.mxu1 %v8523_v9  ;;  %v12864_v23 = vld [vmem:[%s9188_s30 + $0x260] sm:$0xff] }
 0x2c6   : > { %17235 = vst [vmem:[#allocation85_spill] sm:$0xff] %v12827_v20  ;;  %17236 = vst [vmem:[#allocation68_spill] sm:$0xff] %v12831_v60  ;;  %v710_v28 = vadd.f32 %v682_v44, %v620_v18  ;;  %v12843_v2 = vsel %vm538_vm1, %v17238_v26, %v858_v3  ;;  %v12847_v51 = vmul.f32 %v12513_v13, %v12837_v1  ;;  %v17243_v26 = vld [vmem:[#allocation42_spill] sm:$0xff]  ;;  %v17249_v60 = vld [vmem:[#allocation60_spill] sm:$0xff]  ;;  %v1610_v57 = vrot.slane %v12864_v23, 2 }
 0x2c7   : > { %17237 = vst [vmem:[#allocation66_spill] sm:$0xff] %v12837_v1  ;;  %17239 = vst [vmem:[#allocation94_spill] sm:$0xff] %v12843_v2  ;;  %v828_v48 = vadd.f32 %v12489_v40, %v711_v61  ;;  %v12854_v44 = vmul.f32 %v12513_v13, %v12843_v2  ;;  %v981_v18 = vmul.f32 %v12461_v17, %v12778_v32  ;;  %v3109_v46 = vmin.f32 %v3081_v62, 6.0  ;;  %v17244_v61 = vld [vmem:[#allocation59_spill] sm:$0xff] }
 0x2c8   : > { %17240 = vst [vmem:[#allocation95_spill] sm:$0xff] %v12847_v51  ;;  %v827_v3 = vadd.f32 %v17242_v47, %v710_v28  ;;  %v1046_v8 = vmul.f32 %v17243_v26, %v12811_v30  ;;  %v1047_v33 = vmul.f32 %v17243_v26, %v12823_v34  ;;  %v3110_v40 = vmin.f32 %v3082_v4, 6.0  ;;  %v12870_v13 = vld [vmem:[%s9188_s30 + $0x278] sm:$0xff] }
 0x2c9   : > { %17241 = vst [vmem:[#allocation96_spill] sm:$0xff] %v12854_v44  ;;  %v945_v51 = vadd.f32 %v17244_v61, %v828_v48  ;;  %v17245_v44 = vld [vmem:[#allocation31_spill] sm:$0xff]  ;;  %17246 = vst [vmem:[#allocation29_spill] sm:$0xff] %v12870_v13  ;;  %v1437_v34 = vmul.f32 %v17249_v60, %v12864_v23  ;;  %v8102_v62 = vpack.c.bf16 %v3109_v46, %v3109_v46  ;;  %v1493_v48 = vrot.slane %v12864_v23, 1  ;;  %v17251_v46 = vld [vmem:[#allocation32_spill] sm:$0xff] }
 0x2ca   : > { %v1112_v9 = vmul.f32 %v17245_v44, %v12843_v2  ;;  %v17247_v28 = vld [vmem:[#allocation75_spill] sm:$0xff]  ;;  %v1113_v17 = vmul.f32 %v17245_v44, %v12837_v1  ;;  %v8103_v4 = vpack.c.bf16 %v3110_v40, %v3110_v40  ;;  %v16608_v2 = vrot.slane %v12870_v13, 1 }
 0x2cb   : > { %v944_v47 = vadd.f32 %v17247_v28, %v827_v3  ;;  %v17248_v30 = vld [vmem:[#allocation71_spill] sm:$0xff]  ;;  %v1009_v26 = vadd.f32 %v981_v18, %v945_v51  ;;  %v16612_v3 = vrot.slane %v12870_v13, 2  ;;  %3249 = vst [vmem:[#allocation2 + $0x80] sm:$0xf] %v8102_v62  ;;  %v1729_v51 = vmul.f32 %v17251_v46, %v12194_v22 }
 0x2cc   : > { %v1436_v20 = vmul.f32 %v17249_v60, %v17248_v30  ;;  %3250 = vst [vmem:[#allocation2 + $0x8c] sm:$0xf] %v8103_v4  ;;  %v17250_v1 = vrot.slane %v17248_v30, 1  ;;  %v1497_v40 = vsel %vm420_vm0, %v1493_v48, %v16608_v2  ;;  %v17253_v22 = vrot.slane %v17248_v30, 2 }
 0x2cd   : > { %v1008_v61 = vadd.f32 %v980_v42, %v944_v47  ;;  %v1075_v28 = vadd.f32 %v1047_v33, %v1009_v26  ;;  %v1730_v42 = vmul.f32 %v17251_v46, %v12524_v7  ;;  %v17252_v47 = vld [vmem:[#allocation30_spill] sm:$0xff]  ;;  %v1614_v33 = vsel %vm538_vm1, %v1610_v57, %v16612_v3  ;;  %v17255_v3 = vld [vmem:[#allocation45_spill] sm:$0xff] }
 0x2ce   : > { %v1498_v60 = vsel %vm420_vm0, %v17250_v1, %v1493_v48  ;;  %v1554_v26 = vmul.f32 %v17252_v47, %v1497_v40  ;;  %v1615_v7 = vsel %vm538_vm1, %v17253_v22, %v1610_v57  ;;  %v17254_v46 = vld [vmem:[#allocation70_spill] sm:$0xff]  ;;  %v12917_v57 = vmul.f32 %v12581_v50, %v1497_v40 }
 0x2cf   : > { %v1074_v18 = vadd.f32 %v1046_v8, %v1008_v61  ;;  %v1553_v62 = vmul.f32 %v17252_v47, %v1498_v60  ;;  %v1141_v1 = vadd.f32 %v1113_v17, %v1075_v28  ;;  %v1671_v8 = vmul.f32 %v12571_v0, %v1614_v33 }
 0x2d0   : > { %v1670_v48 = vmul.f32 %v12571_v0, %v1615_v7  ;;  %v1757_v2 = vadd.f32 %v1729_v51, %v17254_v46  ;;  %v1582_v44 = vadd.f32 %v1554_v26, %v1437_v34  ;;  %v1758_v17 = vadd.f32 %v1730_v42, %v17255_v3  ;;  %v17262_v46 = vld [vmem:[#allocation90_spill] sm:$0xff] }
 0x2d1   : > { %v1140_v4 = vadd.f32 %v1112_v9, %v1074_v18  ;;  %v1581_v61 = vadd.f32 %v1553_v62, %v1436_v20  ;;  %v1176_v13 = vadd.f32 %v12577_v41, %v1141_v1  ;;  %v12911_v28 = vmul.f32 %v12581_v50, %v1498_v60  ;;  %v17259_v1 = vld [vmem:[#allocation88_spill] sm:$0xff] }
 0x2d2   : > { %v1823_v20 = vadd.f32 %v12584_v55, %v1757_v2  ;;  %v12920_v51 = vadd.f32 %v1671_v8, %v1582_v44  ;;  %v1824_v34 = vadd.f32 %v12587_v54, %v1758_v17  ;;  %v12924_v3 = vmul.f32 %v12595_v19, %v1615_v7  ;;  %v17260_v44 = vld [vmem:[#allocation87_spill] sm:$0xff]  ;;  %v17261_v54 = vld [vmem:[#allocation89_spill] sm:$0xff] }
 0x2d3   : > { %v1175_v47 = vadd.f32 %v12577_v41, %v1140_v4  ;;  %v12914_v37 = vadd.f32 %v1670_v48, %v1581_v61  ;;  %v1204_v9 = vmax.f32 %v1176_v13, 0.0  ;;  %v8525_v42 = vld [vmem:[#allocation2 + $0x80] ss:$12 sps:$4 sm:$0xff]   ;;  %v12927_v18 = vmul.f32 %v12595_v19, %v1614_v33 }
 0x2d4   : > { %17257 = vst [vmem:[#allocation75_spill] sm:$0xff] %v12920_v51  ;;  %v1889_v62 = vadd.f32 %v12598_v29, %v1823_v20  ;;  %v1924_v26 = vmul.f32 %v17259_v1, %v17248_v30  ;;  %v1925_v55 = vmul.f32 %v17259_v1, %v12864_v23  ;;  %v1890_v22 = vadd.f32 %v17260_v44, %v1824_v34  ;;  %v12937_v4 = vld [vmem:[%s9188_s30 + $0x1a8] sm:$0xff]  ;;  %v12940_v61 = vld [vmem:[%s9188_s30 + $0x1c0] sm:$0xff] }
 0x2d5   : > { %17256 = vst [vmem:[#allocation59_spill] sm:$0xff] %v12914_v37  ;;  %17258 = vst [vmem:[#allocation71_spill] sm:$0xff] %v12927_v18  ;;  %v1203_v13 = vmax.f32 %v1175_v47, 0.0  ;;  %v1232_v2 = vmin.f32 %v1204_v9, 6.0  ;;  %v1990_v8 = vmul.f32 %v17261_v54, %v1498_v60  ;;  %8266 = vmatmul.mubr.bf16.gmra.mxu1 %v8525_v42  ;;  %v1991_v29 = vmul.f32 %v17261_v54, %v1497_v40 }
 0x2d6   : > { %v1952_v48 = vadd.f32 %v1924_v26, %v1889_v62  ;;  %v2056_v17 = vmul.f32 %v17262_v46, %v1615_v7  ;;  %v2057_v20 = vmul.f32 %v17262_v46, %v1614_v33  ;;  %v1953_v47 = vadd.f32 %v1925_v55, %v1890_v22 }
 0x2d7   : > { %v1231_v51 = vmin.f32 %v1203_v13, 6.0  ;;  %v8057_v37 = vpack.c.bf16 %v1232_v2, %v1232_v2  ;;  %v2372_v9 = vmul.f32 %v12625_v16, %v12691_v49  ;;  %v2373_v60 = vmul.f32 %v12625_v16, %v12937_v4 }
 0x2d8   : > { %v2018_v34 = vadd.f32 %v1990_v8, %v1952_v48  ;;  %v2429_v44 = vrot.slane %v12937_v4, 1  ;;  %v16616_v42 = vrot.slane %v12940_v61, 1  ;;  %v2019_v40 = vadd.f32 %v1991_v29, %v1953_v47 }
 0x2d9   : > { %v8056_v62 = vpack.c.bf16 %v1231_v51, %v1231_v51  ;;  %1372 = vst [vmem:[#allocation2 + $0xfc] sm:$0xf] %v8057_v37  ;;  %v2546_v7 = vrot.slane %v12937_v4, 2  ;;  %v2547_v33 = vrot.slane %v12940_v61, 2  ;;  %v17263_v13 = vrot.slane %v12691_v49, 1 }
 0x2da   : > { %v2084_v26 = vadd.f32 %v2056_v17, %v2018_v34  ;;  %v2449_v55 = vsel %vm420_vm0, %v2429_v44, %v16616_v42  ;;  %v2665_v51 = vmul.f32 %v12713_v53, %v12615_v10  ;;  %v2085_v37 = vadd.f32 %v2057_v20, %v2019_v40 }
 0x2db   : > { %v2450_v2 = vsel %vm420_vm0, %v17263_v13, %v2429_v44  ;;  %1371 = vst [vmem:[#allocation2 + $0xf0] sm:$0xf] %v8056_v62  ;;  %v2490_v8 = vmul.f32 %v12643_v39, %v2449_v55  ;;  %v2566_v48 = vsel %vm538_vm1, %v2546_v7, %v2547_v33  ;;  %v17264_v17 = vrot.slane %v12691_v49, 2 }
 0x2dc   : > { %v2489_v22 = vmul.f32 %v12643_v39, %v2450_v2  ;;  %v2119_v29 = vadd.f32 %v12659_v27, %v2084_v26  ;;  %v2607_v34 = vmul.f32 %v12733_v38, %v2566_v48  ;;  %v2666_v10 = vmul.f32 %v12713_v53, %v12688_v56 }
 0x2dd   : > { %v2567_v47 = vsel %vm538_vm1, %v17264_v17, %v2546_v7  ;;  %v2120_v20 = vadd.f32 %v12659_v27, %v2085_v37  ;;  %v2518_v62 = vadd.f32 %v2490_v8, %v2373_v60  ;;  %v2693_v42 = vadd.f32 %v2665_v51, %v12669_v25 }
 0x2de   : > { %v2517_v44 = vadd.f32 %v2489_v22, %v2372_v9  ;;  %v2606_v40 = vmul.f32 %v12733_v38, %v2567_v47  ;;  %v2147_v13 = vmax.f32 %v2119_v29, 0.0  ;;  %v2694_v26 = vadd.f32 %v2666_v10, %v12671_v21 }
 0x2df   : > { %v2733_v46 = vmul.f32 %v12737_v35, %v2450_v2  ;;  %v2148_v18 = vmax.f32 %v2120_v20, 0.0  ;;  %v12982_v17 = vadd.f32 %v2607_v34, %v2518_v62  ;;  %v2734_v56 = vmul.f32 %v12737_v35, %v2449_v55 }
 0x2e0   : > { %v12980_v7 = vadd.f32 %v2606_v40, %v2517_v44  ;;  %v2175_v9 = vmin.f32 %v2147_v13, 6.0  ;;  %v2759_v60 = vadd.f32 %v12740_v52, %v2693_v42  ;;  %v2760_v37 = vadd.f32 %v12743_v63, %v2694_v26  ;;  %v12997_v42 = vld [vmem:[%s9188_s30 + $0x1d8] sm:$0xff]  ;;  %v13000_v63 = vld [vmem:[%s9188_s30 + $0x1f0] sm:$0xff] }
 0x2e1   : > { %17266 = vst [vmem:[#allocation70_spill] sm:$0xff] %v12982_v17  ;;  %v2799_v25 = vmul.f32 %v12749_v24, %v2567_v47  ;;  %v2176_v51 = vmin.f32 %v2148_v18, 6.0  ;;  %v2800_v21 = vmul.f32 %v12749_v24, %v2566_v48  ;;  %v2860_v22 = vmul.f32 %v12759_v15, %v12691_v49 }
 0x2e2   : > { %17265 = vst [vmem:[#allocation32_spill] sm:$0xff] %v12980_v7  ;;  %v2861_v8 = vmul.f32 %v12759_v15, %v12937_v4  ;;  %v8084_v29 = vpack.c.bf16 %v2175_v9, %v2175_v9  ;;  %v2825_v34 = vadd.f32 %v12752_v58, %v2759_v60  ;;  %v2826_v10 = vadd.f32 %v12755_v14, %v2760_v37 }
 0x2e3   : > { %v2926_v52 = vmul.f32 %v12765_v36, %v2450_v2  ;;  %v8085_v18 = vpack.c.bf16 %v2176_v51, %v2176_v51  ;;  %v2927_v20 = vmul.f32 %v12765_v36, %v2449_v55  ;;  %v2992_v44 = vmul.f32 %v12769_v45, %v2567_v47 }
 0x2e4   : > { %v2993_v62 = vmul.f32 %v12769_v45, %v2566_v48  ;;  %2315 = vst [vmem:[#allocation2 + $0xf4] sm:$0xf] %v8084_v29  ;;  %v2888_v40 = vadd.f32 %v2860_v22, %v2825_v34  ;;  %v2889_v13 = vadd.f32 %v2861_v8, %v2826_v10  ;;  %v2374_v58 = vmul.f32 %v12625_v16, %v12940_v61 }
 0x2e5   : > { %v2375_v14 = vmul.f32 %v12625_v16, %v12997_v42  ;;  %2316 = vst [vmem:[#allocation2 + $0x100] sm:$0xf] %v8085_v18  ;;  %v2431_v2 = vrot.slane %v12997_v42, 1  ;;  %v16618_v26 = vrot.slane %v13000_v63, 1  ;;  %v2548_v55 = vrot.slane %v12997_v42, 2 }
 0x2e6   : > { %v16619_v47 = vrot.slane %v13000_v63, 2  ;;  %v2954_v9 = vadd.f32 %v2926_v52, %v2888_v40  ;;  %v2955_v48 = vadd.f32 %v2927_v20, %v2889_v13  ;;  %v2667_v60 = vmul.f32 %v12713_v53, %v12691_v49  ;;  %v17268_v40 = vld [vmem:[#allocation92_spill] sm:$0xff] }
 0x2e7   : > { %v2668_v37 = vmul.f32 %v12713_v53, %v12937_v4  ;;  %v2447_v51 = vsel %vm420_vm0, %v2431_v2, %v16618_v26  ;;  %v17267_v22 = vrot.slane %v12940_v61, 1  ;;  %v2565_v49 = vsel %vm538_vm1, %v2547_v33, %v2548_v55 }
 0x2e8   : > { %v2564_v29 = vsel %vm538_vm1, %v2548_v55, %v16619_v47  ;;  %v3020_v34 = vadd.f32 %v2992_v44, %v2954_v9  ;;  %v3021_v4 = vadd.f32 %v2993_v62, %v2955_v48  ;;  %v2492_v52 = vmul.f32 %v12643_v39, %v2447_v51 }
 0x2e9   : > { %v2448_v8 = vsel %vm420_vm0, %v17267_v22, %v2431_v2  ;;  %v2608_v18 = vmul.f32 %v12733_v38, %v2565_v49  ;;  %v2609_v20 = vmul.f32 %v12733_v38, %v2564_v29  ;;  %v2695_v13 = vadd.f32 %v2667_v60, %v17268_v40  ;;  %v17269_v2 = vld [vmem:[#allocation93_spill] sm:$0xff] }
 0x2ea   : > { %v2491_v10 = vmul.f32 %v12643_v39, %v2448_v8  ;;  %v2696_v22 = vadd.f32 %v2668_v37, %v17269_v2  ;;  %v3055_v26 = vadd.f32 %v12815_v59, %v3020_v34  ;;  %v3056_v47 = vadd.f32 %v12815_v59, %v3021_v4  ;;  %v8529_v34 = vld [vmem:[#allocation2 + $0xf0] ss:$12 sps:$4 sm:$0xff]  }
 0x2eb   : > { %v2520_v33 = vadd.f32 %v2492_v52, %v2375_v14  ;;  %v13040_v44 = vmul.f32 %v12737_v35, %v2448_v8  ;;  %v13043_v62 = vmul.f32 %v12737_v35, %v2447_v51  ;;  %v2761_v55 = vadd.f32 %v2733_v46, %v2695_v13  ;;  %v8678_v40 = vld [vmem:[%s9188_s30 + $0x210] sm:$0xff] }
 0x2ec   : > { %v2519_v17 = vadd.f32 %v2491_v10, %v2374_v58  ;;  %v2762_v9 = vadd.f32 %v2734_v56, %v2696_v22  ;;  %v8526_v48 = vld [vmem:[#allocation2 + $0xf4] ss:$12 sps:$4 sm:$0xff]   ;;  %v3083_v7 = vmax.f32 %v3055_v26, 0.0  ;;  %v3084_v38 = vmax.f32 %v3056_v47, 0.0 }
 0x2ed   : > { %v13047_v37 = vadd.f32 %v2609_v20, %v2520_v33  ;;  %v13050_v4 = vmul.f32 %v12749_v24, %v2565_v49  ;;  %v13053_v58 = vmul.f32 %v12749_v24, %v2564_v29  ;;  %v2827_v14 = vadd.f32 %v2799_v25, %v2761_v55  ;;  %7098 = vmatprep.mubr.bf16.mxu0 %v8526_v48  ;;  %v17270_v13 = vld [vmem:[#allocation86_spill] sm:$0xff] }
 0x2ee   : > { %v13045_v60 = vadd.f32 %v2608_v18, %v2519_v17  ;;  %v2828_v10 = vadd.f32 %v2800_v21, %v2762_v9  ;;  %v3111_v46 = vmin.f32 %v3083_v7, 6.0  ;;  %v3112_v56 = vmin.f32 %v3084_v38, 6.0  ;;  %7099 = vmatmul.mubr.bf16.gmra.mxu0 %v8529_v34  ;;  %v17271_v33 = vld [vmem:[#allocation78_spill] sm:$0xff]  ;;  %v13072_v9 = vld [vmem:[%s9188_s30 + $0x288] sm:$0xff] }
 0x2ef   : > { %v2862_v26 = vmul.f32 %v12759_v15, %v12940_v61  ;;  %v2863_v17 = vmul.f32 %v12759_v15, %v12997_v42  ;;  %v2928_v47 = vmul.f32 %v12765_v36, %v2448_v8  ;;  %v2929_v52 = vmul.f32 %v12765_v36, %v2447_v51  ;;  %v17272_v8 = vld [vmem:[#allocation77_spill] sm:$0xff]  ;;  %v17273_v34 = vld [vmem:[#allocation76_spill] sm:$0xff] }
 0x2f0   : > { %v2994_v25 = vmul.f32 %v12769_v45, %v2565_v49  ;;  %v2995_v21 = vmul.f32 %v12769_v45, %v2564_v29  ;;  %v8104_v18 = vpack.c.bf16 %v3111_v46, %v3111_v46  ;;  %v8105_v7 = vpack.c.bf16 %v3112_v56, %v3112_v56  ;;  %v13075_v49 = vld [vmem:[%s9188_s30 + $0x2a0] sm:$0xff] }
 0x2f1   : > { %v2890_v38 = vadd.f32 %v2862_v26, %v2827_v14  ;;  %v2891_v20 = vadd.f32 %v2863_v17, %v2828_v10  ;;  %v356_v2 = vmul.f32 %v8678_v40, %v17270_v13  ;;  %v357_v22 = vmul.f32 %v17270_v13, %v12439_v11  ;;  %v17274_v10 = vld [vmem:[#allocation80_spill] sm:$0xff] }
 0x2f2   : > { %v476_v55 = vmul.f32 %v17227_v5, %v17271_v33  ;;  %v477_v51 = vmul.f32 %v17227_v5, %v17272_v8  ;;  %3251 = vst [vmem:[#allocation2 + $0x98] sm:$0xf] %v8104_v18  ;;  %3252 = vst [vmem:[#allocation2 + $0xa4] sm:$0xf] %v8105_v7  ;;  %v594_v14 = vmul.f32 %v12455_v43, %v17273_v34  ;;  %v13086_v18 = vrot.slane %v13072_v9, 1 }
 0x2f3   : > { %v2956_v29 = vadd.f32 %v2928_v47, %v2890_v38  ;;  %v2957_v48 = vadd.f32 %v2929_v52, %v2891_v20  ;;  %v595_v11 = vmul.f32 %v12455_v43, %v17274_v10  ;;  %v684_v26 = vmul.f32 %v12799_v31, %v12442_v12 }
 0x2f4   : > { %v504_v46 = vadd.f32 %v476_v55, %v356_v2  ;;  %v505_v56 = vadd.f32 %v477_v51, %v357_v22  ;;  %v685_v5 = vmul.f32 %v12799_v31, %v12778_v32  ;;  %17275 = vst [vmem:[#allocation45_spill] sm:$0xff] %v13086_v18  ;;  %v16623_v47 = vrot.slane %v13075_v49, 1  ;;  %v17280_v55 = vld [vmem:[#allocation79_spill] sm:$0xff] }
 0x2f5   : > { %v3022_v17 = vadd.f32 %v2994_v25, %v2956_v29  ;;  %v3023_v40 = vadd.f32 %v2995_v21, %v2957_v48  ;;  %v13090_v38 = vrot.slane %v13072_v9, 2  ;;  %v16622_v43 = vrot.slane %v13075_v49, 2  ;;  %v17277_v21 = vld [vmem:[#allocation33_spill] sm:$0xff] }
 0x2f6   : > { %v622_v52 = vadd.f32 %v594_v14, %v504_v46  ;;  %v623_v7 = vadd.f32 %v595_v11, %v505_v56  ;;  %v747_v25 = vsel %vm420_vm0, %v13086_v18, %v16623_v47  ;;  %v17278_v13 = vrot.slane %v17277_v21, 1  ;;  %v17284_v46 = vld [vmem:[#allocation85_spill] sm:$0xff] }
 0x2f7   : > { %17276 = vst [vmem:[#allocation88_spill] sm:$0xff] %v13090_v38  ;;  %v3057_v20 = vadd.f32 %v12815_v59, %v3022_v17  ;;  %v3058_v12 = vadd.f32 %v12815_v59, %v3023_v40  ;;  %v13112_v51 = vmul.f32 %v17280_v55, %v747_v25  ;;  %v864_v34 = vsel %vm538_vm1, %v13090_v38, %v16622_v43  ;;  %v17286_v17 = vld [vmem:[#allocation64_spill] sm:$0xff]  ;;  %v17292_v43 = vld [vmem:[#allocation42_spill] sm:$0xff] }
 0x2f8   : > { %v13105_v2 = vsel %vm420_vm0, %v17278_v13, %v13086_v18  ;;  %v712_v22 = vadd.f32 %v684_v26, %v622_v52  ;;  %v713_v33 = vadd.f32 %v685_v5, %v623_v7  ;;  %v17282_v14 = vrot.slane %v17277_v21, 2  ;;  %v17285_v26 = vld [vmem:[#allocation68_spill] sm:$0xff]  ;;  %v17293_v18 = vld [vmem:[#allocation31_spill] sm:$0xff] }
 0x2f9   : > { %17279 = vst [vmem:[#allocation87_spill] sm:$0xff] %v13105_v2  ;;  %v13109_v8 = vmul.f32 %v17280_v55, %v13105_v2  ;;  %17281 = vst [vmem:[#allocation89_spill] sm:$0xff] %v13112_v51  ;;  %v3085_v29 = vmax.f32 %v3057_v20, 0.0  ;;  %v3086_v48 = vmax.f32 %v3058_v12, 0.0  ;;  %v8528_v11 = vld [vmem:[#allocation2 + $0x98] ss:$12 sps:$4 sm:$0xff]   ;;  %v13133_v52 = vmul.f32 %v17286_v17, %v864_v34 }
 0x2fa   : > { %v13124_v10 = vsel %vm538_vm1, %v17282_v14, %v13090_v38  ;;  %v829_v56 = vadd.f32 %v17284_v46, %v712_v22  ;;  %v830_v5 = vadd.f32 %v17285_v26, %v713_v33  ;;  %v17289_v12 = vld [vmem:[#allocation55_spill] sm:$0xff]  ;;  %v13140_v14 = vld [vmem:[%s9188_s30 + $0x290] sm:$0xff]  ;;  %8269 = vmatprep.mubr.bf16.mxu1 %v8528_v11  ;;  %v17290_v22 = vld [vmem:[#allocation96_spill] sm:$0xff]  ;;  %v1048_v47 = vmul.f32 %v17292_v43, %v13105_v2 }
 0x2fb   : > { %17283 = vst [vmem:[#allocation92_spill] sm:$0xff] %v13124_v10  ;;  %v13130_v40 = vmul.f32 %v17286_v17, %v13124_v10  ;;  %17288 = vst [vmem:[#allocation86_spill] sm:$0xff] %v13133_v52  ;;  %v3113_v7 = vmin.f32 %v3085_v29, 6.0  ;;  %v3114_v20 = vmin.f32 %v3086_v48, 6.0  ;;  %v982_v13 = vmul.f32 %v17289_v12, %v17277_v21  ;;  %v17291_v46 = vld [vmem:[#allocation95_spill] sm:$0xff]  ;;  %v13148_v29 = vld [vmem:[%s9188_s30 + $0x2a8] sm:$0xff] }
 0x2fc   : > { %v983_v55 = vmul.f32 %v17289_v12, %v13072_v9  ;;  %v946_v33 = vadd.f32 %v17290_v22, %v829_v56  ;;  %v947_v26 = vadd.f32 %v17291_v46, %v830_v5  ;;  %v1049_v17 = vmul.f32 %v17292_v43, %v747_v25  ;;  %v17294_v51 = vld [vmem:[#allocation29_spill] sm:$0xff]  ;;  %v17295_v56 = vld [vmem:[#allocation60_spill] sm:$0xff] }
 0x2fd   : > { %17287 = vst [vmem:[#allocation93_spill] sm:$0xff] %v13130_v40  ;;  %v8106_v48 = vpack.c.bf16 %v3113_v7, %v3113_v7  ;;  %v8107_v38 = vpack.c.bf16 %v3114_v20, %v3114_v20  ;;  %v1114_v52 = vmul.f32 %v17293_v18, %v13124_v10  ;;  %v1115_v12 = vmul.f32 %v17293_v18, %v864_v34  ;;  %v13157_v25 = vld [vmem:[#allocation6 + $0x10] ss:$0 sm:$0xff] }
 0x2fe   : > { %v1010_v40 = vadd.f32 %v982_v13, %v946_v33  ;;  %v1011_v11 = vadd.f32 %v983_v55, %v947_v26  ;;  %v1438_v22 = vmul.f32 %v17295_v56, %v17294_v51  ;;  %v1495_v5 = vrot.slane %v13140_v14, 1  ;;  %17296 = vst [vmem:[#allocation78_spill] sm:$0xff] %v13157_v25 }
 0x2ff   : > { %3253 = vst [vmem:[#allocation2 + $0xb0] sm:$0xf] %v8106_v48  ;;  %3254 = vst [vmem:[#allocation2 + $0xbc] sm:$0xf] %v8107_v38  ;;  %v1612_v43 = vrot.slane %v13140_v14, 2  ;;  %v1731_v7 = vmul.f32 %v13157_v25, %v17248_v30  ;;  %v1732_v20 = vmul.f32 %v13157_v25, %v12864_v23  ;;  %v17297_v55 = vrot.slane %v17294_v51, 1 }
 0x300   : > { %v1076_v34 = vadd.f32 %v1048_v47, %v1010_v40  ;;  %v1077_v13 = vadd.f32 %v1049_v17, %v1011_v11  ;;  %v17298_v38 = vld [vmem:[#allocation23_spill] sm:$0xff]  ;;  %v17300_v48 = vld [vmem:[#allocation30_spill] sm:$0xff]  ;;  %v17302_v23 = vrot.slane %v17294_v51, 2  ;;  %v17307_v25 = vrot.slane %v13148_v29, 1 }
 0x301   : > { %v1496_v33 = vsel %vm420_vm0, %v17297_v55, %v1495_v5  ;;  %v17299_v46 = vrot.slane %v17298_v38, 1  ;;  %v17303_v40 = vrot.slane %v17298_v38, 2 }
 0x302   : > { %v1555_v56 = vmul.f32 %v17300_v48, %v1496_v33  ;;  %v1613_v47 = vsel %vm538_vm1, %v17302_v23, %v1612_v43  ;;  %v1142_v11 = vadd.f32 %v1114_v52, %v1076_v34  ;;  %v1143_v55 = vadd.f32 %v1115_v12, %v1077_v13 }
 0x303   : > { %v1523_v26 = vsel %vm420_vm0, %v1495_v5, %v17299_v46  ;;  %v1640_v17 = vsel %vm538_vm1, %v1612_v43, %v17303_v40  ;;  %v1672_v18 = vmul.f32 %v12571_v0, %v1613_v47  ;;  %v1768_v38 = vsel %vm420_vm0, %v1495_v5, %v17307_v25 }
 0x304   : > { %v13174_v30 = vmul.f32 %v17300_v48, %v1523_v26  ;;  %v13186_v46 = vmul.f32 %v12571_v0, %v1640_v17  ;;  %v1583_v10 = vadd.f32 %v1555_v56, %v1438_v22  ;;  %v17305_v26 = vld [vmem:[#allocation67_spill] sm:$0xff]  ;;  %v1177_v23 = vadd.f32 %v12577_v41, %v1142_v11 }
 0x305   : > { %v1759_v48 = vadd.f32 %v1731_v7, %v17305_v26  ;;  %v1178_v52 = vadd.f32 %v12577_v41, %v1143_v55  ;;  %v13197_v12 = vmul.f32 %v12581_v50, %v1496_v33  ;;  %v13200_v0 = vmul.f32 %v12581_v50, %v1768_v38  ;;  %v13230_v11 = vld [vmem:[%s9188_s30 + $0x220] sm:$0xff] }
 0x306   : > { %17301 = vst [vmem:[#allocation77_spill] sm:$0xff] %v13174_v30  ;;  %17304 = vst [vmem:[#allocation76_spill] sm:$0xff] %v13186_v46  ;;  %v17306_v30 = vld [vmem:[#allocation61_spill] sm:$0xff]  ;;  %v13202_v22 = vadd.f32 %v1672_v18, %v1583_v10  ;;  %v16633_v34 = vrot.slane %v13148_v29, 2  ;;  %v13208_v25 = vmul.f32 %v12595_v19, %v1613_v47  ;;  %v1926_v41 = vmul.f32 %v17259_v1, %v17294_v51  ;;  %v17326_v46 = vld [vmem:[#allocation59_spill] sm:$0xff] }
 0x307   : > { %v1760_v2 = vadd.f32 %v1732_v20, %v17306_v30  ;;  %v1825_v7 = vadd.f32 %v12911_v28, %v1759_v48  ;;  %v8530_v5 = vld [vmem:[#allocation2 + $0xb0] ss:$12 sps:$4 sm:$0xff]   ;;  %v1927_v50 = vmul.f32 %v17259_v1, %v13140_v14  ;;  %v1992_v10 = vmul.f32 %v17261_v54, %v1496_v33 }
 0x308   : > { %v1205_v18 = vmax.f32 %v1177_v23, 0.0  ;;  %v1206_v13 = vmax.f32 %v1178_v52, 0.0  ;;  %v1834_v28 = vsel %vm538_vm1, %v1612_v43, %v16633_v34  ;;  %8270 = vmatmul.mubr.bf16.gmra.mxu1 %v8530_v5  ;;  %v17308_v30 = vld [vmem:[#allocation71_spill] sm:$0xff]  ;;  %v1993_v1 = vmul.f32 %v17261_v54, %v1768_v38  ;;  %v17309_v33 = vld [vmem:[#allocation90_spill] sm:$0xff] }
 0x309   : > { %v1826_v20 = vadd.f32 %v12917_v57, %v1760_v2  ;;  %v1891_v57 = vadd.f32 %v12924_v3, %v1825_v7  ;;  %v13221_v2 = vld [vmem:[%s9188_s30 + $0x208] sm:$0xff]  ;;  %v13224_v56 = vmul.f32 %v12595_v19, %v1834_v28  ;;  %v2058_v17 = vmul.f32 %v17309_v33, %v1613_v47 }
 0x30a   : > { %v1233_v55 = vmin.f32 %v1205_v18, 6.0  ;;  %v1234_v26 = vmin.f32 %v1206_v13, 6.0  ;;  %v2059_v43 = vmul.f32 %v17309_v33, %v1834_v28  ;;  %v2376_v23 = vmul.f32 %v12625_v16, %v13000_v63 }
 0x30b   : > { %v1892_v40 = vadd.f32 %v17308_v30, %v1826_v20  ;;  %v1954_v48 = vadd.f32 %v1926_v41, %v1891_v57  ;;  %v2377_v19 = vmul.f32 %v12625_v16, %v13221_v2  ;;  %v2433_v52 = vrot.slane %v13221_v2, 1 }
 0x30c   : > { %v8058_v7 = vpack.c.bf16 %v1233_v55, %v1233_v55  ;;  %v8059_v54 = vpack.c.bf16 %v1234_v26, %v1234_v26  ;;  %v2434_v47 = vrot.slane %v13230_v11, 1  ;;  %v17310_v5 = vrot.slane %v13000_v63, 1  ;;  %v17312_v26 = vld [vmem:[#allocation91_spill] sm:$0xff] }
 0x30d   : > { %v1955_v3 = vadd.f32 %v1927_v50, %v1892_v40  ;;  %v2020_v38 = vadd.f32 %v1992_v10, %v1954_v48  ;;  %v2550_v50 = vrot.slane %v13221_v2, 2  ;;  %v2551_v18 = vrot.slane %v13230_v11, 2 }
 0x30e   : > { %v2446_v41 = vsel %vm420_vm0, %v17310_v5, %v2433_v52  ;;  %1373 = vst [vmem:[#allocation2 + $0x108] sm:$0xf] %v8058_v7  ;;  %1374 = vst [vmem:[#allocation2 + $0x114] sm:$0xf] %v8059_v54  ;;  %v2445_v13 = vsel %vm420_vm0, %v2433_v52, %v2434_v47  ;;  %v2669_v28 = vmul.f32 %v12713_v53, %v12940_v61  ;;  %v17313_v52 = vld [vmem:[#allocation32_spill] sm:$0xff] }
 0x30f   : > { %v2021_v20 = vadd.f32 %v1993_v1, %v1955_v3  ;;  %v2086_v16 = vadd.f32 %v2058_v17, %v2020_v38  ;;  %v2493_v10 = vmul.f32 %v12643_v39, %v2446_v41  ;;  %v2494_v30 = vmul.f32 %v12643_v39, %v2445_v13 }
 0x310   : > { %v2562_v40 = vsel %vm538_vm1, %v2550_v50, %v2551_v18  ;;  %v17311_v1 = vrot.slane %v13000_v63, 2  ;;  %v2670_v3 = vmul.f32 %v12713_v53, %v12997_v42  ;;  %v2697_v7 = vadd.f32 %v2669_v28, %v17313_v52 }
 0x311   : > { %v2087_v57 = vadd.f32 %v2059_v43, %v2021_v20  ;;  %v2121_v17 = vadd.f32 %v12659_v27, %v2086_v16  ;;  %v2521_v55 = vadd.f32 %v2493_v10, %v2376_v23  ;;  %v2611_v61 = vmul.f32 %v17312_v26, %v2562_v40  ;;  %v17314_v16 = vld [vmem:[#allocation70_spill] sm:$0xff] }
 0x312   : > { %v2563_v33 = vsel %vm538_vm1, %v17311_v1, %v2550_v50  ;;  %v2522_v39 = vadd.f32 %v2494_v30, %v2377_v19  ;;  %v2737_v20 = vmul.f32 %v12737_v35, %v2446_v41  ;;  %v2738_v23 = vmul.f32 %v12737_v35, %v2445_v13 }
 0x313   : > { %v2610_v48 = vmul.f32 %v17312_v26, %v2563_v33  ;;  %v2122_v43 = vadd.f32 %v12659_v27, %v2087_v57  ;;  %v2149_v54 = vmax.f32 %v2121_v17, 0.0  ;;  %v2698_v27 = vadd.f32 %v2670_v3, %v17314_v16 }
 0x314   : > { %v13270_v50 = vadd.f32 %v2611_v61, %v2522_v39  ;;  %v2763_v19 = vadd.f32 %v13040_v44, %v2697_v7  ;;  %v2803_v42 = vmul.f32 %v12749_v24, %v2563_v33  ;;  %v2804_v28 = vmul.f32 %v12749_v24, %v2562_v40  ;;  %v13286_v61 = vld [vmem:[%s9188_s30 + $0x250] sm:$0xff] }
 0x315   : > { %v13266_v38 = vadd.f32 %v2610_v48, %v2521_v55  ;;  %v2150_v5 = vmax.f32 %v2122_v43, 0.0  ;;  %v2177_v10 = vmin.f32 %v2149_v54, 6.0  ;;  %v2864_v57 = vmul.f32 %v12759_v15, %v13000_v63  ;;  %v13283_v48 = vld [vmem:[%s9188_s30 + $0x238] sm:$0xff]  ;;  %v13293_v54 = vld [vmem:[#allocation6 + $0x8] ss:$0 sm:$0xff] }
 0x316   : > { %v2764_v1 = vadd.f32 %v13043_v62, %v2698_v27  ;;  %v2829_v17 = vadd.f32 %v13050_v4, %v2763_v19  ;;  %v2865_v55 = vmul.f32 %v12759_v15, %v13221_v2  ;;  %v2930_v43 = vmul.f32 %v12765_v36, %v2446_v41  ;;  %17315 = vst [vmem:[#allocation80_spill] sm:$0xff] %v13293_v54 }
 0x317   : > { %v2178_v30 = vmin.f32 %v2150_v5, 6.0  ;;  %v8086_v44 = vpack.c.bf16 %v2177_v10, %v2177_v10  ;;  %v2931_v39 = vmul.f32 %v12765_v36, %v2445_v13  ;;  %v2996_v3 = vmul.f32 %v12769_v45, %v2563_v33 }
 0x318   : > { %v2830_v7 = vadd.f32 %v13053_v58, %v2764_v1  ;;  %v2892_v62 = vadd.f32 %v2864_v57, %v2829_v17  ;;  %v2997_v4 = vmul.f32 %v12769_v45, %v2562_v40  ;;  %v2378_v5 = vmul.f32 %v13293_v54, %v13230_v11 }
 0x319   : > { %v8087_v52 = vpack.c.bf16 %v2178_v30, %v2178_v30  ;;  %2317 = vst [vmem:[#allocation2 + $0x10c] sm:$0xf] %v8086_v44  ;;  %v2379_v16 = vmul.f32 %v13293_v54, %v13283_v48  ;;  %v2435_v41 = vrot.slane %v13283_v48, 1  ;;  %v16632_v13 = vrot.slane %v13286_v61, 1 }
 0x31a   : > { %v2893_v33 = vadd.f32 %v2865_v55, %v2830_v7  ;;  %v2958_v27 = vadd.f32 %v2930_v43, %v2892_v62  ;;  %v2552_v58 = vrot.slane %v13283_v48, 2  ;;  %v16631_v40 = vrot.slane %v13286_v61, 2  ;;  %v13313_v55 = vld [vmem:[#allocation6 + $0x9] ss:$0 sm:$0xff] }
 0x31b   : > { %2318 = vst [vmem:[#allocation2 + $0x118] sm:$0xf] %v8087_v52  ;;  %v2443_v19 = vsel %vm420_vm0, %v2435_v41, %v16632_v13  ;;  %v2444_v10 = vsel %vm420_vm0, %v2434_v47, %v2435_v41  ;;  %v2671_v57 = vmul.f32 %v12713_v53, %v13000_v63  ;;  %v2672_v30 = vmul.f32 %v12713_v53, %v13221_v2 }
 0x31c   : > { %v2959_v1 = vadd.f32 %v2931_v39, %v2893_v33  ;;  %v3024_v17 = vadd.f32 %v2996_v3, %v2958_v27  ;;  %v2495_v44 = vmul.f32 %v13313_v55, %v2444_v10  ;;  %v2496_v43 = vmul.f32 %v13313_v55, %v2443_v19 }
 0x31d   : > { %v2560_v52 = vsel %vm538_vm1, %v2552_v58, %v16631_v40  ;;  %v2561_v63 = vsel %vm538_vm1, %v2551_v18, %v2552_v58  ;;  %v2699_v53 = vadd.f32 %v2671_v57, %v13045_v60  ;;  %v2700_v2 = vadd.f32 %v2672_v30, %v13047_v37  ;;  %v8534_v57 = vld [vmem:[#allocation2 + $0x108] ss:$12 sps:$4 sm:$0xff]  }
 0x31e   : > { %v3025_v47 = vadd.f32 %v2997_v4, %v2959_v1  ;;  %v3059_v39 = vadd.f32 %v12815_v59, %v3024_v17  ;;  %v2523_v3 = vadd.f32 %v2495_v44, %v2378_v5  ;;  %v2524_v7 = vadd.f32 %v2496_v43, %v2379_v16 }
 0x31f   : > { %v2612_v62 = vmul.f32 %v17312_v26, %v2561_v63  ;;  %v2613_v41 = vmul.f32 %v17312_v26, %v2560_v52  ;;  %v13331_v33 = vmul.f32 %v12737_v35, %v2444_v10  ;;  %v13334_v27 = vmul.f32 %v12737_v35, %v2443_v19 }
 0x320   : > { %v3060_v18 = vadd.f32 %v12815_v59, %v3025_v47  ;;  %v3087_v60 = vmax.f32 %v3059_v39, 0.0  ;;  %v2765_v58 = vadd.f32 %v2737_v20, %v2699_v53  ;;  %v2766_v37 = vadd.f32 %v2738_v23, %v2700_v2 }
 0x321   : > { %v13337_v30 = vadd.f32 %v2612_v62, %v2523_v3  ;;  %v13339_v5 = vadd.f32 %v2613_v41, %v2524_v7  ;;  %v13342_v16 = vmul.f32 %v12749_v24, %v2561_v63  ;;  %v13345_v26 = vmul.f32 %v12749_v24, %v2560_v52  ;;  %v13355_v3 = vld [vmem:[#allocation6] ss:$0 sm:$0xff]  ;;  %v17316_v41 = vld [vmem:[#allocation73_spill] sm:$0xff] }
 0x322   : > { %v8531_v4 = vld [vmem:[#allocation2 + $0x10c] ss:$12 sps:$4 sm:$0xff]   ;;  %v3088_v1 = vmax.f32 %v3060_v18, 0.0  ;;  %v3115_v35 = vmin.f32 %v3087_v60, 6.0  ;;  %v2831_v17 = vadd.f32 %v2803_v42, %v2765_v58  ;;  %v2832_v44 = vadd.f32 %v2804_v28, %v2766_v37  ;;  %v8683_v7 = vld [vmem:[%s9188_s30 + $0x240] sm:$0xff] }
 0x323   : > { %7106 = vmatprep.mubr.bf16.mxu0 %v8531_v4  ;;  %v2866_v20 = vmul.f32 %v12759_v15, %v13230_v11  ;;  %v2867_v23 = vmul.f32 %v12759_v15, %v13283_v48  ;;  %v2932_v43 = vmul.f32 %v12765_v36, %v2444_v10  ;;  %v2933_v53 = vmul.f32 %v12765_v36, %v2443_v19  ;;  %v13362_v10 = vld [vmem:[%s9188_s30 + $0x2b8] sm:$0xff]  ;;  %v13364_v19 = vld [vmem:[#allocation6 + $0x1] ss:$0 sm:$0xff]  ;;  %v13370_v18 = vld [vmem:[#allocation6 + $0x2] ss:$0 sm:$0xff] }
 0x324   : > { %v3116_v2 = vmin.f32 %v3088_v1, 6.0  ;;  %v8108_v24 = vpack.c.bf16 %v3115_v35, %v3115_v35  ;;  %7107 = vmatmul.mubr.bf16.gmra.mxu0 %v8534_v57  ;;  %v2998_v47 = vmul.f32 %v12769_v45, %v2561_v63  ;;  %v2999_v42 = vmul.f32 %v12769_v45, %v2560_v52  ;;  %v17317_v45 = vld [vmem:[#allocation63_spill] sm:$0xff]  ;;  %v17318_v60 = vld [vmem:[#allocation94_spill] sm:$0xff] }
 0x325   : > { %v2894_v28 = vadd.f32 %v2866_v20, %v2831_v17  ;;  %v2895_v39 = vadd.f32 %v2867_v23, %v2832_v44  ;;  %v358_v62 = vmul.f32 %v8683_v7, %v13355_v3  ;;  %v359_v15 = vmul.f32 %v13355_v3, %v12778_v32  ;;  %v17319_v4 = vld [vmem:[#allocation66_spill] sm:$0xff] }
 0x326   : > { %v8109_v36 = vpack.c.bf16 %v3116_v2, %v3116_v2  ;;  %3255 = vst [vmem:[#allocation2 + $0xc8] sm:$0xf] %v8108_v24  ;;  %v478_v63 = vmul.f32 %v13364_v19, %v17316_v41  ;;  %v479_v52 = vmul.f32 %v13364_v19, %v17317_v45  ;;  %v596_v58 = vmul.f32 %v13370_v18, %v17318_v60  ;;  %v13389_v24 = vld [vmem:[#allocation6 + $0x18] ss:$0 sm:$0xff]  ;;  %v13412_v60 = vld [vmem:[#allocation6 + $0xe] ss:$0 sm:$0xff] }
 0x327   : > { %v2960_v37 = vadd.f32 %v2932_v43, %v2894_v28  ;;  %v2961_v32 = vadd.f32 %v2933_v53, %v2895_v39  ;;  %v597_v57 = vmul.f32 %v13370_v18, %v17319_v4  ;;  %v686_v1 = vmul.f32 %v12799_v31, %v17277_v21  ;;  %v13387_v53 = vld [vmem:[%s9188_s30 + $0x2d0] sm:$0xff]  ;;  %v13418_v4 = vld [vmem:[#allocation6 + $0x19] ss:$0 sm:$0xff] }
 0x328   : > { %3256 = vst [vmem:[#allocation2 + $0xd4] sm:$0xf] %v8109_v36  ;;  %v506_v35 = vadd.f32 %v478_v63, %v358_v62  ;;  %v507_v17 = vadd.f32 %v479_v52, %v359_v15  ;;  %v687_v44 = vmul.f32 %v12799_v31, %v13072_v9  ;;  %v13381_v20 = vrot.slane %v13362_v10, 1  ;;  %v13402_v15 = vld [vmem:[#allocation6 + $0xd] ss:$0 sm:$0xff] }
 0x329   : > { %v3026_v23 = vadd.f32 %v2998_v47, %v2960_v37  ;;  %v3027_v2 = vadd.f32 %v2999_v42, %v2961_v32  ;;  %v13384_v43 = vrot.slane %v13362_v10, 2  ;;  %v984_v21 = vmul.f32 %v13389_v24, %v13075_v49 }
 0x32a   : > { %v624_v28 = vadd.f32 %v596_v58, %v506_v35  ;;  %v625_v39 = vadd.f32 %v597_v57, %v507_v17  ;;  %v17320_v31 = vrot.slane %v13075_v49, 1  ;;  %v985_v47 = vmul.f32 %v13389_v24, %v13362_v10 }
 0x32b   : > { %v3061_v42 = vadd.f32 %v12815_v59, %v3026_v23  ;;  %v3062_v62 = vadd.f32 %v12815_v59, %v3027_v2  ;;  %v17321_v41 = vrot.slane %v13075_v49, 2  ;;  %v16630_v59 = vrot.slane %v13387_v53, 1  ;;  %v17322_v23 = vld [vmem:[#allocation89_spill] sm:$0xff]  ;;  %v13429_v2 = vld [vmem:[#allocation6 + $0x1a] ss:$0 sm:$0xff] }
 0x32c   : > { %v746_v7 = vsel %vm420_vm0, %v17320_v31, %v13381_v20  ;;  %v714_v45 = vadd.f32 %v686_v1, %v624_v28  ;;  %v715_v52 = vadd.f32 %v687_v44, %v625_v39  ;;  %v16634_v35 = vrot.slane %v13387_v53, 2  ;;  %v13433_v39 = vld [vmem:[%s9188_s30 + $0x2c0] sm:$0xff] }
 0x32d   : > { %v13405_v36 = vmul.f32 %v13402_v15, %v746_v7  ;;  %v863_v63 = vsel %vm538_vm1, %v17321_v41, %v13384_v43  ;;  %v3089_v37 = vmax.f32 %v3061_v42, 0.0  ;;  %v3090_v32 = vmax.f32 %v3062_v62, 0.0  ;;  %v17323_v41 = vld [vmem:[#allocation93_spill] sm:$0xff] }
 0x32e   : > { %v13415_v58 = vmul.f32 %v13412_v60, %v863_v63  ;;  %v1050_v57 = vmul.f32 %v13418_v4, %v746_v7  ;;  %v831_v17 = vadd.f32 %v13109_v8, %v714_v45  ;;  %v832_v1 = vadd.f32 %v17322_v23, %v715_v52  ;;  %v17324_v52 = vld [vmem:[#allocation86_spill] sm:$0xff] }
 0x32f   : > { %v1019_v44 = vsel %vm420_vm0, %v13381_v20, %v16630_v59  ;;  %v1116_v28 = vmul.f32 %v13429_v2, %v863_v63  ;;  %v8533_v31 = vld [vmem:[#allocation2 + $0xc8] ss:$12 sps:$4 sm:$0xff]   ;;  %v3117_v7 = vmin.f32 %v3089_v37, 6.0  ;;  %v3118_v42 = vmin.f32 %v3090_v32, 6.0 }
 0x330   : > { %v1051_v8 = vmul.f32 %v13418_v4, %v1019_v44  ;;  %v1085_v62 = vsel %vm538_vm1, %v13384_v43, %v16634_v35  ;;  %v948_v45 = vadd.f32 %v17323_v41, %v831_v17  ;;  %v949_v23 = vadd.f32 %v17324_v52, %v832_v1  ;;  %v17325_v59 = vld [vmem:[#allocation78_spill] sm:$0xff]  ;;  %8273 = vmatprep.mubr.bf16.mxu1 %v8533_v31  ;;  %v13464_v41 = vld [vmem:[#allocation6 + $0x1c] ss:$0 sm:$0xff] }
 0x331   : > { %v1117_v63 = vmul.f32 %v13429_v2, %v1085_v62  ;;  %v1733_v40 = vmul.f32 %v17325_v59, %v17294_v51  ;;  %v8110_v37 = vpack.c.bf16 %v3117_v7, %v3117_v7  ;;  %v8111_v32 = vpack.c.bf16 %v3118_v42, %v3118_v42  ;;  %v13456_v62 = vld [vmem:[%s9188_s30 + $0x2d8] sm:$0xff]  ;;  %17331 = vst [vmem:[#allocation85_spill] sm:$0xff] %v13464_v41 }
 0x332   : > { %v1734_v44 = vmul.f32 %v17325_v59, %v13140_v14  ;;  %v13449_v13 = vrot.slane %v13433_v39, 1  ;;  %v1012_v34 = vadd.f32 %v984_v21, %v948_v45  ;;  %v1013_v35 = vadd.f32 %v985_v47, %v949_v23  ;;  %17328 = vst [vmem:[#allocation79_spill] sm:$0xff] %v13456_v62  ;;  %v17329_v51 = vld [vmem:[#allocation75_spill] sm:$0xff]  ;;  %v13470_v45 = vld [vmem:[#allocation6 + $0x11] ss:$0 sm:$0xff] }
 0x333   : > { %v1761_v17 = vadd.f32 %v1733_v40, %v17326_v46  ;;  %v13453_v1 = vrot.slane %v13433_v39, 2  ;;  %3257 = vst [vmem:[#allocation2 + $0xe0] sm:$0xf] %v8110_v37  ;;  %3258 = vst [vmem:[#allocation2 + $0xec] sm:$0xf] %v8111_v32  ;;  %v17330_v7 = vrot.slane %v13148_v29, 1  ;;  %v1928_v46 = vmul.f32 %v13464_v41, %v13148_v29 }
 0x334   : > { %v1762_v31 = vadd.f32 %v1734_v44, %v17329_v51  ;;  %v1929_v40 = vmul.f32 %v13464_v41, %v13433_v39  ;;  %v1078_v21 = vadd.f32 %v1050_v57, %v1012_v34  ;;  %v1079_v47 = vadd.f32 %v1051_v8, %v1013_v35  ;;  %17332 = vst [vmem:[#allocation68_spill] sm:$0xff] %v13470_v45  ;;  %v13486_v8 = vld [vmem:[#allocation6 + $0x12] ss:$0 sm:$0xff] }
 0x335   : > { %17327 = vst [vmem:[#allocation33_spill] sm:$0xff] %v13453_v1  ;;  %v1767_v42 = vsel %vm420_vm0, %v17330_v7, %v13449_v13  ;;  %v1827_v23 = vadd.f32 %v13197_v12, %v1761_v17  ;;  %v17334_v32 = vrot.slane %v13148_v29, 2  ;;  %v16635_v51 = vrot.slane %v13456_v62, 1  ;;  %v13483_v7 = vld [vmem:[#allocation6 + $0x1d] ss:$0 sm:$0xff]  ;;  %17336 = vst [vmem:[#allocation96_spill] sm:$0xff] %v13486_v8 }
 0x336   : > { %v13473_v52 = vmul.f32 %v13470_v45, %v1767_v42  ;;  %v1828_v37 = vadd.f32 %v13200_v0, %v1762_v31  ;;  %17335 = vst [vmem:[#allocation55_spill] sm:$0xff] %v13483_v7  ;;  %v1994_v34 = vmul.f32 %v13483_v7, %v1767_v42  ;;  %v1144_v57 = vadd.f32 %v1116_v28, %v1078_v21  ;;  %v13499_v28 = vld [vmem:[#allocation6 + $0x1e] ss:$0 sm:$0xff]  ;;  %v13502_v21 = vld [vmem:[#allocation8] ss:$0 sm:$0xff] }
 0x337   : > { %v1833_v44 = vsel %vm538_vm1, %v17334_v32, %v13453_v1  ;;  %v1145_v35 = vadd.f32 %v1117_v63, %v1079_v47  ;;  %v1893_v0 = vadd.f32 %v13208_v25, %v1827_v23  ;;  %v1963_v31 = vsel %vm420_vm0, %v13449_v13, %v16635_v51  ;;  %17338 = vst [vmem:[#allocation42_spill] sm:$0xff] %v13499_v28 }
 0x338   : > { %17333 = vst [vmem:[#allocation64_spill] sm:$0xff] %v13473_v52  ;;  %v13489_v12 = vmul.f32 %v13486_v8, %v1833_v44  ;;  %v1894_v17 = vadd.f32 %v13224_v56, %v1828_v37  ;;  %v16636_v42 = vrot.slane %v13456_v62, 2  ;;  %v2060_v63 = vmul.f32 %v13499_v28, %v1833_v44  ;;  %17339 = vst [vmem:[#allocation31_spill] sm:$0xff] %v13502_v21  ;;  %v13508_v37 = vld [vmem:[%s9188_s30 + $0x268] sm:$0xff] }
 0x339   : > { %v1179_v47 = vadd.f32 %v13502_v21, %v1144_v57  ;;  %v1180_v25 = vadd.f32 %v13502_v21, %v1145_v35  ;;  %v1956_v23 = vadd.f32 %v1928_v46, %v1893_v0  ;;  %v1995_v56 = vmul.f32 %v13483_v7, %v1963_v31  ;;  %v13523_v31 = vld [vmem:[#allocation6 + $0x14] ss:$0 sm:$0xff] }
 0x33a   : > { %17337 = vst [vmem:[#allocation95_spill] sm:$0xff] %v13489_v12  ;;  %v1957_v32 = vadd.f32 %v1929_v40, %v1894_v17  ;;  %v2029_v51 = vsel %vm538_vm1, %v13453_v1, %v16636_v42  ;;  %v13516_v12 = vld [vmem:[%s9188_s30 + $0x280] sm:$0xff]  ;;  %v2380_v44 = vmul.f32 %v13293_v54, %v13286_v61  ;;  %v2381_v57 = vmul.f32 %v13293_v54, %v13508_v37 }
 0x33b   : > { %v8535_v46 = vld [vmem:[#allocation2 + $0xe0] ss:$12 sps:$4 sm:$0xff]   ;;  %v2022_v35 = vadd.f32 %v1994_v34, %v1956_v23  ;;  %v2061_v0 = vmul.f32 %v13499_v28, %v2029_v51  ;;  %v2673_v40 = vmul.f32 %v13523_v31, %v13230_v11  ;;  %v2674_v17 = vmul.f32 %v13523_v31, %v13283_v48 }
 0x33c   : > { %v1207_v42 = vmax.f32 %v1179_v47, 0.0  ;;  %v1208_v7 = vmax.f32 %v1180_v25, 0.0  ;;  %v2023_v21 = vadd.f32 %v1995_v56, %v1957_v32  ;;  %v2437_v41 = vrot.slane %v13508_v37, 1  ;;  %8274 = vmatmul.mubr.bf16.gmra.mxu1 %v8535_v46  ;;  %v13537_v47 = vld [vmem:[#allocation8 + $0x1] ss:$0 sm:$0xff] }
 0x33d   : > { %v2088_v62 = vadd.f32 %v2060_v63, %v2022_v35  ;;  %v16649_v52 = vrot.slane %v13516_v12, 1  ;;  %v2554_v34 = vrot.slane %v13508_v37, 2  ;;  %v16653_v51 = vrot.slane %v13516_v12, 2  ;;  %17341 = vst [vmem:[#allocation29_spill] sm:$0xff] %v13537_v47 }
 0x33e   : > { %v1235_v23 = vmin.f32 %v1207_v42, 6.0  ;;  %v1236_v28 = vmin.f32 %v1208_v7, 6.0  ;;  %v2089_v8 = vadd.f32 %v2061_v0, %v2023_v21  ;;  %v17340_v11 = vrot.slane %v13286_v61, 1 }
 0x33f   : > { %v2123_v25 = vadd.f32 %v13537_v47, %v2088_v62  ;;  %v2441_v63 = vsel %vm420_vm0, %v2437_v41, %v16649_v52  ;;  %v2558_v7 = vsel %vm538_vm1, %v2554_v34, %v16653_v51  ;;  %v17342_v0 = vrot.slane %v13286_v61, 2 }
 0x340   : > { %v2442_v48 = vsel %vm420_vm0, %v17340_v11, %v2437_v41  ;;  %v8060_v42 = vpack.c.bf16 %v1235_v23, %v1235_v23  ;;  %v8061_v21 = vpack.c.bf16 %v1236_v28, %v1236_v28  ;;  %v2124_v32 = vadd.f32 %v13537_v47, %v2089_v8  ;;  %v8699_v11 = vld [vmem:[#allocation6 + $0xa] ss:$0 sm:$0xff] }
 0x341   : > { %v2497_v56 = vmul.f32 %v13313_v55, %v2442_v48  ;;  %v2498_v46 = vmul.f32 %v13313_v55, %v2441_v63  ;;  %v2151_v35 = vmax.f32 %v2123_v25, 0.0  ;;  %v2559_v41 = vsel %vm538_vm1, %v17342_v0, %v2554_v34  ;;  %v13557_v25 = vld [vmem:[#allocation6 + $0x15] ss:$0 sm:$0xff] }
 0x342   : > { %v2615_v52 = vmul.f32 %v8699_v11, %v2558_v7  ;;  %1375 = vst [vmem:[#allocation2 + $0x120] sm:$0xf] %v8060_v42  ;;  %1376 = vst [vmem:[#allocation2 + $0x12c] sm:$0xf] %v8061_v21  ;;  %v2152_v45 = vmax.f32 %v2124_v32, 0.0  ;;  %v2614_v51 = vmul.f32 %v8699_v11, %v2559_v41  ;;  %v2701_v28 = vadd.f32 %v2673_v40, %v13266_v38 }
 0x343   : > { %v2525_v62 = vadd.f32 %v2497_v56, %v2380_v44  ;;  %v2526_v1 = vadd.f32 %v2498_v46, %v2381_v57  ;;  %v2179_v8 = vmin.f32 %v2151_v35, 6.0  ;;  %v2702_v23 = vadd.f32 %v2674_v17, %v13270_v50  ;;  %v13567_v38 = vld [vmem:[#allocation6 + $0x16] ss:$0 sm:$0xff]  ;;  %v13572_v17 = vld [vmem:[%s9188_s30 + $0x298] sm:$0xff] }
 0x344   : > { %v2741_v44 = vmul.f32 %v13557_v25, %v2442_v48  ;;  %v2742_v56 = vmul.f32 %v13557_v25, %v2441_v63  ;;  %v2180_v34 = vmin.f32 %v2152_v45, 6.0  ;;  %v2767_v57 = vadd.f32 %v13331_v33, %v2701_v28  ;;  %v13586_v28 = vld [vmem:[#allocation6 + $0x22] ss:$0 sm:$0xff] }
 0x345   : > { %v13561_v0 = vadd.f32 %v2614_v51, %v2525_v62  ;;  %v13563_v42 = vadd.f32 %v2615_v52, %v2526_v1  ;;  %v8088_v21 = vpack.c.bf16 %v2179_v8, %v2179_v8  ;;  %v2768_v32 = vadd.f32 %v13334_v27, %v2702_v23  ;;  %v13575_v51 = vld [vmem:[#allocation6 + $0x20] ss:$0 sm:$0xff]  ;;  %v13582_v52 = vld [vmem:[#allocation6 + $0x21] ss:$0 sm:$0xff]  ;;  %v13590_v8 = vld [vmem:[%s9188_s30 + $0x2b0] sm:$0xff] }
 0x346   : > { %v2807_v50 = vmul.f32 %v13567_v38, %v2559_v41  ;;  %v2808_v40 = vmul.f32 %v13567_v38, %v2558_v7  ;;  %v8089_v46 = vpack.c.bf16 %v2180_v34, %v2180_v34  ;;  %v2833_v45 = vadd.f32 %v13342_v16, %v2767_v57 }
 0x347   : > { %17343 = vst [vmem:[#allocation60_spill] sm:$0xff] %v13561_v0  ;;  %17344 = vst [vmem:[#allocation23_spill] sm:$0xff] %v13563_v42  ;;  %v2868_v33 = vmul.f32 %v13575_v51, %v13286_v61  ;;  %v2869_v27 = vmul.f32 %v13575_v51, %v13508_v37  ;;  %v2834_v1 = vadd.f32 %v13345_v26, %v2768_v32  ;;  %v2439_v26 = vrot.slane %v13572_v17, 1 }
 0x348   : > { %2319 = vst [vmem:[#allocation2 + $0x124] sm:$0xf] %v8088_v21  ;;  %v2934_v35 = vmul.f32 %v13582_v52, %v2442_v48  ;;  %v2935_v62 = vmul.f32 %v13582_v52, %v2441_v63  ;;  %v3000_v16 = vmul.f32 %v13586_v28, %v2559_v41  ;;  %2320 = vst [vmem:[#allocation2 + $0x130] sm:$0xf] %v8089_v46  ;;  %v2556_v48 = vrot.slane %v13572_v17, 2 }
 0x349   : > { %v2896_v23 = vadd.f32 %v2868_v33, %v2833_v45  ;;  %v3001_v34 = vmul.f32 %v13586_v28, %v2558_v7  ;;  %v2382_v57 = vmul.f32 %v13293_v54, %v13516_v12  ;;  %v2897_v21 = vadd.f32 %v2869_v27, %v2834_v1  ;;  %v17346_v45 = vld [vmem:[#allocation22_spill] sm:$0xff] }
 0x34a   : > { %v2675_v63 = vmul.f32 %v13523_v31, %v13286_v61  ;;  %v2676_v41 = vmul.f32 %v13523_v31, %v13508_v37  ;;  %v17345_v46 = vrot.slane %v13516_v12, 1  ;;  %v17347_v33 = vrot.slane %v17346_v45, 1 }
 0x34b   : > { %v2962_v32 = vadd.f32 %v2934_v35, %v2896_v23  ;;  %v2963_v1 = vadd.f32 %v2935_v62, %v2897_v21  ;;  %v17349_v37 = vrot.slane %v13516_v12, 2 }
 0x34c   : > { %v2440_v7 = vsel %vm420_vm0, %v17345_v46, %v2439_v26  ;;  %v2467_v54 = vsel %vm420_vm0, %v2439_v26, %v17347_v33  ;;  %v17350_v46 = vrot.slane %v17346_v45, 2  ;;  %v2703_v27 = vadd.f32 %v2675_v63, %v13337_v30 }
 0x34d   : > { %v2499_v47 = vmul.f32 %v13313_v55, %v2440_v7  ;;  %v13612_v61 = vmul.f32 %v13313_v55, %v2467_v54  ;;  %v2557_v35 = vsel %vm538_vm1, %v17349_v37, %v2556_v48  ;;  %v3028_v23 = vadd.f32 %v3000_v16, %v2962_v32  ;;  %v13626_v55 = vld [vmem:[#allocation8 + $0x2] ss:$0 sm:$0xff] }
 0x34e   : > { %v2584_v42 = vsel %vm538_vm1, %v2556_v48, %v17350_v46  ;;  %v2616_v33 = vmul.f32 %v8699_v11, %v2557_v35  ;;  %v3029_v62 = vadd.f32 %v3001_v34, %v2963_v1  ;;  %v2704_v54 = vadd.f32 %v2676_v41, %v13339_v5 }
 0x34f   : > { %17348 = vst [vmem:[#allocation30_spill] sm:$0xff] %v13612_v61  ;;  %v2527_v21 = vadd.f32 %v2499_v47, %v2382_v57  ;;  %v13623_v0 = vmul.f32 %v8699_v11, %v2584_v42  ;;  %v3063_v61 = vadd.f32 %v13626_v55, %v3028_v23  ;;  %v17351_v16 = vrot.slane %v13590_v8, 1  ;;  %v8536_v30 = vld [vmem:[#allocation2 + $0x124] ss:$12 sps:$4 sm:$0xff]   ;;  %v8539_v11 = vld [vmem:[#allocation2 + $0x120] ss:$12 sps:$4 sm:$0xff]  }
 0x350   : > { %v13634_v45 = vmul.f32 %v13557_v25, %v2440_v7  ;;  %v2769_v37 = vadd.f32 %v2741_v44, %v2703_v27  ;;  %v3064_v47 = vadd.f32 %v13626_v55, %v3029_v62  ;;  %v2770_v34 = vadd.f32 %v2742_v56, %v2704_v54  ;;  %7114 = vmatprep.mubr.bf16.mxu0 %v8536_v30  ;;  %v8706_v30 = vld [vmem:[%s9188_s30 + $0x270] sm:$0xff] }
 0x351   : > { %v2712_v32 = vsel %vm420_vm0, %v2439_v26, %v17351_v16  ;;  %v13637_v42 = vadd.f32 %v2616_v33, %v2527_v21  ;;  %v3091_v57 = vmax.f32 %v3063_v61, 0.0  ;;  %v2775_v63 = vrot.slane %v13590_v8, 2  ;;  %7115 = vmatmul.mubr.bf16.gmra.mxu0 %v8539_v11 }
 0x352   : > { %v13640_v5 = vmul.f32 %v13557_v25, %v2712_v32  ;;  %v13644_v41 = vmul.f32 %v13567_v38, %v2557_v35  ;;  %v2835_v26 = vadd.f32 %v2807_v50, %v2769_v37  ;;  %v3092_v1 = vmax.f32 %v3064_v47, 0.0 }
 0x353   : > { %v2836_v44 = vadd.f32 %v2808_v40, %v2770_v34  ;;  %v2870_v27 = vmul.f32 %v13575_v51, %v13516_v12  ;;  %v2871_v23 = vmul.f32 %v13575_v51, %v13572_v17  ;;  %v3119_v46 = vmin.f32 %v3091_v57, 6.0  ;;  %v17352_v34 = vld [vmem:[#allocation17_spill] sm:$0xff] }
 0x354   : > { %v2778_v56 = vsel %vm538_vm1, %v2556_v48, %v2775_v63  ;;  %v2936_v61 = vmul.f32 %v13582_v52, %v2440_v7  ;;  %v2937_v50 = vmul.f32 %v13582_v52, %v2712_v32  ;;  %v3120_v33 = vmin.f32 %v3092_v1, 6.0 }
 0x355   : > { %v13657_v40 = vmul.f32 %v13567_v38, %v2778_v56  ;;  %v2898_v62 = vadd.f32 %v2870_v27, %v2835_v26  ;;  %v2899_v21 = vadd.f32 %v2871_v23, %v2836_v44  ;;  %v8112_v54 = vpack.c.bf16 %v3119_v46, %v3119_v46  ;;  %v17354_v26 = vld [vmem:[#allocation45_spill] sm:$0xff]  ;;  %v17357_v23 = vld [vmem:[#allocation88_spill] sm:$0xff] }
 0x356   : > { %v3002_v16 = vmul.f32 %v13586_v28, %v2557_v35  ;;  %v3003_v37 = vmul.f32 %v13586_v28, %v2778_v56  ;;  %v360_v47 = vmul.f32 %v8706_v30, %v13355_v3  ;;  %v8113_v48 = vpack.c.bf16 %v3120_v33, %v3120_v33  ;;  %v17355_v35 = vld [vmem:[#allocation87_spill] sm:$0xff]  ;;  %v17358_v56 = vld [vmem:[#allocation92_spill] sm:$0xff]  ;;  %v13682_v30 = vld [vmem:[#allocation6 + $0xc] ss:$0 sm:$0xff] }
 0x357   : > { %v2964_v11 = vadd.f32 %v2936_v61, %v2898_v62  ;;  %v2965_v7 = vadd.f32 %v2937_v50, %v2899_v21  ;;  %v361_v32 = vmul.f32 %v13355_v3, %v13072_v9  ;;  %3259 = vst [vmem:[#allocation2 + $0xf8] sm:$0xf] %v8112_v54  ;;  %v17353_v57 = vrot.slane %v17352_v34, 1  ;;  %v953_v21 = vld [vmem:[%s9188_s30 + $0x2e8] sm:$0xff] }
 0x358   : > { %v480_v44 = vmul.f32 %v13364_v19, %v17355_v35  ;;  %v17356_v27 = vrot.slane %v17352_v34, 2  ;;  %v598_v61 = vmul.f32 %v13370_v18, %v17358_v56  ;;  %3260 = vst [vmem:[#allocation2 + $0x104] sm:$0xf] %v8113_v48  ;;  %v688_v34 = vmul.f32 %v13682_v30, %v13075_v49 }
 0x359   : > { %v448_v1 = vsel %vm420_vm0, %v17354_v26, %v17353_v57  ;;  %v3030_v9 = vadd.f32 %v3002_v16, %v2964_v11  ;;  %v3031_v50 = vadd.f32 %v3003_v37, %v2965_v7  ;;  %v689_v57 = vmul.f32 %v13682_v30, %v13362_v10  ;;  %v17359_v26 = vld [vmem:[#allocation18_spill] sm:$0xff] }
 0x35a   : > { %v566_v46 = vsel %vm538_vm1, %v17357_v23, %v17356_v27  ;;  %v481_v33 = vmul.f32 %v13364_v19, %v448_v1  ;;  %v508_v54 = vadd.f32 %v480_v44, %v360_v47  ;;  %v773_v16 = vsel %vm420_vm0, %v13381_v20, %v17359_v26  ;;  %v17360_v1 = vld [vmem:[#allocation20_spill] sm:$0xff] }
 0x35b   : > { %v599_v62 = vmul.f32 %v13370_v18, %v566_v46  ;;  %v3065_v37 = vadd.f32 %v13626_v55, %v3030_v9  ;;  %v3066_v48 = vadd.f32 %v13626_v55, %v3031_v50  ;;  %v806_v47 = vmul.f32 %v13402_v15, %v773_v16  ;;  %v13703_v9 = vld [vmem:[#allocation6 + $0x4] ss:$0 sm:$0xff] }
 0x35c   : > { %v509_v11 = vadd.f32 %v481_v33, %v361_v32  ;;  %v626_v7 = vadd.f32 %v598_v61, %v508_v54  ;;  %v890_v49 = vsel %vm538_vm1, %v13384_v43, %v17360_v1  ;;  %v986_v10 = vmul.f32 %v13389_v24, %v13387_v53 }
 0x35d   : > { %v987_v35 = vmul.f32 %v13389_v24, %v953_v21  ;;  %v3093_v44 = vmax.f32 %v3065_v37, 0.0  ;;  %v3094_v20 = vmax.f32 %v3066_v48, 0.0  ;;  %v923_v23 = vmul.f32 %v13412_v60, %v890_v49  ;;  %v17364_v49 = vld [vmem:[#allocation21_spill] sm:$0xff] }
 0x35e   : > { %v627_v27 = vadd.f32 %v599_v62, %v509_v11  ;;  %v716_v46 = vadd.f32 %v688_v34, %v626_v7  ;;  %v1017_v32 = vrot.slane %v953_v21, 1  ;;  %v1083_v56 = vrot.slane %v953_v21, 2  ;;  %v17362_v21 = vld [vmem:[#allocation19_spill] sm:$0xff] }
 0x35f   : > { %v1439_v61 = vmul.f32 %v13703_v9, %v13140_v14  ;;  %v3121_v50 = vmin.f32 %v3093_v44, 6.0  ;;  %v3122_v43 = vmin.f32 %v3094_v20, 6.0  ;;  %v1735_v54 = vmul.f32 %v17325_v59, %v13148_v29  ;;  %v8538_v26 = vld [vmem:[#allocation2 + $0xf8] ss:$12 sps:$4 sm:$0xff]  }
 0x360   : > { %v717_v33 = vadd.f32 %v689_v57, %v627_v27  ;;  %v833_v16 = vadd.f32 %v13405_v36, %v716_v46  ;;  %v17361_v62 = vrot.slane %v13387_v53, 1  ;;  %v1020_v37 = vsel %vm420_vm0, %v1017_v32, %v17362_v21  ;;  %8277 = vmatprep.mubr.bf16.mxu1 %v8538_v26  ;;  %v17365_v46 = vld [vmem:[#allocation77_spill] sm:$0xff]  ;;  %v17367_v26 = vld [vmem:[#allocation26_spill] sm:$0xff]  ;;  %v17370_v21 = vld [vmem:[#allocation68_spill] sm:$0xff] }
 0x361   : > { %v17363_v14 = vrot.slane %v13387_v53, 2  ;;  %v8114_v48 = vpack.c.bf16 %v3121_v50, %v3121_v50  ;;  %v8115_v29 = vpack.c.bf16 %v3122_v43, %v3122_v43  ;;  %v1053_v1 = vmul.f32 %v13418_v4, %v1020_v37  ;;  %v1898_v50 = vld [vmem:[%s9188_s30 + $0x2f0] sm:$0xff] }
 0x362   : > { %v1018_v34 = vsel %vm420_vm0, %v17361_v62, %v1017_v32  ;;  %v834_v11 = vadd.f32 %v806_v47, %v717_v33  ;;  %v950_v7 = vadd.f32 %v13415_v58, %v833_v16  ;;  %v1086_v44 = vsel %vm538_vm1, %v1083_v56, %v17364_v49  ;;  %v17366_v33 = vld [vmem:[#allocation24_spill] sm:$0xff]  ;;  %v17368_v16 = vld [vmem:[#allocation33_spill] sm:$0xff] }
 0x363   : > { %v1084_v57 = vsel %vm538_vm1, %v17363_v14, %v1083_v56  ;;  %v1052_v36 = vmul.f32 %v13418_v4, %v1018_v34  ;;  %3261 = vst [vmem:[#allocation2 + $0x110] sm:$0xf] %v8114_v48  ;;  %3262 = vst [vmem:[#allocation2 + $0x11c] sm:$0xf] %v8115_v29  ;;  %v1119_v27 = vmul.f32 %v13429_v2, %v1086_v44  ;;  %v17369_v34 = vld [vmem:[#allocation76_spill] sm:$0xff]  ;;  %v2027_v49 = vrot.slane %v1898_v50, 2 }
 0x364   : > { %v1118_v53 = vmul.f32 %v13429_v2, %v1084_v57  ;;  %v951_v20 = vadd.f32 %v923_v23, %v834_v11  ;;  %v1584_v47 = vadd.f32 %v17365_v46, %v1439_v61  ;;  %v1736_v32 = vmul.f32 %v17325_v59, %v13433_v39  ;;  %v17371_v59 = vld [vmem:[#allocation96_spill] sm:$0xff]  ;;  %v17374_v57 = vld [vmem:[#allocation85_spill] sm:$0xff] }
 0x365   : > { %v1014_v58 = vadd.f32 %v986_v10, %v950_v7  ;;  %v1763_v43 = vadd.f32 %v1735_v54, %v13202_v22  ;;  %v1769_v56 = vsel %vm420_vm0, %v13449_v13, %v17366_v33  ;;  %v1835_v23 = vsel %vm538_vm1, %v17368_v16, %v17367_v26  ;;  %v17372_v14 = vld [vmem:[#allocation64_spill] sm:$0xff]  ;;  %v17373_v54 = vld [vmem:[#allocation79_spill] sm:$0xff] }
 0x366   : > { %v1015_v62 = vadd.f32 %v987_v35, %v951_v20  ;;  %v1701_v61 = vadd.f32 %v17369_v34, %v1584_v47  ;;  %v1802_v37 = vmul.f32 %v17370_v21, %v1769_v56  ;;  %v1868_v39 = vmul.f32 %v17371_v59, %v1835_v23  ;;  %v17375_v35 = vld [vmem:[#allocation95_spill] sm:$0xff] }
 0x367   : > { %v1080_v10 = vadd.f32 %v1052_v36, %v1014_v58  ;;  %v1829_v22 = vadd.f32 %v17372_v14, %v1763_v43  ;;  %v1930_v48 = vmul.f32 %v17374_v57, %v17373_v54  ;;  %v1931_v13 = vmul.f32 %v17374_v57, %v1898_v50  ;;  %v17378_v33 = vld [vmem:[#allocation31_spill] sm:$0xff]  ;;  %v2647_v14 = vld [vmem:[%s9188_s30 + $0x2c8] sm:$0xff] }
 0x368   : > { %v1081_v29 = vadd.f32 %v1053_v1, %v1015_v62  ;;  %v1764_v11 = vadd.f32 %v1736_v32, %v1701_v61  ;;  %v1961_v7 = vrot.slane %v1898_v50, 1  ;;  %v2677_v46 = vmul.f32 %v13523_v31, %v13516_v12  ;;  %v17377_v32 = vld [vmem:[#allocation25_spill] sm:$0xff]  ;;  %v17379_v16 = vld [vmem:[#allocation55_spill] sm:$0xff] }
 0x369   : > { %v1146_v44 = vadd.f32 %v1118_v53, %v1080_v10  ;;  %v1895_v20 = vadd.f32 %v17375_v35, %v1829_v22  ;;  %v2678_v36 = vmul.f32 %v13523_v31, %v13572_v17  ;;  %v17376_v43 = vrot.slane %v17373_v54, 1  ;;  %v17384_v35 = vld [vmem:[#allocation23_spill] sm:$0xff] }
 0x36a   : > { %v1147_v47 = vadd.f32 %v1119_v27, %v1081_v29  ;;  %v1830_v58 = vadd.f32 %v1802_v37, %v1764_v11  ;;  %v1964_v53 = vsel %vm420_vm0, %v1961_v7, %v17377_v32  ;;  %v8540_v50 = vld [vmem:[#allocation2 + $0x110] ss:$12 sps:$4 sm:$0xff]   ;;  %v17380_v34 = vrot.slane %v17373_v54, 2  ;;  %v17381_v37 = vld [vmem:[#allocation28_spill] sm:$0xff] }
 0x36b   : > { %v1962_v1 = vsel %vm420_vm0, %v17376_v43, %v1961_v7  ;;  %v1181_v56 = vadd.f32 %v17378_v33, %v1146_v44  ;;  %v1958_v26 = vadd.f32 %v1930_v48, %v1895_v20  ;;  %v1997_v23 = vmul.f32 %v17379_v16, %v1964_v53  ;;  %8278 = vmatmul.mubr.bf16.gmra.mxu1 %v8540_v50  ;;  %v17382_v48 = vld [vmem:[#allocation42_spill] sm:$0xff]  ;;  %v17383_v44 = vld [vmem:[#allocation60_spill] sm:$0xff] }
 0x36c   : > { %v1996_v12 = vmul.f32 %v17379_v16, %v1962_v1  ;;  %v1182_v27 = vadd.f32 %v17378_v33, %v1147_v47  ;;  %v1896_v62 = vadd.f32 %v1868_v39, %v1830_v58  ;;  %v2028_v61 = vsel %vm538_vm1, %v17380_v34, %v2027_v49 }
 0x36d   : > { %v2030_v10 = vsel %vm538_vm1, %v2027_v49, %v17381_v37  ;;  %v1209_v22 = vmax.f32 %v1181_v56, 0.0  ;;  %v2062_v29 = vmul.f32 %v17382_v48, %v2028_v61  ;;  %v2705_v54 = vadd.f32 %v2677_v46, %v17383_v44 }
 0x36e   : > { %v2024_v57 = vadd.f32 %v1996_v12, %v1958_v26  ;;  %v2063_v11 = vmul.f32 %v17382_v48, %v2030_v10  ;;  %v1210_v7 = vmax.f32 %v1182_v27, 0.0  ;;  %v1959_v39 = vadd.f32 %v1931_v13, %v1896_v62  ;;  %v17385_v26 = vld [vmem:[#allocation29_spill] sm:$0xff] }
 0x36f   : > { %v2706_v20 = vadd.f32 %v2678_v36, %v17384_v35  ;;  %v1237_v47 = vmin.f32 %v1209_v22, 6.0  ;;  %v2710_v43 = vrot.slane %v2647_v14, 1  ;;  %v2776_v1 = vrot.slane %v2647_v14, 2  ;;  %v13789_v36 = vld [vmem:[%s9188_s30 + $0x2e0] sm:$0xff] }
 0x370   : > { %v2090_v58 = vadd.f32 %v2062_v29, %v2024_v57  ;;  %v1238_v49 = vmin.f32 %v1210_v7, 6.0  ;;  %v2025_v32 = vadd.f32 %v1997_v23, %v1959_v39  ;;  %v2771_v53 = vadd.f32 %v13634_v45, %v2705_v54  ;;  %v17387_v54 = vld [vmem:[#allocation80_spill] sm:$0xff] }
 0x371   : > { %v2772_v50 = vadd.f32 %v13640_v5, %v2706_v20  ;;  %v8062_v56 = vpack.c.bf16 %v1237_v47, %v1237_v47  ;;  %v17386_v12 = vrot.slane %v13590_v8, 1  ;;  %v2777_v46 = vsel %vm538_vm1, %v2775_v63, %v2776_v1 }
 0x372   : > { %v2125_v16 = vadd.f32 %v17385_v26, %v2090_v58  ;;  %v8063_v23 = vpack.c.bf16 %v1238_v49, %v1238_v49  ;;  %v2091_v27 = vadd.f32 %v2063_v11, %v2025_v32  ;;  %v2811_v5 = vmul.f32 %v13567_v38, %v2777_v46 }
 0x373   : > { %v2711_v13 = vsel %vm420_vm0, %v17386_v12, %v2710_v43  ;;  %1377 = vst [vmem:[#allocation2 + $0x138] sm:$0xf] %v8062_v56  ;;  %v2837_v34 = vadd.f32 %v13644_v41, %v2771_v53  ;;  %v2838_v61 = vadd.f32 %v13657_v40, %v2772_v50  ;;  %v2872_v37 = vmul.f32 %v13575_v51, %v13590_v8  ;;  %v17388_v50 = vld [vmem:[#allocation30_spill] sm:$0xff] }
 0x374   : > { %v2745_v45 = vmul.f32 %v13557_v25, %v2711_v13  ;;  %v2153_v62 = vmax.f32 %v2125_v16, 0.0  ;;  %1378 = vst [vmem:[#allocation2 + $0x144] sm:$0xf] %v8063_v23  ;;  %v2126_v63 = vadd.f32 %v17385_v26, %v2091_v27  ;;  %v2873_v10 = vmul.f32 %v13575_v51, %v2647_v14  ;;  %v2842_v23 = vld [vmem:[%s9188_s30 + $0x2f8] sm:$0xff] }
 0x375   : > { %v2904_v22 = vrot.slane %v13789_v36, 1  ;;  %v2938_v57 = vmul.f32 %v13582_v52, %v2711_v13  ;;  %v2900_v11 = vadd.f32 %v2872_v37, %v2837_v34  ;;  %v2970_v7 = vrot.slane %v13789_v36, 2  ;;  %v17389_v13 = vld [vmem:[#allocation65_spill] sm:$0xff] }
 0x376   : > { %v2181_v29 = vmin.f32 %v2153_v62, 6.0  ;;  %v3004_v41 = vmul.f32 %v13586_v28, %v2777_v46  ;;  %v2154_v39 = vmax.f32 %v2126_v63, 0.0  ;;  %v2901_v40 = vadd.f32 %v2873_v10, %v2838_v61  ;;  %v17390_v63 = vld [vmem:[#allocation82_spill] sm:$0xff] }
 0x377   : > { %v2907_v44 = vsel %vm420_vm0, %v2710_v43, %v2904_v22  ;;  %v2383_v35 = vmul.f32 %v17387_v54, %v13572_v17  ;;  %v2966_v58 = vadd.f32 %v2938_v57, %v2900_v11  ;;  %v2973_v49 = vsel %vm538_vm1, %v2776_v1, %v2970_v7  ;;  %v17391_v54 = vld [vmem:[#allocation57_spill] sm:$0xff] }
 0x378   : > { %v8090_v20 = vpack.c.bf16 %v2181_v29, %v2181_v29  ;;  %v2939_v47 = vmul.f32 %v13582_v52, %v2907_v44  ;;  %v2182_v32 = vmin.f32 %v2154_v39, 6.0  ;;  %v3005_v53 = vmul.f32 %v13586_v28, %v2973_v49 }
 0x379   : > { %v2528_v56 = vadd.f32 %v17388_v50, %v2383_v35  ;;  %v2679_v26 = vmul.f32 %v13523_v31, %v13590_v8  ;;  %v3032_v12 = vadd.f32 %v3004_v41, %v2966_v58  ;;  %v2680_v17 = vmul.f32 %v13523_v31, %v2647_v14  ;;  %v13832_v41 = vld [vmem:[%s9188_s30 + $0x318] sm:$0xff]  ;;  %v17392_v50 = vld [vmem:[#allocation81_spill] sm:$0xff] }
 0x37a   : > { %2321 = vst [vmem:[#allocation2 + $0x13c] sm:$0xf] %v8090_v20  ;;  %v2967_v16 = vadd.f32 %v2939_v47, %v2901_v40  ;;  %v2713_v46 = vsel %vm420_vm0, %v2710_v43, %v17389_v13  ;;  %v8091_v27 = vpack.c.bf16 %v2182_v32, %v2182_v32  ;;  %v2779_v31 = vsel %vm538_vm1, %v2776_v1, %v17390_v63  ;;  %v8709_v1 = vld [vmem:[%s9188_s30 + $0x300] sm:$0xff]  ;;  %v13859_v13 = vld [vmem:[%s9188_s30 + $0x390] sm:$0xff] }
 0x37b   : > { %v2645_v62 = vadd.f32 %v13623_v0, %v2528_v56  ;;  %v2707_v34 = vadd.f32 %v2679_v26, %v13637_v42  ;;  %v2746_v61 = vmul.f32 %v13557_v25, %v2713_v46  ;;  %v3067_v8 = vadd.f32 %v13626_v55, %v3032_v12  ;;  %v13851_v56 = vld [vmem:[%s9188_s30 + $0x348] sm:$0xff]  ;;  %v13854_v26 = vld [vmem:[%s9188_s30 + $0x378] sm:$0xff] }
 0x37c   : > { %v3033_v37 = vadd.f32 %v3005_v53, %v2967_v16  ;;  %v2874_v14 = vmul.f32 %v13575_v51, %v13789_v36  ;;  %2322 = vst [vmem:[#allocation2 + $0x148] sm:$0xf] %v8091_v27  ;;  %v2812_v0 = vmul.f32 %v13567_v38, %v2779_v31  ;;  %v2875_v42 = vmul.f32 %v13575_v51, %v2842_v23  ;;  %v13862_v27 = vld [vmem:[%s9188_s30 + $0x360] sm:$0xff] }
 0x37d   : > { %v2708_v43 = vadd.f32 %v2680_v17, %v2645_v62  ;;  %v2773_v10 = vadd.f32 %v2745_v45, %v2707_v34  ;;  %v3095_v57 = vmax.f32 %v3067_v8, 0.0  ;;  %v2905_v29 = vrot.slane %v2842_v23, 1 }
 0x37e   : > { %v3068_v25 = vadd.f32 %v13626_v55, %v3033_v37  ;;  %v2971_v11 = vrot.slane %v2842_v23, 2  ;;  %v3300_v36 = vmul.f32 %v8709_v1, %v13355_v3  ;;  %v3301_v45 = vmul.f32 %v13355_v3, %v13832_v41 }
 0x37f   : > { %v2774_v39 = vadd.f32 %v2746_v61, %v2708_v43  ;;  %v2839_v40 = vadd.f32 %v2811_v5, %v2773_v10  ;;  %v3123_v44 = vmin.f32 %v3095_v57, 6.0  ;;  %v2906_v51 = vsel %vm420_vm0, %v2904_v22, %v2905_v29  ;;  %v17394_v10 = vld [vmem:[#allocation69_spill] sm:$0xff] }
 0x380   : > { %v3096_v38 = vmax.f32 %v3068_v25, 0.0  ;;  %v2908_v35 = vsel %vm420_vm0, %v2905_v29, %v17391_v54  ;;  %v2940_v47 = vmul.f32 %v13582_v52, %v2906_v51  ;;  %v2972_v53 = vsel %vm538_vm1, %v2970_v7, %v2971_v11  ;;  %v8544_v7 = vld [vmem:[#allocation2 + $0x138] ss:$12 sps:$4 sm:$0xff]  }
 0x381   : > { %v2840_v20 = vadd.f32 %v2812_v0, %v2774_v39  ;;  %v2902_v5 = vadd.f32 %v2874_v14, %v2839_v40  ;;  %v2941_v58 = vmul.f32 %v13582_v52, %v2908_v35  ;;  %v8116_v32 = vpack.c.bf16 %v3123_v44, %v3123_v44  ;;  %v17393_v14 = vld [vmem:[#allocation62_spill] sm:$0xff]  ;;  %v17396_v29 = vld [vmem:[#allocation44_spill] sm:$0xff] }
 0x382   : > { %v3124_v49 = vmin.f32 %v3096_v38, 6.0  ;;  %v2974_v22 = vsel %vm538_vm1, %v2971_v11, %v17392_v50  ;;  %v3006_v17 = vmul.f32 %v13586_v28, %v2972_v53  ;;  %v3304_v62 = vmul.f32 %v13862_v27, %v13355_v3 }
 0x383   : > { %v2903_v16 = vadd.f32 %v2875_v42, %v2840_v20  ;;  %v2968_v12 = vadd.f32 %v2940_v47, %v2902_v5  ;;  %v3007_v52 = vmul.f32 %v13586_v28, %v2974_v22  ;;  %v8541_v46 = vld [vmem:[#allocation2 + $0x13c] ss:$12 sps:$4 sm:$0xff]   ;;  %3263 = vst [vmem:[#allocation2 + $0x128] sm:$0xf] %v8116_v32  ;;  %v3305_v34 = vmul.f32 %v13355_v3, %v13854_v26 }
 0x384   : > { %v8117_v23 = vpack.c.bf16 %v3124_v49, %v3124_v49  ;;  %v3357_v61 = vrot.slane %v13832_v41, 1  ;;  %v3359_v28 = vrot.slane %v13851_v56, 1  ;;  %v3361_v63 = vrot.slane %v13854_v26, 1  ;;  %7122 = vmatprep.mubr.bf16.mxu0 %v8541_v46 }
 0x385   : > { %v2969_v37 = vadd.f32 %v2941_v58, %v2903_v16  ;;  %v3034_v8 = vadd.f32 %v3006_v17, %v2968_v12  ;;  %v16660_v31 = vrot.slane %v13859_v13, 1  ;;  %v17395_v0 = vrot.slane %v17394_v10, 1  ;;  %7123 = vmatmul.mubr.bf16.gmra.mxu0 %v8544_v7  ;;  %v17397_v12 = vld [vmem:[#allocation74_spill] sm:$0xff] }
 0x386   : > { %3264 = vst [vmem:[#allocation2 + $0x134] sm:$0xf] %v8117_v23  ;;  %v3409_v43 = vsel %vm420_vm0, %v3357_v61, %v17393_v14  ;;  %v3474_v42 = vrot.slane %v13832_v41, 2  ;;  %v3406_v11 = vsel %vm420_vm0, %v17396_v29, %v3361_v63  ;;  %v3407_v39 = vsel %vm420_vm0, %v3359_v28, %v17396_v29 }
 0x387   : > { %v3410_v3 = vsel %vm420_vm0, %v17395_v0, %v3357_v61  ;;  %v3035_v25 = vadd.f32 %v3007_v52, %v2969_v37  ;;  %v3069_v57 = vadd.f32 %v13626_v55, %v3034_v8  ;;  %v3405_v40 = vsel %vm420_vm0, %v3361_v63, %v16660_v31 }
 0x388   : > { %v3408_v41 = vsel %vm420_vm0, %v17393_v14, %v3359_v28  ;;  %v3417_v1 = vmul.f32 %v13364_v19, %v3410_v3  ;;  %v3418_v38 = vmul.f32 %v13364_v19, %v3409_v43  ;;  %v13901_v35 = vmul.f32 %v13364_v19, %v3407_v39  ;;  %v13939_v3 = vld [vmem:[%s9188_s30 + $0x330] sm:$0xff] }
 0x389   : > { %v3070_v44 = vadd.f32 %v13626_v55, %v3035_v25  ;;  %v3097_v51 = vmax.f32 %v3069_v57, 0.0  ;;  %v13898_v54 = vmul.f32 %v13364_v19, %v3408_v41  ;;  %v3421_v20 = vmul.f32 %v13364_v19, %v3406_v11 }
 0x38a   : > { %v3422_v5 = vmul.f32 %v13364_v19, %v3405_v40  ;;  %v3445_v47 = vadd.f32 %v3417_v1, %v3300_v36  ;;  %v3446_v58 = vadd.f32 %v3418_v38, %v3301_v45  ;;  %v3476_v53 = vrot.slane %v13851_v56, 2  ;;  %v17398_v19 = vld [vmem:[#allocation72_spill] sm:$0xff] }
 0x38b   : > { %v3098_v49 = vmax.f32 %v3070_v44, 0.0  ;;  %v3125_v32 = vmin.f32 %v3097_v51, 6.0  ;;  %v3478_v50 = vrot.slane %v13854_v26, 2  ;;  %v3449_v55 = vadd.f32 %v3421_v20, %v3304_v62 }
 0x38c   : > { %v3450_v22 = vadd.f32 %v3422_v5, %v3305_v34  ;;  %v16659_v16 = vrot.slane %v13859_v13, 2  ;;  %v3526_v17 = vsel %vm538_vm1, %v3474_v42, %v17397_v12  ;;  %v3524_v45 = vsel %vm538_vm1, %v3476_v53, %v17398_v19 }
 0x38d   : > { %v8543_v52 = vld [vmem:[#allocation2 + $0x128] ss:$12 sps:$4 sm:$0xff]   ;;  %v3126_v46 = vmin.f32 %v3098_v49, 6.0  ;;  %v8118_v23 = vpack.c.bf16 %v3125_v32, %v3125_v32  ;;  %v3523_v36 = vsel %vm538_vm1, %v17398_v19, %v3478_v50  ;;  %v3525_v62 = vsel %vm538_vm1, %v17397_v12, %v3476_v53 }
 0x38e   : > { %v3522_v7 = vsel %vm538_vm1, %v3478_v50, %v16659_v16  ;;  %v17399_v34 = vrot.slane %v17394_v10, 2  ;;  %v3535_v37 = vmul.f32 %v13370_v18, %v3526_v17  ;;  %8281 = vmatprep.mubr.bf16.mxu1 %v8543_v52  ;;  %v13931_v63 = vmul.f32 %v13370_v18, %v3525_v62  ;;  %v13978_v17 = vld [vmem:[%s9188_s30 + $0x380] sm:$0xff]  ;;  %v13981_v52 = vld [vmem:[%s9188_s30 + $0x398] sm:$0xff] }
 0x38f   : > { %v8119_v8 = vpack.c.bf16 %v3126_v46, %v3126_v46  ;;  %3265 = vst [vmem:[#allocation2 + $0x140] sm:$0xf] %v8118_v23  ;;  %v13934_v14 = vmul.f32 %v13370_v18, %v3524_v45  ;;  %v3538_v43 = vmul.f32 %v13370_v18, %v3523_v36  ;;  %v3539_v10 = vmul.f32 %v13370_v18, %v3522_v7 }
 0x390   : > { %v3527_v61 = vsel %vm538_vm1, %v17399_v34, %v3474_v42  ;;  %v3563_v0 = vadd.f32 %v3535_v37, %v3446_v58  ;;  %v3597_v42 = vmul.f32 %v13939_v3, %v13682_v30  ;;  %v3598_v57 = vmul.f32 %v13682_v30, %v13851_v56  ;;  %17402 = vst [vmem:[#allocation71_spill] sm:$0xff] %v13978_v17  ;;  %v13997_v34 = vld [vmem:[%s9188_s30 + $0x338] sm:$0xff] }
 0x391   : > { %v3534_v28 = vmul.f32 %v13370_v18, %v3527_v61  ;;  %3266 = vst [vmem:[#allocation2 + $0x14c] sm:$0xf] %v8119_v8  ;;  %v3663_v29 = vmul.f32 %v13402_v15, %v3408_v41  ;;  %v3664_v1 = vmul.f32 %v13402_v15, %v3407_v39  ;;  %v13947_v38 = vadd.f32 %v3538_v43, %v3449_v55  ;;  %v4212_v55 = vld [vmem:[%s9188_s30 + $0x320] sm:$0xff] }
 0x392   : > { %v13949_v44 = vadd.f32 %v3539_v10, %v3450_v22  ;;  %v13952_v18 = vmul.f32 %v13402_v15, %v3406_v11  ;;  %v13955_v51 = vmul.f32 %v13402_v15, %v3405_v40  ;;  %v3626_v5 = vadd.f32 %v3598_v57, %v3563_v0  ;;  %v13973_v22 = vld [vmem:[%s9188_s30 + $0x350] sm:$0xff]  ;;  %v17404_v10 = vld [vmem:[#allocation56_spill] sm:$0xff] }
 0x393   : > { %v3562_v25 = vadd.f32 %v3534_v28, %v3445_v47  ;;  %17400 = vst [vmem:[#allocation67_spill] sm:$0xff] %v13947_v38  ;;  %v3729_v30 = vmul.f32 %v13412_v60, %v3525_v62  ;;  %v3730_v39 = vmul.f32 %v13412_v60, %v3524_v45  ;;  %v13960_v41 = vmul.f32 %v13412_v60, %v3523_v36  ;;  %v13994_v62 = vld [vmem:[#allocation6 + $0x10] ss:$0 sm:$0xff] }
 0x394   : > { %17401 = vst [vmem:[#allocation61_spill] sm:$0xff] %v13949_v44  ;;  %v13963_v47 = vmul.f32 %v13412_v60, %v3522_v7  ;;  %v3792_v58 = vmul.f32 %v13862_v27, %v13389_v24  ;;  %v3793_v15 = vmul.f32 %v13389_v24, %v13854_v26  ;;  %v3692_v32 = vadd.f32 %v3664_v1, %v3626_v5  ;;  %v8712_v24 = vld [vmem:[%s9188_s30 + $0x308] sm:$0xff]  ;;  %v14198_v44 = vld [vmem:[#allocation6 + $0x15] ss:$0 sm:$0xff] }
 0x395   : > { %v3625_v20 = vadd.f32 %v3597_v42, %v3562_v25  ;;  %v3858_v53 = vmul.f32 %v13418_v4, %v3406_v11  ;;  %v3859_v50 = vmul.f32 %v13418_v4, %v3405_v40  ;;  %v3924_v12 = vmul.f32 %v13429_v2, %v3523_v36  ;;  %v13987_v4 = vld [vmem:[%s9188_s30 + $0x368] sm:$0xff]  ;;  %17403 = vst [vmem:[#allocation90_spill] sm:$0xff] %v13994_v62  ;;  %v17405_v42 = vld [vmem:[#allocation58_spill] sm:$0xff] }
 0x396   : > { %v3925_v60 = vmul.f32 %v13429_v2, %v3522_v7  ;;  %v4244_v46 = vmul.f32 %v8712_v24, %v13703_v9  ;;  %v4245_v23 = vmul.f32 %v13703_v9, %v4212_v55  ;;  %v3758_v19 = vadd.f32 %v3730_v39, %v3692_v32 }
 0x397   : > { %v3691_v49 = vadd.f32 %v3663_v29, %v3625_v20  ;;  %v4248_v40 = vmul.f32 %v13987_v4, %v13703_v9  ;;  %v4249_v36 = vmul.f32 %v13703_v9, %v13978_v17  ;;  %v4301_v45 = vrot.slane %v4212_v55, 1  ;;  %v17406_v29 = vld [vmem:[#allocation43_spill] sm:$0xff] }
 0x398   : > { %v8545_v2 = vld [vmem:[#allocation2 + $0x140] ss:$12 sps:$4 sm:$0xff]   ;;  %v4303_v7 = vrot.slane %v13973_v22, 1  ;;  %v4541_v61 = vmul.f32 %v13997_v34, %v13994_v62  ;;  %v4542_v37 = vmul.f32 %v13994_v62, %v13973_v22  ;;  %v3821_v28 = vadd.f32 %v3793_v15, %v3758_v19  ;;  %v14029_v15 = vld [vmem:[#allocation6 + $0x5] ss:$0 sm:$0xff] }
 0x399   : > { %v3757_v11 = vadd.f32 %v3729_v30, %v3691_v49  ;;  %v4305_v43 = vrot.slane %v13978_v17, 1  ;;  %v16658_v9 = vrot.slane %v13981_v52, 1  ;;  %8282 = vmatmul.mubr.bf16.gmra.mxu1 %v8545_v2  ;;  %v4353_v57 = vsel %vm420_vm0, %v4301_v45, %v17405_v42 }
 0x39a   : > { %v4351_v0 = vsel %vm420_vm0, %v4303_v7, %v17404_v10  ;;  %v4352_v25 = vsel %vm420_vm0, %v17405_v42, %v4303_v7  ;;  %v17407_v1 = vrot.slane %v17406_v29, 1  ;;  %v3887_v30 = vadd.f32 %v3859_v50, %v3821_v28 }
 0x39b   : > { %v3820_v8 = vadd.f32 %v3792_v58, %v3757_v11  ;;  %v14022_v39 = vsel %vm420_vm0, %v4305_v43, %v16658_v9  ;;  %v14027_v58 = vsel %vm420_vm0, %v17404_v10, %v4305_v43  ;;  %v4362_v32 = vmul.f32 %v14029_v15, %v4353_v57 }
 0x39c   : > { %v4354_v20 = vsel %vm420_vm0, %v17407_v1, %v4301_v45  ;;  %v14037_v50 = vmul.f32 %v14029_v15, %v4351_v0  ;;  %v3953_v11 = vadd.f32 %v3925_v60, %v3887_v30  ;;  %v4365_v19 = vmul.f32 %v14029_v15, %v14027_v58  ;;  %v17408_v1 = vld [vmem:[#allocation84_spill] sm:$0xff] }
 0x39d   : > { %v3886_v5 = vadd.f32 %v3858_v53, %v3820_v8  ;;  %v4361_v49 = vmul.f32 %v14029_v15, %v4354_v20  ;;  %v14034_v53 = vmul.f32 %v14029_v15, %v4352_v25  ;;  %v4366_v2 = vmul.f32 %v14029_v15, %v14022_v39 }
 0x39e   : > { %v4390_v7 = vadd.f32 %v4362_v32, %v4245_v23  ;;  %v4418_v8 = vrot.slane %v4212_v55, 2  ;;  %v4420_v28 = vrot.slane %v13973_v22, 2  ;;  %v3988_v10 = vadd.f32 %v17378_v33, %v3953_v11  ;;  %v14068_v32 = vld [vmem:[#allocation6 + $0x6] ss:$0 sm:$0xff] }
 0x39f   : > { %v3952_v24 = vadd.f32 %v3924_v12, %v3886_v5  ;;  %v4389_v45 = vadd.f32 %v4361_v49, %v4244_v46  ;;  %v4393_v42 = vadd.f32 %v4365_v19, %v4248_v40  ;;  %v4394_v57 = vadd.f32 %v4366_v2, %v4249_v36  ;;  %v17409_v5 = vld [vmem:[#allocation83_spill] sm:$0xff] }
 0x3a0   : > { %v4422_v12 = vrot.slane %v13978_v17, 2  ;;  %v16657_v60 = vrot.slane %v13981_v52, 2  ;;  %v4468_v20 = vsel %vm538_vm1, %v4420_v28, %v17408_v1  ;;  %v4469_v55 = vsel %vm538_vm1, %v17409_v5, %v4420_v28 }
 0x3a1   : > { %v3987_v43 = vadd.f32 %v17378_v33, %v3952_v24  ;;  %v4016_v23 = vmax.f32 %v3988_v10, 0.0  ;;  %v4470_v33 = vsel %vm538_vm1, %v4418_v8, %v17409_v5  ;;  %v17410_v40 = vrot.slane %v17406_v29, 2 }
 0x3a2   : > { %v4466_v30 = vsel %vm538_vm1, %v4422_v12, %v16657_v60  ;;  %v4467_v49 = vsel %vm538_vm1, %v17408_v1, %v4422_v12  ;;  %v4479_v11 = vmul.f32 %v14068_v32, %v4470_v33  ;;  %v14073_v2 = vmul.f32 %v14068_v32, %v4469_v55 }
 0x3a3   : > { %v4015_v46 = vmax.f32 %v3987_v43, 0.0  ;;  %v4471_v36 = vsel %vm538_vm1, %v17410_v40, %v4418_v8  ;;  %v4044_v29 = vmin.f32 %v4016_v23, 6.0  ;;  %v14076_v8 = vmul.f32 %v14068_v32, %v4468_v20 }
 0x3a4   : > { %v4478_v24 = vmul.f32 %v14068_v32, %v4471_v36  ;;  %v4482_v28 = vmul.f32 %v14068_v32, %v4467_v49  ;;  %v4483_v43 = vmul.f32 %v14068_v32, %v4466_v30  ;;  %v4507_v12 = vadd.f32 %v4479_v11, %v4390_v7  ;;  %v5156_v11 = vld [vmem:[%s9188_s30 + $0x328] sm:$0xff] }
 0x3a5   : > { %v4043_v19 = vmin.f32 %v4015_v46, 6.0  ;;  %v8121_v5 = vpack.c.bf16 %v4044_v29, %v4044_v29  ;;  %v4607_v40 = vmul.f32 %v17370_v21, %v4352_v25  ;;  %v4608_v46 = vmul.f32 %v17370_v21, %v4351_v0 }
 0x3a6   : > { %v4506_v10 = vadd.f32 %v4478_v24, %v4389_v45  ;;  %v14082_v23 = vadd.f32 %v4482_v28, %v4393_v42  ;;  %v14084_v33 = vadd.f32 %v4483_v43, %v4394_v57  ;;  %v4570_v60 = vadd.f32 %v4542_v37, %v4507_v12  ;;  %v14103_v24 = vld [vmem:[%s9188_s30 + $0x310] sm:$0xff]  ;;  %v14121_v28 = vld [vmem:[%s9188_s30 + $0x340] sm:$0xff]  ;;  %v14124_v43 = vld [vmem:[%s9188_s30 + $0x358] sm:$0xff] }
 0x3a7   : > { %v8120_v1 = vpack.c.bf16 %v4043_v19, %v4043_v19  ;;  %4184 = vst [vmem:[#allocation2 + $0x15c] sm:$0xf] %v8121_v5  ;;  %v14088_v45 = vmul.f32 %v17370_v21, %v14027_v58  ;;  %v14092_v7 = vmul.f32 %v17370_v21, %v14022_v39  ;;  %v4673_v0 = vmul.f32 %v17371_v59, %v4469_v55  ;;  %v14106_v21 = vld [vmem:[#allocation6 + $0x8] ss:$0 sm:$0xff]  ;;  %v14108_v19 = vld [vmem:[#allocation6 + $0x1c] ss:$0 sm:$0xff] }
 0x3a8   : > { %17411 = vst [vmem:[#allocation91_spill] sm:$0xff] %v14082_v23  ;;  %17412 = vst [vmem:[#allocation32_spill] sm:$0xff] %v14084_v33  ;;  %v4569_v36 = vadd.f32 %v4541_v61, %v4506_v10  ;;  %v4674_v25 = vmul.f32 %v17371_v59, %v4468_v20  ;;  %v4636_v57 = vadd.f32 %v4608_v46, %v4570_v60  ;;  %v14114_v20 = vld [vmem:[#allocation6 + $0x1d] ss:$0 sm:$0xff]  ;;  %v14127_v5 = vld [vmem:[#allocation6 + $0x1e] ss:$0 sm:$0xff] }
 0x3a9   : > { %4183 = vst [vmem:[#allocation2 + $0x150] sm:$0xf] %v8120_v1  ;;  %17413 = vst [vmem:[#allocation70_spill] sm:$0xff] %v14088_v45  ;;  %v14097_v61 = vmul.f32 %v17371_v59, %v4467_v49  ;;  %v14100_v37 = vmul.f32 %v17371_v59, %v4466_v30  ;;  %v4736_v55 = vmul.f32 %v14108_v19, %v13987_v4  ;;  %v14131_v46 = vld [vmem:[%s9188_s30 + $0x370] sm:$0xff]  ;;  %v5245_v9 = vrot.slane %v5156_v11, 1 }
 0x3aa   : > { %17414 = vst [vmem:[#allocation73_spill] sm:$0xff] %v14092_v7  ;;  %v4635_v42 = vadd.f32 %v4607_v40, %v4569_v36  ;;  %17417 = vst [vmem:[#allocation66_spill] sm:$0xff] %v14103_v24  ;;  %v4737_v60 = vmul.f32 %v14108_v19, %v13978_v17  ;;  %v4802_v59 = vmul.f32 %v14114_v20, %v14027_v58  ;;  %v14216_v7 = vld [vmem:[%s9188_s30 + $0x3a0] sm:$0xff] }
 0x3ab   : > { %17415 = vst [vmem:[#allocation63_spill] sm:$0xff] %v14097_v61  ;;  %17416 = vst [vmem:[#allocation94_spill] sm:$0xff] %v14100_v37  ;;  %v4803_v29 = vmul.f32 %v14114_v20, %v14022_v39  ;;  %v4702_v12 = vadd.f32 %v4674_v25, %v4636_v57  ;;  %v4868_v1 = vmul.f32 %v17382_v48, %v4467_v49  ;;  %v16661_v39 = vrot.slane %v14103_v24, 1  ;;  %v14141_v49 = vld [vmem:[#allocation6 + $0x9] ss:$0 sm:$0xff] }
 0x3ac   : > { %17418 = vst [vmem:[#allocation89_spill] sm:$0xff] %v14108_v19  ;;  %17419 = vst [vmem:[#allocation93_spill] sm:$0xff] %v14114_v20  ;;  %v4701_v10 = vadd.f32 %v4673_v0, %v4635_v42  ;;  %v4869_v40 = vmul.f32 %v14127_v5, %v4466_v30  ;;  %v5188_v58 = vmul.f32 %v14106_v21, %v14103_v24  ;;  %v14138_v0 = vrot.slane %v14121_v28, 1  ;;  %v14213_v20 = vld [vmem:[%s9188_s30 + $0x388] sm:$0xff] }
 0x3ad   : > { %17420 = vst [vmem:[#allocation86_spill] sm:$0xff] %v14127_v5  ;;  %v5189_v36 = vmul.f32 %v14106_v21, %v5156_v11  ;;  %v4765_v31 = vadd.f32 %v4737_v60, %v4702_v12  ;;  %v5247_v48 = vrot.slane %v14124_v43, 1  ;;  %v14144_v30 = vrot.slane %v14131_v46, 1 }
 0x3ae   : > { %v4764_v16 = vadd.f32 %v4736_v55, %v4701_v10  ;;  %17421 = vst [vmem:[#allocation78_spill] sm:$0xff] %v14138_v0  ;;  %v5298_v25 = vsel %vm420_vm0, %v16661_v39, %v5245_v9  ;;  %v5362_v57 = vrot.slane %v5156_v11, 2  ;;  %v5297_v12 = vsel %vm420_vm0, %v5245_v9, %v14138_v0  ;;  %v14171_v9 = vld [vmem:[#allocation6 + $0xa] ss:$0 sm:$0xff] }
 0x3af   : > { %17422 = vst [vmem:[#allocation59_spill] sm:$0xff] %v14144_v30  ;;  %v4831_v60 = vadd.f32 %v4803_v29, %v4765_v31  ;;  %v5296_v10 = vsel %vm420_vm0, %v14138_v0, %v5247_v48  ;;  %v5295_v33 = vsel %vm420_vm0, %v5247_v48, %v14144_v30  ;;  %v5305_v23 = vmul.f32 %v14141_v49, %v5298_v25 }
 0x3b0   : > { %v4830_v55 = vadd.f32 %v4802_v59, %v4764_v16  ;;  %v5306_v39 = vmul.f32 %v14141_v49, %v5297_v12  ;;  %v14163_v11 = vmul.f32 %v14141_v49, %v5296_v10  ;;  %v14166_v59 = vmul.f32 %v14141_v49, %v5295_v33  ;;  %17424 = vst [vmem:[#allocation22_spill] sm:$0xff] %v14171_v9  ;;  %v14177_v12 = vld [vmem:[#allocation8 + $0x1] ss:$0 sm:$0xff] }
 0x3b1   : > { %v4897_v16 = vadd.f32 %v4869_v40, %v4831_v60  ;;  %v14169_v29 = vrot.slane %v14121_v28, 2  ;;  %v5333_v42 = vadd.f32 %v5305_v23, %v5188_v58  ;;  %v5364_v48 = vrot.slane %v14124_v43, 2  ;;  %17426 = vst [vmem:[#allocation45_spill] sm:$0xff] %v14177_v12  ;;  %v14188_v58 = vld [vmem:[#allocation6 + $0x14] ss:$0 sm:$0xff] }
 0x3b2   : > { %v4896_v31 = vadd.f32 %v4868_v1, %v4830_v55  ;;  %v5334_v0 = vadd.f32 %v5306_v39, %v5189_v36  ;;  %v14175_v25 = vrot.slane %v14131_v46, 2  ;;  %v17427_v60 = vrot.slane %v14103_v24, 2  ;;  %17428 = vst [vmem:[#allocation87_spill] sm:$0xff] %v14188_v58 }
 0x3b3   : > { %17423 = vst [vmem:[#allocation75_spill] sm:$0xff] %v14169_v29  ;;  %v4932_v40 = vadd.f32 %v14177_v12, %v4897_v16  ;;  %v5414_v55 = vsel %vm538_vm1, %v5362_v57, %v14169_v29  ;;  %v5413_v39 = vsel %vm538_vm1, %v14169_v29, %v5364_v48  ;;  %v5763_v17 = vrot.slane %v14213_v20, 1 }
 0x3b4   : > { %17425 = vst [vmem:[#allocation17_spill] sm:$0xff] %v14175_v25  ;;  %v4931_v1 = vadd.f32 %v14177_v12, %v4896_v31  ;;  %v5415_v23 = vsel %vm538_vm1, %v17427_v60, %v5362_v57  ;;  %v5412_v36 = vsel %vm538_vm1, %v5364_v48, %v14175_v25  ;;  %v5423_v16 = vmul.f32 %v14171_v9, %v5414_v55  ;;  %v14202_v12 = vld [vmem:[#allocation6 + $0x16] ss:$0 sm:$0xff] }
 0x3b5   : > { %v5422_v31 = vmul.f32 %v14171_v9, %v5415_v23  ;;  %v4960_v57 = vmax.f32 %v4932_v40, 0.0  ;;  %v5424_v60 = vmul.f32 %v14171_v9, %v5413_v39  ;;  %v5425_v38 = vmul.f32 %v14171_v9, %v5412_v36  ;;  %17429 = vst [vmem:[#allocation88_spill] sm:$0xff] %v14202_v12  ;;  %v14208_v23 = vld [vmem:[#allocation6 + $0x20] ss:$0 sm:$0xff] }
 0x3b6   : > { %v4959_v24 = vmax.f32 %v4931_v1, 0.0  ;;  %v5451_v5 = vadd.f32 %v5423_v16, %v5334_v0  ;;  %v5485_v48 = vmul.f32 %v14188_v58, %v14121_v28  ;;  %v5486_v55 = vmul.f32 %v14188_v58, %v14124_v43  ;;  %17430 = vst [vmem:[#allocation92_spill] sm:$0xff] %v14208_v23 }
 0x3b7   : > { %v5450_v37 = vadd.f32 %v5422_v31, %v5333_v42  ;;  %v4988_v61 = vmin.f32 %v4960_v57, 6.0  ;;  %v5551_v1 = vmul.f32 %v14198_v44, %v5296_v10  ;;  %v5552_v40 = vmul.f32 %v14198_v44, %v5295_v33 }
 0x3b8   : > { %v4987_v29 = vmin.f32 %v4959_v24, 6.0  ;;  %v5514_v0 = vadd.f32 %v5486_v55, %v5451_v5  ;;  %v5617_v31 = vmul.f32 %v14202_v12, %v5413_v39  ;;  %v5618_v16 = vmul.f32 %v14202_v12, %v5412_v36 }
 0x3b9   : > { %v5513_v42 = vadd.f32 %v5485_v48, %v5450_v37  ;;  %v8149_v45 = vpack.c.bf16 %v4988_v61, %v4988_v61  ;;  %v5706_v24 = vmul.f32 %v14208_v23, %v14131_v46  ;;  %v5707_v10 = vmul.f32 %v14208_v23, %v14213_v20  ;;  %v14226_v37 = vld [vmem:[#allocation6 + $0x21] ss:$0 sm:$0xff] }
 0x3ba   : > { %v8148_v19 = vpack.c.bf16 %v4987_v29, %v4987_v29  ;;  %v5580_v33 = vadd.f32 %v5552_v40, %v5514_v0  ;;  %v16678_v62 = vrot.slane %v14216_v7, 1  ;;  %17431 = vst [vmem:[#allocation18_spill] sm:$0xff] %v14226_v37  ;;  %v5880_v5 = vrot.slane %v14213_v20, 2  ;;  %v14230_v29 = vld [vmem:[#allocation6 + $0x22] ss:$0 sm:$0xff] }
 0x3bb   : > { %v5579_v57 = vadd.f32 %v5551_v1, %v5513_v42  ;;  %5128 = vst [vmem:[#allocation2 + $0x160] sm:$0xf] %v8149_v45  ;;  %v16677_v61 = vrot.slane %v14216_v7, 2  ;;  %17432 = vst [vmem:[#allocation20_spill] sm:$0xff] %v14230_v29  ;;  %v5190_v36 = vmul.f32 %v14106_v21, %v14121_v28  ;;  %v5191_v39 = vmul.f32 %v14106_v21, %v14124_v43 }
 0x3bc   : > { %5127 = vst [vmem:[#allocation2 + $0x154] sm:$0xf] %v8148_v19  ;;  %v5646_v55 = vadd.f32 %v5618_v16, %v5580_v33  ;;  %v5815_v19 = vsel %vm420_vm0, %v5763_v17, %v16678_v62  ;;  %v5816_v45 = vsel %vm420_vm0, %v14144_v30, %v5763_v17  ;;  %v5933_v43 = vsel %vm538_vm1, %v14175_v25, %v5880_v5 }
 0x3bd   : > { %v5645_v48 = vadd.f32 %v5617_v31, %v5579_v57  ;;  %v5823_v1 = vmul.f32 %v14226_v37, %v5816_v45  ;;  %v5824_v40 = vmul.f32 %v14226_v37, %v5815_v19  ;;  %v5932_v28 = vsel %vm538_vm1, %v5880_v5, %v16677_v61  ;;  %v14268_v5 = vld [vmem:[#allocation8 + $0x2] ss:$0 sm:$0xff] }
 0x3be   : > { %v5735_v0 = vadd.f32 %v5707_v10, %v5646_v55  ;;  %v5940_v31 = vmul.f32 %v14230_v29, %v5933_v43  ;;  %v5941_v17 = vmul.f32 %v14230_v29, %v5932_v28  ;;  %v14255_v16 = vmul.f32 %v14141_v49, %v5816_v45 }
 0x3bf   : > { %v5734_v42 = vadd.f32 %v5706_v24, %v5645_v48  ;;  %v14258_v57 = vmul.f32 %v14141_v49, %v5815_v19  ;;  %v5335_v33 = vadd.f32 %v14163_v11, %v5190_v36  ;;  %v5336_v61 = vadd.f32 %v14166_v59, %v5191_v39  ;;  %v14275_v59 = vld [vmem:[%s9188_s30 + $0x3b8] sm:$0xff] }
 0x3c0   : > { %v5852_v30 = vadd.f32 %v5824_v40, %v5735_v0  ;;  %v14263_v24 = vmul.f32 %v14171_v9, %v5933_v43  ;;  %v14266_v10 = vmul.f32 %v14171_v9, %v5932_v28  ;;  %v5487_v25 = vmul.f32 %v14188_v58, %v14131_v46 }
 0x3c1   : > { %17433 = vst [vmem:[#allocation19_spill] sm:$0xff] %v14258_v57  ;;  %v5851_v62 = vadd.f32 %v5823_v1, %v5734_v42  ;;  %v5452_v48 = vadd.f32 %v5424_v60, %v5335_v33  ;;  %v5453_v55 = vadd.f32 %v5425_v38, %v5336_v61  ;;  %v5488_v11 = vmul.f32 %v14188_v58, %v14213_v20 }
 0x3c2   : > { %17434 = vst [vmem:[#allocation21_spill] sm:$0xff] %v14263_v24  ;;  %17435 = vst [vmem:[#allocation77_spill] sm:$0xff] %v14266_v10  ;;  %v6285_v39 = vld [vmem:[#allocation2 + $0x15c] sm:$0xff]  ;;  %v5969_v42 = vadd.f32 %v5941_v17, %v5852_v30  ;;  %v5553_v0 = vmul.f32 %v14198_v44, %v5816_v45  ;;  %v5554_v10 = vmul.f32 %v14198_v44, %v5815_v19  ;;  %v14281_v24 = vld [vmem:[%s9188_s30 + $0x3d0] sm:$0xff]  ;;  %v5765_v45 = vrot.slane %v14275_v59, 1 }
 0x3c3   : > { %v6283_v36 = vld [vmem:[#allocation2 + $0x150] sm:$0xff]  ;;  %v5968_v40 = vadd.f32 %v5940_v31, %v5851_v62  ;;  %v5515_v33 = vadd.f32 %v5487_v25, %v5452_v48  ;;  %v5516_v38 = vadd.f32 %v5488_v11, %v5453_v55  ;;  %v5619_v61 = vmul.f32 %v14202_v12, %v5933_v43 }
 0x3c4   : > { %v8546_v1 = vld [vmem:[#allocation2 + $0x154] ss:$12 sps:$4 sm:$0xff]   ;;  %v7967_v60 = vcombine.low %v6283_v36, %v6285_v39  ;;  %v6004_v9 = vadd.f32 %v14268_v5, %v5969_v42  ;;  %v5620_v57 = vmul.f32 %v14202_v12, %v5932_v28  ;;  %v5708_v62 = vmul.f32 %v14208_v23, %v14216_v7 }
 0x3c5   : > { %7130 = vmatprep.mubr.bf16.mxu0 %v8546_v1  ;;  %v6003_v58 = vadd.f32 %v14268_v5, %v5968_v40  ;;  %v5581_v30 = vadd.f32 %v5553_v0, %v5515_v33  ;;  %v5582_v19 = vadd.f32 %v5554_v10, %v5516_v38  ;;  %v5709_v25 = vmul.f32 %v14208_v23, %v14275_v59 }
 0x3c6   : > { %7131 = vmatmul.mubr.bf16.gmra.mxu0 %v7967_v60  ;;  %v6032_v31 = vmax.f32 %v6004_v9, 0.0  ;;  %v16687_v17 = vrot.slane %v14281_v24, 1  ;;  %v5882_v48 = vrot.slane %v14275_v59, 2  ;;  %v17436_v11 = vrot.slane %v14216_v7, 1  ;;  %v14317_v60 = vld [vmem:[%s9188_s30 + $0x3a8] sm:$0xff] }
 0x3c7   : > { %v6031_v43 = vmax.f32 %v6003_v58, 0.0  ;;  %v5647_v55 = vadd.f32 %v5619_v61, %v5581_v30  ;;  %v5648_v28 = vadd.f32 %v5620_v57, %v5582_v19  ;;  %v16686_v36 = vrot.slane %v14281_v24, 2  ;;  %v14328_v19 = vld [vmem:[%s9188_s30 + $0x3c0] sm:$0xff] }
 0x3c8   : > { %v14297_v10 = vsel %vm420_vm0, %v17436_v11, %v5765_v45  ;;  %v6060_v1 = vmin.f32 %v6032_v31, 6.0  ;;  %v14304_v9 = vsel %vm420_vm0, %v5765_v45, %v16687_v17  ;;  %v17437_v61 = vrot.slane %v14216_v7, 2  ;;  %17438 = vst [vmem:[#allocation24_spill] sm:$0xff] %v14328_v19  ;;  %v14332_v31 = vld [vmem:[#allocation6] ss:$0 sm:$0xff] }
 0x3c9   : > { %v6059_v39 = vmin.f32 %v6031_v43, 6.0  ;;  %v5825_v58 = vmul.f32 %v14226_v37, %v14297_v10  ;;  %v5736_v57 = vadd.f32 %v5708_v62, %v5647_v55  ;;  %v5737_v40 = vadd.f32 %v5709_v25, %v5648_v28  ;;  %17439 = vst [vmem:[#allocation26_spill] sm:$0xff] %v14332_v31 }
 0x3ca   : > { %v5826_v42 = vmul.f32 %v14226_v37, %v14304_v9  ;;  %v14314_v0 = vsel %vm538_vm1, %v5882_v48, %v16686_v36  ;;  %v8177_v38 = vpack.c.bf16 %v6060_v1, %v6060_v1  ;;  %v14323_v30 = vsel %vm538_vm1, %v17437_v61, %v5882_v48 }
 0x3cb   : > { %v8176_v33 = vpack.c.bf16 %v6059_v39, %v6059_v39  ;;  %v5943_v62 = vmul.f32 %v14230_v29, %v14314_v0  ;;  %v5853_v25 = vadd.f32 %v5825_v58, %v5736_v57  ;;  %v5942_v43 = vmul.f32 %v14230_v29, %v14323_v30 }
 0x3cc   : > { %v5854_v45 = vadd.f32 %v5826_v42, %v5737_v40  ;;  %v3302_v55 = vmul.f32 %v14332_v31, %v13939_v3  ;;  %6200 = vst [vmem:[#allocation2 + $0x164] sm:$0xf] %v8177_v38  ;;  %v3303_v48 = vmul.f32 %v14332_v31, %v13851_v56  ;;  %v3306_v28 = vmul.f32 %v14332_v31, %v13859_v13 }
 0x3cd   : > { %6199 = vst [vmem:[#allocation2 + $0x158] sm:$0xf] %v8176_v33  ;;  %v3307_v11 = vmul.f32 %v14332_v31, %v14317_v60  ;;  %v3363_v39 = vrot.slane %v14317_v60, 1  ;;  %v5970_v1 = vadd.f32 %v5942_v43, %v5853_v25  ;;  %v16685_v57 = vrot.slane %v14328_v19, 1 }
 0x3ce   : > { %v5971_v58 = vadd.f32 %v5943_v62, %v5854_v45  ;;  %v3447_v40 = vadd.f32 %v13898_v54, %v3302_v55  ;;  %v17440_v3 = vrot.slane %v13859_v13, 1  ;;  %v3448_v56 = vadd.f32 %v13901_v35, %v3303_v48  ;;  %v14358_v62 = vld [vmem:[#allocation6 + $0x1] ss:$0 sm:$0xff] }
 0x3cf   : > { %v3480_v33 = vrot.slane %v14317_v60, 2  ;;  %v16692_v38 = vrot.slane %v14328_v19, 2  ;;  %v6005_v61 = vadd.f32 %v14268_v5, %v5970_v1  ;;  %v3403_v54 = vsel %vm420_vm0, %v3363_v39, %v16685_v57  ;;  %17441 = vst [vmem:[#allocation33_spill] sm:$0xff] %v14358_v62  ;;  %v14371_v57 = vld [vmem:[#allocation6 + $0x2] ss:$0 sm:$0xff] }
 0x3d0   : > { %v3404_v42 = vsel %vm420_vm0, %v17440_v3, %v3363_v39  ;;  %v6006_v25 = vadd.f32 %v14268_v5, %v5971_v58  ;;  %v3424_v43 = vmul.f32 %v14358_v62, %v3403_v54  ;;  %v17442_v55 = vrot.slane %v13859_v13, 2 }
 0x3d1   : > { %v3423_v45 = vmul.f32 %v14358_v62, %v3404_v42  ;;  %v3520_v35 = vsel %vm538_vm1, %v3480_v33, %v16692_v38  ;;  %v3564_v1 = vadd.f32 %v13931_v63, %v3447_v40  ;;  %v6033_v58 = vmax.f32 %v6005_v61, 0.0  ;;  %v14376_v38 = vld [vmem:[#allocation6 + $0xc] ss:$0 sm:$0xff] }
 0x3d2   : > { %v3521_v48 = vsel %vm538_vm1, %v17442_v55, %v3480_v33  ;;  %v6034_v39 = vmax.f32 %v6006_v25, 0.0  ;;  %v3452_v17 = vadd.f32 %v3424_v43, %v3307_v11  ;;  %v3541_v62 = vmul.f32 %v14371_v57, %v3520_v35  ;;  %17443 = vst [vmem:[#allocation76_spill] sm:$0xff] %v14376_v38  ;;  %v14394_v25 = vld [vmem:[#allocation6 + $0xe] ss:$0 sm:$0xff]  ;;  %v14402_v43 = vld [vmem:[#allocation6 + $0x18] ss:$0 sm:$0xff] }
 0x3d3   : > { %v3451_v3 = vadd.f32 %v3423_v45, %v3306_v28  ;;  %v3540_v36 = vmul.f32 %v14371_v57, %v3521_v48  ;;  %v3565_v31 = vadd.f32 %v13934_v14, %v3448_v56  ;;  %v3599_v19 = vmul.f32 %v14376_v38, %v13862_v27  ;;  %v14384_v28 = vld [vmem:[#allocation6 + $0xd] ss:$0 sm:$0xff] }
 0x3d4   : > { %v8548_v33 = vld [vmem:[#allocation2 + $0x158] ss:$12 sps:$4 sm:$0xff]   ;;  %v3600_v63 = vmul.f32 %v14376_v38, %v13854_v26  ;;  %v14387_v40 = vmul.f32 %v14384_v28, %v3404_v42  ;;  %v14390_v11 = vmul.f32 %v14384_v28, %v3403_v54  ;;  %v6061_v14 = vmin.f32 %v6033_v58, 6.0 }
 0x3d5   : > { %v14380_v55 = vadd.f32 %v3540_v36, %v3451_v3  ;;  %v6062_v56 = vmin.f32 %v6034_v39, 6.0  ;;  %v14392_v61 = vadd.f32 %v3541_v62, %v3452_v17  ;;  %v3627_v27 = vadd.f32 %v3599_v19, %v3564_v1  ;;  %8285 = vmatprep.mubr.bf16.mxu1 %v8548_v33  ;;  %v14410_v62 = vld [vmem:[%s9188_s30 + $0x3b0] sm:$0xff]  ;;  %v14413_v3 = vld [vmem:[#allocation6 + $0x19] ss:$0 sm:$0xff] }
 0x3d6   : > { %v3628_v36 = vadd.f32 %v3600_v63, %v3565_v31  ;;  %v14397_v26 = vmul.f32 %v14394_v25, %v3521_v48  ;;  %v14400_v45 = vmul.f32 %v14394_v25, %v3520_v35  ;;  %v3794_v58 = vmul.f32 %v14402_v43, %v13859_v13 }
 0x3d7   : > { %17444 = vst [vmem:[#allocation68_spill] sm:$0xff] %v14380_v55  ;;  %17445 = vst [vmem:[#allocation96_spill] sm:$0xff] %v14392_v61  ;;  %v8178_v39 = vpack.c.bf16 %v6061_v14, %v6061_v14  ;;  %v8179_v17 = vpack.c.bf16 %v6062_v56, %v6062_v56  ;;  %v3693_v19 = vadd.f32 %v13952_v18, %v3627_v27  ;;  %v14417_v61 = vld [vmem:[#allocation6 + $0x1a] ss:$0 sm:$0xff]  ;;  %v14421_v14 = vld [vmem:[%s9188_s30 + $0x3c8] sm:$0xff] }
 0x3d8   : > { %v3795_v31 = vmul.f32 %v14402_v43, %v14317_v60  ;;  %v3694_v1 = vadd.f32 %v13955_v51, %v3628_v36  ;;  %v3860_v33 = vmul.f32 %v14413_v3, %v3404_v42  ;;  %v3861_v63 = vmul.f32 %v14413_v3, %v3403_v54  ;;  %17446 = vst [vmem:[#allocation64_spill] sm:$0xff] %v14417_v61  ;;  %v14425_v27 = vld [vmem:[#allocation6 + $0x4] ss:$0 sm:$0xff] }
 0x3d9   : > { %v3926_v13 = vmul.f32 %v14417_v61, %v3521_v48  ;;  %17447 = vst [vmem:[#allocation79_spill] sm:$0xff] %v14421_v14  ;;  %6201 = vst [vmem:[#allocation2 + $0x170] sm:$0xf] %v8178_v39  ;;  %v3759_v18 = vadd.f32 %v13960_v41, %v3693_v19  ;;  %v3927_v56 = vmul.f32 %v14417_v61, %v3520_v35  ;;  %v4307_v41 = vrot.slane %v14410_v62, 1 }
 0x3da   : > { %6202 = vst [vmem:[#allocation2 + $0x17c] sm:$0xf] %v8179_v17  ;;  %17448 = vst [vmem:[#allocation85_spill] sm:$0xff] %v14425_v27  ;;  %v4246_v51 = vmul.f32 %v14425_v27, %v13997_v34  ;;  %v4247_v42 = vmul.f32 %v14425_v27, %v13973_v22  ;;  %v3760_v54 = vadd.f32 %v13963_v47, %v3694_v1  ;;  %v16697_v35 = vrot.slane %v14421_v14, 1 }
 0x3db   : > { %v4250_v48 = vmul.f32 %v14425_v27, %v13981_v52  ;;  %v4251_v36 = vmul.f32 %v14425_v27, %v14410_v62  ;;  %v3822_v39 = vadd.f32 %v3794_v58, %v3759_v18  ;;  %v17449_v22 = vrot.slane %v13981_v52, 1 }
 0x3dc   : > { %v4391_v17 = vadd.f32 %v14034_v53, %v4246_v51  ;;  %v4392_v34 = vadd.f32 %v14037_v50, %v4247_v42  ;;  %v3823_v19 = vadd.f32 %v3795_v31, %v3760_v54  ;;  %v4424_v1 = vrot.slane %v14410_v62, 2 }
 0x3dd   : > { %v4348_v47 = vsel %vm420_vm0, %v17449_v22, %v4307_v41  ;;  %v16698_v55 = vrot.slane %v14421_v14, 2  ;;  %v3888_v27 = vadd.f32 %v3860_v33, %v3822_v39  ;;  %v4347_v58 = vsel %vm420_vm0, %v4307_v41, %v16697_v35 }
 0x3de   : > { %v4367_v53 = vmul.f32 %v14029_v15, %v4348_v47  ;;  %v4508_v50 = vadd.f32 %v14073_v2, %v4391_v17  ;;  %v3889_v31 = vadd.f32 %v3861_v63, %v3823_v19  ;;  %v4368_v18 = vmul.f32 %v14029_v15, %v4347_v58  ;;  %v17451_v19 = vld [vmem:[#allocation90_spill] sm:$0xff] }
 0x3df   : > { %v4464_v51 = vsel %vm538_vm1, %v4424_v1, %v16698_v55  ;;  %v17450_v42 = vrot.slane %v13981_v52, 2  ;;  %v3954_v54 = vadd.f32 %v3926_v13, %v3888_v27  ;;  %v4509_v15 = vadd.f32 %v14076_v8, %v4392_v34  ;;  %v14466_v55 = vld [vmem:[#allocation8] ss:$0 sm:$0xff]  ;;  %v17453_v13 = vld [vmem:[#allocation71_spill] sm:$0xff] }
 0x3e0   : > { %v4395_v39 = vadd.f32 %v4367_v53, %v4250_v48  ;;  %v4485_v22 = vmul.f32 %v14068_v32, %v4464_v51  ;;  %v3955_v63 = vadd.f32 %v3927_v56, %v3889_v31  ;;  %v4396_v17 = vadd.f32 %v4368_v18, %v4251_v36  ;;  %v14473_v48 = vld [vmem:[#allocation6 + $0x11] ss:$0 sm:$0xff]  ;;  %v14484_v31 = vld [vmem:[#allocation6 + $0x12] ss:$0 sm:$0xff] }
 0x3e1   : > { %v4465_v33 = vsel %vm538_vm1, %v17450_v42, %v4424_v1  ;;  %v8549_v2 = vld [vmem:[#allocation2 + $0x170] ss:$12 sps:$4 sm:$0xff]   ;;  %v4543_v35 = vmul.f32 %v17451_v19, %v13987_v4  ;;  %v3989_v14 = vadd.f32 %v14466_v55, %v3954_v54  ;;  %v4544_v27 = vmul.f32 %v17451_v19, %v17453_v13 }
 0x3e2   : > { %v4484_v41 = vmul.f32 %v14068_v32, %v4465_v33  ;;  %v14476_v1 = vmul.f32 %v14473_v48, %v4348_v47  ;;  %8286 = vmatmul.mubr.bf16.gmra.mxu1 %v8549_v2  ;;  %v3990_v8 = vadd.f32 %v14466_v55, %v3955_v63  ;;  %v14479_v56 = vadd.f32 %v4485_v22, %v4396_v17  ;;  %v17458_v22 = vld [vmem:[#allocation89_spill] sm:$0xff] }
 0x3e3   : > { %v4571_v4 = vadd.f32 %v4543_v35, %v4508_v50  ;;  %v14482_v36 = vmul.f32 %v14473_v48, %v4347_v58  ;;  %v4017_v34 = vmax.f32 %v3989_v14, 0.0  ;;  %v4572_v53 = vadd.f32 %v4544_v27, %v4509_v15  ;;  %v17459_v14 = vld [vmem:[#allocation73_spill] sm:$0xff]  ;;  %v17461_v27 = vld [vmem:[#allocation63_spill] sm:$0xff] }
 0x3e4   : > { %v14469_v61 = vadd.f32 %v4484_v41, %v4395_v39  ;;  %17454 = vst [vmem:[#allocation25_spill] sm:$0xff] %v14479_v56  ;;  %v14487_v18 = vmul.f32 %v14484_v31, %v4465_v33  ;;  %v14490_v42 = vmul.f32 %v14484_v31, %v4464_v51  ;;  %v4018_v54 = vmax.f32 %v3990_v8, 0.0  ;;  %v17457_v39 = vld [vmem:[#allocation70_spill] sm:$0xff]  ;;  %v17460_v17 = vld [vmem:[#allocation93_spill] sm:$0xff] }
 0x3e5   : > { %v4637_v41 = vadd.f32 %v17457_v39, %v4571_v4  ;;  %v4738_v2 = vmul.f32 %v17458_v22, %v13981_v52  ;;  %v4739_v35 = vmul.f32 %v17458_v22, %v14410_v62  ;;  %v4045_v50 = vmin.f32 %v4017_v34, 6.0 }
 0x3e6   : > { %17452 = vst [vmem:[#allocation95_spill] sm:$0xff] %v14469_v61  ;;  %17455 = vst [vmem:[#allocation31_spill] sm:$0xff] %v14487_v18  ;;  %v4638_v63 = vadd.f32 %v17459_v14, %v4572_v53  ;;  %v4804_v15 = vmul.f32 %v17460_v17, %v4348_v47  ;;  %v4805_v19 = vmul.f32 %v17460_v17, %v4347_v58  ;;  %v4046_v13 = vmin.f32 %v4018_v54, 6.0  ;;  %v17462_v61 = vld [vmem:[#allocation86_spill] sm:$0xff]  ;;  %v17464_v54 = vld [vmem:[#allocation19_spill] sm:$0xff] }
 0x3e7   : > { %17456 = vst [vmem:[#allocation55_spill] sm:$0xff] %v14490_v42  ;;  %v4703_v56 = vadd.f32 %v17461_v27, %v4637_v41  ;;  %v4870_v8 = vmul.f32 %v17462_v61, %v4465_v33  ;;  %v4871_v4 = vmul.f32 %v17462_v61, %v4464_v51  ;;  %v8122_v39 = vpack.c.bf16 %v4045_v50, %v4045_v50  ;;  %v17463_v42 = vld [vmem:[#allocation94_spill] sm:$0xff] }
 0x3e8   : > { %v4704_v52 = vadd.f32 %v17463_v42, %v4638_v63  ;;  %v5192_v18 = vmul.f32 %v14106_v21, %v14131_v46  ;;  %v5193_v34 = vmul.f32 %v14106_v21, %v14213_v20  ;;  %v8123_v53 = vpack.c.bf16 %v4046_v13, %v4046_v13  ;;  %v17465_v46 = vld [vmem:[#allocation22_spill] sm:$0xff] }
 0x3e9   : > { %v4766_v47 = vadd.f32 %v4738_v2, %v4703_v56  ;;  %v5311_v58 = vmul.f32 %v14141_v49, %v14297_v10  ;;  %v5312_v33 = vmul.f32 %v14141_v49, %v14304_v9  ;;  %4185 = vst [vmem:[#allocation2 + $0x168] sm:$0xf] %v8122_v39  ;;  %v5428_v50 = vmul.f32 %v17465_v46, %v14323_v30  ;;  %v17466_v2 = vld [vmem:[#allocation87_spill] sm:$0xff] }
 0x3ea   : > { %v4767_v51 = vadd.f32 %v4739_v35, %v4704_v52  ;;  %v5337_v42 = vadd.f32 %v14255_v16, %v5192_v18  ;;  %v5338_v41 = vadd.f32 %v17464_v54, %v5193_v34  ;;  %4186 = vst [vmem:[#allocation2 + $0x174] sm:$0xf] %v8123_v53  ;;  %v5429_v56 = vmul.f32 %v17465_v46, %v14314_v0  ;;  %v17467_v35 = vld [vmem:[#allocation21_spill] sm:$0xff] }
 0x3eb   : > { %v4832_v20 = vadd.f32 %v4804_v15, %v4766_v47  ;;  %v5489_v14 = vmul.f32 %v17466_v2, %v14216_v7  ;;  %v5490_v63 = vmul.f32 %v17466_v2, %v14275_v59  ;;  %v17468_v16 = vld [vmem:[#allocation77_spill] sm:$0xff]  ;;  %v5555_v39 = vmul.f32 %v14198_v44, %v14297_v10  ;;  %v14530_v15 = vld [vmem:[%s9188_s30 + $0x400] sm:$0xff] }
 0x3ec   : > { %v4833_v13 = vadd.f32 %v4805_v19, %v4767_v51  ;;  %v5454_v27 = vadd.f32 %v17467_v35, %v5337_v42  ;;  %v5455_v18 = vadd.f32 %v17468_v16, %v5338_v41  ;;  %v14527_v52 = vld [vmem:[%s9188_s30 + $0x3e8] sm:$0xff]  ;;  %v5556_v53 = vmul.f32 %v14198_v44, %v14304_v9 }
 0x3ed   : > { %v4898_v34 = vadd.f32 %v4870_v8, %v4832_v20  ;;  %v5621_v47 = vmul.f32 %v14202_v12, %v14323_v30  ;;  %v5622_v19 = vmul.f32 %v14202_v12, %v14314_v0  ;;  %v5710_v10 = vmul.f32 %v14208_v23, %v14281_v24  ;;  %v17469_v41 = vld [vmem:[#allocation45_spill] sm:$0xff] }
 0x3ee   : > { %v4899_v51 = vadd.f32 %v4871_v4, %v4833_v13  ;;  %v5517_v42 = vadd.f32 %v5489_v14, %v5454_v27  ;;  %v5518_v54 = vadd.f32 %v5490_v63, %v5455_v18  ;;  %v5711_v8 = vmul.f32 %v14208_v23, %v14527_v52 }
 0x3ef   : > { %v4933_v35 = vadd.f32 %v17469_v41, %v4898_v34  ;;  %v5767_v20 = vrot.slane %v14527_v52, 1  ;;  %v16704_v9 = vrot.slane %v14530_v15, 1  ;;  %v5884_v0 = vrot.slane %v14527_v52, 2 }
 0x3f0   : > { %v4934_v30 = vadd.f32 %v17469_v41, %v4899_v51  ;;  %v5583_v16 = vadd.f32 %v5555_v39, %v5517_v42  ;;  %v5584_v61 = vadd.f32 %v5556_v53, %v5518_v54  ;;  %v17470_v63 = vrot.slane %v14281_v24, 1 }
 0x3f1   : > { %v4961_v4 = vmax.f32 %v4933_v35, 0.0  ;;  %v5811_v14 = vsel %vm420_vm0, %v5767_v20, %v16704_v9  ;;  %v16705_v27 = vrot.slane %v14530_v15, 2  ;;  %v17471_v35 = vrot.slane %v14281_v24, 2 }
 0x3f2   : > { %v5812_v13 = vsel %vm420_vm0, %v17470_v63, %v5767_v20  ;;  %v4962_v18 = vmax.f32 %v4934_v30, 0.0  ;;  %v5649_v34 = vadd.f32 %v5621_v47, %v5583_v16  ;;  %v5650_v51 = vadd.f32 %v5622_v19, %v5584_v61 }
 0x3f3   : > { %v5827_v39 = vmul.f32 %v14226_v37, %v5812_v13  ;;  %v4989_v53 = vmin.f32 %v4961_v4, 6.0  ;;  %v5828_v42 = vmul.f32 %v14226_v37, %v5811_v14  ;;  %v5928_v54 = vsel %vm538_vm1, %v5884_v0, %v16705_v27 }
 0x3f4   : > { %v5929_v20 = vsel %vm538_vm1, %v17471_v35, %v5884_v0  ;;  %v4990_v63 = vmin.f32 %v4962_v18, 6.0  ;;  %v5738_v9 = vadd.f32 %v5710_v10, %v5649_v34  ;;  %v5739_v30 = vadd.f32 %v5711_v8, %v5650_v51  ;;  %v14597_v35 = vld [vmem:[%s9188_s30 + $0x430] sm:$0xff] }
 0x3f5   : > { %v5944_v61 = vmul.f32 %v14230_v29, %v5929_v20  ;;  %v8150_v47 = vpack.c.bf16 %v4989_v53, %v4989_v53  ;;  %v5945_v19 = vmul.f32 %v14230_v29, %v5928_v54  ;;  %v5194_v16 = vmul.f32 %v14106_v21, %v14216_v7  ;;  %17472 = vst [vmem:[#allocation28_spill] sm:$0xff] %v14597_v35 }
 0x3f6   : > { %v5195_v4 = vmul.f32 %v14106_v21, %v14275_v59  ;;  %v8151_v27 = vpack.c.bf16 %v4990_v63, %v4990_v63  ;;  %v5855_v41 = vadd.f32 %v5827_v39, %v5738_v9  ;;  %v5856_v17 = vadd.f32 %v5828_v42, %v5739_v30 }
 0x3f7   : > { %v14573_v0 = vmul.f32 %v14141_v49, %v5812_v13  ;;  %5129 = vst [vmem:[#allocation2 + $0x16c] sm:$0xf] %v8150_v47  ;;  %v14576_v10 = vmul.f32 %v14141_v49, %v5811_v14  ;;  %v5339_v8 = vadd.f32 %v5311_v58, %v5194_v16  ;;  %v14579_v34 = vmul.f32 %v17465_v46, %v5929_v20 }
 0x3f8   : > { %v5340_v18 = vadd.f32 %v5312_v33, %v5195_v4  ;;  %5130 = vst [vmem:[#allocation2 + $0x178] sm:$0xf] %v8151_v27  ;;  %v5972_v7 = vadd.f32 %v5944_v61, %v5855_v41  ;;  %v5973_v21 = vadd.f32 %v5945_v19, %v5856_v17  ;;  %v14582_v59 = vmul.f32 %v17465_v46, %v5928_v54  ;;  %v14590_v33 = vld [vmem:[%s9188_s30 + $0x418] sm:$0xff] }
 0x3f9   : > { %v5491_v9 = vmul.f32 %v17466_v2, %v14281_v24  ;;  %v5456_v51 = vadd.f32 %v5428_v50, %v5339_v8  ;;  %v5492_v53 = vmul.f32 %v17466_v2, %v14527_v52  ;;  %v5557_v58 = vmul.f32 %v14198_v44, %v5812_v13 }
 0x3fa   : > { %v5457_v39 = vadd.f32 %v5429_v56, %v5340_v18  ;;  %v6007_v42 = vadd.f32 %v14268_v5, %v5972_v7  ;;  %v6008_v41 = vadd.f32 %v14268_v5, %v5973_v21  ;;  %v5558_v17 = vmul.f32 %v14198_v44, %v5811_v14 }
 0x3fb   : > { %v5623_v27 = vmul.f32 %v14202_v12, %v5929_v20  ;;  %v5519_v63 = vadd.f32 %v5491_v9, %v5456_v51  ;;  %v5624_v56 = vmul.f32 %v14202_v12, %v5928_v54  ;;  %v5712_v13 = vmul.f32 %v14208_v23, %v14530_v15  ;;  %v14615_v9 = vld [vmem:[%s9188_s30 + $0x3d8] sm:$0xff] }
 0x3fc   : > { %v5520_v50 = vadd.f32 %v5492_v53, %v5457_v39  ;;  %v6035_v30 = vmax.f32 %v6007_v42, 0.0  ;;  %v6036_v61 = vmax.f32 %v6008_v41, 0.0  ;;  %v5713_v47 = vmul.f32 %v14208_v23, %v14590_v33  ;;  %v8553_v39 = vld [vmem:[#allocation2 + $0x168] ss:$12 sps:$4 sm:$0xff]  }
 0x3fd   : > { %v5769_v19 = vrot.slane %v14590_v33, 1  ;;  %v5585_v14 = vadd.f32 %v5557_v58, %v5519_v63  ;;  %v16709_v20 = vrot.slane %v14597_v35, 1  ;;  %v5886_v4 = vrot.slane %v14590_v33, 2 }
 0x3fe   : > { %v5586_v16 = vadd.f32 %v5558_v17, %v5520_v50  ;;  %v6063_v8 = vmin.f32 %v6035_v30, 6.0  ;;  %v6064_v18 = vmin.f32 %v6036_v61, 6.0  ;;  %v17473_v54 = vrot.slane %v14530_v15, 1 }
 0x3ff   : > { %v16708_v21 = vrot.slane %v14597_v35, 2  ;;  %v8550_v51 = vld [vmem:[#allocation2 + $0x16c] ss:$12 sps:$4 sm:$0xff]   ;;  %v5651_v53 = vadd.f32 %v5623_v27, %v5585_v14  ;;  %v14621_v42 = vsel %vm420_vm0, %v5769_v19, %v16709_v20 }
 0x400   : > { %v14611_v7 = vsel %vm420_vm0, %v17473_v54, %v5769_v19  ;;  %v5652_v58 = vadd.f32 %v5624_v56, %v5586_v16  ;;  %v8180_v17 = vpack.c.bf16 %v6063_v8, %v6063_v8  ;;  %v8181_v63 = vpack.c.bf16 %v6064_v18, %v6064_v18  ;;  %v14634_v56 = vld [vmem:[%s9188_s30 + $0x3f0] sm:$0xff]  ;;  %7138 = vmatprep.mubr.bf16.mxu0 %v8550_v51  ;;  %v17476_v18 = vld [vmem:[#allocation24_spill] sm:$0xff] }
 0x401   : > { %v5829_v41 = vmul.f32 %v14226_v37, %v14611_v7  ;;  %v5830_v50 = vmul.f32 %v14226_v37, %v14621_v42  ;;  %v14631_v27 = vsel %vm538_vm1, %v5886_v4, %v16708_v21  ;;  %17474 = vst [vmem:[#allocation42_spill] sm:$0xff] %v14634_v56  ;;  %v5740_v30 = vadd.f32 %v5712_v13, %v5651_v53  ;;  %v17477_v54 = vld [vmem:[#allocation26_spill] sm:$0xff] }
 0x402   : > { %v5741_v61 = vadd.f32 %v5713_v47, %v5652_v58  ;;  %v17475_v19 = vrot.slane %v14530_v15, 2  ;;  %v5947_v16 = vmul.f32 %v14230_v29, %v14631_v27  ;;  %6203 = vst [vmem:[#allocation2 + $0x188] sm:$0xf] %v8180_v17  ;;  %6204 = vst [vmem:[#allocation2 + $0x194] sm:$0xf] %v8181_v63  ;;  %7139 = vmatmul.mubr.bf16.gmra.mxu0 %v8553_v39  ;;  %v3365_v51 = vrot.slane %v14615_v9, 1 }
 0x403   : > { %v3308_v13 = vmul.f32 %v17477_v54, %v17476_v18  ;;  %v3309_v47 = vmul.f32 %v17477_v54, %v14615_v9  ;;  %v5857_v53 = vadd.f32 %v5829_v41, %v5740_v30  ;;  %v16715_v58 = vrot.slane %v14634_v56, 1  ;;  %v8735_v21 = vld [vmem:[%s9188_s30 + $0x390] sm:$0xff] }
 0x404   : > { %v14640_v14 = vsel %vm538_vm1, %v17475_v19, %v5886_v4  ;;  %v5858_v4 = vadd.f32 %v5830_v50, %v5741_v61  ;;  %v3482_v19 = vrot.slane %v14615_v9, 2  ;;  %v17478_v17 = vrot.slane %v17476_v18, 1  ;;  %v17479_v30 = vld [vmem:[#allocation33_spill] sm:$0xff] }
 0x405   : > { %v5946_v8 = vmul.f32 %v14230_v29, %v14640_v14  ;;  %v16723_v63 = vrot.slane %v14634_v56, 2  ;;  %v3601_v20 = vmul.f32 %v8735_v21, %v14376_v38  ;;  %v3602_v54 = vmul.f32 %v14376_v38, %v14317_v60  ;;  %v17482_v56 = vld [vmem:[#allocation61_spill] sm:$0xff] }
 0x406   : > { %v3402_v39 = vsel %vm420_vm0, %v17478_v17, %v3365_v51  ;;  %v5975_v41 = vadd.f32 %v5947_v16, %v5858_v4  ;;  %v3401_v50 = vsel %vm420_vm0, %v3365_v51, %v16715_v58  ;;  %v17480_v21 = vrot.slane %v17476_v18, 2  ;;  %v17481_v16 = vld [vmem:[#allocation67_spill] sm:$0xff] }
 0x407   : > { %v5974_v29 = vadd.f32 %v5946_v8, %v5857_v53  ;;  %v3425_v61 = vmul.f32 %v17479_v30, %v3402_v39  ;;  %v3426_v37 = vmul.f32 %v17479_v30, %v3401_v50  ;;  %v3518_v17 = vsel %vm538_vm1, %v3482_v19, %v16723_v63 }
 0x408   : > { %v3519_v60 = vsel %vm538_vm1, %v17480_v21, %v3482_v19  ;;  %v3629_v8 = vadd.f32 %v3601_v20, %v17481_v16  ;;  %v6010_v51 = vadd.f32 %v14268_v5, %v5975_v41  ;;  %v3543_v38 = vmul.f32 %v14371_v57, %v3518_v17 }
 0x409   : > { %v6009_v53 = vadd.f32 %v14268_v5, %v5974_v29  ;;  %v3453_v4 = vadd.f32 %v3425_v61, %v3308_v13  ;;  %v3542_v58 = vmul.f32 %v14371_v57, %v3519_v60  ;;  %v3454_v30 = vadd.f32 %v3426_v37, %v3309_v47  ;;  %v8552_v35 = vld [vmem:[#allocation2 + $0x188] ss:$12 sps:$4 sm:$0xff]  }
 0x40a   : > { %v3630_v23 = vadd.f32 %v3602_v54, %v17482_v56  ;;  %v14683_v63 = vmul.f32 %v14384_v28, %v3402_v39  ;;  %v14688_v20 = vmul.f32 %v14384_v28, %v3401_v50  ;;  %v3695_v29 = vadd.f32 %v14387_v40, %v3629_v8  ;;  %8289 = vmatprep.mubr.bf16.mxu1 %v8552_v35 }
 0x40b   : > { %v14685_v12 = vadd.f32 %v3542_v58, %v3453_v4  ;;  %v14692_v13 = vmul.f32 %v14394_v25, %v3519_v60  ;;  %v6037_v37 = vmax.f32 %v6009_v53, 0.0  ;;  %v6038_v47 = vmax.f32 %v6010_v51, 0.0 }
 0x40c   : > { %v14694_v19 = vadd.f32 %v3543_v38, %v3454_v30  ;;  %v3696_v56 = vadd.f32 %v14390_v11, %v3630_v23  ;;  %v14698_v54 = vmul.f32 %v14394_v25, %v3518_v17  ;;  %v3761_v58 = vadd.f32 %v14397_v26, %v3695_v29  ;;  %v14708_v30 = vld [vmem:[%s9188_s30 + $0x3e0] sm:$0xff]  ;;  %v14711_v23 = vld [vmem:[%s9188_s30 + $0x3f8] sm:$0xff] }
 0x40d   : > { %17483 = vst [vmem:[#allocation60_spill] sm:$0xff] %v14685_v12  ;;  %v3796_v41 = vmul.f32 %v14402_v43, %v17476_v18  ;;  %v3797_v40 = vmul.f32 %v14402_v43, %v14615_v9  ;;  %v6065_v61 = vmin.f32 %v6037_v37, 6.0  ;;  %v6066_v21 = vmin.f32 %v6038_v47, 6.0  ;;  %17485 = vst [vmem:[#allocation29_spill] sm:$0xff] %v14711_v23  ;;  %v17486_v26 = vld [vmem:[#allocation64_spill] sm:$0xff]  ;;  %v17487_v37 = vld [vmem:[#allocation79_spill] sm:$0xff] }
 0x40e   : > { %17484 = vst [vmem:[#allocation23_spill] sm:$0xff] %v14694_v19  ;;  %v3762_v16 = vadd.f32 %v14400_v45, %v3696_v56  ;;  %v3862_v38 = vmul.f32 %v14413_v3, %v3402_v39  ;;  %v3863_v35 = vmul.f32 %v14413_v3, %v3401_v50  ;;  %v3928_v8 = vmul.f32 %v17486_v26, %v3519_v60  ;;  %v17488_v47 = vld [vmem:[#allocation85_spill] sm:$0xff] }
 0x40f   : > { %v3824_v11 = vadd.f32 %v3796_v41, %v3761_v58  ;;  %v3929_v53 = vmul.f32 %v17486_v26, %v3518_v17  ;;  %v8182_v51 = vpack.c.bf16 %v6065_v61, %v6065_v61  ;;  %v8183_v4 = vpack.c.bf16 %v6066_v21, %v6066_v21  ;;  %v14724_v41 = vld [vmem:[#allocation6 + $0x10] ss:$0 sm:$0xff] }
 0x410   : > { %v3825_v29 = vadd.f32 %v3797_v40, %v3762_v16  ;;  %v4252_v45 = vmul.f32 %v17488_v47, %v17487_v37  ;;  %v4253_v39 = vmul.f32 %v17488_v47, %v14708_v30  ;;  %v4309_v19 = vrot.slane %v14708_v30, 1  ;;  %17489 = vst [vmem:[#allocation80_spill] sm:$0xff] %v14724_v41  ;;  %v8737_v40 = vld [vmem:[%s9188_s30 + $0x398] sm:$0xff] }
 0x411   : > { %v3890_v56 = vadd.f32 %v3862_v38, %v3824_v11  ;;  %v16728_v58 = vrot.slane %v14711_v23, 1  ;;  %6205 = vst [vmem:[#allocation2 + $0x1a0] sm:$0xf] %v8182_v51  ;;  %6206 = vst [vmem:[#allocation2 + $0x1ac] sm:$0xf] %v8183_v4  ;;  %v4426_v60 = vrot.slane %v14708_v30, 2  ;;  %v4545_v61 = vmul.f32 %v8737_v40, %v14724_v41 }
 0x412   : > { %v3891_v50 = vadd.f32 %v3863_v35, %v3825_v29  ;;  %v16734_v17 = vrot.slane %v14711_v23, 2  ;;  %v17490_v38 = vrot.slane %v17487_v37, 1  ;;  %v4546_v35 = vmul.f32 %v14724_v41, %v14410_v62  ;;  %v14738_v4 = vld [vmem:[#allocation6 + $0x5] ss:$0 sm:$0xff]  ;;  %v14754_v41 = vld [vmem:[#allocation6 + $0x6] ss:$0 sm:$0xff] }
 0x413   : > { %v3956_v21 = vadd.f32 %v3928_v8, %v3890_v56  ;;  %v4345_v16 = vsel %vm420_vm0, %v4309_v19, %v16728_v58  ;;  %17491 = vst [vmem:[#allocation30_spill] sm:$0xff] %v14738_v4  ;;  %v17492_v58 = vrot.slane %v17487_v37, 2  ;;  %v17494_v23 = vld [vmem:[#allocation32_spill] sm:$0xff] }
 0x414   : > { %v4346_v11 = vsel %vm420_vm0, %v17490_v38, %v4309_v19  ;;  %v3957_v51 = vadd.f32 %v3929_v53, %v3891_v50  ;;  %v4370_v8 = vmul.f32 %v14738_v4, %v4345_v16  ;;  %v4462_v56 = vsel %vm538_vm1, %v4426_v60, %v16734_v17  ;;  %v17493_v53 = vld [vmem:[#allocation91_spill] sm:$0xff] }
 0x415   : > { %v4369_v29 = vmul.f32 %v14738_v4, %v4346_v11  ;;  %v3991_v40 = vadd.f32 %v14466_v55, %v3956_v21  ;;  %v4463_v19 = vsel %vm538_vm1, %v17492_v58, %v4426_v60  ;;  %v4487_v62 = vmul.f32 %v14068_v32, %v4462_v56 }
 0x416   : > { %v4573_v50 = vadd.f32 %v4545_v61, %v17493_v53  ;;  %v3992_v38 = vadd.f32 %v14466_v55, %v3957_v51  ;;  %v4398_v4 = vadd.f32 %v4370_v8, %v4253_v39  ;;  %v4486_v47 = vmul.f32 %v14754_v41, %v4463_v19 }
 0x417   : > { %v4397_v12 = vadd.f32 %v4369_v29, %v4252_v45  ;;  %v4019_v17 = vmax.f32 %v3991_v40, 0.0  ;;  %v4574_v21 = vadd.f32 %v4546_v35, %v17494_v23  ;;  %v14759_v26 = vmul.f32 %v14473_v48, %v4346_v11 }
 0x418   : > { %v14762_v58 = vmul.f32 %v14473_v48, %v4345_v16  ;;  %v4020_v32 = vmax.f32 %v3992_v38, 0.0  ;;  %v14766_v61 = vadd.f32 %v4487_v62, %v4398_v4  ;;  %v4639_v45 = vadd.f32 %v14476_v1, %v4573_v50  ;;  %v8554_v39 = vld [vmem:[#allocation2 + $0x1a0] ss:$12 sps:$4 sm:$0xff]   ;;  %v17502_v38 = vld [vmem:[#allocation86_spill] sm:$0xff] }
 0x419   : > { %v14764_v60 = vadd.f32 %v4486_v47, %v4397_v12  ;;  %v4640_v51 = vadd.f32 %v14482_v36, %v4574_v21  ;;  %v14771_v29 = vmul.f32 %v14484_v31, %v4463_v19  ;;  %v14774_v23 = vmul.f32 %v14484_v31, %v4462_v56  ;;  %v17499_v12 = vld [vmem:[#allocation31_spill] sm:$0xff]  ;;  %8290 = vmatmul.mubr.bf16.gmra.mxu1 %v8554_v39  ;;  %v17501_v36 = vld [vmem:[#allocation93_spill] sm:$0xff] }
 0x41a   : > { %17496 = vst [vmem:[#allocation82_spill] sm:$0xff] %v14766_v61  ;;  %v4740_v35 = vmul.f32 %v17458_v22, %v17487_v37  ;;  %v4047_v8 = vmin.f32 %v4019_v17, 6.0  ;;  %v4048_v40 = vmin.f32 %v4020_v32, 6.0  ;;  %v4705_v47 = vadd.f32 %v17499_v12, %v4639_v45  ;;  %v17500_v1 = vld [vmem:[#allocation55_spill] sm:$0xff] }
 0x41b   : > { %17495 = vst [vmem:[#allocation65_spill] sm:$0xff] %v14764_v60  ;;  %17497 = vst [vmem:[#allocation57_spill] sm:$0xff] %v14771_v29  ;;  %v4741_v4 = vmul.f32 %v17458_v22, %v14708_v30  ;;  %v4706_v62 = vadd.f32 %v17500_v1, %v4640_v51  ;;  %v4806_v53 = vmul.f32 %v17501_v36, %v4346_v11  ;;  %v14786_v29 = vld [vmem:[#allocation6 + $0x8] ss:$0 sm:$0xff] }
 0x41c   : > { %17498 = vst [vmem:[#allocation81_spill] sm:$0xff] %v14774_v23  ;;  %v4807_v50 = vmul.f32 %v17501_v36, %v4345_v16  ;;  %v4872_v21 = vmul.f32 %v17502_v38, %v4463_v19  ;;  %v8124_v61 = vpack.c.bf16 %v4047_v8, %v4047_v8  ;;  %v8125_v60 = vpack.c.bf16 %v4048_v40, %v4048_v40  ;;  %v17503_v40 = vld [vmem:[#allocation88_spill] sm:$0xff] }
 0x41d   : > { %v4768_v23 = vadd.f32 %v4740_v35, %v4705_v47  ;;  %v4873_v17 = vmul.f32 %v17502_v38, %v4462_v56  ;;  %v4769_v32 = vadd.f32 %v4741_v4, %v4706_v62  ;;  %v5196_v22 = vmul.f32 %v14786_v29, %v14281_v24  ;;  %v14820_v47 = vld [vmem:[%s9188_s30 + $0x460] sm:$0xff]  ;;  %v17504_v4 = vld [vmem:[#allocation45_spill] sm:$0xff] }
 0x41e   : > { %v5197_v45 = vmul.f32 %v14786_v29, %v14527_v52  ;;  %v5315_v16 = vmul.f32 %v14141_v49, %v14611_v7  ;;  %4187 = vst [vmem:[#allocation2 + $0x180] sm:$0xf] %v8124_v61  ;;  %4188 = vst [vmem:[#allocation2 + $0x18c] sm:$0xf] %v8125_v60  ;;  %v5316_v19 = vmul.f32 %v14141_v49, %v14621_v42  ;;  %v17505_v1 = vld [vmem:[#allocation28_spill] sm:$0xff] }
 0x41f   : > { %v4834_v11 = vadd.f32 %v4806_v53, %v4768_v23  ;;  %v5432_v56 = vmul.f32 %v17465_v46, %v14640_v14  ;;  %v14800_v24 = vmul.f32 %v17465_v46, %v14631_v27  ;;  %v4835_v39 = vadd.f32 %v4807_v50, %v4769_v32  ;;  %v14813_v46 = vld [vmem:[%s9188_s30 + $0x448] sm:$0xff] }
 0x420   : > { %v5341_v52 = vadd.f32 %v14573_v0, %v5196_v22  ;;  %v5342_v51 = vadd.f32 %v14576_v10, %v5197_v45  ;;  %v5493_v60 = vmul.f32 %v17466_v2, %v14530_v15  ;;  %v5494_v49 = vmul.f32 %v17466_v2, %v14590_v33  ;;  %v17506_v62 = vld [vmem:[#allocation92_spill] sm:$0xff] }
 0x421   : > { %v4900_v61 = vadd.f32 %v4872_v21, %v4834_v11  ;;  %v5559_v23 = vmul.f32 %v14198_v44, %v14611_v7  ;;  %v5560_v35 = vmul.f32 %v14198_v44, %v14621_v42  ;;  %v4901_v8 = vadd.f32 %v4873_v17, %v4835_v39 }
 0x422   : > { %v5458_v0 = vadd.f32 %v14579_v34, %v5341_v52  ;;  %v5459_v10 = vadd.f32 %v14582_v59, %v5342_v51  ;;  %v5625_v12 = vmul.f32 %v17503_v40, %v14640_v14  ;;  %v5626_v7 = vmul.f32 %v17503_v40, %v14631_v27  ;;  %v17508_v52 = vld [vmem:[#allocation18_spill] sm:$0xff]  ;;  %v17510_v40 = vld [vmem:[#allocation20_spill] sm:$0xff] }
 0x423   : > { %v4935_v2 = vadd.f32 %v17504_v4, %v4900_v61  ;;  %v5714_v44 = vmul.f32 %v17506_v62, %v17505_v1  ;;  %v5715_v42 = vmul.f32 %v17506_v62, %v14813_v46  ;;  %v4936_v34 = vadd.f32 %v17504_v4, %v4901_v8 }
 0x424   : > { %v5521_v36 = vadd.f32 %v5493_v60, %v5458_v0  ;;  %v5522_v59 = vadd.f32 %v5494_v49, %v5459_v10  ;;  %v5771_v53 = vrot.slane %v14813_v46, 1  ;;  %v5772_v50 = vrot.slane %v14820_v47, 1 }
 0x425   : > { %v4963_v14 = vmax.f32 %v4935_v2, 0.0  ;;  %v5888_v38 = vrot.slane %v14813_v46, 2  ;;  %v5889_v21 = vrot.slane %v14820_v47, 2  ;;  %v4964_v27 = vmax.f32 %v4936_v34, 0.0 }
 0x426   : > { %v5587_v17 = vadd.f32 %v5559_v23, %v5521_v36  ;;  %v5588_v32 = vadd.f32 %v5560_v35, %v5522_v59  ;;  %v17507_v22 = vrot.slane %v17505_v1, 1  ;;  %v5807_v39 = vsel %vm420_vm0, %v5771_v53, %v5772_v50 }
 0x427   : > { %v4991_v11 = vmin.f32 %v4963_v14, 6.0  ;;  %v5924_v60 = vsel %vm538_vm1, %v5888_v38, %v5889_v21  ;;  %v4992_v61 = vmin.f32 %v4964_v27, 6.0  ;;  %v5832_v35 = vmul.f32 %v17508_v52, %v5807_v39 }
 0x428   : > { %v5808_v45 = vsel %vm420_vm0, %v17507_v22, %v5771_v53  ;;  %v5653_v49 = vadd.f32 %v5625_v12, %v5587_v17  ;;  %v5654_v23 = vadd.f32 %v5626_v7, %v5588_v32  ;;  %v17509_v0 = vrot.slane %v17505_v1, 2  ;;  %v14858_v7 = vld [vmem:[#allocation6 + $0x9] ss:$0 sm:$0xff]  ;;  %v14874_v22 = vld [vmem:[#allocation6 + $0x14] ss:$0 sm:$0xff] }
 0x429   : > { %v5831_v51 = vmul.f32 %v17508_v52, %v5808_v45  ;;  %v8152_v8 = vpack.c.bf16 %v4991_v11, %v4991_v11  ;;  %v5949_v4 = vmul.f32 %v17510_v40, %v5924_v60  ;;  %v5198_v2 = vmul.f32 %v14786_v29, %v14530_v15 }
 0x42a   : > { %v5925_v10 = vsel %vm538_vm1, %v17509_v0, %v5888_v38  ;;  %v8153_v62 = vpack.c.bf16 %v4992_v61, %v4992_v61  ;;  %v5742_v34 = vadd.f32 %v5714_v44, %v5653_v49  ;;  %v5743_v36 = vadd.f32 %v5715_v42, %v5654_v23  ;;  %v14866_v42 = vld [vmem:[#allocation6 + $0xa] ss:$0 sm:$0xff]  ;;  %v14880_v61 = vld [vmem:[#allocation6 + $0x15] ss:$0 sm:$0xff]  ;;  %v14891_v0 = vld [vmem:[#allocation6 + $0x16] ss:$0 sm:$0xff] }
 0x42b   : > { %v5948_v59 = vmul.f32 %v17510_v40, %v5925_v10  ;;  %5131 = vst [vmem:[#allocation2 + $0x184] sm:$0xf] %v8152_v8  ;;  %v5199_v12 = vmul.f32 %v14786_v29, %v14590_v33  ;;  %v14861_v53 = vmul.f32 %v14858_v7, %v5808_v45  ;;  %v14864_v14 = vmul.f32 %v14858_v7, %v5807_v39 }
 0x42c   : > { %v5343_v38 = vadd.f32 %v5315_v16, %v5198_v2  ;;  %5132 = vst [vmem:[#allocation2 + $0x190] sm:$0xf] %v8153_v62  ;;  %v5859_v15 = vadd.f32 %v5831_v51, %v5742_v34  ;;  %v5860_v44 = vadd.f32 %v5832_v35, %v5743_v36  ;;  %v14869_v27 = vmul.f32 %v14866_v42, %v5925_v10  ;;  %v14885_v35 = vld [vmem:[%s9188_s30 + $0x478] sm:$0xff] }
 0x42d   : > { %v14872_v33 = vmul.f32 %v14866_v42, %v5924_v60  ;;  %v5344_v17 = vadd.f32 %v5316_v19, %v5199_v12  ;;  %v5495_v16 = vmul.f32 %v14874_v22, %v17505_v1  ;;  %v5496_v11 = vmul.f32 %v14874_v22, %v14813_v46  ;;  %v14888_v19 = vld [vmem:[%s9188_s30 + $0x490] sm:$0xff]  ;;  %17512 = vst [vmem:[#allocation69_spill] sm:$0xff] %v14891_v0 }
 0x42e   : > { %v5460_v32 = vadd.f32 %v5432_v56, %v5343_v38  ;;  %v5976_v52 = vadd.f32 %v5948_v59, %v5859_v15  ;;  %v5977_v51 = vadd.f32 %v5949_v4, %v5860_v44  ;;  %v5561_v49 = vmul.f32 %v14880_v61, %v5808_v45  ;;  %17511 = vst [vmem:[#allocation62_spill] sm:$0xff] %v14888_v19  ;;  %v14897_v45 = vld [vmem:[#allocation6 + $0x20] ss:$0 sm:$0xff] }
 0x42f   : > { %v5562_v23 = vmul.f32 %v14880_v61, %v5807_v39  ;;  %v5461_v56 = vadd.f32 %v14800_v24, %v5344_v17  ;;  %v5627_v40 = vmul.f32 %v14891_v0, %v5925_v10  ;;  %v5628_v2 = vmul.f32 %v14891_v0, %v5924_v60  ;;  %17513 = vst [vmem:[#allocation44_spill] sm:$0xff] %v14897_v45  ;;  %v8558_v44 = vld [vmem:[#allocation2 + $0x180] ss:$12 sps:$4 sm:$0xff]  }
 0x430   : > { %v5523_v8 = vadd.f32 %v5495_v16, %v5460_v32  ;;  %v6011_v4 = vadd.f32 %v14268_v5, %v5976_v52  ;;  %v6012_v62 = vadd.f32 %v14268_v5, %v5977_v51  ;;  %v5716_v39 = vmul.f32 %v14897_v45, %v14820_v47 }
 0x431   : > { %v5717_v34 = vmul.f32 %v14897_v45, %v14885_v35  ;;  %v5524_v24 = vadd.f32 %v5496_v11, %v5461_v56  ;;  %v5773_v59 = vrot.slane %v14885_v35, 1  ;;  %v16739_v10 = vrot.slane %v14888_v19, 1 }
 0x432   : > { %v5589_v36 = vadd.f32 %v5561_v49, %v5523_v8  ;;  %v6039_v12 = vmax.f32 %v6011_v4, 0.0  ;;  %v6040_v60 = vmax.f32 %v6012_v62, 0.0  ;;  %v5890_v38 = vrot.slane %v14885_v35, 2  ;;  %v14919_v49 = vld [vmem:[#allocation6 + $0x21] ss:$0 sm:$0xff]  ;;  %v14938_v62 = vld [vmem:[%s9188_s30 + $0x408] sm:$0xff] }
 0x433   : > { %v16738_v5 = vrot.slane %v14888_v19, 2  ;;  %v8555_v15 = vld [vmem:[#allocation2 + $0x184] ss:$12 sps:$4 sm:$0xff]   ;;  %v5590_v17 = vadd.f32 %v5562_v23, %v5524_v24  ;;  %v14911_v16 = vsel %vm420_vm0, %v5773_v59, %v16739_v10  ;;  %v14917_v11 = vsel %vm420_vm0, %v5772_v50, %v5773_v59  ;;  %17514 = vst [vmem:[#allocation74_spill] sm:$0xff] %v14919_v49 }
 0x434   : > { %v5655_v32 = vadd.f32 %v5627_v40, %v5589_v36  ;;  %v6067_v52 = vmin.f32 %v6039_v12, 6.0  ;;  %v6068_v51 = vmin.f32 %v6040_v60, 6.0  ;;  %v5833_v23 = vmul.f32 %v14919_v49, %v14917_v11  ;;  %7146 = vmatprep.mubr.bf16.mxu0 %v8555_v15  ;;  %v14941_v24 = vld [vmem:[%s9188_s30 + $0x420] sm:$0xff] }
 0x435   : > { %v5834_v56 = vmul.f32 %v14919_v49, %v14911_v16  ;;  %v5656_v8 = vadd.f32 %v5628_v2, %v5590_v17  ;;  %v14929_v4 = vsel %vm538_vm1, %v5890_v38, %v16738_v5  ;;  %v14935_v50 = vsel %vm538_vm1, %v5889_v21, %v5890_v38  ;;  %17515 = vst [vmem:[#allocation72_spill] sm:$0xff] %v14941_v24  ;;  %v14943_v2 = vld [vmem:[#allocation6 + $0x22] ss:$0 sm:$0xff]  ;;  %v17517_v17 = vld [vmem:[#allocation42_spill] sm:$0xff] }
 0x436   : > { %v5744_v40 = vadd.f32 %v5716_v39, %v5655_v32  ;;  %v8184_v36 = vpack.c.bf16 %v6067_v52, %v6067_v52  ;;  %v8185_v59 = vpack.c.bf16 %v6068_v51, %v6068_v51  ;;  %7147 = vmatmul.mubr.bf16.gmra.mxu0 %v8558_v44  ;;  %17516 = vst [vmem:[#allocation56_spill] sm:$0xff] %v14943_v2  ;;  %v17518_v21 = vld [vmem:[#allocation26_spill] sm:$0xff]  ;;  %v3367_v44 = vrot.slane %v14938_v62, 1  ;;  %v17524_v49 = vld [vmem:[#allocation96_spill] sm:$0xff] }
 0x437   : > { %v5950_v39 = vmul.f32 %v14943_v2, %v14935_v50  ;;  %v5951_v12 = vmul.f32 %v14943_v2, %v14929_v4  ;;  %v5745_v60 = vadd.f32 %v5717_v34, %v5656_v8  ;;  %v3310_v38 = vmul.f32 %v17518_v21, %v17517_v17  ;;  %v17519_v34 = vld [vmem:[#allocation76_spill] sm:$0xff] }
 0x438   : > { %v5861_v15 = vadd.f32 %v5833_v23, %v5744_v40  ;;  %v3311_v32 = vmul.f32 %v17518_v21, %v14938_v62  ;;  %6207 = vst [vmem:[#allocation2 + $0x1b8] sm:$0xf] %v8184_v36  ;;  %6208 = vst [vmem:[#allocation2 + $0x1c4] sm:$0xf] %v8185_v59  ;;  %v16742_v52 = vrot.slane %v14941_v24, 1  ;;  %v3484_v51 = vrot.slane %v14938_v62, 2 }
 0x439   : > { %v16745_v5 = vrot.slane %v14941_v24, 2  ;;  %v5862_v10 = vadd.f32 %v5834_v56, %v5745_v60  ;;  %v3603_v23 = vmul.f32 %v17519_v34, %v17476_v18  ;;  %v3604_v8 = vmul.f32 %v17519_v34, %v14615_v9  ;;  %v14977_v60 = vld [vmem:[#allocation8 + $0x2] ss:$0 sm:$0xff]  ;;  %v17522_v21 = vld [vmem:[#allocation33_spill] sm:$0xff] }
 0x43a   : > { %v5978_v2 = vadd.f32 %v5950_v39, %v5861_v15  ;;  %v3399_v40 = vsel %vm420_vm0, %v3367_v44, %v16742_v52  ;;  %v17520_v36 = vrot.slane %v17517_v17, 1  ;;  %v17521_v18 = vrot.slane %v17517_v17, 2  ;;  %v17523_v24 = vld [vmem:[#allocation68_spill] sm:$0xff] }
 0x43b   : > { %v3516_v56 = vsel %vm538_vm1, %v3484_v51, %v16745_v5  ;;  %v5979_v39 = vadd.f32 %v5951_v12, %v5862_v10  ;;  %v3428_v52 = vmul.f32 %v17522_v21, %v3399_v40  ;;  %v3631_v5 = vadd.f32 %v3603_v23, %v17523_v24 }
 0x43c   : > { %v3400_v59 = vsel %vm420_vm0, %v17520_v36, %v3367_v44  ;;  %v3517_v9 = vsel %vm538_vm1, %v17521_v18, %v3484_v51  ;;  %v6013_v15 = vadd.f32 %v14977_v60, %v5978_v2  ;;  %v3545_v36 = vmul.f32 %v14371_v57, %v3516_v56 }
 0x43d   : > { %v3427_v34 = vmul.f32 %v17522_v21, %v3400_v59  ;;  %v3544_v44 = vmul.f32 %v14371_v57, %v3517_v9  ;;  %v3632_v45 = vadd.f32 %v3604_v8, %v17524_v49  ;;  %v6014_v19 = vadd.f32 %v14977_v60, %v5979_v39 }
 0x43e   : > { %v6041_v51 = vmax.f32 %v6013_v15, 0.0  ;;  %v3456_v12 = vadd.f32 %v3428_v52, %v3311_v32  ;;  %v14988_v18 = vmul.f32 %v14384_v28, %v3400_v59  ;;  %v14991_v2 = vmul.f32 %v14384_v28, %v3399_v40  ;;  %v15014_v15 = vld [vmem:[%s9188_s30 + $0x410] sm:$0xff] }
 0x43f   : > { %v3455_v10 = vadd.f32 %v3427_v34, %v3310_v38  ;;  %v3697_v21 = vadd.f32 %v14683_v63, %v3631_v5  ;;  %v3698_v57 = vadd.f32 %v14688_v20, %v3632_v45  ;;  %v8557_v24 = vld [vmem:[#allocation2 + $0x1b8] ss:$12 sps:$4 sm:$0xff]   ;;  %v15000_v38 = vmul.f32 %v14394_v25, %v3517_v9 }
 0x440   : > { %v14997_v49 = vadd.f32 %v3545_v36, %v3456_v12  ;;  %v15003_v32 = vmul.f32 %v14394_v25, %v3516_v56  ;;  %v6042_v52 = vmax.f32 %v6014_v19, 0.0  ;;  %v6069_v28 = vmin.f32 %v6041_v51, 6.0  ;;  %8293 = vmatprep.mubr.bf16.mxu1 %v8557_v24  ;;  %v15017_v25 = vld [vmem:[%s9188_s30 + $0x428] sm:$0xff] }
 0x441   : > { %v14995_v23 = vadd.f32 %v3544_v44, %v3455_v10  ;;  %v3763_v8 = vadd.f32 %v14692_v13, %v3697_v21  ;;  %v3764_v63 = vadd.f32 %v14698_v54, %v3698_v57  ;;  %v3798_v20 = vmul.f32 %v14402_v43, %v17517_v17  ;;  %v17527_v13 = vld [vmem:[#allocation64_spill] sm:$0xff]  ;;  %v17528_v10 = vld [vmem:[#allocation29_spill] sm:$0xff] }
 0x442   : > { %17526 = vst [vmem:[#allocation43_spill] sm:$0xff] %v14997_v49  ;;  %v3799_v45 = vmul.f32 %v14402_v43, %v14938_v62  ;;  %v3864_v5 = vmul.f32 %v14413_v3, %v3400_v59  ;;  %v3865_v39 = vmul.f32 %v14413_v3, %v3399_v40  ;;  %v6070_v19 = vmin.f32 %v6042_v52, 6.0  ;;  %v17529_v12 = vld [vmem:[#allocation85_spill] sm:$0xff]  ;;  %v17530_v52 = vld [vmem:[#allocation80_spill] sm:$0xff] }
 0x443   : > { %17525 = vst [vmem:[#allocation58_spill] sm:$0xff] %v14995_v23  ;;  %v8186_v34 = vpack.c.bf16 %v6069_v28, %v6069_v28  ;;  %v3930_v44 = vmul.f32 %v17527_v13, %v3517_v9  ;;  %v3931_v54 = vmul.f32 %v17527_v13, %v3516_v56  ;;  %v3826_v36 = vadd.f32 %v3798_v20, %v3763_v8 }
 0x444   : > { %v3827_v51 = vadd.f32 %v3799_v45, %v3764_v63  ;;  %v4254_v21 = vmul.f32 %v17529_v12, %v17528_v10  ;;  %v4255_v43 = vmul.f32 %v17529_v12, %v15014_v15  ;;  %v8187_v59 = vpack.c.bf16 %v6070_v19, %v6070_v19 }
 0x445   : > { %6209 = vst [vmem:[#allocation2 + $0x1d0] sm:$0xf] %v8186_v34  ;;  %v4311_v3 = vrot.slane %v15014_v15, 1  ;;  %v16752_v40 = vrot.slane %v15017_v25, 1  ;;  %v4428_v57 = vrot.slane %v15014_v15, 2  ;;  %v3892_v24 = vadd.f32 %v3864_v5, %v3826_v36  ;;  %v17533_v34 = vld [vmem:[#allocation30_spill] sm:$0xff] }
 0x446   : > { %v3893_v9 = vadd.f32 %v3865_v39, %v3827_v51  ;;  %v16753_v56 = vrot.slane %v15017_v25, 2  ;;  %v4547_v28 = vmul.f32 %v17530_v52, %v17487_v37  ;;  %6210 = vst [vmem:[#allocation2 + $0x1dc] sm:$0xf] %v8187_v59  ;;  %v17531_v63 = vrot.slane %v17528_v10, 1  ;;  %v17534_v59 = vld [vmem:[#allocation95_spill] sm:$0xff] }
 0x447   : > { %v4343_v8 = vsel %vm420_vm0, %v4311_v3, %v16752_v40  ;;  %v17532_v45 = vrot.slane %v17528_v10, 2  ;;  %v4548_v39 = vmul.f32 %v17530_v52, %v14708_v30  ;;  %v3958_v37 = vadd.f32 %v3930_v44, %v3892_v24 }
 0x448   : > { %v4344_v20 = vsel %vm420_vm0, %v17531_v63, %v4311_v3  ;;  %v3959_v19 = vadd.f32 %v3931_v54, %v3893_v9  ;;  %v4372_v36 = vmul.f32 %v17533_v34, %v4343_v8  ;;  %v4460_v51 = vsel %vm538_vm1, %v4428_v57, %v16753_v56  ;;  %v17535_v63 = vld [vmem:[#allocation25_spill] sm:$0xff] }
 0x449   : > { %v4461_v5 = vsel %vm538_vm1, %v17532_v45, %v4428_v57  ;;  %v4371_v13 = vmul.f32 %v17533_v34, %v4344_v20  ;;  %v4575_v3 = vadd.f32 %v4547_v28, %v17534_v59  ;;  %v4576_v45 = vadd.f32 %v4548_v39, %v17535_v63  ;;  %v15083_v63 = vld [vmem:[#allocation6 + $0x1d] ss:$0 sm:$0xff] }
 0x44a   : > { %v4488_v12 = vmul.f32 %v14754_v41, %v4461_v5  ;;  %v3993_v40 = vadd.f32 %v14466_v55, %v3958_v37  ;;  %v3994_v30 = vadd.f32 %v14466_v55, %v3959_v19  ;;  %v4400_v54 = vadd.f32 %v4372_v36, %v4255_v43  ;;  %v17538_v43 = vld [vmem:[#allocation57_spill] sm:$0xff] }
 0x44b   : > { %v4399_v44 = vadd.f32 %v4371_v13, %v4254_v21  ;;  %v4489_v24 = vmul.f32 %v14754_v41, %v4460_v51  ;;  %v15058_v9 = vmul.f32 %v14473_v48, %v4344_v20  ;;  %v15061_v49 = vmul.f32 %v14473_v48, %v4343_v8 }
 0x44c   : > { %v4641_v57 = vadd.f32 %v14759_v26, %v4575_v3  ;;  %v4021_v56 = vmax.f32 %v3993_v40, 0.0  ;;  %v4022_v28 = vmax.f32 %v3994_v30, 0.0  ;;  %v4642_v39 = vadd.f32 %v14762_v58, %v4576_v45  ;;  %v17539_v26 = vld [vmem:[#allocation81_spill] sm:$0xff]  ;;  %v15077_v3 = vld [vmem:[#allocation6 + $0x1c] ss:$0 sm:$0xff] }
 0x44d   : > { %v15064_v59 = vadd.f32 %v4488_v12, %v4399_v44  ;;  %v15067_v37 = vadd.f32 %v4489_v24, %v4400_v54  ;;  %v15070_v55 = vmul.f32 %v14484_v31, %v4461_v5  ;;  %v15073_v21 = vmul.f32 %v14484_v31, %v4460_v51  ;;  %v8559_v48 = vld [vmem:[#allocation2 + $0x1d0] ss:$12 sps:$4 sm:$0xff]  }
 0x44e   : > { %v4707_v19 = vadd.f32 %v17538_v43, %v4641_v57  ;;  %v4049_v13 = vmin.f32 %v4021_v56, 6.0  ;;  %v4050_v36 = vmin.f32 %v4022_v28, 6.0  ;;  %v4708_v40 = vadd.f32 %v17539_v26, %v4642_v39  ;;  %v15087_v30 = vld [vmem:[#allocation6 + $0x1e] ss:$0 sm:$0xff]  ;;  %8294 = vmatmul.mubr.bf16.gmra.mxu1 %v8559_v48 }
 0x44f   : > { %17536 = vst [vmem:[#allocation84_spill] sm:$0xff] %v15064_v59  ;;  %17537 = vst [vmem:[#allocation83_spill] sm:$0xff] %v15067_v37  ;;  %v4742_v58 = vmul.f32 %v15077_v3, %v17528_v10  ;;  %v4743_v12 = vmul.f32 %v15077_v3, %v15014_v15  ;;  %v4808_v31 = vmul.f32 %v15083_v63, %v4344_v20 }
 0x450   : > { %v4809_v45 = vmul.f32 %v15083_v63, %v4343_v8  ;;  %17540 = vst [vmem:[#allocation90_spill] sm:$0xff] %v15087_v30  ;;  %v4874_v56 = vmul.f32 %v15087_v30, %v4461_v5  ;;  %v8126_v44 = vpack.c.bf16 %v4049_v13, %v4049_v13  ;;  %v8127_v54 = vpack.c.bf16 %v4050_v36, %v4050_v36 }
 0x451   : > { %v4770_v24 = vadd.f32 %v4742_v58, %v4707_v19  ;;  %v4875_v57 = vmul.f32 %v15087_v30, %v4460_v51  ;;  %v4771_v28 = vadd.f32 %v4743_v12, %v4708_v40  ;;  %v5200_v39 = vmul.f32 %v14786_v29, %v17505_v1  ;;  %v15116_v12 = vld [vmem:[%s9188_s30 + $0x4a8] sm:$0xff] }
 0x452   : > { %v5201_v43 = vmul.f32 %v14786_v29, %v14813_v46  ;;  %v5319_v8 = vmul.f32 %v14858_v7, %v14917_v11  ;;  %4189 = vst [vmem:[#allocation2 + $0x198] sm:$0xf] %v8126_v44  ;;  %4190 = vst [vmem:[#allocation2 + $0x1a4] sm:$0xf] %v8127_v54  ;;  %v5320_v5 = vmul.f32 %v14858_v7, %v14911_v16  ;;  %v15125_v44 = vld [vmem:[#allocation8 + $0x1] ss:$0 sm:$0xff] }
 0x453   : > { %v4836_v20 = vadd.f32 %v4808_v31, %v4770_v24  ;;  %v5436_v51 = vmul.f32 %v14866_v42, %v14935_v50  ;;  %v15103_v1 = vmul.f32 %v14866_v42, %v14929_v4  ;;  %v4837_v19 = vadd.f32 %v4809_v45, %v4771_v28  ;;  %17541 = vst [vmem:[#allocation71_spill] sm:$0xff] %v15125_v44  ;;  %v17543_v24 = vld [vmem:[#allocation44_spill] sm:$0xff] }
 0x454   : > { %v5345_v46 = vadd.f32 %v14861_v53, %v5200_v39  ;;  %v5346_v48 = vadd.f32 %v14864_v14, %v5201_v43  ;;  %v5497_v13 = vmul.f32 %v14874_v22, %v14820_v47  ;;  %v5498_v26 = vmul.f32 %v14874_v22, %v14885_v35 }
 0x455   : > { %v4902_v36 = vadd.f32 %v4874_v56, %v4836_v20  ;;  %v5563_v40 = vmul.f32 %v14880_v61, %v14917_v11  ;;  %v5564_v58 = vmul.f32 %v14880_v61, %v14911_v16  ;;  %v4903_v31 = vadd.f32 %v4875_v57, %v4837_v19  ;;  %v15123_v56 = vld [vmem:[%s9188_s30 + $0x4c0] sm:$0xff]  ;;  %v17542_v16 = vld [vmem:[#allocation62_spill] sm:$0xff] }
 0x456   : > { %v5462_v53 = vadd.f32 %v14869_v27, %v5345_v46  ;;  %v5463_v14 = vadd.f32 %v14872_v33, %v5346_v48  ;;  %v5629_v45 = vmul.f32 %v14891_v0, %v14935_v50  ;;  %v5630_v11 = vmul.f32 %v14891_v0, %v14929_v4 }
 0x457   : > { %v4937_v54 = vadd.f32 %v15125_v44, %v4902_v36  ;;  %v5718_v28 = vmul.f32 %v17543_v24, %v17542_v16  ;;  %v5719_v27 = vmul.f32 %v17543_v24, %v15116_v12  ;;  %v4938_v33 = vadd.f32 %v15125_v44, %v4903_v31 }
 0x458   : > { %v5525_v57 = vadd.f32 %v5497_v13, %v5462_v53  ;;  %v5526_v39 = vadd.f32 %v5498_v26, %v5463_v14  ;;  %v5775_v50 = vrot.slane %v15116_v12, 1  ;;  %v16754_v20 = vrot.slane %v15123_v56, 1  ;;  %v17545_v26 = vld [vmem:[#allocation74_spill] sm:$0xff] }
 0x459   : > { %v4965_v43 = vmax.f32 %v4937_v54, 0.0  ;;  %v5892_v19 = vrot.slane %v15116_v12, 2  ;;  %v5893_v46 = vrot.slane %v15123_v56, 2  ;;  %v4966_v4 = vmax.f32 %v4938_v33, 0.0 }
 0x45a   : > { %v5591_v48 = vadd.f32 %v5563_v40, %v5525_v57  ;;  %v5592_v36 = vadd.f32 %v5564_v58, %v5526_v39  ;;  %v17544_v37 = vrot.slane %v17542_v16, 1  ;;  %v5803_v13 = vsel %vm420_vm0, %v5775_v50, %v16754_v20 }
 0x45b   : > { %v4993_v31 = vmin.f32 %v4965_v43, 6.0  ;;  %v5920_v14 = vsel %vm538_vm1, %v5892_v19, %v5893_v46  ;;  %v4994_v40 = vmin.f32 %v4966_v4, 6.0  ;;  %v5836_v33 = vmul.f32 %v17545_v26, %v5803_v13  ;;  %v17547_v43 = vld [vmem:[#allocation56_spill] sm:$0xff] }
 0x45c   : > { %v5804_v59 = vsel %vm420_vm0, %v17544_v37, %v5775_v50  ;;  %v5657_v58 = vadd.f32 %v5629_v45, %v5591_v48  ;;  %v5658_v54 = vadd.f32 %v5630_v11, %v5592_v36  ;;  %v17546_v37 = vrot.slane %v17542_v16, 2 }
 0x45d   : > { %v5835_v53 = vmul.f32 %v17545_v26, %v5804_v59  ;;  %v8154_v57 = vpack.c.bf16 %v4993_v31, %v4993_v31  ;;  %v5953_v50 = vmul.f32 %v17547_v43, %v5920_v14  ;;  %v5202_v20 = vmul.f32 %v14786_v29, %v14820_v47 }
 0x45e   : > { %v5921_v39 = vsel %vm538_vm1, %v17546_v37, %v5892_v19  ;;  %v8155_v23 = vpack.c.bf16 %v4994_v40, %v4994_v40  ;;  %v5746_v44 = vadd.f32 %v5718_v28, %v5657_v58  ;;  %v5747_v30 = vadd.f32 %v5719_v27, %v5658_v54 }
 0x45f   : > { %v5952_v4 = vmul.f32 %v17547_v43, %v5921_v39  ;;  %5133 = vst [vmem:[#allocation2 + $0x19c] sm:$0xf] %v8154_v57  ;;  %v5203_v45 = vmul.f32 %v14786_v29, %v14885_v35  ;;  %v15164_v11 = vmul.f32 %v14858_v7, %v5804_v59  ;;  %v15167_v19 = vmul.f32 %v14858_v7, %v5803_v13 }
 0x460   : > { %v5347_v48 = vadd.f32 %v5319_v8, %v5202_v20  ;;  %5134 = vst [vmem:[#allocation2 + $0x1a8] sm:$0xf] %v8155_v23  ;;  %v5863_v47 = vadd.f32 %v5835_v53, %v5746_v44  ;;  %v5864_v36 = vadd.f32 %v5836_v33, %v5747_v30  ;;  %v15170_v28 = vmul.f32 %v14866_v42, %v5921_v39  ;;  %v15182_v8 = vld [vmem:[%s9188_s30 + $0x4d8] sm:$0xff]  ;;  %v15185_v44 = vld [vmem:[%s9188_s30 + $0x4f0] sm:$0xff] }
 0x461   : > { %v15173_v27 = vmul.f32 %v14866_v42, %v5920_v14  ;;  %v5348_v31 = vadd.f32 %v5320_v5, %v5203_v45  ;;  %v5499_v40 = vmul.f32 %v14874_v22, %v17542_v16  ;;  %v5500_v58 = vmul.f32 %v14874_v22, %v15116_v12  ;;  %17550 = vst [vmem:[#allocation73_spill] sm:$0xff] %v15185_v44 }
 0x462   : > { %17548 = vst [vmem:[#allocation70_spill] sm:$0xff] %v15170_v28  ;;  %v5464_v35 = vadd.f32 %v5436_v51, %v5347_v48  ;;  %v5980_v54 = vadd.f32 %v5952_v4, %v5863_v47  ;;  %v5981_v57 = vadd.f32 %v5953_v50, %v5864_v36  ;;  %v5565_v23 = vmul.f32 %v14880_v61, %v5804_v59 }
 0x463   : > { %17549 = vst [vmem:[#allocation89_spill] sm:$0xff] %v15173_v27  ;;  %v5566_v30 = vmul.f32 %v14880_v61, %v5803_v13  ;;  %v5465_v20 = vadd.f32 %v15103_v1, %v5348_v31  ;;  %v5631_v51 = vmul.f32 %v14891_v0, %v5921_v39  ;;  %v5632_v53 = vmul.f32 %v14891_v0, %v5920_v14  ;;  %v8563_v31 = vld [vmem:[#allocation2 + $0x198] ss:$12 sps:$4 sm:$0xff]  }
 0x464   : > { %v5527_v5 = vadd.f32 %v5499_v40, %v5464_v35  ;;  %v6015_v33 = vadd.f32 %v14977_v60, %v5980_v54  ;;  %v6016_v37 = vadd.f32 %v14977_v60, %v5981_v57  ;;  %v5720_v59 = vmul.f32 %v17543_v24, %v15123_v56 }
 0x465   : > { %v5721_v13 = vmul.f32 %v17543_v24, %v15182_v8  ;;  %v5528_v50 = vadd.f32 %v5500_v58, %v5465_v20  ;;  %v5777_v45 = vrot.slane %v15182_v8, 1  ;;  %v16760_v1 = vrot.slane %v15185_v44, 1 }
 0x466   : > { %v5593_v4 = vadd.f32 %v5565_v23, %v5527_v5  ;;  %v6043_v48 = vmax.f32 %v6015_v33, 0.0  ;;  %v6044_v39 = vmax.f32 %v6016_v37, 0.0  ;;  %v5894_v14 = vrot.slane %v15182_v8, 2 }
 0x467   : > { %v16759_v47 = vrot.slane %v15185_v44, 2  ;;  %v8560_v36 = vld [vmem:[#allocation2 + $0x19c] ss:$12 sps:$4 sm:$0xff]   ;;  %v5594_v35 = vadd.f32 %v5566_v30, %v5528_v50  ;;  %v15204_v58 = vsel %vm420_vm0, %v5777_v45, %v16760_v1  ;;  %v17551_v54 = vrot.slane %v15123_v56, 1 }
 0x468   : > { %v5659_v40 = vadd.f32 %v5631_v51, %v5593_v4  ;;  %v6071_v23 = vmin.f32 %v6043_v48, 6.0  ;;  %v6072_v20 = vmin.f32 %v6044_v39, 6.0  ;;  %v5838_v30 = vmul.f32 %v17545_v26, %v15204_v58  ;;  %7154 = vmatprep.mubr.bf16.mxu0 %v8560_v36  ;;  %v15229_v4 = vld [vmem:[%s9188_s30 + $0x438] sm:$0xff] }
 0x469   : > { %v15210_v57 = vsel %vm420_vm0, %v17551_v54, %v5777_v45  ;;  %v5660_v51 = vadd.f32 %v5632_v53, %v5594_v35  ;;  %v15220_v37 = vsel %vm538_vm1, %v5894_v14, %v16759_v47  ;;  %v15226_v50 = vsel %vm538_vm1, %v5893_v46, %v5894_v14  ;;  %17552 = vst [vmem:[#allocation63_spill] sm:$0xff] %v15229_v4  ;;  %v8754_v35 = vld [vmem:[#allocation6] ss:$0 sm:$0xff] }
 0x46a   : > { %v5837_v5 = vmul.f32 %v17545_v26, %v15210_v57  ;;  %v5748_v33 = vadd.f32 %v5720_v59, %v5659_v40  ;;  %v8188_v45 = vpack.c.bf16 %v6071_v23, %v6071_v23  ;;  %v8189_v48 = vpack.c.bf16 %v6072_v20, %v6072_v20  ;;  %7155 = vmatmul.mubr.bf16.gmra.mxu0 %v8563_v31  ;;  %v17553_v40 = vld [vmem:[#allocation72_spill] sm:$0xff]  ;;  %v15239_v31 = vld [vmem:[#allocation6 + $0xc] ss:$0 sm:$0xff] }
 0x46b   : > { %v5954_v53 = vmul.f32 %v17547_v43, %v15226_v50  ;;  %v5955_v59 = vmul.f32 %v17547_v43, %v15220_v37  ;;  %v5749_v39 = vadd.f32 %v5721_v13, %v5660_v51  ;;  %v3312_v54 = vmul.f32 %v8754_v35, %v17553_v40  ;;  %17554 = vst [vmem:[#allocation94_spill] sm:$0xff] %v15239_v31  ;;  %v15245_v51 = vld [vmem:[#allocation6 + $0x18] ss:$0 sm:$0xff]  ;;  %v8758_v26 = vld [vmem:[#allocation6 + $0x2] ss:$0 sm:$0xff] }
 0x46c   : > { %v5865_v36 = vadd.f32 %v5837_v5, %v5748_v33  ;;  %v3313_v47 = vmul.f32 %v8754_v35, %v15229_v4  ;;  %6211 = vst [vmem:[#allocation2 + $0x1e8] sm:$0xf] %v8188_v45  ;;  %6212 = vst [vmem:[#allocation2 + $0x1f4] sm:$0xf] %v8189_v48  ;;  %v3369_v46 = vrot.slane %v15229_v4, 1  ;;  %v3486_v14 = vrot.slane %v15229_v4, 2 }
 0x46d   : > { %v3605_v23 = vmul.f32 %v15239_v31, %v17517_v17  ;;  %v3606_v13 = vmul.f32 %v15239_v31, %v14938_v62  ;;  %v5866_v20 = vadd.f32 %v5838_v30, %v5749_v39  ;;  %17555 = vst [vmem:[#allocation19_spill] sm:$0xff] %v15245_v51  ;;  %v3800_v33 = vmul.f32 %v15245_v51, %v17553_v40  ;;  %v17556_v48 = vld [vmem:[#allocation27_spill] sm:$0xff] }
 0x46e   : > { %v5982_v5 = vadd.f32 %v5954_v53, %v5865_v36  ;;  %v3801_v45 = vmul.f32 %v15245_v51, %v15229_v4  ;;  %v17557_v35 = vrot.slane %v17556_v48, 1  ;;  %v17558_v17 = vrot.slane %v17553_v40, 1  ;;  %v8757_v31 = vld [vmem:[#allocation6 + $0x1] ss:$0 sm:$0xff] }
 0x46f   : > { %v17559_v30 = vrot.slane %v17556_v48, 2  ;;  %v17560_v39 = vrot.slane %v17553_v40, 2  ;;  %v5983_v51 = vadd.f32 %v5955_v59, %v5866_v20  ;;  %v17562_v48 = vld [vmem:[#allocation23_spill] sm:$0xff] }
 0x470   : > { %v3397_v1 = vsel %vm420_vm0, %v3369_v46, %v17557_v35  ;;  %v3398_v62 = vsel %vm420_vm0, %v17558_v17, %v3369_v46  ;;  %v6017_v4 = vadd.f32 %v14977_v60, %v5982_v5  ;;  %v17561_v46 = vld [vmem:[#allocation60_spill] sm:$0xff]  ;;  %v3634_v0 = vadd.f32 %v3606_v13, %v17562_v48 }
 0x471   : > { %v3514_v53 = vsel %vm538_vm1, %v3486_v14, %v17559_v30  ;;  %v3515_v36 = vsel %vm538_vm1, %v17560_v39, %v3486_v14  ;;  %v3429_v35 = vmul.f32 %v8757_v31, %v3398_v62  ;;  %v3430_v43 = vmul.f32 %v8757_v31, %v3397_v1  ;;  %v15271_v14 = vld [vmem:[#allocation6 + $0xd] ss:$0 sm:$0xff] }
 0x472   : > { %v3546_v24 = vmul.f32 %v8758_v26, %v3515_v36  ;;  %v3547_v44 = vmul.f32 %v8758_v26, %v3514_v53  ;;  %v3633_v17 = vadd.f32 %v3605_v23, %v17561_v46  ;;  %v6018_v30 = vadd.f32 %v14977_v60, %v5983_v51 }
 0x473   : > { %v6045_v27 = vmax.f32 %v6017_v4, 0.0  ;;  %v3457_v40 = vadd.f32 %v3429_v35, %v3312_v54  ;;  %v3458_v28 = vadd.f32 %v3430_v43, %v3313_v47  ;;  %v15274_v59 = vmul.f32 %v15271_v14, %v3398_v62  ;;  %v8562_v20 = vld [vmem:[#allocation2 + $0x1e8] ss:$12 sps:$4 sm:$0xff]   ;;  %v15285_v4 = vld [vmem:[#allocation6 + $0xe] ss:$0 sm:$0xff] }
 0x474   : > { %v15277_v31 = vmul.f32 %v15271_v14, %v3397_v1  ;;  %v3699_v26 = vadd.f32 %v14988_v18, %v3633_v17  ;;  %v3700_v23 = vadd.f32 %v14991_v2, %v3634_v0  ;;  %v15288_v43 = vmul.f32 %v15285_v4, %v3515_v36  ;;  %v15296_v0 = vld [vmem:[%s9188_s30 + $0x440] sm:$0xff]  ;;  %8297 = vmatprep.mubr.bf16.mxu1 %v8562_v20  ;;  %v15298_v2 = vld [vmem:[#allocation6 + $0x19] ss:$0 sm:$0xff] }
 0x475   : > { %v15281_v13 = vadd.f32 %v3546_v24, %v3457_v40  ;;  %v15283_v5 = vadd.f32 %v3547_v44, %v3458_v28  ;;  %v15291_v47 = vmul.f32 %v15285_v4, %v3514_v53  ;;  %v6046_v54 = vmax.f32 %v6018_v30, 0.0  ;;  %17565 = vst [vmem:[#allocation21_spill] sm:$0xff] %v15298_v2  ;;  %v15302_v44 = vld [vmem:[#allocation6 + $0x1a] ss:$0 sm:$0xff] }
 0x476   : > { %v6073_v51 = vmin.f32 %v6045_v27, 6.0  ;;  %v3765_v39 = vadd.f32 %v15000_v38, %v3699_v26  ;;  %v3766_v18 = vadd.f32 %v15003_v32, %v3700_v23  ;;  %v3866_v24 = vmul.f32 %v15298_v2, %v3398_v62  ;;  %17566 = vst [vmem:[#allocation77_spill] sm:$0xff] %v15302_v44  ;;  %v8763_v32 = vld [vmem:[#allocation6 + $0x4] ss:$0 sm:$0xff] }
 0x477   : > { %17563 = vst [vmem:[#allocation22_spill] sm:$0xff] %v15281_v13  ;;  %17564 = vst [vmem:[#allocation87_spill] sm:$0xff] %v15283_v5  ;;  %v3867_v28 = vmul.f32 %v15298_v2, %v3397_v1  ;;  %v3932_v40 = vmul.f32 %v15302_v44, %v3515_v36  ;;  %v3933_v35 = vmul.f32 %v15302_v44, %v3514_v53  ;;  %v6074_v27 = vmin.f32 %v6046_v54, 6.0  ;;  %v17567_v36 = vld [vmem:[#allocation46_spill] sm:$0xff]  ;;  %v15455_v5 = vld [vmem:[#allocation6 + $0x8] ss:$0 sm:$0xff] }
 0x478   : > { %v8190_v46 = vpack.c.bf16 %v6073_v51, %v6073_v51  ;;  %v3828_v38 = vadd.f32 %v3800_v33, %v3765_v39  ;;  %v3829_v17 = vadd.f32 %v3801_v45, %v3766_v18  ;;  %v4256_v48 = vmul.f32 %v8763_v32, %v15017_v25  ;;  %v15574_v13 = vld [vmem:[#allocation6 + $0x10] ss:$0 sm:$0xff] }
 0x479   : > { %v4257_v30 = vmul.f32 %v8763_v32, %v15296_v0  ;;  %v4313_v26 = vrot.slane %v15296_v0, 1  ;;  %v4430_v62 = vrot.slane %v15296_v0, 2  ;;  %v8191_v1 = vpack.c.bf16 %v6074_v27, %v6074_v27 }
 0x47a   : > { %6213 = vst [vmem:[#allocation2 + $0x200] sm:$0xf] %v8190_v46  ;;  %v3894_v23 = vadd.f32 %v3866_v24, %v3828_v38  ;;  %v3895_v20 = vadd.f32 %v3867_v28, %v3829_v17  ;;  %v4549_v53 = vmul.f32 %v17530_v52, %v17528_v10  ;;  %v17568_v54 = vrot.slane %v17567_v36, 1 }
 0x47b   : > { %v17569_v45 = vrot.slane %v15017_v25, 1  ;;  %v17570_v39 = vrot.slane %v17567_v36, 2  ;;  %v17571_v24 = vrot.slane %v15017_v25, 2  ;;  %6214 = vst [vmem:[#allocation2 + $0x20c] sm:$0xf] %v8191_v1  ;;  %v17572_v36 = vld [vmem:[#allocation65_spill] sm:$0xff] }
 0x47c   : > { %v4341_v33 = vsel %vm420_vm0, %v4313_v26, %v17568_v54  ;;  %v3960_v28 = vadd.f32 %v3932_v40, %v3894_v23  ;;  %v3961_v27 = vadd.f32 %v3933_v35, %v3895_v20  ;;  %v4577_v54 = vadd.f32 %v4549_v53, %v17572_v36  ;;  %v17573_v23 = vld [vmem:[#allocation82_spill] sm:$0xff] }
 0x47d   : > { %v4342_v51 = vsel %vm420_vm0, %v17569_v45, %v4313_v26  ;;  %v4458_v18 = vsel %vm538_vm1, %v4430_v62, %v17570_v39  ;;  %v4459_v10 = vsel %vm538_vm1, %v17571_v24, %v4430_v62  ;;  %v4374_v38 = vmul.f32 %v17533_v34, %v4341_v33  ;;  %v15335_v45 = vld [vmem:[#allocation8] ss:$0 sm:$0xff] }
 0x47e   : > { %v4373_v46 = vmul.f32 %v17533_v34, %v4342_v51  ;;  %v4490_v17 = vmul.f32 %v14754_v41, %v4459_v10  ;;  %v4491_v32 = vmul.f32 %v14754_v41, %v4458_v18  ;;  %v4550_v26 = vmul.f32 %v17530_v52, %v15014_v15  ;;  %v15340_v34 = vld [vmem:[#allocation6 + $0x11] ss:$0 sm:$0xff] }
 0x47f   : > { %v3995_v62 = vadd.f32 %v15335_v45, %v3960_v28  ;;  %v3996_v40 = vadd.f32 %v15335_v45, %v3961_v27  ;;  %v4402_v1 = vadd.f32 %v4374_v38, %v4257_v30  ;;  %17574 = vst [vmem:[#allocation24_spill] sm:$0xff] %v15340_v34  ;;  %v15343_v39 = vmul.f32 %v15340_v34, %v4342_v51  ;;  %v15354_v30 = vld [vmem:[#allocation6 + $0x12] ss:$0 sm:$0xff] }
 0x480   : > { %v4401_v35 = vadd.f32 %v4373_v46, %v4256_v48  ;;  %v4578_v20 = vadd.f32 %v4550_v26, %v17573_v23  ;;  %v15346_v41 = vmul.f32 %v15340_v34, %v4341_v33  ;;  %v4643_v15 = vadd.f32 %v15058_v9, %v4577_v54  ;;  %17577 = vst [vmem:[#allocation79_spill] sm:$0xff] %v15354_v30 }
 0x481   : > { %v4023_v52 = vmax.f32 %v3995_v62, 0.0  ;;  %v4024_v53 = vmax.f32 %v3996_v40, 0.0  ;;  %v15351_v28 = vadd.f32 %v4491_v32, %v4402_v1  ;;  %v15357_v27 = vmul.f32 %v15354_v30, %v4459_v10  ;;  %v17578_v40 = vld [vmem:[#allocation90_spill] sm:$0xff] }
 0x482   : > { %v15349_v24 = vadd.f32 %v4490_v17, %v4401_v35  ;;  %v4644_v48 = vadd.f32 %v15061_v49, %v4578_v20  ;;  %v15360_v46 = vmul.f32 %v15354_v30, %v4458_v18  ;;  %v4709_v38 = vadd.f32 %v15070_v55, %v4643_v15  ;;  %v8564_v36 = vld [vmem:[#allocation2 + $0x200] ss:$12 sps:$4 sm:$0xff]  }
 0x483   : > { %17576 = vst [vmem:[#allocation61_spill] sm:$0xff] %v15351_v28  ;;  %v4051_v26 = vmin.f32 %v4023_v52, 6.0  ;;  %v4052_v9 = vmin.f32 %v4024_v53, 6.0  ;;  %v4744_v17 = vmul.f32 %v15077_v3, %v15017_v25  ;;  %v4745_v32 = vmul.f32 %v15077_v3, %v15296_v0  ;;  %8298 = vmatmul.mubr.bf16.gmra.mxu1 %v8564_v36 }
 0x484   : > { %17575 = vst [vmem:[#allocation67_spill] sm:$0xff] %v15349_v24  ;;  %v4710_v49 = vadd.f32 %v15073_v21, %v4644_v48  ;;  %v4810_v54 = vmul.f32 %v15083_v63, %v4342_v51  ;;  %v4811_v62 = vmul.f32 %v15083_v63, %v4341_v33  ;;  %v4876_v35 = vmul.f32 %v17578_v40, %v4459_v10 }
 0x485   : > { %v8128_v1 = vpack.c.bf16 %v4051_v26, %v4051_v26  ;;  %v8129_v23 = vpack.c.bf16 %v4052_v9, %v4052_v9  ;;  %v4772_v55 = vadd.f32 %v4744_v17, %v4709_v38  ;;  %v4877_v20 = vmul.f32 %v17578_v40, %v4458_v18 }
 0x486   : > { %v4773_v15 = vadd.f32 %v4745_v32, %v4710_v49  ;;  %v5204_v52 = vmul.f32 %v14786_v29, %v17542_v16  ;;  %v5205_v53 = vmul.f32 %v14786_v29, %v15116_v12  ;;  %v15378_v21 = vmul.f32 %v14858_v7, %v15210_v57  ;;  %v15392_v29 = vpop.f32.mrf.mxu0  ;;  %v15394_v12 = vpop.f32.mrf.mxu1  ;;  %v15407_v49 = vld [vmem:[%s9188_s30 + $0x508] sm:$0xff] }
 0x487   : > { %4191 = vst [vmem:[#allocation2 + $0x1b0] sm:$0xf] %v8128_v1  ;;  %4192 = vst [vmem:[#allocation2 + $0x1bc] sm:$0xf] %v8129_v23  ;;  %v4838_v33 = vadd.f32 %v4810_v54, %v4772_v55  ;;  %v15382_v51 = vmul.f32 %v14858_v7, %v15204_v58  ;;  %v15386_v18 = vmul.f32 %v14866_v42, %v15226_v50  ;;  %v17581_v1 = vld [vmem:[#allocation70_spill] sm:$0xff]  ;;  %v17582_v23 = vld [vmem:[#allocation89_spill] sm:$0xff] }
 0x488   : > { %v15390_v16 = vmul.f32 %v14866_v42, %v15220_v37  ;;  %17579 = vst [vmem:[#allocation91_spill] sm:$0xff] %v15392_v29  ;;  %17580 = vst [vmem:[#allocation32_spill] sm:$0xff] %v15394_v12  ;;  %v4839_v10 = vadd.f32 %v4811_v62, %v4773_v15  ;;  %v5349_v48 = vadd.f32 %v15164_v11, %v5204_v52  ;;  %v7022_v54 = vpop.f32.mrf.mxu0  ;;  %v7190_v62 = vpop.f32.mrf.mxu1  ;;  %v15414_v52 = vld [vmem:[%s9188_s30 + $0x520] sm:$0xff] }
 0x489   : > { %v5350_v38 = vadd.f32 %v15167_v19, %v5205_v53  ;;  %v5501_v26 = vmul.f32 %v14874_v22, %v15123_v56  ;;  %v4904_v9 = vadd.f32 %v4876_v35, %v4838_v33  ;;  %v5502_v17 = vmul.f32 %v14874_v22, %v15182_v8  ;;  %v17583_v35 = vld [vmem:[#allocation69_spill] sm:$0xff]  ;;  %v17584_v53 = vld [vmem:[#allocation71_spill] sm:$0xff]  ;;  %v17586_v12 = vld [vmem:[#allocation44_spill] sm:$0xff] }
 0x48a   : > { %v5567_v32 = vmul.f32 %v14880_v61, %v15210_v57  ;;  %v5568_v36 = vmul.f32 %v14880_v61, %v15204_v58  ;;  %v4905_v11 = vadd.f32 %v4877_v20, %v4839_v10  ;;  %v5466_v19 = vadd.f32 %v17581_v1, %v5349_v48  ;;  %v17585_v58 = vld [vmem:[#allocation73_spill] sm:$0xff]  ;;  %v15423_v10 = vpop.f32.mrf.mxu0  ;;  %v15425_v48 = vpop.f32.mrf.mxu1 }
 0x48b   : > { %v5467_v55 = vadd.f32 %v17582_v23, %v5350_v38  ;;  %v5633_v15 = vmul.f32 %v17583_v35, %v15226_v50  ;;  %v4939_v33 = vadd.f32 %v17584_v53, %v4904_v9  ;;  %v5634_v57 = vmul.f32 %v17583_v35, %v15220_v37  ;;  %17587 = vst [vmem:[#allocation31_spill] sm:$0xff] %v15423_v10 }
 0x48c   : > { %v5722_v29 = vmul.f32 %v17586_v12, %v17585_v58  ;;  %v5723_v20 = vmul.f32 %v17586_v12, %v15407_v49  ;;  %17588 = vst [vmem:[#allocation55_spill] sm:$0xff] %v15425_v48  ;;  %v4940_v38 = vadd.f32 %v17584_v53, %v4905_v11  ;;  %v5529_v50 = vadd.f32 %v5501_v26, %v5466_v19  ;;  %v7025_v28 = vpop.f32.mrf.mxu0  ;;  %v7193_v30 = vpop.f32.mrf.mxu1  ;;  %v17590_v19 = vld [vmem:[#allocation74_spill] sm:$0xff] }
 0x48d   : > { %v5530_v54 = vadd.f32 %v5502_v17, %v5467_v55  ;;  %v5779_v62 = vrot.slane %v15407_v49, 1  ;;  %v4967_v9 = vmax.f32 %v4939_v33, 0.0  ;;  %v16778_v1 = vrot.slane %v15414_v52, 1 }
 0x48e   : > { %v5896_v37 = vrot.slane %v15407_v49, 2  ;;  %v16779_v23 = vrot.slane %v15414_v52, 2  ;;  %v4968_v24 = vmax.f32 %v4940_v38, 0.0  ;;  %v5595_v34 = vadd.f32 %v5567_v32, %v5529_v50  ;;  %v15445_v30 = vpop.f32.mrf.mxu0  ;;  %v15447_v32 = vpop.f32.mrf.mxu1 }
 0x48f   : > { %v5596_v10 = vadd.f32 %v5568_v36, %v5530_v54  ;;  %v17589_v48 = vrot.slane %v17585_v58, 1  ;;  %v4995_v17 = vmin.f32 %v4967_v9, 6.0  ;;  %v5799_v11 = vsel %vm420_vm0, %v5779_v62, %v16778_v1  ;;  %17591 = vst [vmem:[#allocation93_spill] sm:$0xff] %v15445_v30  ;;  %17592 = vst [vmem:[#allocation86_spill] sm:$0xff] %v15447_v32  ;;  %v17594_v9 = vld [vmem:[#allocation56_spill] sm:$0xff] }
 0x490   : > { %v5916_v28 = vsel %vm538_vm1, %v5896_v37, %v16779_v23  ;;  %v4996_v36 = vmin.f32 %v4968_v24, 6.0  ;;  %v5661_v33 = vadd.f32 %v5633_v15, %v5595_v34  ;;  %v5840_v38 = vmul.f32 %v17590_v19, %v5799_v11  ;;  %v7030_v30 = vpop.f32.mrf.mxu0  ;;  %v7198_v32 = vpop.f32.mrf.mxu1 }
 0x491   : > { %v5800_v26 = vsel %vm420_vm0, %v17589_v48, %v5779_v62  ;;  %v5662_v48 = vadd.f32 %v5634_v57, %v5596_v10  ;;  %v8156_v50 = vpack.c.bf16 %v4995_v17, %v4995_v17  ;;  %v17593_v54 = vrot.slane %v17585_v58, 2 }
 0x492   : > { %v5839_v55 = vmul.f32 %v17590_v19, %v5800_v26  ;;  %v5957_v1 = vmul.f32 %v17594_v9, %v5916_v28  ;;  %v5206_v23 = vmul.f32 %v15455_v5, %v15123_v56  ;;  %v8157_v24 = vpack.c.bf16 %v4996_v36, %v4996_v36  ;;  %v15469_v56 = vpop.f32.mrf.mxu0  ;;  %v15471_v30 = vpop.f32.mrf.mxu1 }
 0x493   : > { %v5917_v62 = vsel %vm538_vm1, %v17593_v54, %v5896_v37  ;;  %v5750_v34 = vadd.f32 %v5722_v29, %v5661_v33  ;;  %v5751_v15 = vadd.f32 %v5723_v20, %v5662_v48  ;;  %5135 = vst [vmem:[#allocation2 + $0x1b4] sm:$0xf] %v8156_v50  ;;  %v5207_v10 = vmul.f32 %v15455_v5, %v15182_v8 }
 0x494   : > { %v5956_v57 = vmul.f32 %v17594_v9, %v5917_v62  ;;  %v15463_v37 = vmul.f32 %v14858_v7, %v5800_v26  ;;  %v15466_v17 = vmul.f32 %v14858_v7, %v5799_v11  ;;  %v5351_v54 = vadd.f32 %v15378_v21, %v5206_v23  ;;  %17595 = vst [vmem:[#allocation88_spill] sm:$0xff] %v15469_v56  ;;  %v7033_v33 = vpop.f32.mrf.mxu0  ;;  %v7201_v48 = vpop.f32.mrf.mxu1  ;;  %v17614_v56 = vld [vmem:[#allocation39_spill] sm:$0xff] }
 0x495   : > { %17596 = vst [vmem:[#allocation45_spill] sm:$0xff] %v15471_v30  ;;  %5136 = vst [vmem:[#allocation2 + $0x1c0] sm:$0xf] %v8157_v24  ;;  %v5867_v29 = vadd.f32 %v5839_v55, %v5750_v34  ;;  %v5868_v20 = vadd.f32 %v5840_v38, %v5751_v15  ;;  %v15474_v32 = vmul.f32 %v14866_v42, %v5917_v62  ;;  %v15491_v34 = vld [vmem:[%s9188_s30 + $0x550] sm:$0xff]  ;;  %v17612_v30 = vld [vmem:[#allocation43_spill] sm:$0xff] }
 0x496   : > { %v15477_v8 = vmul.f32 %v14866_v42, %v5916_v28  ;;  %v5352_v7 = vadd.f32 %v15382_v51, %v5207_v10  ;;  %v5468_v36 = vadd.f32 %v15386_v18, %v5351_v54  ;;  %v5503_v21 = vmul.f32 %v14874_v22, %v17585_v58  ;;  %v15488_v42 = vld [vmem:[%s9188_s30 + $0x538] sm:$0xff]  ;;  %v15498_v54 = vpop.f32.mrf.mxu1 }
 0x497   : > { %v5504_v23 = vmul.f32 %v14874_v22, %v15407_v49  ;;  %v5984_v55 = vadd.f32 %v5956_v57, %v5867_v29  ;;  %v5985_v38 = vadd.f32 %v5957_v1, %v5868_v20  ;;  %v5569_v50 = vmul.f32 %v14880_v61, %v5800_v26  ;;  %v15496_v22 = vpop.f32.mrf.mxu0  ;;  %17598 = vst [vmem:[#allocation92_spill] sm:$0xff] %v15498_v54  ;;  %v8568_v48 = vld [vmem:[#allocation2 + $0x1b0] ss:$12 sps:$4 sm:$0xff]  }
 0x498   : > { %v5570_v24 = vmul.f32 %v14880_v61, %v5799_v11  ;;  %v5469_v51 = vadd.f32 %v15390_v16, %v5352_v7  ;;  %v5531_v18 = vadd.f32 %v5503_v21, %v5468_v36  ;;  %v5635_v15 = vmul.f32 %v17583_v35, %v5917_v62  ;;  %17597 = vst [vmem:[#allocation28_spill] sm:$0xff] %v15496_v22  ;;  %v7206_v29 = vpop.f32.mrf.mxu1 }
 0x499   : > { %v5636_v10 = vmul.f32 %v17583_v35, %v5916_v28  ;;  %v6019_v1 = vadd.f32 %v14977_v60, %v5984_v55  ;;  %v6020_v26 = vadd.f32 %v14977_v60, %v5985_v38  ;;  %v5724_v61 = vmul.f32 %v17586_v12, %v15414_v52  ;;  %v7038_v28 = vpop.f32.mrf.mxu0 }
 0x49a   : > { %v5725_v11 = vmul.f32 %v17586_v12, %v15488_v42  ;;  %v5532_v16 = vadd.f32 %v5504_v23, %v5469_v51  ;;  %v5597_v57 = vadd.f32 %v5569_v50, %v5531_v18  ;;  %v5781_v62 = vrot.slane %v15488_v42, 1  ;;  %v15524_v18 = vpop.f32.mrf.mxu1 }
 0x49b   : > { %v16781_v35 = vrot.slane %v15491_v34, 1  ;;  %v6047_v20 = vmax.f32 %v6019_v1, 0.0  ;;  %v6048_v7 = vmax.f32 %v6020_v26, 0.0  ;;  %v5898_v36 = vrot.slane %v15488_v42, 2  ;;  %v15522_v51 = vpop.f32.mrf.mxu0  ;;  %17601 = vst [vmem:[#allocation20_spill] sm:$0xff] %v15524_v18 }
 0x49c   : > { %v16780_v21 = vrot.slane %v15491_v34, 2  ;;  %v8565_v33 = vld [vmem:[#allocation2 + $0x1b4] ss:$12 sps:$4 sm:$0xff]   ;;  %v5598_v55 = vadd.f32 %v5570_v24, %v5532_v16  ;;  %v5663_v38 = vadd.f32 %v5635_v15, %v5597_v57  ;;  %v17599_v23 = vrot.slane %v15414_v52, 1  ;;  %17600 = vst [vmem:[#allocation18_spill] sm:$0xff] %v15522_v51 }
 0x49d   : > { %v15514_v12 = vsel %vm420_vm0, %v5781_v62, %v16781_v35  ;;  %v6075_v1 = vmin.f32 %v6047_v20, 6.0  ;;  %v6076_v26 = vmin.f32 %v6048_v7, 6.0  ;;  %7162 = vmatprep.mubr.bf16.mxu0 %v8565_v33  ;;  %v17602_v28 = vrot.slane %v15414_v52, 2  ;;  %v7041_v20 = vpop.f32.mrf.mxu0  ;;  %v7209_v7 = vpop.f32.mrf.mxu1  ;;  %v17613_v51 = vld [vmem:[#allocation40_spill] sm:$0xff] }
 0x49e   : > { %v15520_v50 = vsel %vm420_vm0, %v17599_v23, %v5781_v62  ;;  %v5842_v15 = vmul.f32 %v17590_v19, %v15514_v12  ;;  %v5664_v16 = vadd.f32 %v5636_v10, %v5598_v55  ;;  %v5752_v57 = vadd.f32 %v5724_v61, %v5663_v38  ;;  %7163 = vmatmul.mubr.bf16.gmra.mxu0 %v8568_v48  ;;  %v17603_v23 = vld [vmem:[#allocation72_spill] sm:$0xff]  ;;  %v15555_v48 = vld [vmem:[%s9188_s30 + $0x450] sm:$0xff] }
 0x49f   : > { %v5841_v24 = vmul.f32 %v17590_v19, %v15520_v50  ;;  %v15534_v62 = vsel %vm538_vm1, %v5898_v36, %v16780_v21  ;;  %v15540_v29 = vsel %vm538_vm1, %v17602_v28, %v5898_v36  ;;  %v8192_v19 = vpack.c.bf16 %v6075_v1, %v6075_v1  ;;  %v17604_v21 = vld [vmem:[#allocation94_spill] sm:$0xff]  ;;  %v17605_v36 = vld [vmem:[#allocation63_spill] sm:$0xff]  ;;  %v15550_v20 = vpop.f32.mrf.mxu0  ;;  %v15552_v7 = vpop.f32.mrf.mxu1 }
 0x4a0   : > { %v8193_v33 = vpack.c.bf16 %v6076_v26, %v6076_v26  ;;  %v5958_v10 = vmul.f32 %v17594_v9, %v15540_v29  ;;  %v5959_v61 = vmul.f32 %v17594_v9, %v15534_v62  ;;  %v5753_v55 = vadd.f32 %v5725_v11, %v5664_v16  ;;  %17606 = vst [vmem:[#allocation42_spill] sm:$0xff] %v15550_v20  ;;  %v17608_v1 = vld [vmem:[#allocation19_spill] sm:$0xff]  ;;  %v15560_v9 = vld [vmem:[%s9188_s30 + $0x468] sm:$0xff] }
 0x4a1   : > { %v5869_v38 = vadd.f32 %v5841_v24, %v5752_v57  ;;  %v3607_v35 = vmul.f32 %v17604_v21, %v17603_v23  ;;  %v3608_v28 = vmul.f32 %v17604_v21, %v17605_v36  ;;  %17607 = vst [vmem:[#allocation26_spill] sm:$0xff] %v15552_v7  ;;  %6215 = vst [vmem:[#allocation2 + $0x218] sm:$0xf] %v8192_v19  ;;  %v17609_v24 = vld [vmem:[#allocation37_spill] sm:$0xff]  ;;  %v17610_v57 = vld [vmem:[#allocation36_spill] sm:$0xff]  ;;  %v7046_v54 = vpop.f32.mrf.mxu0  ;;  %v7214_v20 = vpop.f32.mrf.mxu1 }
 0x4a2   : > { %6216 = vst [vmem:[#allocation2 + $0x224] sm:$0xf] %v8193_v33  ;;  %v3802_v26 = vmul.f32 %v15555_v48, %v17608_v1  ;;  %v3803_v11 = vmul.f32 %v15560_v9, %v17608_v1  ;;  %v3868_v16 = vmul.f32 %v15298_v2, %v17609_v24  ;;  %v3869_v23 = vmul.f32 %v15298_v2, %v17610_v57  ;;  %v17611_v19 = vld [vmem:[#allocation58_spill] sm:$0xff]  ;;  %v17617_v20 = vld [vmem:[#allocation84_spill] sm:$0xff] }
 0x4a3   : > { %v5870_v36 = vadd.f32 %v5842_v15, %v5753_v55  ;;  %v5986_v7 = vadd.f32 %v5958_v10, %v5869_v38  ;;  %v3635_v33 = vadd.f32 %v3607_v35, %v17611_v19  ;;  %v3636_v18 = vadd.f32 %v3608_v28, %v17612_v30  ;;  %v15583_v38 = vpop.f32.mrf.mxu0  ;;  %v15585_v28 = vpop.f32.mrf.mxu1 }
 0x4a4   : > { %v3934_v22 = vmul.f32 %v15302_v44, %v17613_v51  ;;  %v3935_v1 = vmul.f32 %v15302_v44, %v17614_v56  ;;  %v4551_v15 = vmul.f32 %v15574_v13, %v15017_v25  ;;  %v4552_v35 = vmul.f32 %v15574_v13, %v15296_v0  ;;  %17615 = vst [vmem:[#allocation76_spill] sm:$0xff] %v15583_v38  ;;  %v17618_v44 = vld [vmem:[#allocation83_spill] sm:$0xff]  ;;  %v15595_v0 = vld [vmem:[%s9188_s30 + $0x470] sm:$0xff] }
 0x4a5   : > { %v5987_v10 = vadd.f32 %v5959_v61, %v5870_v36  ;;  %v6021_v30 = vadd.f32 %v14977_v60, %v5986_v7  ;;  %v3701_v54 = vadd.f32 %v15274_v59, %v3635_v33  ;;  %v3702_v55 = vadd.f32 %v15277_v31, %v3636_v18  ;;  %17616 = vst [vmem:[#allocation33_spill] sm:$0xff] %v15585_v28  ;;  %v15590_v56 = vld [vmem:[%s9188_s30 + $0x458] sm:$0xff]  ;;  %v7049_v36 = vpop.f32.mrf.mxu0  ;;  %v7217_v33 = vpop.f32.mrf.mxu1 }
 0x4a6   : > { %v4579_v19 = vadd.f32 %v4551_v15, %v17617_v20  ;;  %v4580_v2 = vadd.f32 %v4552_v35, %v17618_v44  ;;  %v4746_v25 = vmul.f32 %v15590_v56, %v15077_v3  ;;  %17619 = vst [vmem:[#allocation68_spill] sm:$0xff] %v15595_v0  ;;  %v4747_v59 = vmul.f32 %v15595_v0, %v15077_v3  ;;  %v17620_v35 = vld [vmem:[#allocation48_spill] sm:$0xff]  ;;  %v17621_v28 = vld [vmem:[#allocation47_spill] sm:$0xff] }
 0x4a7   : > { %v6022_v31 = vadd.f32 %v14977_v60, %v5987_v10  ;;  %v6049_v18 = vmax.f32 %v6021_v30, 0.0  ;;  %v3767_v61 = vadd.f32 %v15288_v43, %v3701_v54  ;;  %v3768_v7 = vadd.f32 %v15291_v47, %v3702_v55  ;;  %v17622_v10 = vld [vmem:[#allocation51_spill] sm:$0xff]  ;;  %v17623_v30 = vld [vmem:[#allocation54_spill] sm:$0xff]  ;;  %v15612_v54 = vpop.f32.mrf.mxu0 }
 0x4a8   : > { %v4645_v44 = vadd.f32 %v15343_v39, %v4579_v19  ;;  %v4646_v15 = vadd.f32 %v15346_v41, %v4580_v2  ;;  %v4812_v20 = vmul.f32 %v15083_v63, %v17620_v35  ;;  %v4813_v38 = vmul.f32 %v15083_v63, %v17621_v28  ;;  %17624 = vst [vmem:[#allocation96_spill] sm:$0xff] %v15612_v54  ;;  %v15614_v39 = vpop.f32.mrf.mxu1 }
 0x4a9   : > { %v8567_v3 = vld [vmem:[#allocation2 + $0x218] ss:$12 sps:$4 sm:$0xff]   ;;  %v3830_v0 = vadd.f32 %v3802_v26, %v3767_v61  ;;  %v3831_v60 = vadd.f32 %v3803_v11, %v3768_v7  ;;  %v4878_v43 = vmul.f32 %v17578_v40, %v17622_v10  ;;  %v4879_v47 = vmul.f32 %v17578_v40, %v17623_v30  ;;  %17625 = vst [vmem:[#allocation64_spill] sm:$0xff] %v15614_v39  ;;  %v7054_v40 = vpop.f32.mrf.mxu0 }
 0x4aa   : > { %v6050_v2 = vmax.f32 %v6022_v31, 0.0  ;;  %v6077_v41 = vmin.f32 %v6049_v18, 6.0  ;;  %v4711_v55 = vadd.f32 %v15357_v27, %v4645_v44  ;;  %v4712_v19 = vadd.f32 %v15360_v46, %v4646_v15  ;;  %8301 = vmatprep.mubr.bf16.mxu1 %v8567_v3  ;;  %v7222_v7 = vpop.f32.mrf.mxu1  ;;  %v15622_v27 = vld [vmem:[#allocation6 + $0x9] ss:$0 sm:$0xff]  ;;  %v15640_v15 = vld [vmem:[#allocation6 + $0xa] ss:$0 sm:$0xff] }
 0x4ab   : > { %v3896_v63 = vadd.f32 %v3868_v16, %v3830_v0  ;;  %v3897_v26 = vadd.f32 %v3869_v23, %v3831_v60  ;;  %v5208_v11 = vmul.f32 %v15455_v5, %v17585_v58  ;;  %v5209_v61 = vmul.f32 %v15455_v5, %v15407_v49  ;;  %v15632_v16 = vpop.f32.mrf.mxu0 }
 0x4ac   : > { %v6078_v36 = vmin.f32 %v6050_v2, 6.0  ;;  %v8194_v33 = vpack.c.bf16 %v6077_v41, %v6077_v41  ;;  %v4774_v39 = vadd.f32 %v4746_v25, %v4711_v55  ;;  %v4775_v31 = vadd.f32 %v4747_v59, %v4712_v19  ;;  %v15634_v49 = vpop.f32.mrf.mxu1  ;;  %v15652_v55 = vld [vmem:[#allocation6 + $0x14] ss:$0 sm:$0xff] }
 0x4ad   : > { %v3962_v18 = vadd.f32 %v3934_v22, %v3896_v63  ;;  %v3963_v54 = vadd.f32 %v3935_v1, %v3897_v26  ;;  %v15626_v46 = vmul.f32 %v15622_v27, %v15520_v50  ;;  %v15630_v58 = vmul.f32 %v15622_v27, %v15514_v12  ;;  %17626 = vst [vmem:[#allocation29_spill] sm:$0xff] %v15634_v49  ;;  %v7057_v60 = vpop.f32.mrf.mxu0 }
 0x4ae   : > { %v8195_v23 = vpack.c.bf16 %v6078_v36, %v6078_v36  ;;  %6217 = vst [vmem:[#allocation2 + $0x230] sm:$0xf] %v8194_v33  ;;  %v4840_v25 = vadd.f32 %v4812_v20, %v4774_v39  ;;  %v4841_v0 = vadd.f32 %v4813_v38, %v4775_v31  ;;  %v5353_v22 = vadd.f32 %v15463_v37, %v5208_v11  ;;  %v7225_v2 = vpop.f32.mrf.mxu1  ;;  %v15664_v11 = vld [vmem:[#allocation6 + $0x15] ss:$0 sm:$0xff] }
 0x4af   : > { %v3997_v1 = vadd.f32 %v15335_v45, %v3962_v18  ;;  %v3998_v59 = vadd.f32 %v15335_v45, %v3963_v54  ;;  %v5354_v44 = vadd.f32 %v15466_v17, %v5209_v61  ;;  %v15644_v3 = vmul.f32 %v15640_v15, %v15540_v29  ;;  %v15656_v63 = vpop.f32.mrf.mxu0 }
 0x4b0   : > { %6218 = vst [vmem:[#allocation2 + $0x23c] sm:$0xf] %v8195_v23  ;;  %v4906_v41 = vadd.f32 %v4878_v43, %v4840_v25  ;;  %v4907_v20 = vadd.f32 %v4879_v47, %v4841_v0  ;;  %v15648_v37 = vmul.f32 %v15640_v15, %v15534_v62  ;;  %v5470_v38 = vadd.f32 %v15474_v32, %v5353_v22  ;;  %v15658_v26 = vpop.f32.mrf.mxu1  ;;  %v15670_v25 = vld [vmem:[#allocation6 + $0x16] ss:$0 sm:$0xff]  ;;  %v15675_v22 = vld [vmem:[%s9188_s30 + $0x568] sm:$0xff] }
 0x4b1   : > { %v4025_v54 = vmax.f32 %v3997_v1, 0.0  ;;  %v4026_v39 = vmax.f32 %v3998_v59, 0.0  ;;  %v5471_v17 = vadd.f32 %v15477_v8, %v5354_v44  ;;  %v5505_v19 = vmul.f32 %v15652_v55, %v15414_v52  ;;  %17627 = vst [vmem:[#allocation85_spill] sm:$0xff] %v15658_v26  ;;  %v7062_v33 = vpop.f32.mrf.mxu0  ;;  %v15678_v1 = vld [vmem:[%s9188_s30 + $0x580] sm:$0xff] }
 0x4b2   : > { %v4941_v43 = vadd.f32 %v17584_v53, %v4906_v41  ;;  %v4942_v47 = vadd.f32 %v17584_v53, %v4907_v20  ;;  %v5506_v32 = vmul.f32 %v15652_v55, %v15488_v42  ;;  %v5571_v8 = vmul.f32 %v15664_v11, %v15520_v50  ;;  %v7230_v31 = vpop.f32.mrf.mxu1 }
 0x4b3   : > { %v4053_v61 = vmin.f32 %v4025_v54, 6.0  ;;  %v4054_v40 = vmin.f32 %v4026_v39, 6.0  ;;  %v5533_v7 = vadd.f32 %v5505_v19, %v5470_v38  ;;  %v5572_v36 = vmul.f32 %v15664_v11, %v15514_v12  ;;  %v15682_v60 = vpop.f32.mrf.mxu0  ;;  %v15686_v54 = vld [vmem:[#allocation6 + $0x20] ss:$0 sm:$0xff] }
 0x4b4   : > { %v4969_v18 = vmax.f32 %v4941_v43, 0.0  ;;  %v4970_v23 = vmax.f32 %v4942_v47, 0.0  ;;  %v5534_v53 = vadd.f32 %v5506_v32, %v5471_v17  ;;  %v5637_v0 = vmul.f32 %v15670_v25, %v15540_v29  ;;  %17628 = vst [vmem:[#allocation80_spill] sm:$0xff] %v15682_v60  ;;  %v15684_v2 = vpop.f32.mrf.mxu1 }
 0x4b5   : > { %v8130_v50 = vpack.c.bf16 %v4053_v61, %v4053_v61  ;;  %v8131_v59 = vpack.c.bf16 %v4054_v40, %v4054_v40  ;;  %v5599_v44 = vadd.f32 %v5571_v8, %v5533_v7  ;;  %v5638_v12 = vmul.f32 %v15670_v25, %v15534_v62  ;;  %17629 = vst [vmem:[#allocation30_spill] sm:$0xff] %v15684_v2  ;;  %v7065_v47 = vpop.f32.mrf.mxu0 }
 0x4b6   : > { %v4997_v41 = vmin.f32 %v4969_v18, 6.0  ;;  %v4998_v20 = vmin.f32 %v4970_v23, 6.0  ;;  %v5600_v38 = vadd.f32 %v5572_v36, %v5534_v53  ;;  %v5726_v29 = vmul.f32 %v15686_v54, %v15491_v34  ;;  %v7233_v32 = vpop.f32.mrf.mxu1 }
 0x4b7   : > { %v8569_v39 = vld [vmem:[#allocation2 + $0x230] ss:$12 sps:$4 sm:$0xff]   ;;  %4193 = vst [vmem:[#allocation2 + $0x1c8] sm:$0xf] %v8130_v50  ;;  %4194 = vst [vmem:[#allocation2 + $0x1d4] sm:$0xf] %v8131_v59  ;;  %v5665_v17 = vadd.f32 %v5637_v0, %v5599_v44  ;;  %v5727_v19 = vmul.f32 %v15686_v54, %v15675_v22  ;;  %v15704_v53 = vpop.f32.mrf.mxu0 }
 0x4b8   : > { %v5783_v62 = vrot.slane %v15675_v22, 1  ;;  %v16789_v43 = vrot.slane %v15678_v1, 1  ;;  %v8158_v8 = vpack.c.bf16 %v4997_v41, %v4997_v41  ;;  %v8159_v61 = vpack.c.bf16 %v4998_v20, %v4998_v20  ;;  %8302 = vmatmul.mubr.bf16.gmra.mxu1 %v8569_v39  ;;  %17631 = vst [vmem:[#allocation95_spill] sm:$0xff] %v15704_v53  ;;  %v15706_v0 = vpop.f32.mrf.mxu1  ;;  %v15708_v59 = vld [vmem:[#allocation6 + $0x21] ss:$0 sm:$0xff] }
 0x4b9   : > { %v5666_v40 = vadd.f32 %v5638_v12, %v5600_v38  ;;  %v5900_v7 = vrot.slane %v15675_v22, 2  ;;  %v5754_v36 = vadd.f32 %v5726_v29, %v5665_v17  ;;  %v17630_v31 = vrot.slane %v15491_v34, 1  ;;  %17632 = vst [vmem:[#allocation25_spill] sm:$0xff] %v15706_v0  ;;  %v15720_v29 = vld [vmem:[#allocation6 + $0x22] ss:$0 sm:$0xff] }
 0x4ba   : > { %v5795_v33 = vsel %vm420_vm0, %v5783_v62, %v16789_v43  ;;  %v16788_v23 = vrot.slane %v15678_v1, 2  ;;  %5137 = vst [vmem:[#allocation2 + $0x1cc] sm:$0xf] %v8158_v8  ;;  %5138 = vst [vmem:[#allocation2 + $0x1d8] sm:$0xf] %v8159_v61  ;;  %v17633_v41 = vrot.slane %v15491_v34, 2  ;;  %v5210_v17 = vmul.f32 %v15455_v5, %v15414_v52  ;;  %v7238_v47 = vpop.f32.mrf.mxu1 }
 0x4bb   : > { %v5796_v18 = vsel %vm420_vm0, %v17630_v31, %v5783_v62  ;;  %v5755_v50 = vadd.f32 %v5727_v19, %v5666_v40  ;;  %v5844_v12 = vmul.f32 %v15708_v59, %v5795_v33  ;;  %v5211_v19 = vmul.f32 %v15455_v5, %v15488_v42  ;;  %v7070_v62 = vpop.f32.mrf.mxu0  ;;  %v15754_v47 = vld [vmem:[%s9188_s30 + $0x598] sm:$0xff] }
 0x4bc   : > { %v5843_v44 = vmul.f32 %v15708_v59, %v5796_v18  ;;  %v5913_v20 = vsel %vm538_vm1, %v17633_v41, %v5900_v7  ;;  %v5912_v38 = vsel %vm538_vm1, %v5900_v7, %v16788_v23  ;;  %v15729_v40 = vmul.f32 %v15622_v27, %v5796_v18 }
 0x4bd   : > { %v5960_v39 = vmul.f32 %v15720_v29, %v5913_v20  ;;  %v5872_v8 = vadd.f32 %v5844_v12, %v5755_v50  ;;  %v5961_v61 = vmul.f32 %v15720_v29, %v5912_v38  ;;  %v15732_v7 = vmul.f32 %v15622_v27, %v5795_v33  ;;  %v15739_v42 = vpop.f32.mrf.mxu0 }
 0x4be   : > { %v5871_v32 = vadd.f32 %v5843_v44, %v5754_v36  ;;  %v5355_v31 = vadd.f32 %v15626_v46, %v5210_v17  ;;  %v5356_v52 = vadd.f32 %v15630_v58, %v5211_v19  ;;  %v15737_v41 = vmul.f32 %v15640_v15, %v5913_v20  ;;  %17634 = vst [vmem:[#allocation57_spill] sm:$0xff] %v15739_v42  ;;  %v15741_v36 = vpop.f32.mrf.mxu1  ;;  %v8573_v26 = vld [vmem:[#allocation2 + $0x1c8] ss:$12 sps:$4 sm:$0xff]  }
 0x4bf   : > { %17635 = vst [vmem:[#allocation81_spill] sm:$0xff] %v15741_v36  ;;  %v5989_v44 = vadd.f32 %v5961_v61, %v5872_v8  ;;  %v15744_v12 = vmul.f32 %v15640_v15, %v5912_v38  ;;  %v5507_v62 = vmul.f32 %v15652_v55, %v15491_v34  ;;  %v5508_v17 = vmul.f32 %v15652_v55, %v15675_v22  ;;  %v15756_v8 = vld [vmem:[#allocation8 + $0x2] ss:$0 sm:$0xff]  ;;  %v17651_v42 = vld [vmem:[#allocation21_spill] sm:$0xff] }
 0x4c0   : > { %v5988_v50 = vadd.f32 %v5960_v39, %v5871_v32  ;;  %v5472_v46 = vadd.f32 %v15644_v3, %v5355_v31  ;;  %v5473_v58 = vadd.f32 %v15648_v37, %v5356_v52  ;;  %v5573_v19 = vmul.f32 %v15664_v11, %v5796_v18  ;;  %v7073_v39 = vpop.f32.mrf.mxu0  ;;  %v7241_v32 = vpop.f32.mrf.mxu1  ;;  %v15763_v37 = vld [vmem:[%s9188_s30 + $0x5b0] sm:$0xff] }
 0x4c1   : > { %v6024_v23 = vadd.f32 %v15756_v8, %v5989_v44  ;;  %v5574_v43 = vmul.f32 %v15664_v11, %v5795_v33  ;;  %v5639_v3 = vmul.f32 %v15670_v25, %v5913_v20  ;;  %v8570_v31 = vld [vmem:[#allocation2 + $0x1cc] ss:$12 sps:$4 sm:$0xff]   ;;  %v5640_v18 = vmul.f32 %v15670_v25, %v5912_v38 }
 0x4c2   : > { %v6023_v61 = vadd.f32 %v15756_v8, %v5988_v50  ;;  %v5535_v52 = vadd.f32 %v5507_v62, %v5472_v46  ;;  %v5536_v2 = vadd.f32 %v5508_v17, %v5473_v58  ;;  %v5728_v39 = vmul.f32 %v15686_v54, %v15678_v1  ;;  %v15768_v32 = vpop.f32.mrf.mxu0  ;;  %v15770_v36 = vpop.f32.mrf.mxu1  ;;  %7170 = vmatprep.mubr.bf16.mxu0 %v8570_v31 }
 0x4c3   : > { %17636 = vst [vmem:[#allocation62_spill] sm:$0xff] %v15768_v32  ;;  %17637 = vst [vmem:[#allocation27_spill] sm:$0xff] %v15770_v36  ;;  %v6052_v44 = vmax.f32 %v6024_v23, 0.0  ;;  %v5729_v33 = vmul.f32 %v15686_v54, %v15754_v47  ;;  %v15775_v20 = vrot.slane %v15754_v47, 1  ;;  %v16790_v38 = vrot.slane %v15763_v37, 1  ;;  %7171 = vmatmul.mubr.bf16.gmra.mxu0 %v8573_v26 }
 0x4c4   : > { %v6051_v50 = vmax.f32 %v6023_v61, 0.0  ;;  %v5601_v62 = vadd.f32 %v5573_v19, %v5535_v52  ;;  %v5602_v46 = vadd.f32 %v5574_v43, %v5536_v2  ;;  %v15779_v58 = vrot.slane %v15754_v47, 2  ;;  %v7078_v17 = vpop.f32.mrf.mxu0  ;;  %v15781_v0 = vpop.f32.mrf.mxu1 }
 0x4c5   : > { %17638 = vst [vmem:[#allocation60_spill] sm:$0xff] %v15781_v0  ;;  %v6080_v23 = vmin.f32 %v6052_v44, 6.0  ;;  %v17639_v49 = vrot.slane %v15678_v1, 1  ;;  %v16791_v2 = vrot.slane %v15763_v37, 2  ;;  %v15796_v31 = vsel %vm420_vm0, %v15775_v20, %v16790_v38  ;;  %v17647_v0 = vld [vmem:[#allocation87_spill] sm:$0xff] }
 0x4c6   : > { %v6079_v61 = vmin.f32 %v6051_v50, 6.0  ;;  %v5667_v43 = vadd.f32 %v5639_v3, %v5601_v62  ;;  %v5668_v19 = vadd.f32 %v5640_v18, %v5602_v46  ;;  %v15800_v52 = vpop.f32.mrf.mxu0  ;;  %v15802_v50 = vpop.f32.mrf.mxu1  ;;  %v5846_v3 = vmul.f32 %v15708_v59, %v15796_v31 }
 0x4c7   : > { %v15788_v36 = vsel %vm420_vm0, %v17639_v49, %v15775_v20  ;;  %17640 = vst [vmem:[#allocation23_spill] sm:$0xff] %v15800_v52  ;;  %17641 = vst [vmem:[#allocation46_spill] sm:$0xff] %v15802_v50  ;;  %v8197_v44 = vpack.c.bf16 %v6080_v23, %v6080_v23  ;;  %v15811_v18 = vsel %vm538_vm1, %v15779_v58, %v16791_v2  ;;  %v17642_v17 = vrot.slane %v15678_v1, 2 }
 0x4c8   : > { %v5845_v26 = vmul.f32 %v15708_v59, %v15788_v36  ;;  %v8196_v49 = vpack.c.bf16 %v6079_v61, %v6079_v61  ;;  %v5756_v62 = vadd.f32 %v5728_v39, %v5667_v43  ;;  %v5757_v46 = vadd.f32 %v5729_v33, %v5668_v19  ;;  %v7081_v23 = vpop.f32.mrf.mxu0  ;;  %v15822_v50 = vpop.f32.mrf.mxu1 }
 0x4c9   : > { %v15818_v38 = vsel %vm538_vm1, %v17642_v17, %v15779_v58  ;;  %v5963_v61 = vmul.f32 %v15720_v29, %v15811_v18  ;;  %17643 = vst [vmem:[#allocation65_spill] sm:$0xff] %v15822_v50  ;;  %6220 = vst [vmem:[#allocation2 + $0x254] sm:$0xf] %v8197_v44  ;;  %v3609_v33 = vmul.f32 %v15555_v48, %v17604_v21  ;;  %v17646_v48 = vld [vmem:[#allocation22_spill] sm:$0xff] }
 0x4ca   : > { %6219 = vst [vmem:[#allocation2 + $0x248] sm:$0xf] %v8196_v49  ;;  %v5962_v39 = vmul.f32 %v15720_v29, %v15818_v38  ;;  %v3610_v43 = vmul.f32 %v15560_v9, %v17604_v21  ;;  %v3675_v19 = vmul.f32 %v15271_v14, %v17609_v24  ;;  %v5873_v17 = vadd.f32 %v5845_v26, %v5756_v62  ;;  %v15836_v44 = vpop.f32.mrf.mxu0  ;;  %v15838_v50 = vpop.f32.mrf.mxu1  ;;  %v17648_v21 = vld [vmem:[#allocation39_spill] sm:$0xff] }
 0x4cb   : > { %v5874_v23 = vadd.f32 %v5846_v3, %v5757_v46  ;;  %v3676_v2 = vmul.f32 %v15271_v14, %v17610_v57  ;;  %v3741_v49 = vmul.f32 %v15285_v4, %v17613_v51  ;;  %17644 = vst [vmem:[#allocation82_spill] sm:$0xff] %v15836_v44  ;;  %17645 = vst [vmem:[#allocation90_spill] sm:$0xff] %v15838_v50  ;;  %v8782_v24 = vld [vmem:[%s9188_s30 + $0x480] sm:$0xff]  ;;  %v8783_v14 = vld [vmem:[%s9188_s30 + $0x498] sm:$0xff] }
 0x4cc   : > { %v3637_v52 = vadd.f32 %v3609_v33, %v17646_v48  ;;  %v3638_v32 = vadd.f32 %v3610_v43, %v17647_v0  ;;  %v3742_v9 = vmul.f32 %v15285_v4, %v17648_v21  ;;  %v17649_v26 = vld [vmem:[#allocation19_spill] sm:$0xff]  ;;  %v5990_v62 = vadd.f32 %v5962_v39, %v5873_v17  ;;  %v7086_v53 = vpop.f32.mrf.mxu0  ;;  %v15850_v50 = vpop.f32.mrf.mxu1  ;;  %v17653_v0 = vld [vmem:[#allocation34_spill] sm:$0xff]  ;;  %v17655_v21 = vld [vmem:[#allocation77_spill] sm:$0xff] }
 0x4cd   : > { %v3804_v3 = vmul.f32 %v8782_v24, %v17649_v26  ;;  %v5991_v46 = vadd.f32 %v5963_v61, %v5874_v23  ;;  %v3805_v57 = vmul.f32 %v8783_v14, %v17649_v26  ;;  %v17650_v51 = vld [vmem:[#allocation35_spill] sm:$0xff]  ;;  %17652 = vst [vmem:[#allocation70_spill] sm:$0xff] %v15850_v50  ;;  %v3871_v43 = vmul.f32 %v17651_v42, %v17653_v0  ;;  %v17654_v4 = vld [vmem:[#allocation38_spill] sm:$0xff]  ;;  %v17656_v17 = vld [vmem:[#allocation41_spill] sm:$0xff] }
 0x4ce   : > { %v3870_v44 = vmul.f32 %v17651_v42, %v17650_v51  ;;  %v3703_v33 = vadd.f32 %v3675_v19, %v3637_v52  ;;  %v3704_v48 = vadd.f32 %v3676_v2, %v3638_v32  ;;  %v3936_v60 = vmul.f32 %v17655_v21, %v17654_v4  ;;  %v15862_v24 = vpop.f32.mrf.mxu0  ;;  %v15864_v52 = vpop.f32.mrf.mxu1  ;;  %v17659_v42 = vld [vmem:[#allocation68_spill] sm:$0xff]  ;;  %v17661_v14 = vld [vmem:[#allocation67_spill] sm:$0xff] }
 0x4cf   : > { %v6025_v39 = vadd.f32 %v15756_v8, %v5990_v62  ;;  %v6026_v61 = vadd.f32 %v15756_v8, %v5991_v46  ;;  %v3937_v23 = vmul.f32 %v17655_v21, %v17656_v17  ;;  %v4553_v53 = vmul.f32 %v15590_v56, %v15574_v13  ;;  %17657 = vst [vmem:[#allocation89_spill] sm:$0xff] %v15862_v24  ;;  %v17660_v26 = vld [vmem:[#allocation24_spill] sm:$0xff]  ;;  %v17662_v0 = vld [vmem:[#allocation79_spill] sm:$0xff]  ;;  %v17663_v17 = vld [vmem:[#allocation61_spill] sm:$0xff] }
 0x4d0   : > { %17658 = vst [vmem:[#allocation69_spill] sm:$0xff] %v15864_v52  ;;  %v3769_v32 = vadd.f32 %v3741_v49, %v3703_v33  ;;  %v3770_v2 = vadd.f32 %v3742_v9, %v3704_v48  ;;  %v4554_v19 = vmul.f32 %v17659_v42, %v15574_v13  ;;  %v4619_v62 = vmul.f32 %v17660_v26, %v17620_v35  ;;  %v7089_v9 = vpop.f32.mrf.mxu0  ;;  %v15877_v33 = vpop.f32.mrf.mxu1  ;;  %v8785_v52 = vld [vmem:[%s9188_s30 + $0x488] sm:$0xff] }
 0x4d1   : > { %v8572_v46 = vld [vmem:[#allocation2 + $0x248] ss:$12 sps:$4 sm:$0xff]   ;;  %v4581_v51 = vadd.f32 %v4553_v53, %v17661_v14  ;;  %v4620_v56 = vmul.f32 %v17660_v26, %v17621_v28  ;;  %v4685_v4 = vmul.f32 %v17662_v0, %v17622_v10  ;;  %v4686_v49 = vmul.f32 %v17662_v0, %v17623_v30  ;;  %v8784_v14 = vld [vmem:[#allocation6 + $0x1c] ss:$0 sm:$0xff]  ;;  %v8786_v26 = vld [vmem:[%s9188_s30 + $0x4a0] sm:$0xff] }
 0x4d2   : > { %v6053_v13 = vmax.f32 %v6025_v39, 0.0  ;;  %v6054_v48 = vmax.f32 %v6026_v61, 0.0  ;;  %v3832_v35 = vadd.f32 %v3804_v3, %v3769_v32  ;;  %v3833_v21 = vadd.f32 %v3805_v57, %v3770_v2  ;;  %8305 = vmatprep.mubr.bf16.mxu1 %v8572_v46  ;;  %v15882_v10 = vpop.f32.mrf.mxu0  ;;  %v15884_v50 = vpop.f32.mrf.mxu1  ;;  %v8787_v57 = vld [vmem:[#allocation6 + $0x1d] ss:$0 sm:$0xff]  ;;  %v17666_v32 = vld [vmem:[#allocation50_spill] sm:$0xff] }
 0x4d3   : > { %v4582_v53 = vadd.f32 %v4554_v19, %v17663_v17  ;;  %v4647_v42 = vadd.f32 %v4619_v62, %v4581_v51  ;;  %v4748_v28 = vmul.f32 %v8785_v52, %v8784_v14  ;;  %v4749_v24 = vmul.f32 %v8786_v26, %v8784_v14  ;;  %17664 = vst [vmem:[#allocation71_spill] sm:$0xff] %v15882_v10  ;;  %v17667_v19 = vld [vmem:[#allocation49_spill] sm:$0xff] }
 0x4d4   : > { %17665 = vst [vmem:[#allocation73_spill] sm:$0xff] %v15884_v50  ;;  %v6081_v30 = vmin.f32 %v6053_v13, 6.0  ;;  %v6082_v0 = vmin.f32 %v6054_v48, 6.0  ;;  %v3898_v9 = vadd.f32 %v3870_v44, %v3832_v35  ;;  %v3899_v39 = vadd.f32 %v3871_v43, %v3833_v21  ;;  %v7094_v46 = vpop.f32.mrf.mxu0  ;;  %v15888_v51 = vpop.f32.mrf.mxu1  ;;  %v8788_v13 = vld [vmem:[#allocation6 + $0x1e] ss:$0 sm:$0xff]  ;;  %v17668_v48 = vld [vmem:[#allocation53_spill] sm:$0xff] }
 0x4d5   : > { %v4648_v61 = vadd.f32 %v4620_v56, %v4582_v53  ;;  %v4713_v3 = vadd.f32 %v4685_v4, %v4647_v42  ;;  %v4814_v2 = vmul.f32 %v8787_v57, %v17666_v32  ;;  %v4815_v62 = vmul.f32 %v8787_v57, %v17667_v19  ;;  %v17669_v43 = vld [vmem:[#allocation52_spill] sm:$0xff] }
 0x4d6   : > { %v8198_v52 = vpack.c.bf16 %v6081_v30, %v6081_v30  ;;  %v8199_v17 = vpack.c.bf16 %v6082_v0, %v6082_v0  ;;  %v3964_v14 = vadd.f32 %v3936_v60, %v3898_v9  ;;  %v3965_v26 = vadd.f32 %v3937_v23, %v3899_v39  ;;  %v15892_v4 = vpop.f32.mrf.mxu0  ;;  %v15894_v35 = vpop.f32.mrf.mxu1 }
 0x4d7   : > { %v4714_v10 = vadd.f32 %v4686_v49, %v4648_v61  ;;  %v4776_v50 = vadd.f32 %v4748_v28, %v4713_v3  ;;  %v4880_v44 = vmul.f32 %v8788_v13, %v17668_v48  ;;  %v4881_v56 = vmul.f32 %v8788_v13, %v17669_v43 }
 0x4d8   : > { %6221 = vst [vmem:[#allocation2 + $0x260] sm:$0xf] %v8198_v52  ;;  %6222 = vst [vmem:[#allocation2 + $0x26c] sm:$0xf] %v8199_v17  ;;  %v3999_v21 = vadd.f32 %v15335_v45, %v3964_v14  ;;  %v4000_v53 = vadd.f32 %v15335_v45, %v3965_v26  ;;  %v5212_v60 = vmul.f32 %v15455_v5, %v15491_v34  ;;  %v7097_v0 = vpop.f32.mrf.mxu0  ;;  %v15910_v9 = vpop.f32.mrf.mxu1 }
 0x4d9   : > { %v5213_v23 = vmul.f32 %v15455_v5, %v15675_v22  ;;  %v4777_v49 = vadd.f32 %v4749_v24, %v4714_v10  ;;  %v4842_v42 = vadd.f32 %v4814_v2, %v4776_v50  ;;  %v15904_v28 = vmul.f32 %v15622_v27, %v15788_v36 }
 0x4da   : > { %v15908_v30 = vmul.f32 %v15640_v15, %v15818_v38  ;;  %v4027_v45 = vmax.f32 %v3999_v21, 0.0  ;;  %v4028_v39 = vmax.f32 %v4000_v53, 0.0  ;;  %v5357_v34 = vadd.f32 %v15729_v40, %v5212_v60  ;;  %v15918_v3 = vpop.f32.mrf.mxu0  ;;  %v15920_v57 = vpop.f32.mrf.mxu1  ;;  %v5698_v21 = vld [vmem:[%s9188_s30 + $0x5c8] sm:$0xff] }
 0x4db   : > { %v5358_v61 = vadd.f32 %v15732_v7, %v5213_v23  ;;  %v4843_v22 = vadd.f32 %v4815_v62, %v4777_v49  ;;  %v4908_v24 = vadd.f32 %v4880_v44, %v4842_v42  ;;  %v5509_v50 = vmul.f32 %v15652_v55, %v15678_v1  ;;  %v8789_v62 = vld [vmem:[#allocation8 + $0x1] ss:$0 sm:$0xff] }
 0x4dc   : > { %v5510_v10 = vmul.f32 %v15652_v55, %v15754_v47  ;;  %v4055_v32 = vmin.f32 %v4027_v45, 6.0  ;;  %v4056_v2 = vmin.f32 %v4028_v39, 6.0  ;;  %v5474_v40 = vadd.f32 %v15737_v41, %v5357_v34  ;;  %v7102_v14 = vpop.f32.mrf.mxu0  ;;  %v15928_v26 = vpop.f32.mrf.mxu1  ;;  %v15932_v41 = vld [vmem:[%s9188_s30 + $0x5e0] sm:$0xff] }
 0x4dd   : > { %v5475_v7 = vadd.f32 %v15744_v12, %v5358_v61  ;;  %v4909_v19 = vadd.f32 %v4881_v56, %v4843_v22  ;;  %v4943_v46 = vadd.f32 %v8789_v62, %v4908_v24  ;;  %v5575_v52 = vmul.f32 %v15664_v11, %v15788_v36 }
 0x4de   : > { %v5576_v17 = vmul.f32 %v15664_v11, %v15796_v31  ;;  %v8132_v13 = vpack.c.bf16 %v4055_v32, %v4055_v32  ;;  %v8133_v48 = vpack.c.bf16 %v4056_v2, %v4056_v2  ;;  %v5537_v44 = vadd.f32 %v5509_v50, %v5474_v40  ;;  %v15940_v60 = vpop.f32.mrf.mxu0  ;;  %v15942_v23 = vpop.f32.mrf.mxu1 }
 0x4df   : > { %v5538_v43 = vadd.f32 %v5510_v10, %v5475_v7  ;;  %v8574_v12 = vld [vmem:[#allocation2 + $0x260] ss:$12 sps:$4 sm:$0xff]   ;;  %v4944_v56 = vadd.f32 %v8789_v62, %v4909_v19  ;;  %v5641_v53 = vmul.f32 %v15670_v25, %v15818_v38  ;;  %v5642_v36 = vmul.f32 %v15670_v25, %v15811_v18 }
 0x4e0   : > { %v5730_v31 = vmul.f32 %v15686_v54, %v15763_v37  ;;  %4195 = vst [vmem:[#allocation2 + $0x1e0] sm:$0xf] %v8132_v13  ;;  %4196 = vst [vmem:[#allocation2 + $0x1ec] sm:$0xf] %v8133_v48  ;;  %v4971_v49 = vmax.f32 %v4943_v46, 0.0  ;;  %v5603_v42 = vadd.f32 %v5575_v52, %v5537_v44  ;;  %v5731_v45 = vmul.f32 %v15686_v54, %v5698_v21  ;;  %v7105_v61 = vpop.f32.mrf.mxu0  ;;  %v15946_v22 = vpop.f32.mrf.mxu1 }
 0x4e1   : > { %v5604_v0 = vadd.f32 %v5576_v17, %v5538_v43  ;;  %8306 = vmatmul.mubr.bf16.gmra.mxu1 %v8574_v12  ;;  %v4972_v39 = vmax.f32 %v4944_v56, 0.0  ;;  %v5787_v38 = vrot.slane %v5698_v21, 1  ;;  %v5788_v34 = vrot.slane %v15932_v41, 1  ;;  %v17672_v61 = vld [vmem:[#allocation66_spill] sm:$0xff] }
 0x4e2   : > { %v5904_v18 = vrot.slane %v5698_v21, 2  ;;  %v4999_v24 = vmin.f32 %v4971_v49, 6.0  ;;  %v5669_v50 = vadd.f32 %v5641_v53, %v5603_v42  ;;  %v5905_v32 = vrot.slane %v15932_v41, 2  ;;  %v15961_v52 = vpop.f32.mrf.mxu0  ;;  %v15963_v17 = vpop.f32.mrf.mxu1 }
 0x4e3   : > { %v5670_v10 = vadd.f32 %v5642_v36, %v5604_v0  ;;  %v5000_v2 = vmin.f32 %v4972_v39, 6.0  ;;  %v5791_v40 = vsel %vm420_vm0, %v5787_v38, %v5788_v34  ;;  %v17670_v7 = vrot.slane %v15763_v37, 1 }
 0x4e4   : > { %v17671_v62 = vrot.slane %v15763_v37, 2  ;;  %v8160_v14 = vpack.c.bf16 %v4999_v24, %v4999_v24  ;;  %v5758_v13 = vadd.f32 %v5730_v31, %v5669_v50  ;;  %v5848_v12 = vmul.f32 %v15708_v59, %v5791_v40  ;;  %v7110_v36 = vpop.f32.mrf.mxu0  ;;  %v15972_v49 = vpop.f32.mrf.mxu1 }
 0x4e5   : > { %v5792_v19 = vsel %vm420_vm0, %v17670_v7, %v5787_v38  ;;  %v5759_v48 = vadd.f32 %v5731_v45, %v5670_v10  ;;  %v8161_v43 = vpack.c.bf16 %v5000_v2, %v5000_v2  ;;  %v5908_v56 = vsel %vm538_vm1, %v5904_v18, %v5905_v32 }
 0x4e6   : > { %v5909_v46 = vsel %vm538_vm1, %v17671_v62, %v5904_v18  ;;  %v5847_v44 = vmul.f32 %v15708_v59, %v5792_v19  ;;  %5139 = vst [vmem:[#allocation2 + $0x1e4] sm:$0xf] %v8160_v14  ;;  %v5965_v31 = vmul.f32 %v15720_v29, %v5908_v56  ;;  %v5214_v0 = vmul.f32 %v15455_v5, %v15678_v1  ;;  %v15991_v40 = vpop.f32.mrf.mxu0 }
 0x4e7   : > { %v5964_v53 = vmul.f32 %v15720_v29, %v5909_v46  ;;  %v5215_v45 = vmul.f32 %v15455_v5, %v15754_v47  ;;  %5140 = vst [vmem:[#allocation2 + $0x1f0] sm:$0xf] %v8161_v43  ;;  %v5876_v39 = vadd.f32 %v5848_v12, %v5759_v48  ;;  %v17673_v24 = vrot.slane %v17672_v61, 1  ;;  %v15993_v5 = vpop.f32.mrf.mxu1  ;;  %v17675_v48 = vld [vmem:[#allocation78_spill] sm:$0xff] }
 0x4e8   : > { %v5875_v42 = vadd.f32 %v5847_v44, %v5758_v13  ;;  %v17674_v10 = vrot.slane %v17672_v61, 2  ;;  %v5511_v1 = vmul.f32 %v15652_v55, %v15763_v37  ;;  %v5359_v62 = vadd.f32 %v15904_v28, %v5214_v0  ;;  %v7113_v37 = vpop.f32.mrf.mxu0  ;;  %v5700_v28 = vld [vmem:[%s9188_s30 + $0x5f8] sm:$0xff] }
 0x4e9   : > { %v5299_v50 = vsel %vm420_vm0, %v15775_v20, %v17673_v24  ;;  %v5993_v14 = vadd.f32 %v5965_v31, %v5876_v39  ;;  %v5512_v13 = vmul.f32 %v15652_v55, %v5698_v21  ;;  %v16002_v44 = vpop.f32.mrf.mxu1  ;;  %v17676_v55 = vld [vmem:[#allocation75_spill] sm:$0xff]  ;;  %v5906_v61 = vrot.slane %v5700_v28, 2 }
 0x4ea   : > { %v5416_v2 = vsel %vm538_vm1, %v15779_v58, %v17674_v10  ;;  %v5992_v47 = vadd.f32 %v5964_v53, %v5875_v42  ;;  %v5332_v7 = vmul.f32 %v15622_v27, %v5299_v50  ;;  %v5545_v58 = vsel %vm420_vm0, %v5787_v38, %v17675_v48  ;;  %v16014_v36 = vpop.f32.mrf.mxu0  ;;  %v8578_v10 = vld [vmem:[#allocation2 + $0x1e0] ss:$12 sps:$4 sm:$0xff]  }
 0x4eb   : > { %v5449_v20 = vmul.f32 %v15640_v15, %v5416_v2  ;;  %v5476_v56 = vadd.f32 %v15908_v30, %v5359_v62  ;;  %v5577_v27 = vmul.f32 %v15664_v11, %v5792_v19  ;;  %v6028_v15 = vadd.f32 %v15756_v8, %v5993_v14  ;;  %v16016_v42 = vpop.f32.mrf.mxu1 }
 0x4ec   : > { %v6027_v43 = vadd.f32 %v15756_v8, %v5992_v47  ;;  %v5360_v12 = vadd.f32 %v5332_v7, %v5215_v45  ;;  %v5578_v53 = vmul.f32 %v15664_v11, %v5545_v58  ;;  %v5611_v21 = vsel %vm538_vm1, %v5904_v18, %v17676_v55  ;;  %v7118_v24 = vpop.f32.mrf.mxu0 }
 0x4ed   : > { %v5643_v38 = vmul.f32 %v15670_v25, %v5909_v46  ;;  %v5539_v30 = vadd.f32 %v5511_v1, %v5476_v56  ;;  %v5732_v19 = vmul.f32 %v15686_v54, %v15932_v41  ;;  %v6056_v45 = vmax.f32 %v6028_v15, 0.0  ;;  %v16021_v50 = vpop.f32.mrf.mxu1 }
 0x4ee   : > { %v6055_v31 = vmax.f32 %v6027_v43, 0.0  ;;  %v5477_v0 = vadd.f32 %v5449_v20, %v5360_v12  ;;  %v5644_v39 = vmul.f32 %v15670_v25, %v5611_v21  ;;  %v5789_v11 = vrot.slane %v5700_v28, 1  ;;  %v8575_v18 = vld [vmem:[#allocation2 + $0x1e4] ss:$12 sps:$4 sm:$0xff]   ;;  %v17677_v20 = vld [vmem:[#allocation59_spill] sm:$0xff]  ;;  %v16035_v48 = vpop.f32.mrf.mxu0 }
 0x4ef   : > { %v5605_v47 = vadd.f32 %v5577_v27, %v5539_v30  ;;  %v5733_v7 = vmul.f32 %v15686_v54, %v5700_v28  ;;  %v6084_v62 = vmin.f32 %v6056_v45, 6.0  ;;  %v5907_v14 = vsel %vm538_vm1, %v5905_v32, %v5906_v61  ;;  %7178 = vmatprep.mubr.bf16.mxu0 %v8575_v18  ;;  %v17678_v12 = vld [vmem:[#allocation17_spill] sm:$0xff] }
 0x4f0   : > { %v6083_v46 = vmin.f32 %v6055_v31, 6.0  ;;  %v5540_v2 = vadd.f32 %v5512_v13, %v5477_v0  ;;  %v5790_v1 = vsel %vm420_vm0, %v5788_v34, %v5789_v11  ;;  %v5817_v25 = vsel %vm420_vm0, %v5789_v11, %v17677_v20  ;;  %v16037_v13 = vpop.f32.mrf.mxu1  ;;  %7179 = vmatmul.mubr.bf16.gmra.mxu0 %v8578_v10  ;;  %v7121_v41 = vpop.f32.mrf.mxu0  ;;  %v16052_v0 = vld [vmem:[#allocation11] ss:$0 sm:$0xff]  ;;  %v17681_v18 = vld [vmem:[#allocation93_spill] sm:$0xff] }
 0x4f1   : > { %v5671_v37 = vadd.f32 %v5643_v38, %v5605_v47  ;;  %v5849_v43 = vmul.f32 %v15708_v59, %v5790_v1  ;;  %v8201_v34 = vpack.c.bf16 %v6084_v62, %v6084_v62  ;;  %v5934_v56 = vsel %vm538_vm1, %v5906_v61, %v17678_v12  ;;  %v17680_v61 = vld [vmem:[#allocation31_spill] sm:$0xff]  ;;  %v17682_v10 = vld [vmem:[#allocation88_spill] sm:$0xff] }
 0x4f2   : > { %v8200_v54 = vpack.c.bf16 %v6083_v46, %v6083_v46  ;;  %v5606_v58 = vadd.f32 %v5578_v53, %v5540_v2  ;;  %v16043_v27 = vpop.f32.mrf.mxu1  ;;  %v5850_v15 = vmul.f32 %v15708_v59, %v5817_v25  ;;  %v5966_v53 = vmul.f32 %v15720_v29, %v5907_v14  ;;  %v16047_v55 = vpop.f32.mrf.mxu0  ;;  %v17679_v59 = vld [vmem:[#allocation91_spill] sm:$0xff]  ;;  %v17683_v1 = vld [vmem:[#allocation28_spill] sm:$0xff]  ;;  %v17684_v25 = vld [vmem:[#allocation18_spill] sm:$0xff] }
 0x4f3   : > { %v5760_v28 = vadd.f32 %v5732_v19, %v5671_v37  ;;  %6224 = vst [vmem:[#allocation2 + $0x284] sm:$0xf] %v8201_v34  ;;  %v5967_v6 = vmul.f32 %v15720_v29, %v5934_v56  ;;  %v7021_v11 = vadd.f32 %v16052_v0, %v17679_v59  ;;  %v7024_v24 = vadd.f32 %v16052_v0, %v17680_v61  ;;  %v17686_v37 = vld [vmem:[#allocation76_spill] sm:$0xff]  ;;  %v17691_v59 = vld [vmem:[#allocation62_spill] sm:$0xff] }
 0x4f4   : > { %6223 = vst [vmem:[#allocation2 + $0x278] sm:$0xf] %v8200_v54  ;;  %v5672_v32 = vadd.f32 %v5644_v39, %v5606_v58  ;;  %v16049_v21 = vpop.f32.mrf.mxu1  ;;  %v7126_v30 = vpop.f32.mrf.mxu0  ;;  %v7029_v46 = vadd.f32 %v16052_v0, %v17681_v18  ;;  %v7032_v29 = vadd.f32 %v16052_v0, %v17682_v10  ;;  %v7037_v20 = vadd.f32 %v16052_v0, %v17683_v1  ;;  %v17685_v54 = vld [vmem:[#allocation42_spill] sm:$0xff]  ;;  %v17687_v34 = vld [vmem:[#allocation96_spill] sm:$0xff]  ;;  %v17692_v18 = vld [vmem:[#allocation27_spill] sm:$0xff] }
 0x4f5   : > { %v5877_v31 = vadd.f32 %v5849_v43, %v5760_v28  ;;  %v7040_v14 = vadd.f32 %v16052_v0, %v17684_v25  ;;  %v7045_v58 = vadd.f32 %v16052_v0, %v17685_v54  ;;  %v7048_v43 = vadd.f32 %v16052_v0, %v17686_v37  ;;  %v17689_v30 = vld [vmem:[#allocation95_spill] sm:$0xff] }
 0x4f6   : > { %v5761_v38 = vadd.f32 %v5733_v7, %v5672_v32  ;;  %v16054_v45 = vpop.f32.mrf.mxu1  ;;  %v16065_v2 = vpop.f32.mrf.mxu0  ;;  %v7053_v12 = vadd.f32 %v16052_v0, %v17687_v34  ;;  %v7056_v56 = vadd.f32 %v16052_v0, %v15632_v16  ;;  %v7077_v61 = vadd.f32 %v16052_v0, %v17691_v59  ;;  %v17695_v54 = vld [vmem:[#allocation23_spill] sm:$0xff] }
 0x4f7   : > { %v5994_v19 = vadd.f32 %v5966_v53, %v5877_v31  ;;  %v17688_v31 = vld [vmem:[#allocation80_spill] sm:$0xff]  ;;  %v7286_v10 = vadd.f32 %v17692_v18, %v7029_v46  ;;  %v7080_v37 = vadd.f32 %v16052_v0, %v17695_v54  ;;  %v17696_v46 = vld [vmem:[#allocation46_spill] sm:$0xff] }
 0x4f8   : > { %v5878_v39 = vadd.f32 %v5850_v15, %v5761_v38  ;;  %v16067_v47 = vpop.f32.mrf.mxu1  ;;  %v7129_v41 = vpop.f32.mrf.mxu0  ;;  %v7061_v38 = vadd.f32 %v16052_v0, %v15656_v63  ;;  %v7289_v34 = vadd.f32 %v17696_v46, %v7032_v29  ;;  %v17703_v46 = vld [vmem:[#allocation71_spill] sm:$0xff] }
 0x4f9   : > { %v6029_v62 = vadd.f32 %v15756_v8, %v5994_v19  ;;  %v17690_v19 = vld [vmem:[#allocation57_spill] sm:$0xff]  ;;  %7502 = vst [vmem:[%s16105_s26 + $0x10] sm:$0xff] %v7286_v10 }
 0x4fa   : > { %v5995_v7 = vadd.f32 %v5967_v6, %v5878_v39  ;;  %v16082_v32 = vpop.f32.mrf.mxu1  ;;  %v7064_v6 = vadd.f32 %v16052_v0, %v17688_v31  ;;  %v7069_v39 = vadd.f32 %v16052_v0, %v17689_v30  ;;  %v7072_v16 = vadd.f32 %v16052_v0, %v17690_v19  ;;  %v16096_v1 = vpop.f32.mrf.mxu0  ;;  %v17697_v41 = vld [vmem:[#allocation65_spill] sm:$0xff]  ;;  %7503 = vst [vmem:[%s16105_s26 + $0x18] sm:$0xff] %v7289_v34 }
 0x4fb   : > { %v8577_v28 = vld [vmem:[#allocation2 + $0x278] ss:$12 sps:$4 sm:$0xff]   ;;  %v6057_v53 = vmax.f32 %v6029_v62, 0.0  ;;  %v7334_v34 = vadd.f32 %v15920_v57, %v7077_v61 }
 0x4fc   : > { %v6030_v15 = vadd.f32 %v15756_v8, %v5995_v7  ;;  %v16098_v8 = vpop.f32.mrf.mxu1  ;;  %8309 = vmatprep.mubr.bf16.mxu1 %v8577_v28  ;;  %v17694_v62 = vld [vmem:[#allocation60_spill] sm:$0xff]  ;;  %v7281_v28 = vadd.f32 %v17697_v41, %v7024_v24  ;;  %v7134_v30 = vpop.f32.mrf.mxu0  ;;  %v17702_v24 = vld [vmem:[#allocation69_spill] sm:$0xff] }
 0x4fd   : > { %17693 = vst [vmem:[#allocation44_spill] sm:$0xff] %v16098_v8  ;;  %v6085_v7 = vmin.f32 %v6057_v53, 6.0  ;;  %v7278_v25 = vadd.f32 %v17694_v62, %v7021_v11  ;;  %v17699_v11 = vld [vmem:[#allocation90_spill] sm:$0xff]  ;;  %v17701_v8 = vld [vmem:[#allocation89_spill] sm:$0xff]  ;;  %v7305_v29 = vadd.f32 %v17702_v24, %v7048_v43  ;;  %v7096_v43 = vadd.f32 %v16052_v0, %v15892_v4  ;;  %7514 = vst [vmem:[%s16105_s26 + $0x70] sm:$0xff] %v7334_v34 }
 0x4fe   : > { %v6058_v63 = vmax.f32 %v6030_v15, 0.0  ;;  %v17698_v15 = vld [vmem:[#allocation82_spill] sm:$0xff]  ;;  %v7302_v31 = vadd.f32 %v17699_v11, %v7045_v58  ;;  %v16113_v19 = vpop.f32.mrf.mxu1  ;;  %v7088_v10 = vadd.f32 %v16052_v0, %v17701_v8  ;;  %7501 = vst [vmem:[%s16105_s26 + $0x8] sm:$0xff] %v7281_v28  ;;  %v7297_v58 = vadd.f32 %v15877_v33, %v7040_v14  ;;  %v7135_v41 = vpop.f32.mrf.mxu0  ;;  %v17706_v34 = vld [vmem:[#allocation32_spill] sm:$0xff] }
 0x4ff   : > { %v7085_v53 = vadd.f32 %v16052_v0, %v17698_v15  ;;  %v8202_v18 = vpack.c.bf16 %v6085_v7, %v6085_v7  ;;  %7500 = vst [vmem:[%s16105_s26] sm:$0xff] %v7278_v25  ;;  %v17700_v62 = vld [vmem:[#allocation70_spill] sm:$0xff]  ;;  %v17704_v7 = vld [vmem:[#allocation73_spill] sm:$0xff]  ;;  %v7310_v8 = vadd.f32 %v15888_v51, %v7053_v12  ;;  %v7321_v33 = vadd.f32 %v15894_v35, %v7064_v6 }
 0x500   : > { %v6086_v59 = vmin.f32 %v6058_v63, 6.0  ;;  %v7294_v54 = vadd.f32 %v17700_v62, %v7037_v20  ;;  %7506 = vst [vmem:[%s16105_s26 + $0x30] sm:$0xff] %v7302_v31  ;;  %v7093_v63 = vadd.f32 %v16052_v0, %v17703_v46  ;;  %v7318_v25 = vadd.f32 %v17704_v7, %v7061_v38  ;;  %v16127_v20 = vpop.f32.mrf.mxu1  ;;  %7507 = vst [vmem:[%s16105_s26 + $0x38] sm:$0xff] %v7305_v29  ;;  %v7137_v12 = vpop.f32.mrf.mxu0 }
 0x501   : > { %6225 = vst [vmem:[#allocation2 + $0x290] sm:$0xf] %v8202_v18  ;;  %7505 = vst [vmem:[%s16105_s26 + $0x28] sm:$0xff] %v7297_v58  ;;  %v7313_v14 = vadd.f32 %v15910_v9, %v7056_v56  ;;  %v7101_v38 = vadd.f32 %v16052_v0, %v15918_v3  ;;  %v7326_v51 = vadd.f32 %v15928_v26, %v7069_v39 }
 0x502   : > { %v8203_v15 = vpack.c.bf16 %v6086_v59, %v6086_v59  ;;  %7504 = vst [vmem:[%s16105_s26 + $0x20] sm:$0xff] %v7294_v54  ;;  %7510 = vst [vmem:[%s16105_s26 + $0x50] sm:$0xff] %v7318_v25  ;;  %v7392_v28 = vpop.f32.mrf.mxu1  ;;  %v7104_v4 = vadd.f32 %v16052_v0, %v15940_v60  ;;  %v7337_v35 = vadd.f32 %v15942_v23, %v7080_v37  ;;  %v7140_v56 = vpop.f32.mrf.mxu0 }
 0x503   : > { %7508 = vst [vmem:[%s16105_s26 + $0x40] sm:$0xff] %v7310_v8  ;;  %7511 = vst [vmem:[%s16105_s26 + $0x58] sm:$0xff] %v7321_v33  ;;  %v7329_v9 = vadd.f32 %v15946_v22, %v7072_v16  ;;  %v7109_v3 = vadd.f32 %v16052_v0, %v15961_v52  ;;  %v7350_v57 = vadd.f32 %v15963_v17, %v7093_v63 }
 0x504   : > { %6226 = vst [vmem:[#allocation2 + $0x29c] sm:$0xf] %v8203_v15  ;;  %7509 = vst [vmem:[%s16105_s26 + $0x48] sm:$0xff] %v7313_v14  ;;  %v7342_v26 = vadd.f32 %v15972_v49, %v7085_v53  ;;  %v7112_v60 = vadd.f32 %v16052_v0, %v15991_v40  ;;  %v7353_v23 = vadd.f32 %v15993_v5, %v7096_v43 }
 0x505   : > { %7512 = vst [vmem:[%s16105_s26 + $0x60] sm:$0xff] %v7326_v51  ;;  %7515 = vst [vmem:[%s16105_s26 + $0x78] sm:$0xff] %v7337_v35  ;;  %v7345_v22 = vadd.f32 %v16002_v44, %v7088_v10  ;;  %v7117_v52 = vadd.f32 %v16052_v0, %v16014_v36  ;;  %v7366_v17 = vadd.f32 %v16016_v42, %v7109_v3  ;;  %v8291_v36 = vpop.f32.mrf.mxu1  ;;  %v7142_v42 = vpop.f32.mrf.mxu0  ;;  %v17707_v35 = vld [vmem:[#allocation55_spill] sm:$0xff] }
 0x506   : > { %7513 = vst [vmem:[%s16105_s26 + $0x68] sm:$0xff] %v7329_v9  ;;  %v7358_v49 = vadd.f32 %v16021_v50, %v7101_v38  ;;  %7518 = vst [vmem:[%s16105_s26 + $0x90] sm:$0xff] %v7350_v57  ;;  %v7120_v40 = vadd.f32 %v16052_v0, %v16035_v48  ;;  %v7369_v5 = vadd.f32 %v16037_v13, %v7112_v60 }
 0x507   : > { %7516 = vst [vmem:[%s16105_s26 + $0x80] sm:$0xff] %v7342_v26  ;;  %7519 = vst [vmem:[%s16105_s26 + $0x98] sm:$0xff] %v7353_v23  ;;  %v7361_v6 = vadd.f32 %v16043_v27, %v7104_v4  ;;  %v7125_v44 = vadd.f32 %v16052_v0, %v16047_v55  ;;  %v7374_v50 = vadd.f32 %v16054_v45, %v7117_v52  ;;  %v7143_v16 = vpop.f32.mrf.mxu0 }
 0x508   : > { %7517 = vst [vmem:[%s16105_s26 + $0x88] sm:$0xff] %v7345_v22  ;;  %7522 = vst [vmem:[%s16105_s26 + $0xb0] sm:$0xff] %v7366_v17  ;;  %v7128_v39 = vadd.f32 %v16052_v0, %v16065_v2  ;;  %v7133_v48 = vadd.f32 %v16052_v0, %v16096_v1  ;;  %v7136_v13 = vadd.f32 %v16052_v0, %v7135_v41 }
 0x509   : > { %7520 = vst [vmem:[%s16105_s26 + $0xa0] sm:$0xff] %v7358_v49  ;;  %7523 = vst [vmem:[%s16105_s26 + $0xb8] sm:$0xff] %v7369_v5  ;;  %v7382_v27 = vadd.f32 %v16049_v21, %v7125_v44  ;;  %v7377_v55 = vadd.f32 %v16082_v32, %v7120_v40  ;;  %v7141_v45 = vadd.f32 %v16052_v0, %v7140_v56  ;;  %v17705_v21 = vld [vmem:[#allocation44_spill] sm:$0xff]  ;;  %v7405_v32 = vpop.f32.mrf.mxu1  ;;  %v7145_v31 = vpop.f32.mrf.mxu0 }
 0x50a   : > { %7521 = vst [vmem:[%s16105_s26 + $0xa8] sm:$0xff] %v7361_v6  ;;  %7524 = vst [vmem:[%s16105_s26 + $0xc0] sm:$0xff] %v7374_v50  ;;  %v7385_v2 = vadd.f32 %v16067_v47, %v7128_v39  ;;  %v7390_v61 = vadd.f32 %v16113_v19, %v7133_v48  ;;  %v7393_v1 = vadd.f32 %v7392_v28, %v7136_v13  ;;  %v17708_v5 = vld [vmem:[#allocation92_spill] sm:$0xff] }
 0x50b   : > { %v7144_v37 = vadd.f32 %v16052_v0, %v7143_v16  ;;  %v8579_v53 = vld [vmem:[#allocation2 + $0x290] ss:$12 sps:$4 sm:$0xff]   ;;  %7526 = vst [vmem:[%s16105_s26 + $0xd0] sm:$0xff] %v7382_v27  ;;  %7525 = vst [vmem:[%s16105_s26 + $0xc8] sm:$0xff] %v7377_v55  ;;  %v7398_v11 = vadd.f32 %v17705_v21, %v7141_v45  ;;  %v7148_v30 = vpop.f32.mrf.mxu0  ;;  %v8292_v59 = vpop.f32.mrf.mxu1  ;;  %v7189_v51 = vadd.f32 %v16052_v0, %v17706_v34  ;;  %v17710_v48 = vld [vmem:[#allocation20_spill] sm:$0xff] }
 0x50c   : > { %7527 = vst [vmem:[%s16105_s26 + $0xd8] sm:$0xff] %v7385_v2  ;;  %7528 = vst [vmem:[%s16105_s26 + $0xe0] sm:$0xff] %v7390_v61  ;;  %8310 = vmatmul.mubr.bf16.gmra.mxu1 %v8579_v53  ;;  %v7149_v19 = vadd.f32 %v16052_v0, %v7148_v30  ;;  %v7192_v9 = vadd.f32 %v16052_v0, %v17707_v35  ;;  %v7205_v6 = vadd.f32 %v16052_v0, %v17708_v5  ;;  %v17711_v45 = vld [vmem:[#allocation45_spill] sm:$0xff] }
 0x50d   : > { %7529 = vst [vmem:[%s16105_s26 + $0xe8] sm:$0xff] %v7393_v1  ;;  %v7401_v47 = vadd.f32 %v16127_v20, %v7144_v37  ;;  %7530 = vst [vmem:[%s16105_s26 + $0xf0] sm:$0xff] %v7398_v11  ;;  %v7150_v18 = vpop.f32.mrf.mxu0  ;;  %v7408_v24 = vpop.f32.mrf.mxu1  ;;  %v7208_v13 = vadd.f32 %v16052_v0, %v17710_v48  ;;  %v7200_v16 = vadd.f32 %v16052_v0, %v17711_v45 }
 0x50e   : > { %v7406_v62 = vadd.f32 %v7405_v32, %v7149_v19  ;;  %v17712_v19 = vld [vmem:[#allocation64_spill] sm:$0xff] }
 0x50f   : > { %7531 = vst [vmem:[%s16105_s26 + $0xf8] sm:$0xff] %v7401_v47  ;;  %v7151_v54 = vpop.f32.mrf.mxu0  ;;  %v8295_v43 = vpop.f32.mrf.mxu1 }
 0x510   : > { %7532 = vst [vmem:[%s16105_s26 + $0x100] sm:$0xff] %v7406_v62  ;;  %v7152_v10 = vadd.f32 %v16052_v0, %v7151_v54  ;;  %v17713_v62 = vld [vmem:[#allocation26_spill] sm:$0xff] }
 0x511   : > { %v7153_v29 = vpop.f32.mrf.mxu0  ;;  %v7421_v33 = vpop.f32.mrf.mxu1  ;;  %v7213_v54 = vadd.f32 %v16052_v0, %v17713_v62 }
 0x512   : > { %v7409_v58 = vadd.f32 %v7408_v24, %v7152_v10  ;;  %v17714_v29 = vld [vmem:[#allocation29_spill] sm:$0xff] }
 0x513   : > { %v8296_v14 = vpop.f32.mrf.mxu1 }
 0x514   : > { %7533 = vst [vmem:[%s16105_s26 + $0x108] sm:$0xff] %v7409_v58  ;;  %v7224_v58 = vadd.f32 %v16052_v0, %v17714_v29 }
 0x515   : > { %v7424_v38 = vpop.f32.mrf.mxu1 }
 0x52a   : > { %v7156_v46 = vpop.f32.mrf.mxu0 }
 0x52b   : > { %v7157_v63 = vadd.f32 %v16052_v0, %v7156_v46 }
 0x52c   : > { %v7158_v7 = vpop.f32.mrf.mxu0 }
 0x52d   : > { %v7414_v25 = vadd.f32 %v8291_v36, %v7157_v63  ;;  %v17709_v36 = vld [vmem:[#allocation86_spill] sm:$0xff]  ;;  %v17715_v7 = vld [vmem:[#allocation33_spill] sm:$0xff] }
 0x52e   : > { %v7159_v41 = vpop.f32.mrf.mxu0  ;;  %v7197_v42 = vadd.f32 %v16052_v0, %v17709_v36 }
 0x52f   : > { %7534 = vst [vmem:[%s16105_s26 + $0x110] sm:$0xff] %v7414_v25  ;;  %v7160_v20 = vadd.f32 %v16052_v0, %v7159_v41  ;;  %v7216_v25 = vadd.f32 %v16052_v0, %v17715_v7 }
 0x530   : > { %v7161_v15 = vpop.f32.mrf.mxu0 }
 0x531   : > { %v7417_v8 = vadd.f32 %v8292_v59, %v7160_v20  ;;  %v7221_v59 = vadd.f32 %v16052_v0, %v17712_v19 }
 0x533   : > { %7535 = vst [vmem:[%s16105_s26 + $0x118] sm:$0xff] %v7417_v8 }
 0x543   : > { %v8299_v12 = vpop.f32.mrf.mxu1 }
 0x544   : > { %v7446_v28 = vadd.f32 %v8299_v12, %v7189_v51 }
 0x545   : > { %v7437_v4 = vpop.f32.mrf.mxu1 }
 0x546   : > { %7542 = vst [vmem:[%s16105_s26 + $0x150] sm:$0xff] %v7446_v28  ;;  %v17716_v28 = vld [vmem:[#allocation25_spill] sm:$0xff] }
 0x547   : > { %v8300_v3 = vpop.f32.mrf.mxu1  ;;  %v7237_v35 = vadd.f32 %v16052_v0, %v17716_v28 }
 0x548   : > { %v7449_v57 = vadd.f32 %v8300_v3, %v7192_v9  ;;  %v17717_v3 = vld [vmem:[#allocation85_spill] sm:$0xff] }
 0x549   : > { %v7440_v40 = vpop.f32.mrf.mxu1 }
 0x54a   : > { %7543 = vst [vmem:[%s16105_s26 + $0x158] sm:$0xff] %v7449_v57  ;;  %v7229_v57 = vadd.f32 %v16052_v0, %v17717_v3 }
 0x55e   : > { %v7164_v26 = vpop.f32.mrf.mxu0 }
 0x55f   : > { %v7165_v60 = vadd.f32 %v16052_v0, %v7164_v26 }
 0x560   : > { %v7166_v23 = vpop.f32.mrf.mxu0 }
 0x561   : > { %v7422_v56 = vadd.f32 %v7421_v33, %v7165_v60  ;;  %v17718_v60 = vld [vmem:[#allocation81_spill] sm:$0xff] }
 0x562   : > { %v7167_v22 = vpop.f32.mrf.mxu0  ;;  %v7240_v23 = vadd.f32 %v16052_v0, %v17718_v60 }
 0x563   : > { %7536 = vst [vmem:[%s16105_s26 + $0x120] sm:$0xff] %v7422_v56  ;;  %v7168_v52 = vadd.f32 %v16052_v0, %v7167_v22 }
 0x564   : > { %v7169_v17 = vpop.f32.mrf.mxu0 }
 0x565   : > { %v7425_v49 = vadd.f32 %v7424_v38, %v7168_v52  ;;  %v17719_v52 = vld [vmem:[#allocation30_spill] sm:$0xff] }
 0x566   : > { %v7232_v17 = vadd.f32 %v16052_v0, %v17719_v52 }
 0x567   : > { %7537 = vst [vmem:[%s16105_s26 + $0x128] sm:$0xff] %v7425_v49 }
 0x578   : > { %v8303_v44 = vpop.f32.mrf.mxu1 }
 0x579   : > { %v7462_v50 = vadd.f32 %v8303_v44, %v7205_v6 }
 0x57a   : > { %v7453_v39 = vpop.f32.mrf.mxu1 }
 0x57b   : > { %7546 = vst [vmem:[%s16105_s26 + $0x170] sm:$0xff] %v7462_v50  ;;  %v7454_v27 = vadd.f32 %v7453_v39, %v7197_v42 }
 0x57c   : > { %v8304_v55 = vpop.f32.mrf.mxu1 }
 0x57d   : > { %7544 = vst [vmem:[%s16105_s26 + $0x160] sm:$0xff] %v7454_v27  ;;  %v7465_v2 = vadd.f32 %v8304_v55, %v7208_v13 }
 0x57e   : > { %v7456_v61 = vpop.f32.mrf.mxu1 }
 0x57f   : > { %7547 = vst [vmem:[%s16105_s26 + $0x178] sm:$0xff] %v7465_v2  ;;  %v7457_v1 = vadd.f32 %v7456_v61, %v7200_v16 }
 0x581   : > { %7545 = vst [vmem:[%s16105_s26 + $0x168] sm:$0xff] %v7457_v1 }
 0x583   : > { %v7172_v37 = vpop.f32.mrf.mxu0 }
 0x584   : > { %v7173_v53 = vadd.f32 %v16052_v0, %v7172_v37 }
 0x585   : > { %v7174_v21 = vpop.f32.mrf.mxu0 }
 0x586   : > { %v7430_v11 = vadd.f32 %v8295_v43, %v7173_v53 }
 0x587   : > { %v7175_v32 = vpop.f32.mrf.mxu0 }
 0x588   : > { %7538 = vst [vmem:[%s16105_s26 + $0x130] sm:$0xff] %v7430_v11  ;;  %v7176_v31 = vadd.f32 %v16052_v0, %v7175_v32 }
 0x589   : > { %v7177_v47 = vpop.f32.mrf.mxu0 }
 0x58a   : > { %v7433_v30 = vadd.f32 %v8296_v14, %v7176_v31 }
 0x58c   : > { %7539 = vst [vmem:[%s16105_s26 + $0x138] sm:$0xff] %v7433_v30 }
 0x5a1   : > { %v8307_v18 = vpop.f32.mrf.mxu1 }
 0x5a2   : > { %v7478_v10 = vadd.f32 %v8307_v18, %v7221_v59 }
 0x5a3   : > { %v7469_v24 = vpop.f32.mrf.mxu1 }
 0x5a4   : > { %7550 = vst [vmem:[%s16105_s26 + $0x190] sm:$0xff] %v7478_v10  ;;  %v7470_v46 = vadd.f32 %v7469_v24, %v7213_v54 }
 0x5a5   : > { %v8308_v63 = vpop.f32.mrf.mxu1 }
 0x5a6   : > { %7548 = vst [vmem:[%s16105_s26 + $0x180] sm:$0xff] %v7470_v46  ;;  %v7481_v41 = vadd.f32 %v8308_v63, %v7224_v58 }
 0x5a7   : > { %v7472_v20 = vpop.f32.mrf.mxu1 }
 0x5a8   : > { %7551 = vst [vmem:[%s16105_s26 + $0x198] sm:$0xff] %v7481_v41  ;;  %v7473_v15 = vadd.f32 %v7472_v20, %v7216_v25 }
 0x5aa   : > { %7549 = vst [vmem:[%s16105_s26 + $0x188] sm:$0xff] %v7473_v15 }
 0x5b0   : > { %v7180_v8 = vpop.f32.mrf.mxu0 }
 0x5b1   : > { %v7181_v43 = vadd.f32 %v16052_v0, %v7180_v8 }
 0x5b2   : > { %v7182_v33 = vpop.f32.mrf.mxu0 }
 0x5b3   : > { %v7438_v14 = vadd.f32 %v7437_v4, %v7181_v43 }
 0x5b4   : > { %v7183_v38 = vpop.f32.mrf.mxu0 }
 0x5b5   : > { %7540 = vst [vmem:[%s16105_s26 + $0x140] sm:$0xff] %v7438_v14  ;;  %v7184_v34 = vadd.f32 %v16052_v0, %v7183_v38 }
 0x5b6   : > { %v7185_v51 = vpop.f32.mrf.mxu0 }
 0x5b7   : > { %v7441_v12 = vadd.f32 %v7440_v40, %v7184_v34 }
 0x5b9   : > { %7541 = vst [vmem:[%s16105_s26 + $0x148] sm:$0xff] %v7441_v12 }
 0x5cc   : > { %v8311_v9 = vpop.f32.mrf.mxu1 }
 0x5cd   : > { %v7494_v26 = vadd.f32 %v8311_v9, %v7237_v35 }
 0x5ce   : > { %v7485_v4 = vpop.f32.mrf.mxu1 }
 0x5cf   : > { %7554 = vst [vmem:[%s16105_s26 + $0x1b0] sm:$0xff] %v7494_v26  ;;  %v7486_v56 = vadd.f32 %v7485_v4, %v7229_v57 }
 0x5d0   : > { %v8312_v22 = vpop.f32.mrf.mxu1 }
 0x5d1   : > { %7552 = vst [vmem:[%s16105_s26 + $0x1a0] sm:$0xff] %v7486_v56  ;;  %v7497_v49 = vadd.f32 %v8312_v22, %v7240_v23 }
 0x5d2   : > { %v7488_v40 = vpop.f32.mrf.mxu1 }
 0x5d3   : > { %7555 = vst [vmem:[%s16105_s26 + $0x1b8] sm:$0xff] %v7497_v49  ;;  %v7489_v5 = vadd.f32 %v7488_v40, %v7232_v17 }
 0x5d5   : > { %7553 = vst [vmem:[%s16105_s26 + $0x1a8] sm:$0xff] %v7489_v5 }
 0x5d6   : > { %8935 = shalt.err (!%p8932_p1)
}
 0x5d7   : > { %s8936_s12 = scalar_lea.hbm %s16266_s17, 7168  ;;  %s8940_s30 = scalar_lea.hbm %s16318_s5, 14336 }
 0x5d8   : > { %p8937_p10 = scmp.ne.s32.totalorder %s16266_s17, %s8936_s12  ;;  %p8941_p11 = scmp.lt.s32.totalorder %s16266_s17, %s16318_s5 }
 0x5d9   : > { %p8942_p2 = scmp.lt.s32.totalorder %s8940_s30, %s8936_s12 }
 0x5da   : > { %p8938_p8 = pnand %p8937_p10, %p17720_p12 }
 0x5db   : > { %p8943_p3 = por %p8942_p2, %p8941_p11 }
 0x5dc   : > { %p8939_p13 = pneg %p8938_p8 }
 0x5de   : > { %p8944_p4 = pnand %p8943_p3, %p8939_p13 }
 0x5e0   : > { %8947 = shalt.err (!%p8944_p4)
}
 0x5e1   : > { %s9009_s28 = smov 128   ;;  %s9010_s9 = smov 8  }
 0x5e2   : > { %8367 = dma.vmem_to_hbm [thread:$0]  (%p17720_p12), %s16268_s6, 7168, %s16266_s17, %s7557_s22, %s9009_s28, %s9009_s28, %s9010_s9  }
 0x5e3 PF: > { %s7585_s10 = sand.u32 1, %s8982_s18   ;;  %p17721_p6 = scmp.ne.s32.totalorder %s16793_s25, 0 }
 0x5e4   : > { %p17722_p7 = scmp.ge.s32.totalorder %s8994_s21, 2  ;;  %s7586_s23 = scalar_lea.sflag [#allocation5], %s7585_s10 }
 0x5e6   : > { %p8387_p9 = pnand %p17722_p7, %p17721_p6 }
 0x5e8   : > { %p8388_p0 = pneg %p8387_p9 }
 0x5ea   : > { %8977 = dma.done.wait (%p8388_p0), %s7586_s23, 7168  }
 0x5eb   : > { %8979 = vsyncadd (%p8388_p0), %s7586_s23, 4294960128  ;;  %p20_p5 = scmp.ge.s32.totalorder %s9129_s13, 4   ;;  %s17723_s18 = smov %s8986_s19 }
 0x5ec   : > { %s17724_s19 = smov %s8990_s20  ;;  %s17725_s20 = smov %s9138_s15 }
 0x5ed   : > { %s17726_s21 = smov %s9129_s13  ;;  %22 = sbr.rel (!%p20_p5) target bundleno = 7 (0x7), region = 103 }
 0x5f2   :  { %7591 = vsyncpa [#allocation4], 1 }
 0x5f3   :  { %7593 = vsyncpa [#allocation4 + $0x1], 1 }
 0x5f4   :  { %7594 = vsyncpa [#allocation7], 1 }
 0x5f5   :  { %7595 = vsyncpa [#allocation10], 1 }
 0x5f6   :  { %7596 = vsyncpa [#allocation5], 1 }
 0x5f7   :  { %7598 = vsyncpa [#allocation5 + $0x1], 1 }

</bundles_post_ra>
